<compile_context>
chip_gen: v5e
topology: v5e:2x2
jax: 0.10.0
libtpu: 0.0.40
codegen_flags: <defaults>
</compile_context>

<pallas_src>
import functools

import jax
import jax.numpy as jnp
from jax.experimental import pallas as pl
from jax.experimental.pallas import tpu as pltpu

VOCAB = 35632
SEM_DIM = 128          # semantic_feature_dim (encoder hidden / LSTM width)
DEC_HID = 32           # decoder LSTM hidden -> prediction Linear(32, 35632)
PRED_TILE_N = 9216     # lane-dense vocab tile; 4 tiles -> even 2-way split on v7x
VOCAB_PAD = pl.cdiv(VOCAB, PRED_TILE_N) * PRED_TILE_N   # 36864 (weights/bias padded)

_VMEM = pl.BlockSpec(memory_space=pltpu.MemorySpace.VMEM)
_SMEM = pl.BlockSpec(memory_space=pltpu.MemorySpace.SMEM)


# ----------------------------------------------------------------------------
# Encoder LSTM: input projection hoisted into the kernel prologue (one matmul
# over all timesteps), then the whole recurrence runs fully unrolled with h/c
# carried as values.  Rows are time-major (s, b).
# For S >> 8 move the recurrence to lax.fori_loop(unroll=4/8) or a grid axis.
# ----------------------------------------------------------------------------
def encoder_lstm_kernel(emb_ref, wih_ref, b_ref, whh_ref, out_ref,
                        *, seq_len, batch, hidden):
    # Hoisted input projection for ALL timesteps: (S*B, 128) x (128, 4H) + b.
    xp = jnp.dot(emb_ref[...].astype(jnp.bfloat16), wih_ref[...],
                 preferred_element_type=jnp.float32) + b_ref[...]   # (S*B, 4H) f32

    h = jnp.zeros((batch, hidden), jnp.float32)
    c = jnp.zeros((batch, hidden), jnp.float32)
    for t in range(seq_len):                      # static unroll; all slices static
        gates = xp[t * batch:(t + 1) * batch, :] + jnp.dot(
            h.astype(jnp.bfloat16), whh_ref[...],
            preferred_element_type=jnp.float32)                      # (B, 4H)
        i = jax.nn.sigmoid(gates[:, 0 * hidden:1 * hidden])
        f = jax.nn.sigmoid(gates[:, 1 * hidden:2 * hidden])
        g = jnp.tanh(gates[:, 2 * hidden:3 * hidden])
        o = jax.nn.sigmoid(gates[:, 3 * hidden:4 * hidden])
        c = f * c + i * g
        h = o * jnp.tanh(c)
        out_ref[t * batch:(t + 1) * batch, :] = h


def encoder_lstm(emb_tm, wih, b, whh, seq_len, batch):
    """emb_tm: (S*B, 128) f32 time-major -> (S*B, 128) f32 time-major hidden."""
    return pl.pallas_call(
        functools.partial(encoder_lstm_kernel,
                          seq_len=seq_len, batch=batch, hidden=SEM_DIM),
        out_shape=jax.ShapeDtypeStruct((seq_len * batch, SEM_DIM), jnp.float32),
        in_specs=[_VMEM] * 4,
        out_specs=_VMEM,
    )(emb_tm, wih, b, whh)


# ----------------------------------------------------------------------------
# Fused channel chain + decoder LSTM:
#   denseEncoder1(ReLU) -> denseEncoder2(ReLU) -> AWGN -> denseDecoder1(ReLU)
#   -> denseDecoder2(ReLU) -> decoder input projection -> 32-wide LSTM recurrence.
# All intermediates (incl. the lane-sparse 16-wide code and the (S*B,128)
# decoder xproj) stay in VMEM/vregs.  AWGN uses the global mean power of the
# whole code tensor (exact here since the full (N,16) code lives in this block).
# ----------------------------------------------------------------------------
def chain_decoder_kernel(inv_snr_ref, code_ref, noise_ref,
                         w1_ref, b1_ref, w2_ref, b2_ref,
                         w3_ref, b3_ref, w4_ref, b4_ref,
                         wih_ref, bih_ref, whh_ref, out_ref,
                         *, seq_len, batch, hidden):
    def mm(a, w_ref, b_ref):
        return jnp.dot(a.astype(jnp.bfloat16), w_ref[...],
                       preferred_element_type=jnp.float32) + b_ref[...]

    x = code_ref[...]                                            # (N, 128)
    h = jnp.maximum(mm(x, w1_ref, b1_ref), 0.0)                  # denseEncoder1 (N, 256)
    h = jnp.maximum(mm(h, w2_ref, b2_ref), 0.0)                  # denseEncoder2 (N, 16)
    # TODO(synk): AWGN_channel source not given; assumed noise power =
    # mean(code^2) / 10^(snr_dB/10) over the whole code tensor.
    p_noise = jnp.sum(h * h) * (inv_snr_ref[0] / float(h.size))
    h = h + noise_ref[...] * jnp.sqrt(p_noise)                   # codeWithNoise (N, 16)
    h = jnp.maximum(mm(h, w3_ref, b3_ref), 0.0)                  # denseDecoder1 (N, 256)
    h = jnp.maximum(mm(h, w4_ref, b4_ref), 0.0)                  # denseDecoder2 (N, 128)
    xp = mm(h, wih_ref, bih_ref)                                 # decoder xproj (N, 4*32)

    hs = jnp.zeros((batch, hidden), jnp.float32)
    cs = jnp.zeros((batch, hidden), jnp.float32)
    for t in range(seq_len):                                     # static unroll (S=8)
        gates = xp[t * batch:(t + 1) * batch, :] + jnp.dot(
            hs.astype(jnp.bfloat16), whh_ref[...],
            preferred_element_type=jnp.float32)                  # (B, 4*32)
        i = jax.nn.sigmoid(gates[:, 0 * hidden:1 * hidden])
        f = jax.nn.sigmoid(gates[:, 1 * hidden:2 * hidden])
        g = jnp.tanh(gates[:, 2 * hidden:3 * hidden])
        o = jax.nn.sigmoid(gates[:, 3 * hidden:4 * hidden])
        cs = f * cs + i * g
        hs = o * jnp.tanh(cs)
        out_ref[t * batch:(t + 1) * batch, :] = hs


def chain_decoder(code_tm, noise, inv_snr_lin, p, seq_len, batch):
    """code_tm: (S*B, 128) f32 time-major -> (S*B, 32) f32 time-major decoder hidden."""
    n_rows = code_tm.shape[0]
    return pl.pallas_call(
        functools.partial(chain_decoder_kernel,
                          seq_len=seq_len, batch=batch, hidden=DEC_HID),
        out_shape=jax.ShapeDtypeStruct((n_rows, DEC_HID), jnp.float32),
        in_specs=[_SMEM] + [_VMEM] * 13,
        out_specs=_VMEM,
    )(inv_snr_lin, code_tm, noise,
      p["de1_w"], p["de1_b"], p["de2_w"], p["de2_b"],
      p["dd1_w"], p["dd1_b"], p["dd2_w"], p["dd2_b"],
      p["dec_wih"], p["dec_b"], p["dec_whh"])


# ----------------------------------------------------------------------------
# Prediction Linear(32, VOCAB).  Weight/bias are padded to VOCAB_PAD so every
# *read* block is full and lane-dense, but out_shape is the exact (N, VOCAB):
# Pallas masks the ragged final output tile, so no wrapper-side un-pad slice.
# 4 even tiles -> clean 2-TC split on v7x under dimension_semantics "parallel".
# ----------------------------------------------------------------------------
def pred_kernel(x_ref, w_ref, b_ref, o_ref):
    y = jnp.dot(x_ref[...].astype(jnp.bfloat16), w_ref[...],
                preferred_element_type=jnp.float32) + b_ref[...]
    o_ref[...] = y.astype(o_ref.dtype)


def prediction(x, w, b, out_dim=VOCAB, logits_dtype=jnp.float32):
    """x: (M, 32) f32, w: (32, VOCAB_PAD) bf16, b: (1, VOCAB_PAD) f32 -> (M, VOCAB).

    Flip logits_dtype to jnp.bfloat16 to halve the logits writeback if the
    consumer (argmax / softmax-CE) accepts bf16 logits; kept f32 here to match
    the PyTorch reference numerics.
    """
    M, K = x.shape
    n_pad = w.shape[1]
    grid = (n_pad // PRED_TILE_N,)
    return pl.pallas_call(
        pred_kernel,
        out_shape=jax.ShapeDtypeStruct((M, out_dim), logits_dtype),
        grid=grid,
        in_specs=[
            pl.BlockSpec((M, K), lambda n: (0, 0)),
            pl.BlockSpec((K, PRED_TILE_N), lambda n: (0, n)),
            pl.BlockSpec((1, PRED_TILE_N), lambda n: (0, n)),
        ],
        out_specs=pl.BlockSpec((M, PRED_TILE_N), lambda n: (0, n)),
        compiler_params=pltpu.CompilerParams(
            dimension_semantics=("parallel",)),
    )(x, w, b)


# ----------------------------------------------------------------------------
# Deterministic synthetic parameters (PyTorch-like uniform(+-1/sqrt(hidden))).
# Matmul weights stored bf16 (f32 accumulation on the MXU); biases f32.
# LSTM gate weights fused along the last axis in PyTorch order [i | f | g | o].
# ----------------------------------------------------------------------------
def init_params(key):
    ks = iter(jax.random.split(key, 32))

    def u(shape, fan, dtype=jnp.float32):
        bound = 1.0 / float(fan) ** 0.5
        w = jax.random.uniform(next(ks), shape, jnp.float32, -bound, bound)
        return w.astype(dtype)

    p = {}
    p["embed"] = jax.random.normal(next(ks), (VOCAB, SEM_DIM), jnp.float32)
    # Encoder LSTM 128 -> 128 (bound 1/sqrt(128)); b = b_ih + b_hh.
    p["enc_wih"] = u((SEM_DIM, 4 * SEM_DIM), SEM_DIM, jnp.bfloat16)
    p["enc_whh"] = u((SEM_DIM, 4 * SEM_DIM), SEM_DIM, jnp.bfloat16)
    p["enc_b"] = u((1, 4 * SEM_DIM), SEM_DIM) + u((1, 4 * SEM_DIM), SEM_DIM)
    # dense encoder / decoder stacks (Linear + ReLU assumed for `dense`).
    p["de1_w"], p["de1_b"] = u((128, 256), 128, jnp.bfloat16), u((1, 256), 128)
    p["de2_w"], p["de2_b"] = u((256, 16), 256, jnp.bfloat16), u((1, 16), 256)
    p["dd1_w"], p["dd1_b"] = u((16, 256), 16, jnp.bfloat16), u((1, 256), 16)
    p["dd2_w"], p["dd2_b"] = u((256, 128), 256, jnp.bfloat16), u((1, 128), 256)
    # Decoder LSTM 128 -> 32 (bound 1/sqrt(32)); b = b_ih + b_hh.
    p["dec_wih"] = u((SEM_DIM, 4 * DEC_HID), DEC_HID, jnp.bfloat16)
    p["dec_whh"] = u((DEC_HID, 4 * DEC_HID), DEC_HID, jnp.bfloat16)
    p["dec_b"] = u((1, 4 * DEC_HID), DEC_HID) + u((1, 4 * DEC_HID), DEC_HID)
    # Prediction Linear(32, 35632); weight/bias padded with zeros to a tile multiple.
    pw = u((DEC_HID, VOCAB), DEC_HID, jnp.bfloat16)
    pb = u((1, VOCAB), DEC_HID)
    p["pred_w"] = jnp.pad(pw, ((0, 0), (0, VOCAB_PAD - VOCAB)))
    p["pred_b"] = jnp.pad(pb, ((0, 0), (0, VOCAB_PAD - VOCAB)))
    return p


# ----------------------------------------------------------------------------
# Full forward pass (mirrors SemanticCommunicationSystem.forward).
# ----------------------------------------------------------------------------
def semantic_comm_forward(params, tokens, snr, noise_key):
    B, S = tokens.shape
    N = B * S

    # Embedding gather in time-major (s, b) row order (XLA gather in the wrapper).
    emb_tm = jnp.take(params["embed"], tokens.T.reshape(-1), axis=0)    # (S*B, 128)

    # Encoder LSTM (input projection fused into the kernel prologue).
    code_tm = encoder_lstm(emb_tm, params["enc_wih"], params["enc_b"],
                           params["enc_whh"], S, B)                     # (S*B, 128)

    # dense -> AWGN -> dense -> decoder LSTM, all in one fused kernel.
    noise = jax.random.normal(noise_key, (N, 16), jnp.float32)
    inv_snr_lin = jnp.reshape(
        jnp.power(jnp.float32(10.0), -jnp.asarray(snr, jnp.float32) / 10.0), (1,))
    dec_tm = chain_decoder(code_tm, noise, inv_snr_lin, params, S, B)   # (S*B, 32)

    # Reorder the tiny (2 KiB) decoder hidden to batch-major for the vocab projection.
    hid_bf = dec_tm.reshape(S, B, DEC_HID).transpose(1, 0, 2).reshape(N, DEC_HID)

    # Prediction over the vocabulary; ragged final tile masked by Pallas (no un-pad slice).
    logits = prediction(hid_bf, params["pred_w"], params["pred_b"])     # (N, 35632) f32
    code_semantic = logits.reshape(B, S, VOCAB)                         # free reshape

    # TODO(synk): self.softmax(dim=2) is defined in __init__ but never applied in the
    # reference forward, so it is intentionally not applied here.
    return code_semantic, tokens


if __name__ == "__main__":
    B, S = 2, 8
    key = jax.random.PRNGKey(0)
    k_tok, k_noise, k_par = jax.random.split(key, 3)

    tokens = jax.random.randint(k_tok, (B, S), 0, VOCAB, dtype=jnp.int32)
    params = init_params(k_par)
    snr_db = jnp.float32(12.0)

    fwd = jax.jit(semantic_comm_forward)
    code_semantic, inputs_out = fwd(params, tokens, snr_db, k_noise)
    jax.block_until_ready(code_semantic)

    assert code_semantic.shape == (B, S, VOCAB)
    assert code_semantic.dtype == jnp.float32
    assert inputs_out.shape == (B, S)
    assert bool(jnp.all(jnp.isfinite(code_semantic)))
    print("KERNEL_OK")
</pallas_src>

<mosaic_0001>
module attributes {stable_mosaic.version = 11 : i64} {
  func.func @encoder_lstm_kernel(%arg0: memref<16x128xf32, #tpu.memory_space<vmem>>, %arg1: memref<128x512xbf16, #tpu.memory_space<vmem>>, %arg2: memref<1x512xf32, #tpu.memory_space<vmem>>, %arg3: memref<128x512xbf16, #tpu.memory_space<vmem>>, %arg4: memref<16x128xf32, #tpu.memory_space<vmem>>) attributes {dimension_semantics = [], scalar_prefetch = 0 : i64, scratch_operands = 0 : i64, tpu.core_type = #tpu.core_type<tc>} {
    %c0 = arith.constant 0 : index
    %c0_0 = arith.constant 0 : index
    %0 = vector.load %arg0[%c0, %c0_0] : memref<16x128xf32, #tpu.memory_space<vmem>>, vector<16x128xf32>
    %1 = arith.truncf %0 : vector<16x128xf32> to vector<16x128xbf16>
    %c0_1 = arith.constant 0 : index
    %c0_2 = arith.constant 0 : index
    %2 = vector.load %arg1[%c0_1, %c0_2] : memref<128x512xbf16, #tpu.memory_space<vmem>>, vector<128x512xbf16>
    %cst = arith.constant dense<0.000000e+00> : vector<16x512xf32>
    %3 = tpu.matmul %1, %2, %cst {dimension_numbers = #tpu.dot_dimension_numbers<[1], [0], [0], [1], [0, 0, 1, 1], [], []>} : vector<16x128xbf16>, vector<128x512xbf16>, vector<16x512xf32> -> vector<16x512xf32>
    %c0_3 = arith.constant 0 : index
    %c0_4 = arith.constant 0 : index
    %4 = vector.load %arg2[%c0_3, %c0_4] : memref<1x512xf32, #tpu.memory_space<vmem>>, vector<1x512xf32>
    %5 = vector.broadcast %4 : vector<1x512xf32> to vector<16x512xf32>
    %6 = arith.addf %3, %5 : vector<16x512xf32>
    %cst_5 = arith.constant 0.000000e+00 : f32
    %7 = vector.broadcast %cst_5 : f32 to vector<2x128xf32>
    %cst_6 = arith.constant 0.000000e+00 : f32
    %8 = vector.broadcast %cst_6 : f32 to vector<2x128xf32>
    %9 = vector.extract_strided_slice %6 {offsets = [0, 0], sizes = [2, 512], strides = [1, 1]} : vector<16x512xf32> to vector<2x512xf32>
    %10 = arith.truncf %7 : vector<2x128xf32> to vector<2x128xbf16>
    %c0_7 = arith.constant 0 : index
    %c0_8 = arith.constant 0 : index
    %11 = vector.load %arg3[%c0_7, %c0_8] : memref<128x512xbf16, #tpu.memory_space<vmem>>, vector<128x512xbf16>
    %cst_9 = arith.constant dense<0.000000e+00> : vector<2x512xf32>
    %12 = tpu.matmul %10, %11, %cst_9 {dimension_numbers = #tpu.dot_dimension_numbers<[1], [0], [0], [1], [0, 0, 1, 1], [], []>} : vector<2x128xbf16>, vector<128x512xbf16>, vector<2x512xf32> -> vector<2x512xf32>
    %13 = arith.addf %9, %12 : vector<2x512xf32>
    %14 = vector.extract_strided_slice %13 {offsets = [0, 0], sizes = [2, 128], strides = [1, 1]} : vector<2x512xf32> to vector<2x128xf32>
    %15 = arith.negf %14 : vector<2x128xf32>
    %16 = math.exp %15 : vector<2x128xf32>
    %cst_10 = arith.constant 1.000000e+00 : f32
    %17 = vector.broadcast %cst_10 : f32 to vector<2x128xf32>
    %18 = arith.addf %17, %16 : vector<2x128xf32>
    %19 = arith.divf %17, %18 : vector<2x128xf32>
    %20 = vector.extract_strided_slice %13 {offsets = [0, 128], sizes = [2, 128], strides = [1, 1]} : vector<2x512xf32> to vector<2x128xf32>
    %21 = arith.negf %20 : vector<2x128xf32>
    %22 = math.exp %21 : vector<2x128xf32>
    %cst_11 = arith.constant 1.000000e+00 : f32
    %23 = vector.broadcast %cst_11 : f32 to vector<2x128xf32>
    %24 = arith.addf %23, %22 : vector<2x128xf32>
    %25 = arith.divf %23, %24 : vector<2x128xf32>
    %26 = vector.extract_strided_slice %13 {offsets = [0, 256], sizes = [2, 128], strides = [1, 1]} : vector<2x512xf32> to vector<2x128xf32>
    %27 = math.tanh %26 : vector<2x128xf32>
    %28 = vector.extract_strided_slice %13 {offsets = [0, 384], sizes = [2, 128], strides = [1, 1]} : vector<2x512xf32> to vector<2x128xf32>
    %29 = arith.negf %28 : vector<2x128xf32>
    %30 = math.exp %29 : vector<2x128xf32>
    %cst_12 = arith.constant 1.000000e+00 : f32
    %31 = vector.broadcast %cst_12 : f32 to vector<2x128xf32>
    %32 = arith.addf %31, %30 : vector<2x128xf32>
    %33 = arith.divf %31, %32 : vector<2x128xf32>
    %34 = arith.mulf %25, %8 : vector<2x128xf32>
    %35 = arith.mulf %19, %27 : vector<2x128xf32>
    %36 = arith.addf %34, %35 : vector<2x128xf32>
    %37 = math.tanh %36 : vector<2x128xf32>
    %38 = arith.mulf %33, %37 : vector<2x128xf32>
    %c0_13 = arith.constant 0 : index
    %c0_14 = arith.constant 0 : index
    %39 = vector.load %arg4[%c0_13, %c0_14] : memref<16x128xf32, #tpu.memory_space<vmem>>, vector<2x128xf32>
    tpu.vector_store %arg4[%c0_13, %c0_14], %38 {strides = array<i32>} : memref<16x128xf32, #tpu.memory_space<vmem>>, vector<2x128xf32>,
    %40 = vector.extract_strided_slice %6 {offsets = [2, 0], sizes = [2, 512], strides = [1, 1]} : vector<16x512xf32> to vector<2x512xf32>
    %41 = arith.truncf %38 : vector<2x128xf32> to vector<2x128xbf16>
    %c0_15 = arith.constant 0 : index
    %c0_16 = arith.constant 0 : index
    %42 = vector.load %arg3[%c0_15, %c0_16] : memref<128x512xbf16, #tpu.memory_space<vmem>>, vector<128x512xbf16>
    %cst_17 = arith.constant dense<0.000000e+00> : vector<2x512xf32>
    %43 = tpu.matmul %41, %42, %cst_17 {dimension_numbers = #tpu.dot_dimension_numbers<[1], [0], [0], [1], [0, 0, 1, 1], [], []>} : vector<2x128xbf16>, vector<128x512xbf16>, vector<2x512xf32> -> vector<2x512xf32>
    %44 = arith.addf %40, %43 : vector<2x512xf32>
    %45 = vector.extract_strided_slice %44 {offsets = [0, 0], sizes = [2, 128], strides = [1, 1]} : vector<2x512xf32> to vector<2x128xf32>
    %46 = arith.negf %45 : vector<2x128xf32>
    %47 = math.exp %46 : vector<2x128xf32>
    %cst_18 = arith.constant 1.000000e+00 : f32
    %48 = vector.broadcast %cst_18 : f32 to vector<2x128xf32>
    %49 = arith.addf %48, %47 : vector<2x128xf32>
    %50 = arith.divf %48, %49 : vector<2x128xf32>
    %51 = vector.extract_strided_slice %44 {offsets = [0, 128], sizes = [2, 128], strides = [1, 1]} : vector<2x512xf32> to vector<2x128xf32>
    %52 = arith.negf %51 : vector<2x128xf32>
    %53 = math.exp %52 : vector<2x128xf32>
    %cst_19 = arith.constant 1.000000e+00 : f32
    %54 = vector.broadcast %cst_19 : f32 to vector<2x128xf32>
    %55 = arith.addf %54, %53 : vector<2x128xf32>
    %56 = arith.divf %54, %55 : vector<2x128xf32>
    %57 = vector.extract_strided_slice %44 {offsets = [0, 256], sizes = [2, 128], strides = [1, 1]} : vector<2x512xf32> to vector<2x128xf32>
    %58 = math.tanh %57 : vector<2x128xf32>
    %59 = vector.extract_strided_slice %44 {offsets = [0, 384], sizes = [2, 128], strides = [1, 1]} : vector<2x512xf32> to vector<2x128xf32>
    %60 = arith.negf %59 : vector<2x128xf32>
    %61 = math.exp %60 : vector<2x128xf32>
    %cst_20 = arith.constant 1.000000e+00 : f32
    %62 = vector.broadcast %cst_20 : f32 to vector<2x128xf32>
    %63 = arith.addf %62, %61 : vector<2x128xf32>
    %64 = arith.divf %62, %63 : vector<2x128xf32>
    %65 = arith.mulf %56, %36 : vector<2x128xf32>
    %66 = arith.mulf %50, %58 : vector<2x128xf32>
    %67 = arith.addf %65, %66 : vector<2x128xf32>
    %68 = math.tanh %67 : vector<2x128xf32>
    %69 = arith.mulf %64, %68 : vector<2x128xf32>
    %c2 = arith.constant 2 : index
    %c0_21 = arith.constant 0 : index
    %70 = vector.load %arg4[%c2, %c0_21] : memref<16x128xf32, #tpu.memory_space<vmem>>, vector<2x128xf32>
    tpu.vector_store %arg4[%c2, %c0_21], %69 {strides = array<i32>} : memref<16x128xf32, #tpu.memory_space<vmem>>, vector<2x128xf32>,
    %71 = vector.extract_strided_slice %6 {offsets = [4, 0], sizes = [2, 512], strides = [1, 1]} : vector<16x512xf32> to vector<2x512xf32>
    %72 = arith.truncf %69 : vector<2x128xf32> to vector<2x128xbf16>
    %c0_22 = arith.constant 0 : index
    %c0_23 = arith.constant 0 : index
    %73 = vector.load %arg3[%c0_22, %c0_23] : memref<128x512xbf16, #tpu.memory_space<vmem>>, vector<128x512xbf16>
    %cst_24 = arith.constant dense<0.000000e+00> : vector<2x512xf32>
    %74 = tpu.matmul %72, %73, %cst_24 {dimension_numbers = #tpu.dot_dimension_numbers<[1], [0], [0], [1], [0, 0, 1, 1], [], []>} : vector<2x128xbf16>, vector<128x512xbf16>, vector<2x512xf32> -> vector<2x512xf32>
    %75 = arith.addf %71, %74 : vector<2x512xf32>
    %76 = vector.extract_strided_slice %75 {offsets = [0, 0], sizes = [2, 128], strides = [1, 1]} : vector<2x512xf32> to vector<2x128xf32>
    %77 = arith.negf %76 : vector<2x128xf32>
    %78 = math.exp %77 : vector<2x128xf32>
    %cst_25 = arith.constant 1.000000e+00 : f32
    %79 = vector.broadcast %cst_25 : f32 to vector<2x128xf32>
    %80 = arith.addf %79, %78 : vector<2x128xf32>
    %81 = arith.divf %79, %80 : vector<2x128xf32>
    %82 = vector.extract_strided_slice %75 {offsets = [0, 128], sizes = [2, 128], strides = [1, 1]} : vector<2x512xf32> to vector<2x128xf32>
    %83 = arith.negf %82 : vector<2x128xf32>
    %84 = math.exp %83 : vector<2x128xf32>
    %cst_26 = arith.constant 1.000000e+00 : f32
    %85 = vector.broadcast %cst_26 : f32 to vector<2x128xf32>
    %86 = arith.addf %85, %84 : vector<2x128xf32>
    %87 = arith.divf %85, %86 : vector<2x128xf32>
    %88 = vector.extract_strided_slice %75 {offsets = [0, 256], sizes = [2, 128], strides = [1, 1]} : vector<2x512xf32> to vector<2x128xf32>
    %89 = math.tanh %88 : vector<2x128xf32>
    %90 = vector.extract_strided_slice %75 {offsets = [0, 384], sizes = [2, 128], strides = [1, 1]} : vector<2x512xf32> to vector<2x128xf32>
    %91 = arith.negf %90 : vector<2x128xf32>
    %92 = math.exp %91 : vector<2x128xf32>
    %cst_27 = arith.constant 1.000000e+00 : f32
    %93 = vector.broadcast %cst_27 : f32 to vector<2x128xf32>
    %94 = arith.addf %93, %92 : vector<2x128xf32>
    %95 = arith.divf %93, %94 : vector<2x128xf32>
    %96 = arith.mulf %87, %67 : vector<2x128xf32>
    %97 = arith.mulf %81, %89 : vector<2x128xf32>
    %98 = arith.addf %96, %97 : vector<2x128xf32>
    %99 = math.tanh %98 : vector<2x128xf32>
    %100 = arith.mulf %95, %99 : vector<2x128xf32>
    %c4 = arith.constant 4 : index
    %c0_28 = arith.constant 0 : index
    %101 = vector.load %arg4[%c4, %c0_28] : memref<16x128xf32, #tpu.memory_space<vmem>>, vector<2x128xf32>
    tpu.vector_store %arg4[%c4, %c0_28], %100 {strides = array<i32>} : memref<16x128xf32, #tpu.memory_space<vmem>>, vector<2x128xf32>,
    %102 = vector.extract_strided_slice %6 {offsets = [6, 0], sizes = [2, 512], strides = [1, 1]} : vector<16x512xf32> to vector<2x512xf32>
    %103 = arith.truncf %100 : vector<2x128xf32> to vector<2x128xbf16>
    %c0_29 = arith.constant 0 : index
    %c0_30 = arith.constant 0 : index
    %104 = vector.load %arg3[%c0_29, %c0_30] : memref<128x512xbf16, #tpu.memory_space<vmem>>, vector<128x512xbf16>
    %cst_31 = arith.constant dense<0.000000e+00> : vector<2x512xf32>
    %105 = tpu.matmul %103, %104, %cst_31 {dimension_numbers = #tpu.dot_dimension_numbers<[1], [0], [0], [1], [0, 0, 1, 1], [], []>} : vector<2x128xbf16>, vector<128x512xbf16>, vector<2x512xf32> -> vector<2x512xf32>
    %106 = arith.addf %102, %105 : vector<2x512xf32>
    %107 = vector.extract_strided_slice %106 {offsets = [0, 0], sizes = [2, 128], strides = [1, 1]} : vector<2x512xf32> to vector<2x128xf32>
    %108 = arith.negf %107 : vector<2x128xf32>
    %109 = math.exp %108 : vector<2x128xf32>
    %cst_32 = arith.constant 1.000000e+00 : f32
    %110 = vector.broadcast %cst_32 : f32 to vector<2x128xf32>
    %111 = arith.addf %110, %109 : vector<2x128xf32>
    %112 = arith.divf %110, %111 : vector<2x128xf32>
    %113 = vector.extract_strided_slice %106 {offsets = [0, 128], sizes = [2, 128], strides = [1, 1]} : vector<2x512xf32> to vector<2x128xf32>
    %114 = arith.negf %113 : vector<2x128xf32>
    %115 = math.exp %114 : vector<2x128xf32>
    %cst_33 = arith.constant 1.000000e+00 : f32
    %116 = vector.broadcast %cst_33 : f32 to vector<2x128xf32>
    %117 = arith.addf %116, %115 : vector<2x128xf32>
    %118 = arith.divf %116, %117 : vector<2x128xf32>
    %119 = vector.extract_strided_slice %106 {offsets = [0, 256], sizes = [2, 128], strides = [1, 1]} : vector<2x512xf32> to vector<2x128xf32>
    %120 = math.tanh %119 : vector<2x128xf32>
    %121 = vector.extract_strided_slice %106 {offsets = [0, 384], sizes = [2, 128], strides = [1, 1]} : vector<2x512xf32> to vector<2x128xf32>
    %122 = arith.negf %121 : vector<2x128xf32>
    %123 = math.exp %122 : vector<2x128xf32>
    %cst_34 = arith.constant 1.000000e+00 : f32
    %124 = vector.broadcast %cst_34 : f32 to vector<2x128xf32>
    %125 = arith.addf %124, %123 : vector<2x128xf32>
    %126 = arith.divf %124, %125 : vector<2x128xf32>
    %127 = arith.mulf %118, %98 : vector<2x128xf32>
    %128 = arith.mulf %112, %120 : vector<2x128xf32>
    %129 = arith.addf %127, %128 : vector<2x128xf32>
    %130 = math.tanh %129 : vector<2x128xf32>
    %131 = arith.mulf %126, %130 : vector<2x128xf32>
    %c6 = arith.constant 6 : index
    %c0_35 = arith.constant 0 : index
    %132 = vector.load %arg4[%c6, %c0_35] : memref<16x128xf32, #tpu.memory_space<vmem>>, vector<2x128xf32>
    tpu.vector_store %arg4[%c6, %c0_35], %131 {strides = array<i32>} : memref<16x128xf32, #tpu.memory_space<vmem>>, vector<2x128xf32>,
    %133 = vector.extract_strided_slice %6 {offsets = [8, 0], sizes = [2, 512], strides = [1, 1]} : vector<16x512xf32> to vector<2x512xf32>
    %134 = arith.truncf %131 : vector<2x128xf32> to vector<2x128xbf16>
    %c0_36 = arith.constant 0 : index
    %c0_37 = arith.constant 0 : index
    %135 = vector.load %arg3[%c0_36, %c0_37] : memref<128x512xbf16, #tpu.memory_space<vmem>>, vector<128x512xbf16>
    %cst_38 = arith.constant dense<0.000000e+00> : vector<2x512xf32>
    %136 = tpu.matmul %134, %135, %cst_38 {dimension_numbers = #tpu.dot_dimension_numbers<[1], [0], [0], [1], [0, 0, 1, 1], [], []>} : vector<2x128xbf16>, vector<128x512xbf16>, vector<2x512xf32> -> vector<2x512xf32>
    %137 = arith.addf %133, %136 : vector<2x512xf32>
    %138 = vector.extract_strided_slice %137 {offsets = [0, 0], sizes = [2, 128], strides = [1, 1]} : vector<2x512xf32> to vector<2x128xf32>
    %139 = arith.negf %138 : vector<2x128xf32>
    %140 = math.exp %139 : vector<2x128xf32>
    %cst_39 = arith.constant 1.000000e+00 : f32
    %141 = vector.broadcast %cst_39 : f32 to vector<2x128xf32>
    %142 = arith.addf %141, %140 : vector<2x128xf32>
    %143 = arith.divf %141, %142 : vector<2x128xf32>
    %144 = vector.extract_strided_slice %137 {offsets = [0, 128], sizes = [2, 128], strides = [1, 1]} : vector<2x512xf32> to vector<2x128xf32>
    %145 = arith.negf %144 : vector<2x128xf32>
    %146 = math.exp %145 : vector<2x128xf32>
    %cst_40 = arith.constant 1.000000e+00 : f32
    %147 = vector.broadcast %cst_40 : f32 to vector<2x128xf32>
    %148 = arith.addf %147, %146 : vector<2x128xf32>
    %149 = arith.divf %147, %148 : vector<2x128xf32>
    %150 = vector.extract_strided_slice %137 {offsets = [0, 256], sizes = [2, 128], strides = [1, 1]} : vector<2x512xf32> to vector<2x128xf32>
    %151 = math.tanh %150 : vector<2x128xf32>
    %152 = vector.extract_strided_slice %137 {offsets = [0, 384], sizes = [2, 128], strides = [1, 1]} : vector<2x512xf32> to vector<2x128xf32>
    %153 = arith.negf %152 : vector<2x128xf32>
    %154 = math.exp %153 : vector<2x128xf32>
    %cst_41 = arith.constant 1.000000e+00 : f32
    %155 = vector.broadcast %cst_41 : f32 to vector<2x128xf32>
    %156 = arith.addf %155, %154 : vector<2x128xf32>
    %157 = arith.divf %155, %156 : vector<2x128xf32>
    %158 = arith.mulf %149, %129 : vector<2x128xf32>
    %159 = arith.mulf %143, %151 : vector<2x128xf32>
    %160 = arith.addf %158, %159 : vector<2x128xf32>
    %161 = math.tanh %160 : vector<2x128xf32>
    %162 = arith.mulf %157, %161 : vector<2x128xf32>
    %c8 = arith.constant 8 : index
    %c0_42 = arith.constant 0 : index
    %163 = vector.load %arg4[%c8, %c0_42] : memref<16x128xf32, #tpu.memory_space<vmem>>, vector<2x128xf32>
    tpu.vector_store %arg4[%c8, %c0_42], %162 {strides = array<i32>} : memref<16x128xf32, #tpu.memory_space<vmem>>, vector<2x128xf32>,
    %164 = vector.extract_strided_slice %6 {offsets = [10, 0], sizes = [2, 512], strides = [1, 1]} : vector<16x512xf32> to vector<2x512xf32>
    %165 = arith.truncf %162 : vector<2x128xf32> to vector<2x128xbf16>
    %c0_43 = arith.constant 0 : index
    %c0_44 = arith.constant 0 : index
    %166 = vector.load %arg3[%c0_43, %c0_44] : memref<128x512xbf16, #tpu.memory_space<vmem>>, vector<128x512xbf16>
    %cst_45 = arith.constant dense<0.000000e+00> : vector<2x512xf32>
    %167 = tpu.matmul %165, %166, %cst_45 {dimension_numbers = #tpu.dot_dimension_numbers<[1], [0], [0], [1], [0, 0, 1, 1], [], []>} : vector<2x128xbf16>, vector<128x512xbf16>, vector<2x512xf32> -> vector<2x512xf32>
    %168 = arith.addf %164, %167 : vector<2x512xf32>
    %169 = vector.extract_strided_slice %168 {offsets = [0, 0], sizes = [2, 128], strides = [1, 1]} : vector<2x512xf32> to vector<2x128xf32>
    %170 = arith.negf %169 : vector<2x128xf32>
    %171 = math.exp %170 : vector<2x128xf32>
    %cst_46 = arith.constant 1.000000e+00 : f32
    %172 = vector.broadcast %cst_46 : f32 to vector<2x128xf32>
    %173 = arith.addf %172, %171 : vector<2x128xf32>
    %174 = arith.divf %172, %173 : vector<2x128xf32>
    %175 = vector.extract_strided_slice %168 {offsets = [0, 128], sizes = [2, 128], strides = [1, 1]} : vector<2x512xf32> to vector<2x128xf32>
    %176 = arith.negf %175 : vector<2x128xf32>
    %177 = math.exp %176 : vector<2x128xf32>
    %cst_47 = arith.constant 1.000000e+00 : f32
    %178 = vector.broadcast %cst_47 : f32 to vector<2x128xf32>
    %179 = arith.addf %178, %177 : vector<2x128xf32>
    %180 = arith.divf %178, %179 : vector<2x128xf32>
    %181 = vector.extract_strided_slice %168 {offsets = [0, 256], sizes = [2, 128], strides = [1, 1]} : vector<2x512xf32> to vector<2x128xf32>
    %182 = math.tanh %181 : vector<2x128xf32>
    %183 = vector.extract_strided_slice %168 {offsets = [0, 384], sizes = [2, 128], strides = [1, 1]} : vector<2x512xf32> to vector<2x128xf32>
    %184 = arith.negf %183 : vector<2x128xf32>
    %185 = math.exp %184 : vector<2x128xf32>
    %cst_48 = arith.constant 1.000000e+00 : f32
    %186 = vector.broadcast %cst_48 : f32 to vector<2x128xf32>
    %187 = arith.addf %186, %185 : vector<2x128xf32>
    %188 = arith.divf %186, %187 : vector<2x128xf32>
    %189 = arith.mulf %180, %160 : vector<2x128xf32>
    %190 = arith.mulf %174, %182 : vector<2x128xf32>
    %191 = arith.addf %189, %190 : vector<2x128xf32>
    %192 = math.tanh %191 : vector<2x128xf32>
    %193 = arith.mulf %188, %192 : vector<2x128xf32>
    %c10 = arith.constant 10 : index
    %c0_49 = arith.constant 0 : index
    %194 = vector.load %arg4[%c10, %c0_49] : memref<16x128xf32, #tpu.memory_space<vmem>>, vector<2x128xf32>
    tpu.vector_store %arg4[%c10, %c0_49], %193 {strides = array<i32>} : memref<16x128xf32, #tpu.memory_space<vmem>>, vector<2x128xf32>,
    %195 = vector.extract_strided_slice %6 {offsets = [12, 0], sizes = [2, 512], strides = [1, 1]} : vector<16x512xf32> to vector<2x512xf32>
    %196 = arith.truncf %193 : vector<2x128xf32> to vector<2x128xbf16>
    %c0_50 = arith.constant 0 : index
    %c0_51 = arith.constant 0 : index
    %197 = vector.load %arg3[%c0_50, %c0_51] : memref<128x512xbf16, #tpu.memory_space<vmem>>, vector<128x512xbf16>
    %cst_52 = arith.constant dense<0.000000e+00> : vector<2x512xf32>
    %198 = tpu.matmul %196, %197, %cst_52 {dimension_numbers = #tpu.dot_dimension_numbers<[1], [0], [0], [1], [0, 0, 1, 1], [], []>} : vector<2x128xbf16>, vector<128x512xbf16>, vector<2x512xf32> -> vector<2x512xf32>
    %199 = arith.addf %195, %198 : vector<2x512xf32>
    %200 = vector.extract_strided_slice %199 {offsets = [0, 0], sizes = [2, 128], strides = [1, 1]} : vector<2x512xf32> to vector<2x128xf32>
    %201 = arith.negf %200 : vector<2x128xf32>
    %202 = math.exp %201 : vector<2x128xf32>
    %cst_53 = arith.constant 1.000000e+00 : f32
    %203 = vector.broadcast %cst_53 : f32 to vector<2x128xf32>
    %204 = arith.addf %203, %202 : vector<2x128xf32>
    %205 = arith.divf %203, %204 : vector<2x128xf32>
    %206 = vector.extract_strided_slice %199 {offsets = [0, 128], sizes = [2, 128], strides = [1, 1]} : vector<2x512xf32> to vector<2x128xf32>
    %207 = arith.negf %206 : vector<2x128xf32>
    %208 = math.exp %207 : vector<2x128xf32>
    %cst_54 = arith.constant 1.000000e+00 : f32
    %209 = vector.broadcast %cst_54 : f32 to vector<2x128xf32>
    %210 = arith.addf %209, %208 : vector<2x128xf32>
    %211 = arith.divf %209, %210 : vector<2x128xf32>
    %212 = vector.extract_strided_slice %199 {offsets = [0, 256], sizes = [2, 128], strides = [1, 1]} : vector<2x512xf32> to vector<2x128xf32>
    %213 = math.tanh %212 : vector<2x128xf32>
    %214 = vector.extract_strided_slice %199 {offsets = [0, 384], sizes = [2, 128], strides = [1, 1]} : vector<2x512xf32> to vector<2x128xf32>
    %215 = arith.negf %214 : vector<2x128xf32>
    %216 = math.exp %215 : vector<2x128xf32>
    %cst_55 = arith.constant 1.000000e+00 : f32
    %217 = vector.broadcast %cst_55 : f32 to vector<2x128xf32>
    %218 = arith.addf %217, %216 : vector<2x128xf32>
    %219 = arith.divf %217, %218 : vector<2x128xf32>
    %220 = arith.mulf %211, %191 : vector<2x128xf32>
    %221 = arith.mulf %205, %213 : vector<2x128xf32>
    %222 = arith.addf %220, %221 : vector<2x128xf32>
    %223 = math.tanh %222 : vector<2x128xf32>
    %224 = arith.mulf %219, %223 : vector<2x128xf32>
    %c12 = arith.constant 12 : index
    %c0_56 = arith.constant 0 : index
    %225 = vector.load %arg4[%c12, %c0_56] : memref<16x128xf32, #tpu.memory_space<vmem>>, vector<2x128xf32>
    tpu.vector_store %arg4[%c12, %c0_56], %224 {strides = array<i32>} : memref<16x128xf32, #tpu.memory_space<vmem>>, vector<2x128xf32>,
    %226 = vector.extract_strided_slice %6 {offsets = [14, 0], sizes = [2, 512], strides = [1, 1]} : vector<16x512xf32> to vector<2x512xf32>
    %227 = arith.truncf %224 : vector<2x128xf32> to vector<2x128xbf16>
    %c0_57 = arith.constant 0 : index
    %c0_58 = arith.constant 0 : index
    %228 = vector.load %arg3[%c0_57, %c0_58] : memref<128x512xbf16, #tpu.memory_space<vmem>>, vector<128x512xbf16>
    %cst_59 = arith.constant dense<0.000000e+00> : vector<2x512xf32>
    %229 = tpu.matmul %227, %228, %cst_59 {dimension_numbers = #tpu.dot_dimension_numbers<[1], [0], [0], [1], [0, 0, 1, 1], [], []>} : vector<2x128xbf16>, vector<128x512xbf16>, vector<2x512xf32> -> vector<2x512xf32>
    %230 = arith.addf %226, %229 : vector<2x512xf32>
    %231 = vector.extract_strided_slice %230 {offsets = [0, 0], sizes = [2, 128], strides = [1, 1]} : vector<2x512xf32> to vector<2x128xf32>
    %232 = arith.negf %231 : vector<2x128xf32>
    %233 = math.exp %232 : vector<2x128xf32>
    %cst_60 = arith.constant 1.000000e+00 : f32
    %234 = vector.broadcast %cst_60 : f32 to vector<2x128xf32>
    %235 = arith.addf %234, %233 : vector<2x128xf32>
    %236 = arith.divf %234, %235 : vector<2x128xf32>
    %237 = vector.extract_strided_slice %230 {offsets = [0, 128], sizes = [2, 128], strides = [1, 1]} : vector<2x512xf32> to vector<2x128xf32>
    %238 = arith.negf %237 : vector<2x128xf32>
    %239 = math.exp %238 : vector<2x128xf32>
    %cst_61 = arith.constant 1.000000e+00 : f32
    %240 = vector.broadcast %cst_61 : f32 to vector<2x128xf32>
    %241 = arith.addf %240, %239 : vector<2x128xf32>
    %242 = arith.divf %240, %241 : vector<2x128xf32>
    %243 = vector.extract_strided_slice %230 {offsets = [0, 256], sizes = [2, 128], strides = [1, 1]} : vector<2x512xf32> to vector<2x128xf32>
    %244 = math.tanh %243 : vector<2x128xf32>
    %245 = vector.extract_strided_slice %230 {offsets = [0, 384], sizes = [2, 128], strides = [1, 1]} : vector<2x512xf32> to vector<2x128xf32>
    %246 = arith.negf %245 : vector<2x128xf32>
    %247 = math.exp %246 : vector<2x128xf32>
    %cst_62 = arith.constant 1.000000e+00 : f32
    %248 = vector.broadcast %cst_62 : f32 to vector<2x128xf32>
    %249 = arith.addf %248, %247 : vector<2x128xf32>
    %250 = arith.divf %248, %249 : vector<2x128xf32>
    %251 = arith.mulf %242, %222 : vector<2x128xf32>
    %252 = arith.mulf %236, %244 : vector<2x128xf32>
    %253 = arith.addf %251, %252 : vector<2x128xf32>
    %254 = math.tanh %253 : vector<2x128xf32>
    %255 = arith.mulf %250, %254 : vector<2x128xf32>
    %c14 = arith.constant 14 : index
    %c0_63 = arith.constant 0 : index
    %256 = vector.load %arg4[%c14, %c0_63] : memref<16x128xf32, #tpu.memory_space<vmem>>, vector<2x128xf32>
    tpu.vector_store %arg4[%c14, %c0_63], %255 {strides = array<i32>} : memref<16x128xf32, #tpu.memory_space<vmem>>, vector<2x128xf32>,
    return
  }
}

module attributes {stable_mosaic.version = 11 : i64} {
  func.func @chain_decoder_kernel(%arg0: memref<1xf32, #tpu.memory_space<smem>>, %arg1: memref<16x128xf32, #tpu.memory_space<vmem>>, %arg2: memref<16x16xf32, #tpu.memory_space<vmem>>, %arg3: memref<128x256xbf16, #tpu.memory_space<vmem>>, %arg4: memref<1x256xf32, #tpu.memory_space<vmem>>, %arg5: memref<256x16xbf16, #tpu.memory_space<vmem>>, %arg6: memref<1x16xf32, #tpu.memory_space<vmem>>, %arg7: memref<16x256xbf16, #tpu.memory_space<vmem>>, %arg8: memref<1x256xf32, #tpu.memory_space<vmem>>, %arg9: memref<256x128xbf16, #tpu.memory_space<vmem>>, %arg10: memref<1x128xf32, #tpu.memory_space<vmem>>, %arg11: memref<128x128xbf16, #tpu.memory_space<vmem>>, %arg12: memref<1x128xf32, #tpu.memory_space<vmem>>, %arg13: memref<32x128xbf16, #tpu.memory_space<vmem>>, %arg14: memref<16x32xf32, #tpu.memory_space<vmem>>) attributes {dimension_semantics = [], scalar_prefetch = 0 : i64, scratch_operands = 0 : i64, tpu.core_type = #tpu.core_type<tc>} {
    %c0 = arith.constant 0 : index
    %c0_0 = arith.constant 0 : index
    %0 = vector.load %arg1[%c0, %c0_0] : memref<16x128xf32, #tpu.memory_space<vmem>>, vector<16x128xf32>
    %1 = arith.truncf %0 : vector<16x128xf32> to vector<16x128xbf16>
    %c0_1 = arith.constant 0 : index
    %c0_2 = arith.constant 0 : index
    %2 = vector.load %arg3[%c0_1, %c0_2] : memref<128x256xbf16, #tpu.memory_space<vmem>>, vector<128x256xbf16>
    %cst = arith.constant dense<0.000000e+00> : vector<16x256xf32>
    %3 = tpu.matmul %1, %2, %cst {dimension_numbers = #tpu.dot_dimension_numbers<[1], [0], [0], [1], [0, 0, 1, 1], [], []>} : vector<16x128xbf16>, vector<128x256xbf16>, vector<16x256xf32> -> vector<16x256xf32>
    %c0_3 = arith.constant 0 : index
    %c0_4 = arith.constant 0 : index
    %4 = vector.load %arg4[%c0_3, %c0_4] : memref<1x256xf32, #tpu.memory_space<vmem>>, vector<1x256xf32>
    %5 = vector.broadcast %4 : vector<1x256xf32> to vector<16x256xf32>
    %6 = arith.addf %3, %5 : vector<16x256xf32>
    %cst_5 = arith.constant 0.000000e+00 : f32
    %7 = vector.broadcast %cst_5 : f32 to vector<16x256xf32>
    %8 = arith.maximumf %6, %7 : vector<16x256xf32>
    %9 = arith.truncf %8 : vector<16x256xf32> to vector<16x256xbf16>
    %c0_6 = arith.constant 0 : index
    %c0_7 = arith.constant 0 : index
    %10 = vector.load %arg5[%c0_6, %c0_7] : memref<256x16xbf16, #tpu.memory_space<vmem>>, vector<256x16xbf16>
    %cst_8 = arith.constant dense<0.000000e+00> : vector<16x16xf32>
    %11 = tpu.matmul %9, %10, %cst_8 {dimension_numbers = #tpu.dot_dimension_numbers<[1], [0], [0], [1], [0, 0, 1, 1], [], []>} : vector<16x256xbf16>, vector<256x16xbf16>, vector<16x16xf32> -> vector<16x16xf32>
    %c0_9 = arith.constant 0 : index
    %c0_10 = arith.constant 0 : index
    %12 = vector.load %arg6[%c0_9, %c0_10] : memref<1x16xf32, #tpu.memory_space<vmem>>, vector<1x16xf32>
    %13 = vector.broadcast %12 : vector<1x16xf32> to vector<16x16xf32>
    %14 = arith.addf %11, %13 : vector<16x16xf32>
    %cst_11 = arith.constant 0.000000e+00 : f32
    %15 = vector.broadcast %cst_11 : f32 to vector<16x16xf32>
    %16 = arith.maximumf %14, %15 : vector<16x16xf32>
    %17 = arith.mulf %16, %16 : vector<16x16xf32>
    %18 = vector.shape_cast %17 : vector<16x16xf32> to vector<1x16x16xf32>
    %cst_12 = arith.constant dense<0.000000e+00> : vector<1xf32>
    %19 = vector.multi_reduction <add>, %18, %cst_12 [1, 2] : vector<1x16x16xf32> to vector<1xf32>
    %20 = vector.shape_cast %19 : vector<1xf32> to vector<1x1x1xf32>
    %21 = vector.extract %20[0, 0, 0] : f32 from vector<1x1x1xf32>
    %c0_13 = arith.constant 0 : index
    %22 = memref.load %arg0[%c0_13] : memref<1xf32, #tpu.memory_space<smem>>
    %cst_14 = arith.constant 2.560000e+02 : f32
    %23 = arith.divf %22, %cst_14 : f32
    %24 = arith.mulf %21, %23 : f32
    %c0_15 = arith.constant 0 : index
    %c0_16 = arith.constant 0 : index
    %25 = vector.load %arg2[%c0_15, %c0_16] : memref<16x16xf32, #tpu.memory_space<vmem>>, vector<16x16xf32>
    %26 = math.sqrt %24 : f32
    %27 = vector.broadcast %26 : f32 to vector<16x16xf32>
    %28 = arith.mulf %25, %27 : vector<16x16xf32>
    %29 = arith.addf %16, %28 : vector<16x16xf32>
    %30 = arith.truncf %29 : vector<16x16xf32> to vector<16x16xbf16>
    %c0_17 = arith.constant 0 : index
    %c0_18 = arith.constant 0 : index
    %31 = vector.load %arg7[%c0_17, %c0_18] : memref<16x256xbf16, #tpu.memory_space<vmem>>, vector<16x256xbf16>
    %cst_19 = arith.constant dense<0.000000e+00> : vector<16x256xf32>
    %32 = tpu.matmul %30, %31, %cst_19 {dimension_numbers = #tpu.dot_dimension_numbers<[1], [0], [0], [1], [0, 0, 1, 1], [], []>} : vector<16x16xbf16>, vector<16x256xbf16>, vector<16x256xf32> -> vector<16x256xf32>
    %c0_20 = arith.constant 0 : index
    %c0_21 = arith.constant 0 : index
    %33 = vector.load %arg8[%c0_20, %c0_21] : memref<1x256xf32, #tpu.memory_space<vmem>>, vector<1x256xf32>
    %34 = vector.broadcast %33 : vector<1x256xf32> to vector<16x256xf32>
    %35 = arith.addf %32, %34 : vector<16x256xf32>
    %cst_22 = arith.constant 0.000000e+00 : f32
    %36 = vector.broadcast %cst_22 : f32 to vector<16x256xf32>
    %37 = arith.maximumf %35, %36 : vector<16x256xf32>
    %38 = arith.truncf %37 : vector<16x256xf32> to vector<16x256xbf16>
    %c0_23 = arith.constant 0 : index
    %c0_24 = arith.constant 0 : index
    %39 = vector.load %arg9[%c0_23, %c0_24] : memref<256x128xbf16, #tpu.memory_space<vmem>>, vector<256x128xbf16>
    %cst_25 = arith.constant dense<0.000000e+00> : vector<16x128xf32>
    %40 = tpu.matmul %38, %39, %cst_25 {dimension_numbers = #tpu.dot_dimension_numbers<[1], [0], [0], [1], [0, 0, 1, 1], [], []>} : vector<16x256xbf16>, vector<256x128xbf16>, vector<16x128xf32> -> vector<16x128xf32>
    %c0_26 = arith.constant 0 : index
    %c0_27 = arith.constant 0 : index
    %41 = vector.load %arg10[%c0_26, %c0_27] : memref<1x128xf32, #tpu.memory_space<vmem>>, vector<1x128xf32>
    %42 = vector.broadcast %41 : vector<1x128xf32> to vector<16x128xf32>
    %43 = arith.addf %40, %42 : vector<16x128xf32>
    %cst_28 = arith.constant 0.000000e+00 : f32
    %44 = vector.broadcast %cst_28 : f32 to vector<16x128xf32>
    %45 = arith.maximumf %43, %44 : vector<16x128xf32>
    %46 = arith.truncf %45 : vector<16x128xf32> to vector<16x128xbf16>
    %c0_29 = arith.constant 0 : index
    %c0_30 = arith.constant 0 : index
    %47 = vector.load %arg11[%c0_29, %c0_30] : memref<128x128xbf16, #tpu.memory_space<vmem>>, vector<128x128xbf16>
    %cst_31 = arith.constant dense<0.000000e+00> : vector<16x128xf32>
    %48 = tpu.matmul %46, %47, %cst_31 {dimension_numbers = #tpu.dot_dimension_numbers<[1], [0], [0], [1], [0, 0, 1, 1], [], []>} : vector<16x128xbf16>, vector<128x128xbf16>, vector<16x128xf32> -> vector<16x128xf32>
    %c0_32 = arith.constant 0 : index
    %c0_33 = arith.constant 0 : index
    %49 = vector.load %arg12[%c0_32, %c0_33] : memref<1x128xf32, #tpu.memory_space<vmem>>, vector<1x128xf32>
    %50 = vector.broadcast %49 : vector<1x128xf32> to vector<16x128xf32>
    %51 = arith.addf %48, %50 : vector<16x128xf32>
    %cst_34 = arith.constant 0.000000e+00 : f32
    %52 = vector.broadcast %cst_34 : f32 to vector<2x32xf32>
    %cst_35 = arith.constant 0.000000e+00 : f32
    %53 = vector.broadcast %cst_35 : f32 to vector<2x32xf32>
    %54 = vector.extract_strided_slice %51 {offsets = [0, 0], sizes = [2, 128], strides = [1, 1]} : vector<16x128xf32> to vector<2x128xf32>
    %55 = arith.truncf %52 : vector<2x32xf32> to vector<2x32xbf16>
    %c0_36 = arith.constant 0 : index
    %c0_37 = arith.constant 0 : index
    %56 = vector.load %arg13[%c0_36, %c0_37] : memref<32x128xbf16, #tpu.memory_space<vmem>>, vector<32x128xbf16>
    %cst_38 = arith.constant dense<0.000000e+00> : vector<2x128xf32>
    %57 = tpu.matmul %55, %56, %cst_38 {dimension_numbers = #tpu.dot_dimension_numbers<[1], [0], [0], [1], [0, 0, 1, 1], [], []>} : vector<2x32xbf16>, vector<32x128xbf16>, vector<2x128xf32> -> vector<2x128xf32>
    %58 = arith.addf %54, %57 : vector<2x128xf32>
    %59 = vector.extract_strided_slice %58 {offsets = [0, 0], sizes = [2, 32], strides = [1, 1]} : vector<2x128xf32> to vector<2x32xf32>
    %60 = arith.negf %59 : vector<2x32xf32>
    %61 = math.exp %60 : vector<2x32xf32>
    %cst_39 = arith.constant 1.000000e+00 : f32
    %62 = vector.broadcast %cst_39 : f32 to vector<2x32xf32>
    %63 = arith.addf %62, %61 : vector<2x32xf32>
    %64 = arith.divf %62, %63 : vector<2x32xf32>
    %65 = vector.extract_strided_slice %58 {offsets = [0, 32], sizes = [2, 32], strides = [1, 1]} : vector<2x128xf32> to vector<2x32xf32>
    %66 = arith.negf %65 : vector<2x32xf32>
    %67 = math.exp %66 : vector<2x32xf32>
    %cst_40 = arith.constant 1.000000e+00 : f32
    %68 = vector.broadcast %cst_40 : f32 to vector<2x32xf32>
    %69 = arith.addf %68, %67 : vector<2x32xf32>
    %70 = arith.divf %68, %69 : vector<2x32xf32>
    %71 = vector.extract_strided_slice %58 {offsets = [0, 64], sizes = [2, 32], strides = [1, 1]} : vector<2x128xf32> to vector<2x32xf32>
    %72 = math.tanh %71 : vector<2x32xf32>
    %73 = vector.extract_strided_slice %58 {offsets = [0, 96], sizes = [2, 32], strides = [1, 1]} : vector<2x128xf32> to vector<2x32xf32>
    %74 = arith.negf %73 : vector<2x32xf32>
    %75 = math.exp %74 : vector<2x32xf32>
    %cst_41 = arith.constant 1.000000e+00 : f32
    %76 = vector.broadcast %cst_41 : f32 to vector<2x32xf32>
    %77 = arith.addf %76, %75 : vector<2x32xf32>
    %78 = arith.divf %76, %77 : vector<2x32xf32>
    %79 = arith.mulf %70, %53 : vector<2x32xf32>
    %80 = arith.mulf %64, %72 : vector<2x32xf32>
    %81 = arith.addf %79, %80 : vector<2x32xf32>
    %82 = math.tanh %81 : vector<2x32xf32>
    %83 = arith.mulf %78, %82 : vector<2x32xf32>
    %c0_42 = arith.constant 0 : index
    %c0_43 = arith.constant 0 : index
    %84 = vector.load %arg14[%c0_42, %c0_43] : memref<16x32xf32, #tpu.memory_space<vmem>>, vector<2x32xf32>
    tpu.vector_store %arg14[%c0_42, %c0_43], %83 {strides = array<i32>} : memref<16x32xf32, #tpu.memory_space<vmem>>, vector<2x32xf32>,
    %85 = vector.extract_strided_slice %51 {offsets = [2, 0], sizes = [2, 128], strides = [1, 1]} : vector<16x128xf32> to vector<2x128xf32>
    %86 = arith.truncf %83 : vector<2x32xf32> to vector<2x32xbf16>
    %c0_44 = arith.constant 0 : index
    %c0_45 = arith.constant 0 : index
    %87 = vector.load %arg13[%c0_44, %c0_45] : memref<32x128xbf16, #tpu.memory_space<vmem>>, vector<32x128xbf16>
    %cst_46 = arith.constant dense<0.000000e+00> : vector<2x128xf32>
    %88 = tpu.matmul %86, %87, %cst_46 {dimension_numbers = #tpu.dot_dimension_numbers<[1], [0], [0], [1], [0, 0, 1, 1], [], []>} : vector<2x32xbf16>, vector<32x128xbf16>, vector<2x128xf32> -> vector<2x128xf32>
    %89 = arith.addf %85, %88 : vector<2x128xf32>
    %90 = vector.extract_strided_slice %89 {offsets = [0, 0], sizes = [2, 32], strides = [1, 1]} : vector<2x128xf32> to vector<2x32xf32>
    %91 = arith.negf %90 : vector<2x32xf32>
    %92 = math.exp %91 : vector<2x32xf32>
    %cst_47 = arith.constant 1.000000e+00 : f32
    %93 = vector.broadcast %cst_47 : f32 to vector<2x32xf32>
    %94 = arith.addf %93, %92 : vector<2x32xf32>
    %95 = arith.divf %93, %94 : vector<2x32xf32>
    %96 = vector.extract_strided_slice %89 {offsets = [0, 32], sizes = [2, 32], strides = [1, 1]} : vector<2x128xf32> to vector<2x32xf32>
    %97 = arith.negf %96 : vector<2x32xf32>
    %98 = math.exp %97 : vector<2x32xf32>
    %cst_48 = arith.constant 1.000000e+00 : f32
    %99 = vector.broadcast %cst_48 : f32 to vector<2x32xf32>
    %100 = arith.addf %99, %98 : vector<2x32xf32>
    %101 = arith.divf %99, %100 : vector<2x32xf32>
    %102 = vector.extract_strided_slice %89 {offsets = [0, 64], sizes = [2, 32], strides = [1, 1]} : vector<2x128xf32> to vector<2x32xf32>
    %103 = math.tanh %102 : vector<2x32xf32>
    %104 = vector.extract_strided_slice %89 {offsets = [0, 96], sizes = [2, 32], strides = [1, 1]} : vector<2x128xf32> to vector<2x32xf32>
    %105 = arith.negf %104 : vector<2x32xf32>
    %106 = math.exp %105 : vector<2x32xf32>
    %cst_49 = arith.constant 1.000000e+00 : f32
    %107 = vector.broadcast %cst_49 : f32 to vector<2x32xf32>
    %108 = arith.addf %107, %106 : vector<2x32xf32>
    %109 = arith.divf %107, %108 : vector<2x32xf32>
    %110 = arith.mulf %101, %81 : vector<2x32xf32>
    %111 = arith.mulf %95, %103 : vector<2x32xf32>
    %112 = arith.addf %110, %111 : vector<2x32xf32>
    %113 = math.tanh %112 : vector<2x32xf32>
    %114 = arith.mulf %109, %113 : vector<2x32xf32>
    %c2 = arith.constant 2 : index
    %c0_50 = arith.constant 0 : index
    %115 = vector.load %arg14[%c2, %c0_50] : memref<16x32xf32, #tpu.memory_space<vmem>>, vector<2x32xf32>
    tpu.vector_store %arg14[%c2, %c0_50], %114 {strides = array<i32>} : memref<16x32xf32, #tpu.memory_space<vmem>>, vector<2x32xf32>,
    %116 = vector.extract_strided_slice %51 {offsets = [4, 0], sizes = [2, 128], strides = [1, 1]} : vector<16x128xf32> to vector<2x128xf32>
    %117 = arith.truncf %114 : vector<2x32xf32> to vector<2x32xbf16>
    %c0_51 = arith.constant 0 : index
    %c0_52 = arith.constant 0 : index
    %118 = vector.load %arg13[%c0_51, %c0_52] : memref<32x128xbf16, #tpu.memory_space<vmem>>, vector<32x128xbf16>
    %cst_53 = arith.constant dense<0.000000e+00> : vector<2x128xf32>
    %119 = tpu.matmul %117, %118, %cst_53 {dimension_numbers = #tpu.dot_dimension_numbers<[1], [0], [0], [1], [0, 0, 1, 1], [], []>} : vector<2x32xbf16>, vector<32x128xbf16>, vector<2x128xf32> -> vector<2x128xf32>
    %120 = arith.addf %116, %119 : vector<2x128xf32>
    %121 = vector.extract_strided_slice %120 {offsets = [0, 0], sizes = [2, 32], strides = [1, 1]} : vector<2x128xf32> to vector<2x32xf32>
    %122 = arith.negf %121 : vector<2x32xf32>
    %123 = math.exp %122 : vector<2x32xf32>
    %cst_54 = arith.constant 1.000000e+00 : f32
    %124 = vector.broadcast %cst_54 : f32 to vector<2x32xf32>
    %125 = arith.addf %124, %123 : vector<2x32xf32>
    %126 = arith.divf %124, %125 : vector<2x32xf32>
    %127 = vector.extract_strided_slice %120 {offsets = [0, 32], sizes = [2, 32], strides = [1, 1]} : vector<2x128xf32> to vector<2x32xf32>
    %128 = arith.negf %127 : vector<2x32xf32>
    %129 = math.exp %128 : vector<2x32xf32>
    %cst_55 = arith.constant 1.000000e+00 : f32
    %130 = vector.broadcast %cst_55 : f32 to vector<2x32xf32>
    %131 = arith.addf %130, %129 : vector<2x32xf32>
    %132 = arith.divf %130, %131 : vector<2x32xf32>
    %133 = vector.extract_strided_slice %120 {offsets = [0, 64], sizes = [2, 32], strides = [1, 1]} : vector<2x128xf32> to vector<2x32xf32>
    %134 = math.tanh %133 : vector<2x32xf32>
    %135 = vector.extract_strided_slice %120 {offsets = [0, 96], sizes = [2, 32], strides = [1, 1]} : vector<2x128xf32> to vector<2x32xf32>
    %136 = arith.negf %135 : vector<2x32xf32>
    %137 = math.exp %136 : vector<2x32xf32>
    %cst_56 = arith.constant 1.000000e+00 : f32
    %138 = vector.broadcast %cst_56 : f32 to vector<2x32xf32>
    %139 = arith.addf %138, %137 : vector<2x32xf32>
    %140 = arith.divf %138, %139 : vector<2x32xf32>
    %141 = arith.mulf %132, %112 : vector<2x32xf32>
    %142 = arith.mulf %126, %134 : vector<2x32xf32>
    %143 = arith.addf %141, %142 : vector<2x32xf32>
    %144 = math.tanh %143 : vector<2x32xf32>
    %145 = arith.mulf %140, %144 : vector<2x32xf32>
    %c4 = arith.constant 4 : index
    %c0_57 = arith.constant 0 : index
    %146 = vector.load %arg14[%c4, %c0_57] : memref<16x32xf32, #tpu.memory_space<vmem>>, vector<2x32xf32>
    tpu.vector_store %arg14[%c4, %c0_57], %145 {strides = array<i32>} : memref<16x32xf32, #tpu.memory_space<vmem>>, vector<2x32xf32>,
    %147 = vector.extract_strided_slice %51 {offsets = [6, 0], sizes = [2, 128], strides = [1, 1]} : vector<16x128xf32> to vector<2x128xf32>
    %148 = arith.truncf %145 : vector<2x32xf32> to vector<2x32xbf16>
    %c0_58 = arith.constant 0 : index
    %c0_59 = arith.constant 0 : index
    %149 = vector.load %arg13[%c0_58, %c0_59] : memref<32x128xbf16, #tpu.memory_space<vmem>>, vector<32x128xbf16>
    %cst_60 = arith.constant dense<0.000000e+00> : vector<2x128xf32>
    %150 = tpu.matmul %148, %149, %cst_60 {dimension_numbers = #tpu.dot_dimension_numbers<[1], [0], [0], [1], [0, 0, 1, 1], [], []>} : vector<2x32xbf16>, vector<32x128xbf16>, vector<2x128xf32> -> vector<2x128xf32>
    %151 = arith.addf %147, %150 : vector<2x128xf32>
    %152 = vector.extract_strided_slice %151 {offsets = [0, 0], sizes = [2, 32], strides = [1, 1]} : vector<2x128xf32> to vector<2x32xf32>
    %153 = arith.negf %152 : vector<2x32xf32>
    %154 = math.exp %153 : vector<2x32xf32>
    %cst_61 = arith.constant 1.000000e+00 : f32
    %155 = vector.broadcast %cst_61 : f32 to vector<2x32xf32>
    %156 = arith.addf %155, %154 : vector<2x32xf32>
    %157 = arith.divf %155, %156 : vector<2x32xf32>
    %158 = vector.extract_strided_slice %151 {offsets = [0, 32], sizes = [2, 32], strides = [1, 1]} : vector<2x128xf32> to vector<2x32xf32>
    %159 = arith.negf %158 : vector<2x32xf32>
    %160 = math.exp %159 : vector<2x32xf32>
    %cst_62 = arith.constant 1.000000e+00 : f32
    %161 = vector.broadcast %cst_62 : f32 to vector<2x32xf32>
    %162 = arith.addf %161, %160 : vector<2x32xf32>
    %163 = arith.divf %161, %162 : vector<2x32xf32>
    %164 = vector.extract_strided_slice %151 {offsets = [0, 64], sizes = [2, 32], strides = [1, 1]} : vector<2x128xf32> to vector<2x32xf32>
    %165 = math.tanh %164 : vector<2x32xf32>
    %166 = vector.extract_strided_slice %151 {offsets = [0, 96], sizes = [2, 32], strides = [1, 1]} : vector<2x128xf32> to vector<2x32xf32>
    %167 = arith.negf %166 : vector<2x32xf32>
    %168 = math.exp %167 : vector<2x32xf32>
    %cst_63 = arith.constant 1.000000e+00 : f32
    %169 = vector.broadcast %cst_63 : f32 to vector<2x32xf32>
    %170 = arith.addf %169, %168 : vector<2x32xf32>
    %171 = arith.divf %169, %170 : vector<2x32xf32>
    %172 = arith.mulf %163, %143 : vector<2x32xf32>
    %173 = arith.mulf %157, %165 : vector<2x32xf32>
    %174 = arith.addf %172, %173 : vector<2x32xf32>
    %175 = math.tanh %174 : vector<2x32xf32>
    %176 = arith.mulf %171, %175 : vector<2x32xf32>
    %c6 = arith.constant 6 : index
    %c0_64 = arith.constant 0 : index
    %177 = vector.load %arg14[%c6, %c0_64] : memref<16x32xf32, #tpu.memory_space<vmem>>, vector<2x32xf32>
    tpu.vector_store %arg14[%c6, %c0_64], %176 {strides = array<i32>} : memref<16x32xf32, #tpu.memory_space<vmem>>, vector<2x32xf32>,
    %178 = vector.extract_strided_slice %51 {offsets = [8, 0], sizes = [2, 128], strides = [1, 1]} : vector<16x128xf32> to vector<2x128xf32>
    %179 = arith.truncf %176 : vector<2x32xf32> to vector<2x32xbf16>
    %c0_65 = arith.constant 0 : index
    %c0_66 = arith.constant 0 : index
    %180 = vector.load %arg13[%c0_65, %c0_66] : memref<32x128xbf16, #tpu.memory_space<vmem>>, vector<32x128xbf16>
    %cst_67 = arith.constant dense<0.000000e+00> : vector<2x128xf32>
    %181 = tpu.matmul %179, %180, %cst_67 {dimension_numbers = #tpu.dot_dimension_numbers<[1], [0], [0], [1], [0, 0, 1, 1], [], []>} : vector<2x32xbf16>, vector<32x128xbf16>, vector<2x128xf32> -> vector<2x128xf32>
    %182 = arith.addf %178, %181 : vector<2x128xf32>
    %183 = vector.extract_strided_slice %182 {offsets = [0, 0], sizes = [2, 32], strides = [1, 1]} : vector<2x128xf32> to vector<2x32xf32>
    %184 = arith.negf %183 : vector<2x32xf32>
    %185 = math.exp %184 : vector<2x32xf32>
    %cst_68 = arith.constant 1.000000e+00 : f32
    %186 = vector.broadcast %cst_68 : f32 to vector<2x32xf32>
    %187 = arith.addf %186, %185 : vector<2x32xf32>
    %188 = arith.divf %186, %187 : vector<2x32xf32>
    %189 = vector.extract_strided_slice %182 {offsets = [0, 32], sizes = [2, 32], strides = [1, 1]} : vector<2x128xf32> to vector<2x32xf32>
    %190 = arith.negf %189 : vector<2x32xf32>
    %191 = math.exp %190 : vector<2x32xf32>
    %cst_69 = arith.constant 1.000000e+00 : f32
    %192 = vector.broadcast %cst_69 : f32 to vector<2x32xf32>
    %193 = arith.addf %192, %191 : vector<2x32xf32>
    %194 = arith.divf %192, %193 : vector<2x32xf32>
    %195 = vector.extract_strided_slice %182 {offsets = [0, 64], sizes = [2, 32], strides = [1, 1]} : vector<2x128xf32> to vector<2x32xf32>
    %196 = math.tanh %195 : vector<2x32xf32>
    %197 = vector.extract_strided_slice %182 {offsets = [0, 96], sizes = [2, 32], strides = [1, 1]} : vector<2x128xf32> to vector<2x32xf32>
    %198 = arith.negf %197 : vector<2x32xf32>
    %199 = math.exp %198 : vector<2x32xf32>
    %cst_70 = arith.constant 1.000000e+00 : f32
    %200 = vector.broadcast %cst_70 : f32 to vector<2x32xf32>
    %201 = arith.addf %200, %199 : vector<2x32xf32>
    %202 = arith.divf %200, %201 : vector<2x32xf32>
    %203 = arith.mulf %194, %174 : vector<2x32xf32>
    %204 = arith.mulf %188, %196 : vector<2x32xf32>
    %205 = arith.addf %203, %204 : vector<2x32xf32>
    %206 = math.tanh %205 : vector<2x32xf32>
    %207 = arith.mulf %202, %206 : vector<2x32xf32>
    %c8 = arith.constant 8 : index
    %c0_71 = arith.constant 0 : index
    %208 = vector.load %arg14[%c8, %c0_71] : memref<16x32xf32, #tpu.memory_space<vmem>>, vector<2x32xf32>
    tpu.vector_store %arg14[%c8, %c0_71], %207 {strides = array<i32>} : memref<16x32xf32, #tpu.memory_space<vmem>>, vector<2x32xf32>,
    %209 = vector.extract_strided_slice %51 {offsets = [10, 0], sizes = [2, 128], strides = [1, 1]} : vector<16x128xf32> to vector<2x128xf32>
    %210 = arith.truncf %207 : vector<2x32xf32> to vector<2x32xbf16>
    %c0_72 = arith.constant 0 : index
    %c0_73 = arith.constant 0 : index
    %211 = vector.load %arg13[%c0_72, %c0_73] : memref<32x128xbf16, #tpu.memory_space<vmem>>, vector<32x128xbf16>
    %cst_74 = arith.constant dense<0.000000e+00> : vector<2x128xf32>
    %212 = tpu.matmul %210, %211, %cst_74 {dimension_numbers = #tpu.dot_dimension_numbers<[1], [0], [0], [1], [0, 0, 1, 1], [], []>} : vector<2x32xbf16>, vector<32x128xbf16>, vector<2x128xf32> -> vector<2x128xf32>
    %213 = arith.addf %209, %212 : vector<2x128xf32>
    %214 = vector.extract_strided_slice %213 {offsets = [0, 0], sizes = [2, 32], strides = [1, 1]} : vector<2x128xf32> to vector<2x32xf32>
    %215 = arith.negf %214 : vector<2x32xf32>
    %216 = math.exp %215 : vector<2x32xf32>
    %cst_75 = arith.constant 1.000000e+00 : f32
    %217 = vector.broadcast %cst_75 : f32 to vector<2x32xf32>
    %218 = arith.addf %217, %216 : vector<2x32xf32>
    %219 = arith.divf %217, %218 : vector<2x32xf32>
    %220 = vector.extract_strided_slice %213 {offsets = [0, 32], sizes = [2, 32], strides = [1, 1]} : vector<2x128xf32> to vector<2x32xf32>
    %221 = arith.negf %220 : vector<2x32xf32>
    %222 = math.exp %221 : vector<2x32xf32>
    %cst_76 = arith.constant 1.000000e+00 : f32
    %223 = vector.broadcast %cst_76 : f32 to vector<2x32xf32>
    %224 = arith.addf %223, %222 : vector<2x32xf32>
    %225 = arith.divf %223, %224 : vector<2x32xf32>
    %226 = vector.extract_strided_slice %213 {offsets = [0, 64], sizes = [2, 32], strides = [1, 1]} : vector<2x128xf32> to vector<2x32xf32>
    %227 = math.tanh %226 : vector<2x32xf32>
    %228 = vector.extract_strided_slice %213 {offsets = [0, 96], sizes = [2, 32], strides = [1, 1]} : vector<2x128xf32> to vector<2x32xf32>
    %229 = arith.negf %228 : vector<2x32xf32>
    %230 = math.exp %229 : vector<2x32xf32>
    %cst_77 = arith.constant 1.000000e+00 : f32
    %231 = vector.broadcast %cst_77 : f32 to vector<2x32xf32>
    %232 = arith.addf %231, %230 : vector<2x32xf32>
    %233 = arith.divf %231, %232 : vector<2x32xf32>
    %234 = arith.mulf %225, %205 : vector<2x32xf32>
    %235 = arith.mulf %219, %227 : vector<2x32xf32>
    %236 = arith.addf %234, %235 : vector<2x32xf32>
    %237 = math.tanh %236 : vector<2x32xf32>
    %238 = arith.mulf %233, %237 : vector<2x32xf32>
    %c10 = arith.constant 10 : index
    %c0_78 = arith.constant 0 : index
    %239 = vector.load %arg14[%c10, %c0_78] : memref<16x32xf32, #tpu.memory_space<vmem>>, vector<2x32xf32>
    tpu.vector_store %arg14[%c10, %c0_78], %238 {strides = array<i32>} : memref<16x32xf32, #tpu.memory_space<vmem>>, vector<2x32xf32>,
    %240 = vector.extract_strided_slice %51 {offsets = [12, 0], sizes = [2, 128], strides = [1, 1]} : vector<16x128xf32> to vector<2x128xf32>
    %241 = arith.truncf %238 : vector<2x32xf32> to vector<2x32xbf16>
    %c0_79 = arith.constant 0 : index
    %c0_80 = arith.constant 0 : index
    %242 = vector.load %arg13[%c0_79, %c0_80] : memref<32x128xbf16, #tpu.memory_space<vmem>>, vector<32x128xbf16>
    %cst_81 = arith.constant dense<0.000000e+00> : vector<2x128xf32>
    %243 = tpu.matmul %241, %242, %cst_81 {dimension_numbers = #tpu.dot_dimension_numbers<[1], [0], [0], [1], [0, 0, 1, 1], [], []>} : vector<2x32xbf16>, vector<32x128xbf16>, vector<2x128xf32> -> vector<2x128xf32>
    %244 = arith.addf %240, %243 : vector<2x128xf32>
    %245 = vector.extract_strided_slice %244 {offsets = [0, 0], sizes = [2, 32], strides = [1, 1]} : vector<2x128xf32> to vector<2x32xf32>
    %246 = arith.negf %245 : vector<2x32xf32>
    %247 = math.exp %246 : vector<2x32xf32>
    %cst_82 = arith.constant 1.000000e+00 : f32
    %248 = vector.broadcast %cst_82 : f32 to vector<2x32xf32>
    %249 = arith.addf %248, %247 : vector<2x32xf32>
    %250 = arith.divf %248, %249 : vector<2x32xf32>
    %251 = vector.extract_strided_slice %244 {offsets = [0, 32], sizes = [2, 32], strides = [1, 1]} : vector<2x128xf32> to vector<2x32xf32>
    %252 = arith.negf %251 : vector<2x32xf32>
    %253 = math.exp %252 : vector<2x32xf32>
    %cst_83 = arith.constant 1.000000e+00 : f32
    %254 = vector.broadcast %cst_83 : f32 to vector<2x32xf32>
    %255 = arith.addf %254, %253 : vector<2x32xf32>
    %256 = arith.divf %254, %255 : vector<2x32xf32>
    %257 = vector.extract_strided_slice %244 {offsets = [0, 64], sizes = [2, 32], strides = [1, 1]} : vector<2x128xf32> to vector<2x32xf32>
    %258 = math.tanh %257 : vector<2x32xf32>
    %259 = vector.extract_strided_slice %244 {offsets = [0, 96], sizes = [2, 32], strides = [1, 1]} : vector<2x128xf32> to vector<2x32xf32>
    %260 = arith.negf %259 : vector<2x32xf32>
    %261 = math.exp %260 : vector<2x32xf32>
    %cst_84 = arith.constant 1.000000e+00 : f32
    %262 = vector.broadcast %cst_84 : f32 to vector<2x32xf32>
    %263 = arith.addf %262, %261 : vector<2x32xf32>
    %264 = arith.divf %262, %263 : vector<2x32xf32>
    %265 = arith.mulf %256, %236 : vector<2x32xf32>
    %266 = arith.mulf %250, %258 : vector<2x32xf32>
    %267 = arith.addf %265, %266 : vector<2x32xf32>
    %268 = math.tanh %267 : vector<2x32xf32>
    %269 = arith.mulf %264, %268 : vector<2x32xf32>
    %c12 = arith.constant 12 : index
    %c0_85 = arith.constant 0 : index
    %270 = vector.load %arg14[%c12, %c0_85] : memref<16x32xf32, #tpu.memory_space<vmem>>, vector<2x32xf32>
    tpu.vector_store %arg14[%c12, %c0_85], %269 {strides = array<i32>} : memref<16x32xf32, #tpu.memory_space<vmem>>, vector<2x32xf32>,
    %271 = vector.extract_strided_slice %51 {offsets = [14, 0], sizes = [2, 128], strides = [1, 1]} : vector<16x128xf32> to vector<2x128xf32>
    %272 = arith.truncf %269 : vector<2x32xf32> to vector<2x32xbf16>
    %c0_86 = arith.constant 0 : index
    %c0_87 = arith.constant 0 : index
    %273 = vector.load %arg13[%c0_86, %c0_87] : memref<32x128xbf16, #tpu.memory_space<vmem>>, vector<32x128xbf16>
    %cst_88 = arith.constant dense<0.000000e+00> : vector<2x128xf32>
    %274 = tpu.matmul %272, %273, %cst_88 {dimension_numbers = #tpu.dot_dimension_numbers<[1], [0], [0], [1], [0, 0, 1, 1], [], []>} : vector<2x32xbf16>, vector<32x128xbf16>, vector<2x128xf32> -> vector<2x128xf32>
    %275 = arith.addf %271, %274 : vector<2x128xf32>
    %276 = vector.extract_strided_slice %275 {offsets = [0, 0], sizes = [2, 32], strides = [1, 1]} : vector<2x128xf32> to vector<2x32xf32>
    %277 = arith.negf %276 : vector<2x32xf32>
    %278 = math.exp %277 : vector<2x32xf32>
    %cst_89 = arith.constant 1.000000e+00 : f32
    %279 = vector.broadcast %cst_89 : f32 to vector<2x32xf32>
    %280 = arith.addf %279, %278 : vector<2x32xf32>
    %281 = arith.divf %279, %280 : vector<2x32xf32>
    %282 = vector.extract_strided_slice %275 {offsets = [0, 32], sizes = [2, 32], strides = [1, 1]} : vector<2x128xf32> to vector<2x32xf32>
    %283 = arith.negf %282 : vector<2x32xf32>
    %284 = math.exp %283 : vector<2x32xf32>
    %cst_90 = arith.constant 1.000000e+00 : f32
    %285 = vector.broadcast %cst_90 : f32 to vector<2x32xf32>
    %286 = arith.addf %285, %284 : vector<2x32xf32>
    %287 = arith.divf %285, %286 : vector<2x32xf32>
    %288 = vector.extract_strided_slice %275 {offsets = [0, 64], sizes = [2, 32], strides = [1, 1]} : vector<2x128xf32> to vector<2x32xf32>
    %289 = math.tanh %288 : vector<2x32xf32>
    %290 = vector.extract_strided_slice %275 {offsets = [0, 96], sizes = [2, 32], strides = [1, 1]} : vector<2x128xf32> to vector<2x32xf32>
    %291 = arith.negf %290 : vector<2x32xf32>
    %292 = math.exp %291 : vector<2x32xf32>
    %cst_91 = arith.constant 1.000000e+00 : f32
    %293 = vector.broadcast %cst_91 : f32 to vector<2x32xf32>
    %294 = arith.addf %293, %292 : vector<2x32xf32>
    %295 = arith.divf %293, %294 : vector<2x32xf32>
    %296 = arith.mulf %287, %267 : vector<2x32xf32>
    %297 = arith.mulf %281, %289 : vector<2x32xf32>
    %298 = arith.addf %296, %297 : vector<2x32xf32>
    %299 = math.tanh %298 : vector<2x32xf32>
    %300 = arith.mulf %295, %299 : vector<2x32xf32>
    %c14 = arith.constant 14 : index
    %c0_92 = arith.constant 0 : index
    %301 = vector.load %arg14[%c14, %c0_92] : memref<16x32xf32, #tpu.memory_space<vmem>>, vector<2x32xf32>
    tpu.vector_store %arg14[%c14, %c0_92], %300 {strides = array<i32>} : memref<16x32xf32, #tpu.memory_space<vmem>>, vector<2x32xf32>,
    return
  }
}

module attributes {stable_mosaic.version = 11 : i64} {
  func.func @pred_kernel(%arg0: i32, %arg1: memref<16x32xf32, #tpu.memory_space<vmem>>, %arg2: memref<32x9216xbf16, #tpu.memory_space<vmem>>, %arg3: memref<1x9216xf32, #tpu.memory_space<vmem>>, %arg4: memref<16x9216xf32, #tpu.memory_space<vmem>>) attributes {dimension_semantics = [#tpu.dimension_semantics<parallel>], iteration_bounds = array<i64: 4>, scalar_prefetch = 0 : i64, scratch_operands = 0 : i64, tpu.core_type = #tpu.core_type<tc>, window_params = [{pipeline_mode = #tpu.pipeline_mode<synchronous>, transform_indices = @transform_0, window_bounds = array<i64: 16, 32>}, {transform_indices = @transform_1, window_bounds = array<i64: 32, 9216>}, {transform_indices = @transform_2, window_bounds = array<i64: 1, 9216>}, {transform_indices = @transform_3, window_bounds = array<i64: 16, 9216>}]} {
    %c0 = arith.constant 0 : index
    %c0_0 = arith.constant 0 : index
    %0 = vector.load %arg1[%c0, %c0_0] : memref<16x32xf32, #tpu.memory_space<vmem>>, vector<16x32xf32>
    %1 = arith.truncf %0 : vector<16x32xf32> to vector<16x32xbf16>
    %c0_1 = arith.constant 0 : index
    %c0_2 = arith.constant 0 : index
    %2 = vector.load %arg2[%c0_1, %c0_2] : memref<32x9216xbf16, #tpu.memory_space<vmem>>, vector<32x9216xbf16>
    %cst = arith.constant dense<0.000000e+00> : vector<16x9216xf32>
    %3 = tpu.matmul %1, %2, %cst {dimension_numbers = #tpu.dot_dimension_numbers<[1], [0], [0], [1], [0, 0, 1, 1], [], []>} : vector<16x32xbf16>, vector<32x9216xbf16>, vector<16x9216xf32> -> vector<16x9216xf32>
    %c0_3 = arith.constant 0 : index
    %c0_4 = arith.constant 0 : index
    %4 = vector.load %arg3[%c0_3, %c0_4] : memref<1x9216xf32, #tpu.memory_space<vmem>>, vector<1x9216xf32>
    %5 = vector.broadcast %4 : vector<1x9216xf32> to vector<16x9216xf32>
    %6 = arith.addf %3, %5 : vector<16x9216xf32>
    %c0_5 = arith.constant 0 : index
    %c0_6 = arith.constant 0 : index
    %7 = vector.load %arg4[%c0_5, %c0_6] : memref<16x9216xf32, #tpu.memory_space<vmem>>, vector<16x9216xf32>
    tpu.vector_store %arg4[%c0_5, %c0_6], %6 {strides = array<i32>} : memref<16x9216xf32, #tpu.memory_space<vmem>>, vector<16x9216xf32>,
    return
  }
  func.func @transform_0(%arg0: i32) -> (i32, i32) {
    %c0_i32 = arith.constant 0 : i32
    %c0_i32_0 = arith.constant 0 : i32
    %c0_i32_1 = arith.constant 0 : i32
    return %c0_i32, %c0_i32_0 : i32, i32
  }
  func.func @transform_1(%arg0: i32) -> (i32, i32) {
    %c0_i32 = arith.constant 0 : i32
    %c0_i32_0 = arith.constant 0 : i32
    return %c0_i32, %arg0 : i32, i32
  }
  func.func @transform_2(%arg0: i32) -> (i32, i32) {
    %c0_i32 = arith.constant 0 : i32
    %c0_i32_0 = arith.constant 0 : i32
    return %c0_i32, %arg0 : i32, i32
  }
  func.func @transform_3(%arg0: i32) -> (i32, i32) {
    %c0_i32 = arith.constant 0 : i32
    %c0_i32_0 = arith.constant 0 : i32
    return %c0_i32, %arg0 : i32, i32
  }
}

</mosaic_0001>

<bundles_post_ra>
// kernel: semantic_comm_forward.4
= control target key start
LH: loop header
LB: loop body
LE: loop exit
PB: predicated region body
PF: predicated region fallthrough
CT: control target
= control target key end

     0   :  { %20 = vsyncpa [#allocation4], 0  ;;  %s2594_s0 = inlined_call_operand.<no memory space> [shape: f32[1], index: 0, kind: input, shape index: {}]   ;;  %s2595_s1 = inlined_call_operand.vmem [shape: f32[16,128], index: 1, kind: input, shape index: {}]   ;;  %s2596_s2 = inlined_call_operand.vmem [shape: f32[16,16], index: 2, kind: input, shape index: {}]   ;;  %s2597_s3 = inlined_call_operand.hbm [shape: bf16[128,256], index: 3, kind: input, shape index: {}]   ;;  %s2598_s4 = inlined_call_operand.hbm [shape: f32[1,256], index: 4, kind: input, shape index: {}]   ;;  %s2599_s5 = inlined_call_operand.vmem [shape: bf16[256,16], index: 5, kind: input, shape index: {}]   ;;  %s2600_s6 = inlined_call_operand.hbm [shape: f32[1,16], index: 6, kind: input, shape index: {}]   ;;  %s2601_s7 = inlined_call_operand.hbm [shape: bf16[16,256], index: 7, kind: input, shape index: {}]   ;;  %s2602_s8 = inlined_call_operand.hbm [shape: f32[1,256], index: 8, kind: input, shape index: {}]   ;;  %s2603_s9 = inlined_call_operand.hbm [shape: bf16[256,128], index: 9, kind: input, shape index: {}]   ;;  %s2604_s10 = inlined_call_operand.hbm [shape: f32[1,128], index: 10, kind: input, shape index: {}]   ;;  %s2605_s11 = inlined_call_operand.hbm [shape: bf16[128,128], index: 11, kind: input, shape index: {}]   ;;  %s2606_s12 = inlined_call_operand.hbm [shape: f32[1,128], index: 12, kind: input, shape index: {}]   ;;  %s2607_s13 = inlined_call_operand.hbm [shape: bf16[32,128], index: 13, kind: input, shape index: {}]   ;;  %s2608_s14 = inlined_call_operand.vmem [shape: f32[16,32], index: 14, kind: output, shape index: {}]  }
   0x1   :  { %21 = vsyncpa [#allocation6], 0 }
   0x2   :  { %22 = vsyncpa [#allocation9], 0 }
   0x3   :  { %23 = vsyncpa [#allocation12], 0 }
   0x4   :  { %24 = vsyncpa [#allocation15], 0  ;;  %s50_s15 = sshll.u32 %s2598_s4, 4  ;;  %s51_s15 = int_to_ptr.hbm [resolvable:$true] %s50_s15 }
   0x5   :  { %25 = vsyncpa [#allocation18], 0  ;;  %s2264_s16 = smov [#allocation5]   ;;  %s73_s20 = sshll.u32 %s2601_s7, 4  ;;  %s74_s20 = int_to_ptr.hbm [resolvable:$true] %s73_s20 }
   0x6   :  { %s52_s17 = sshll.u32 %s2264_s16, 4  ;;  %s2265_s21 = smov [#allocation8]   ;;  %s53_s17 = int_to_ptr.vmem [resolvable:$true] %s52_s17 }
   0x7   :  { %55 = dma.hbm_to_vmem [thread:$0]  %s51_s15, 32, %s53_s17, [#allocation6]  }
   0x8   :  { %s75_s22 = sshll.u32 %s2265_s21, 4  ;;  %s97_s25 = sshll.u32 %s2603_s9, 4  ;;  %s76_s22 = int_to_ptr.vmem [resolvable:$true] %s75_s22  ;;  %s98_s25 = int_to_ptr.hbm [resolvable:$true] %s97_s25 }
   0x9   :  { %s2266_s4 = smov 128   ;;  %s2267_s26 = smov 8  }
   0xa   :  { %81 = dma.hbm_to_vmem [thread:$0]  %s74_s20, 256, %s76_s22, [#allocation9], %s2266_s4, %s2266_s4, %s2267_s26  }
   0xb   :  { %s2268_s27 = smov [#allocation11]   ;;  %s121_s15 = sshll.u32 %s2605_s11, 4  ;;  %s122_s15 = int_to_ptr.hbm [resolvable:$true] %s121_s15 }
   0xc   :  { %s99_s28 = sshll.u32 %s2268_s27, 4  ;;  %s2269_s7 = smov 64   ;;  %s100_s28 = int_to_ptr.vmem [resolvable:$true] %s99_s28 }
   0xd   :  { %s2270_s16 = smov 4   ;;  %s2271_s9 = smov [#allocation14]  }
   0xe   :  { %105 = dma.hbm_to_vmem [thread:$0]  %s98_s25, 2048, %s100_s28, [#allocation12], %s2269_s7, %s2269_s7, %s2270_s16  }
   0xf   :  { %s123_s17 = sshll.u32 %s2271_s9, 4  ;;  %s36_s20 = sshll.u32 %s2597_s3, 4  ;;  %s124_s17 = int_to_ptr.vmem [resolvable:$true] %s123_s17  ;;  %s37_s20 = int_to_ptr.hbm [resolvable:$true] %s36_s20 }
  0x10   :  { %129 = dma.hbm_to_vmem [thread:$0]  %s122_s15, 1024, %s124_s17, [#allocation15], %s2269_s7, %s2269_s7, %s2270_s16  }
  0x11   :  { %s63_s22 = sshll.u32 %s2600_s6, 4  ;;  %s2272_s23 = smov [#allocation3]   ;;  %s64_s22 = int_to_ptr.hbm [resolvable:$true] %s63_s22 }
  0x12   :  { %s38_s24 = sshll.u32 %s2272_s23, 4  ;;  %s2273_s25 = smov [#allocation7]   ;;  %s39_s24 = int_to_ptr.vmem [resolvable:$true] %s38_s24 }
  0x13   :  { %44 = dma.hbm_to_vmem [thread:$0]  %s37_s20, 2048, %s39_s24, [#allocation4], %s2266_s4, %s2266_s4, %s2267_s26  }
  0x14   :  { %s65_s27 = sshll.u32 %s2273_s25, 4  ;;  %s87_s3 = sshll.u32 %s2602_s8, 4  ;;  %s66_s27 = int_to_ptr.vmem [resolvable:$true] %s65_s27  ;;  %s88_s3 = int_to_ptr.hbm [resolvable:$true] %s87_s3 }
  0x15   :  { %68 = dma.hbm_to_vmem [thread:$0]  %s64_s22, 16, %s66_s27, [#allocation6]  }
  0x16   :  { %s111_s9 = sshll.u32 %s2604_s10, 4  ;;  %s2274_s17 = smov [#allocation10]   ;;  %s112_s9 = int_to_ptr.hbm [resolvable:$true] %s111_s9 }
  0x17   :  { %s89_s6 = sshll.u32 %s2274_s17, 4  ;;  %s2275_s18 = smov [#allocation13]   ;;  %s90_s6 = int_to_ptr.vmem [resolvable:$true] %s89_s6 }
  0x18   :  { %92 = dma.hbm_to_vmem [thread:$0]  %s88_s3, 32, %s90_s6, [#allocation9]  }
  0x19   :  { %s113_s4 = sshll.u32 %s2275_s18, 4  ;;  %s135_s20 = sshll.u32 %s2606_s12, 4  ;;  %s114_s4 = int_to_ptr.vmem [resolvable:$true] %s113_s4  ;;  %s136_s20 = int_to_ptr.hbm [resolvable:$true] %s135_s20 }
  0x1a   :  { %116 = dma.hbm_to_vmem [thread:$0]  %s112_s9, 16, %s114_s4, [#allocation12]  }
  0x1b   :  { %s145_s21 = sshll.u32 %s2607_s13, 4  ;;  %s2276_s22 = smov [#allocation16]   ;;  %s146_s21 = int_to_ptr.hbm [resolvable:$true] %s145_s21 }
  0x1c   :  { %s137_s10 = sshll.u32 %s2276_s22, 4  ;;  %s2277_s23 = smov [#allocation17]   ;;  %s138_s10 = int_to_ptr.vmem [resolvable:$true] %s137_s10 }
  0x1d   :  { %140 = dma.hbm_to_vmem [thread:$0]  %s136_s20, 16, %s138_s10, [#allocation15]  }
  0x1e   :  { %s147_s24 = sshll.u32 %s2277_s23, 4  ;;  %s148_s24 = int_to_ptr.vmem [resolvable:$true] %s147_s24 }
  0x1f   :  { %153 = dma.hbm_to_vmem [thread:$0]  %s146_s21, 256, %s148_s24, [#allocation18], %s2269_s7, %s2269_s7, %s2270_s16  }
  0x20   :  { %2252 = dma.done.wait [#allocation4], 2048  }
  0x21   :  { %2253 = vsyncadd [#allocation4], 4294965248 }
  0x22   :  { %2254 = dma.done.wait [#allocation6], 48  }
  0x23   :  { %2255 = vsyncadd [#allocation6], 4294967248 }
  0x24   :  { %2256 = dma.done.wait [#allocation9], 288  }
  0x25   :  { %2257 = vsyncadd [#allocation9], 4294967008 }
  0x26   :  { %2258 = dma.done.wait [#allocation12], 2064  }
  0x27   :  { %2259 = vsyncadd [#allocation12], 4294965232 }
  0x28   :  { %2260 = dma.done.wait [#allocation15], 1040  }
  0x29   :  { %2261 = vsyncadd [#allocation15], 4294966256 }
  0x2a   :  { %2262 = dma.done.wait [#allocation18], 256  }
  0x2b   :  { %2263 = vsyncadd [#allocation18], 4294967040  ;;  %v1589_v0 = vld [vmem:[#allocation3 + $0x70] sm:$0xf]  ;;  %v1859_v1 = vld [vmem:[#allocation3 + $0x74] sm:$0xf0] }
  0x2c   :  { %v1858_v2 = vld [vmem:[#allocation3 + $0x74] sm:$0xf]  ;;  %v1590_v3 = vor.u32 %v1859_v1, %v1589_v0  ;;  %v1591_v4 = vld [vmem:[#allocation3 + $0x78] sm:$0xf0]  ;;  %v1581_v5 = vld [vmem:[#allocation3 + $0x60] sm:$0xf] }
  0x2d   :  { %v1857_v6 = vld [vmem:[#allocation3 + $0x64] sm:$0xf0]  ;;  %v1594_v7 = vor.u32 %v1858_v2, %v1591_v4  ;;  %v1856_v8 = vld [vmem:[#allocation3 + $0x64] sm:$0xf]  ;;  %v1583_v9 = vld [vmem:[#allocation3 + $0x68] sm:$0xf0] }
  0x2e   :  { %300 = vmatpush.bf16.msra.mxu0 %v1590_v3  ;;  %v1582_v10 = vor.u32 %v1857_v6, %v1581_v5  ;;  %v1586_v11 = vor.u32 %v1856_v8, %v1583_v9  ;;  %v1573_v12 = vld [vmem:[#allocation3 + $0x50] sm:$0xf]  ;;  %v1855_v13 = vld [vmem:[#allocation3 + $0x54] sm:$0xf0]  ;;  %v1854_v14 = vld [vmem:[#allocation3 + $0x54] sm:$0xf] }
  0x2f   :  { %314 = vmatpush.bf16.msra.mxu1 %v1594_v7  ;;  %v1575_v15 = vld [vmem:[#allocation3 + $0x58] sm:$0xf0]  ;;  %v1574_v16 = vor.u32 %v1855_v13, %v1573_v12  ;;  %v1565_v18 = vld [vmem:[#allocation3 + $0x40] sm:$0xf]  ;;  %v1853_v19 = vld [vmem:[#allocation3 + $0x44] sm:$0xf0] }
  0x30   :  { %v1578_v17 = vor.u32 %v1854_v14, %v1575_v15  ;;  %v1852_v20 = vld [vmem:[#allocation3 + $0x44] sm:$0xf]  ;;  %v1567_v21 = vld [vmem:[#allocation3 + $0x48] sm:$0xf0]  ;;  %v1566_v22 = vor.u32 %v1853_v19, %v1565_v18  ;;  %v1867_v23 = vld [vmem:[%s2599_s5 + $0x38] sm:$0xff]  ;;  %vm498_vm0 = vcmask 130048  }
  0x31   :  { %v1875_v24 = vld [vmem:[%s2599_s5 + $0x78] sm:$0xff]  ;;  %v1570_v25 = vor.u32 %v1852_v20, %v1567_v21  ;;  %v1557_v26 = vld [vmem:[#allocation3 + $0x30] sm:$0xf]  ;;  %v1850_v28 = vld [vmem:[#allocation3 + $0x34] sm:$0xf]  ;;  %466 = vmatpush.bf16.msra.mxu2 %v1867_v23  ;;  %vm860_vm8 = vcmask 261120  }
  0x32   :  { %301 = vmatpush.bf16.msra.mxu0 %v1582_v10  ;;  %v1851_v27 = vld [vmem:[#allocation3 + $0x34] sm:$0xf0]  ;;  %v1559_v29 = vld [vmem:[#allocation3 + $0x38] sm:$0xf0]  ;;  %480 = vmatpush.bf16.msra.mxu3 %v1875_v24  ;;  %v1866_v30 = vld [vmem:[%s2599_s5 + $0x30] sm:$0xff] }
  0x33   :  { %315 = vmatpush.bf16.msra.mxu1 %v1586_v11  ;;  %v1874_v31 = vld [vmem:[%s2599_s5 + $0x70] sm:$0xff]  ;;  %v1558_v32 = vor.u32 %v1851_v27, %v1557_v26  ;;  %v1562_v33 = vor.u32 %v1850_v28, %v1559_v29  ;;  %v1549_v34 = vld [vmem:[#allocation3 + $0x20] sm:$0xf]  ;;  %v1849_v35 = vld [vmem:[#allocation3 + $0x24] sm:$0xf0] }
  0x34   :  { %v1848_v36 = vld [vmem:[#allocation3 + $0x24] sm:$0xf]  ;;  %v1551_v37 = vld [vmem:[#allocation3 + $0x28] sm:$0xf0]  ;;  %v1550_v40 = vor.u32 %v1849_v35, %v1549_v34  ;;  %v1541_v42 = vld [vmem:[#allocation3 + $0x10] sm:$0xf] }
  0x35   :  { %467 = vmatpush.bf16.msra.mxu2 %v1866_v30  ;;  %v1865_v38 = vld [vmem:[%s2599_s5 + $0x28] sm:$0xff]  ;;  %v1554_v41 = vor.u32 %v1848_v36, %v1551_v37  ;;  %v1847_v43 = vld [vmem:[#allocation3 + $0x14] sm:$0xf0]  ;;  %v1846_v44 = vld [vmem:[#allocation3 + $0x14] sm:$0xf]  ;;  %v2278_v36 = vmov 256.0  }
  0x36   :  { %302 = vmatpush.bf16.msra.mxu0 %v1574_v16  ;;  %481 = vmatpush.bf16.msra.mxu3 %v1874_v31  ;;  %v1873_v39 = vld [vmem:[%s2599_s5 + $0x68] sm:$0xff]  ;;  %v1543_v45 = vld [vmem:[#allocation3 + $0x18] sm:$0xf0]  ;;  %v1864_v46 = vld [vmem:[%s2599_s5 + $0x20] sm:$0xff]  ;;  %v1542_v48 = vor.u32 %v1847_v43, %v1541_v42  ;;  %1944 = vrcp.f32 %v2278_v36 }
  0x37   :  { %316 = vmatpush.bf16.msra.mxu1 %v1578_v17  ;;  %v1872_v47 = vld [vmem:[%s2599_s5 + $0x60] sm:$0xff]  ;;  %v1546_v49 = vor.u32 %v1846_v44, %v1543_v45  ;;  %v1845_v51 = vld [vmem:[#allocation3 + $0x4] sm:$0xf0]  ;;  %v1535_v53 = vld [vmem:[#allocation3 + $0x8] sm:$0xf0] }
  0x38   :  { %v1533_v50 = vld [vmem:[#allocation3] sm:$0xf]  ;;  %v1844_v52 = vld [vmem:[#allocation3 + $0x4] sm:$0xf]  ;;  %v196_v56 = vld [vmem:[%s2595_s1 + $0x8] sm:$0xff] }
  0x39   :  { %468 = vmatpush.bf16.msra.mxu2 %v1865_v38  ;;  %v1534_v54 = vor.u32 %v1845_v51, %v1533_v50  ;;  %v195_v55 = vld [vmem:[%s2595_s1] sm:$0xff]  ;;  %v1538_v57 = vor.u32 %v1844_v52, %v1535_v53  ;;  %v1863_v59 = vld [vmem:[%s2599_s5 + $0x18] sm:$0xff]  ;;  %v1862_v61 = vld [vmem:[%s2599_s5 + $0x10] sm:$0xff] }
  0x3a   :  { %303 = vmatpush.bf16.msra.mxu0 %v1566_v22  ;;  %482 = vmatpush.bf16.msra.mxu3 %v1873_v39  ;;  %v197_v58 = vpack.c.bf16 %v196_v56, %v195_v55  ;;  %v1871_v60 = vld [vmem:[%s2599_s5 + $0x58] sm:$0xff]  ;;  %v1870_v62 = vld [vmem:[%s2599_s5 + $0x50] sm:$0xff]  ;;  %v1861_v63 = vld [vmem:[%s2599_s5 + $0x8] sm:$0xff] }
  0x3b   :  { %317 = vmatpush.bf16.msra.mxu1 %v1570_v25  ;;  %v1869_v0 = vld [vmem:[%s2599_s5 + $0x48] sm:$0xff]  ;;  %v1860_v1 = vld [vmem:[%s2599_s5] sm:$0xff] }
  0x3c   :  { %v1868_v2 = vld [vmem:[%s2599_s5 + $0x40] sm:$0xff]  ;;  %v1945_v37 = vpop.eup %1944  ;;  %v1877_v51 = vld [vmem:[#allocation8 + $0x4] sm:$0xf0]  ;;  %v1876_v52 = vld [vmem:[#allocation8 + $0x4] sm:$0xf] }
  0x3d   :  { %469 = vmatpush.bf16.msra.mxu2 %v1864_v46  ;;  %v214_v3 = vld [vmem:[#allocation5] sm:$0x3]  ;;  %v1941_v20 = vld [vmem:[#allocation7] ss:$0 sm:$0xff]  ;;  %v513_v38 = vmul.f32 256.0, %v1945_v37  ;;  %vm517_vm1 = vweird.f32 %v1945_v37 }
  0x3e   :  { %304 = vmatpush.bf16.msra.mxu0 %v1558_v32  ;;  %483 = vmatpush.bf16.msra.mxu3 %v1872_v47  ;;  %v216_v6 = vperm.slane %v214_v3, 0  ;;  %v217_v7 = vperm.slane %v214_v3, 1  ;;  %v1661_v50 = vld [vmem:[#allocation8] sm:$0xf]  ;;  %v1885_v3 = vld [vmem:[#allocation11 + $0x38] sm:$0xff] }
  0x3f   :  { %318 = vmatpush.bf16.msra.mxu1 %v1562_v33  ;;  %v514_v39 = vsub.f32 1.0, %v513_v38  ;;  %v1662_v53 = vor.u32 %v1877_v51, %v1661_v50  ;;  %v1896_v50 = vld [vmem:[#allocation14 + $0x10] sm:$0xff]  ;;  %v1902_v51 = vld [vmem:[#allocation17] sm:$0xff] }
  0x41   :  { %470 = vmatpush.bf16.msra.mxu2 %v1863_v59  ;;  %v515_v43 = vmul.f32 %v1945_v37, %v514_v39 }
  0x42   :  { %305 = vmatpush.bf16.msra.mxu0 %v1550_v40  ;;  %484 = vmatpush.bf16.msra.mxu3 %v1871_v60 }
  0x43   :  { %319 = vmatpush.bf16.msra.mxu1 %v1554_v41  ;;  %v516_v46 = vadd.f32 %v1945_v37, %v515_v43 }
  0x45   :  { %471 = vmatpush.bf16.msra.mxu2 %v1862_v61 }
  0x46   :  { %306 = vmatpush.bf16.msra.mxu0 %v1542_v48  ;;  %485 = vmatpush.bf16.msra.mxu3 %v1870_v62 }
  0x47   :  { %320 = vmatpush.bf16.msra.mxu1 %v1546_v49  ;;  %v518_v49 = vsel %vm517_vm1, %v1945_v37, %v516_v46 }
  0x49   :  { %472 = vmatpush.bf16.msra.mxu2 %v1861_v63 }
  0x4a   :  { %307 = vmatpush.bf16.msra.mxu0 %v1534_v54  ;;  %486 = vmatpush.bf16.msra.mxu3 %v1869_v0  ;;  %v1663_v54 = vld [vmem:[#allocation8 + $0x8] sm:$0xf0] }
  0x4b   :  { %321 = vmatpush.bf16.msra.mxu1 %v1538_v57  ;;  %v1666_v55 = vor.u32 %v1876_v52, %v1663_v54  ;;  %v1895_v52 = vld [vmem:[#allocation14 + $0x8] sm:$0xff]  ;;  %v1894_v54 = vld [vmem:[#allocation14] sm:$0xff] }
  0x4d   :  { %308 = vmatmul.bf16.vlgmr.msra.gmra.mxu0 %v197_v58  ;;  %473 = vmatpush.bf16.msra.mxu2 %v1860_v1 }
  0x4e   :  { %322 = vmatmul.bf16.vlgmr.msra.gmra.mxu1 %v197_v58  ;;  %487 = vmatpush.bf16.msra.mxu3 %v1868_v2 }
  0x4f   :  { %572 = vmatpush.bf16.msrb.mxu0 %v1662_v53  ;;  %586 = vmatpush.bf16.msrb.mxu1 %v1666_v55  ;;  %v2279_v53 = vmov 0  }
  0x51   :  { %731 = vmatpush.bf16.msrb.mxu2 %v1885_v3 }
  0xca   :  { %v309_v4 = vpop.f32.mrf.mxu0 }
  0xcb   :  { %v323_v5 = vpop.f32.mrf.mxu1  ;;  %v310_v8 = vadd.f32 %v309_v4, %v216_v6  ;;  %v1893_v4 = vld [vmem:[#allocation11 + $0x78] sm:$0xff] }
  0xcc   :  { %v324_v9 = vadd.f32 %v323_v5, %v217_v7  ;;  %745 = vmatpush.bf16.msrb.mxu3 %v1893_v4  ;;  %v1884_v5 = vld [vmem:[#allocation11 + $0x30] sm:$0xff] }
  0xcd   :  { %v328_v14 = vmax.f32 %v310_v8, 0.0  ;;  %732 = vmatpush.bf16.msrb.mxu2 %v1884_v5  ;;  %v1891_v8 = vld [vmem:[#allocation11 + $0x68] sm:$0xff]  ;;  %v2472_v5 = vld [vmem:[#allocation16] ss:$0 sm:$0xff] }
  0xce   :  { %v329_v16 = vmax.f32 %v324_v9, 0.0  ;;  %v1882_v9 = vld [vmem:[#allocation11 + $0x20] sm:$0xff] }
  0xd2   :  { %v311_v10 = vpop.f32.mrf.mxu0 }
  0xd3   :  { %v312_v11 = vadd.f32 %v311_v10, %v216_v6  ;;  %v325_v12 = vpop.f32.mrf.mxu1  ;;  %v1892_v6 = vld [vmem:[#allocation11 + $0x70] sm:$0xff]  ;;  %v1890_v10 = vld [vmem:[#allocation11 + $0x60] sm:$0xff] }
  0xd4   :  { %v326_v13 = vadd.f32 %v325_v12, %v217_v7  ;;  %746 = vmatpush.bf16.msrb.mxu3 %v1892_v6  ;;  %v1883_v7 = vld [vmem:[#allocation11 + $0x28] sm:$0xff]  ;;  %v523_v12 = vld [vmem:[%s2596_s2 + $0x8] sm:$0xff] }
  0xd5   :  { %v330_v15 = vmax.f32 %v312_v11, 0.0  ;;  %733 = vmatpush.bf16.msrb.mxu2 %v1883_v7  ;;  %v522_v11 = vld [vmem:[%s2596_s2] sm:$0xff]  ;;  %s2280_s2 = smov 32  }
  0xd6   :  { %v331_v17 = vmax.f32 %v326_v13, 0.0 }
  0xd7   :  { %v332_v18 = vpack.c.bf16 %v330_v15, %v328_v14 }
  0xd8   :  { %v333_v19 = vpack.c.bf16 %v331_v17, %v329_v16  ;;  %747 = vmatpush.bf16.msrb.mxu3 %v1891_v8 }
  0xd9   :  { %474 = vmatmul.bf16.vlgmr.msra.gmra.mxu2 %v332_v18 }
  0xda   :  { %488 = vmatmul.bf16.vlgmr.msra.gmra.mxu3 %v333_v19  ;;  %734 = vmatpush.bf16.msrb.mxu2 %v1882_v9  ;;  %v1881_v19 = vld [vmem:[#allocation11 + $0x18] sm:$0xff] }
  0xdc   :  { %748 = vmatpush.bf16.msrb.mxu3 %v1890_v10 }
  0xde   :  { %735 = vmatpush.bf16.msrb.mxu2 %v1881_v19 }
 0x15c   :  { %v475_v21 = vpop.f32.mrf.mxu2 }
 0x15d   :  { %v476_v22 = vadd.f32 %v1941_v20, %v475_v21  ;;  %v489_v23 = vpop.f32.mrf.mxu3  ;;  %v1880_v21 = vld [vmem:[#allocation11 + $0x10] sm:$0xff] }
 0x15e   :  { %736 = vmatpush.bf16.msrb.mxu2 %v1880_v21 }
 0x15f   :  { %v490_v24 = vadd.f32 %v489_v23, %v476_v22  ;;  %v1888_v22 = vld [vmem:[#allocation11 + $0x50] sm:$0xff]  ;;  %v1879_v23 = vld [vmem:[#allocation11 + $0x8] sm:$0xff] }
 0x161   :  { %v2449_v26 = vmax.f32 %v490_v24, 0.0  ;;  %v1887_v24 = vld [vmem:[#allocation11 + $0x48] sm:$0xff] }
 0x162   :  { %737 = vmatpush.bf16.msrb.mxu2 %v1879_v23 }
 0x163   :  { %v496_v31 = vmul.f32 %v2449_v26, %v2449_v26 }
 0x164   :  { %v477_v25 = vpop.f32.mrf.mxu2 }
 0x165   :  { %v478_v27 = vadd.f32 %v1941_v20, %v477_v25  ;;  %v491_v28 = vpop.f32.mrf.mxu3  ;;  %v499_v33 = vsel %vm498_vm0, %v496_v31, 0.0  ;;  %v1889_v20 = vld [vmem:[#allocation11 + $0x58] sm:$0xff]  ;;  %v1878_v25 = vld [vmem:[#allocation11] sm:$0xff] }
 0x166   :  { %749 = vmatpush.bf16.msrb.mxu3 %v1889_v20  ;;  %738 = vmatpush.bf16.msrb.mxu2 %v1878_v25  ;;  %v546_v31 = vld [vmem:[#allocation10] sm:$0x3] }
 0x167   :  { %v492_v29 = vadd.f32 %v491_v28, %v478_v27  ;;  %v1901_v27 = vld [vmem:[#allocation14 + $0x38] sm:$0xff]  ;;  %v1900_v28 = vld [vmem:[#allocation14 + $0x30] sm:$0xff] }
 0x168   :  { %830 = vmatpush.bf16.msra.mxu0 %v1901_v27 }
 0x169   :  { %v2451_v30 = vmax.f32 %v492_v29, 0.0  ;;  %v1899_v29 = vld [vmem:[#allocation14 + $0x28] sm:$0xff] }
 0x16a   :  { %750 = vmatpush.bf16.msrb.mxu3 %v1888_v22 }
 0x16b   :  { %v497_v32 = vmul.f32 %v2451_v30, %v2451_v30 }
 0x16c   :  { %831 = vmatpush.bf16.msra.mxu0 %v1900_v28 }
 0x16d   :  { %v500_v34 = vsel %vm498_vm0, %v497_v32, 0.0 }
 0x16e   :  { %v501_v35 = vadd.f32 %v500_v34, %v499_v33  ;;  %751 = vmatpush.bf16.msrb.mxu3 %v1887_v24  ;;  %v548_v34 = vperm.slane %v546_v31, 0 }
 0x170   :  { %502 = vadd.xlane.f32.xlu0 %v501_v35  ;;  %832 = vmatpush.bf16.msra.mxu0 %v1899_v29  ;;  %v549_v35 = vperm.slane %v546_v31, 1  ;;  %v1905_v29 = vld [vmem:[#allocation17 + $0x8] sm:$0xff] }
 0x1e3   :  { %v503_v40 = vpop.xlane.xlu0 %502 }
 0x1e4   :  { %v504_v41 = vrot.slane %v503_v40, 4 }
 0x1e6   :  { %v505_v42 = vadd.f32 %v504_v41, %v503_v40 }
 0x1e8   :  { %v506_v44 = vrot.slane %v505_v42, 2 }
 0x1ea   :  { %v507_v45 = vadd.f32 %v506_v44, %v505_v42 }
 0x1ec   :  { %v508_v47 = vrot.slane %v507_v45, 1 }
 0x1ee   :  { %v509_v48 = vadd.f32 %v508_v47, %v507_v45 }
 0x1f0   :  { %1918 = vpush %v509_v48  ;;  %v1897_v48 = vld [vmem:[#allocation14 + $0x18] sm:$0xff] }
 0x1f1   :  { %1920 = vpush %v518_v49  ;;  %v1903_v49 = vld [vmem:[#allocation17 + $0x8] sm:$0xff] }
 0x1f2   :  { %870 = vmatpush.bf16.msra.mxu1 %v1903_v49 }
 0x1f6   :  { %871 = vmatpush.bf16.msra.mxu1 %v1902_v51 }
 0x221   :  { %s1919_s5 = spop %1918 }
 0x222   :  { %s1921_s9 = spop %1920 }
 0x223   :  { %s520_s18 = smul.f32 %s1921_s9, %s2594_s0 }
 0x225   :  { %s521_s4 = smul.f32 %s1919_s5, %s520_s18 }
 0x227   :  { %v524_v56 = vstv %s521_s4 }
 0x228   :  { %1946 = vrsqrt.f32 %v524_v56  ;;  %vm532_vm2 = vcmp.eq.f32.partialorder %v524_v56, inf  ;;  %v535_v0 = vand.u32 2147483648, %v524_v56  ;;  %vm534_vm3 = vcmp.eq.f32.partialorder %v524_v56, 0.0 }
 0x22e   :  { %v1947_v57 = vpop.eup %1946 }
 0x22f   :  { %v526_v58 = vmul.f32 %v1947_v57, %v524_v56 }
 0x231   :  { %v527_v59 = vmul.f32 %v1947_v57, %v526_v58 }
 0x233   :  { %v528_v60 = vmul.f32 0.5, %v527_v59 }
 0x235   :  { %v529_v61 = vsub.f32 1.5, %v528_v60 }
 0x237   :  { %v530_v62 = vmul.f32 %v1947_v57, %v529_v61  ;;  %v1942_v57 = vld [vmem:[#allocation13] ss:$0 sm:$0xff] }
 0x239   :  { %v531_v63 = vmul.f32 %v530_v62, %v524_v56 }
 0x23b   :  { %v533_v1 = vsel %vm532_vm2, %v524_v56, %v531_v63 }
 0x23c   :  { %v536_v2 = vsel %vm534_vm3, %v535_v0, %v533_v1 }
 0x23d   :  { %1922 = vpush %v536_v2 }
 0x26e   :  { %s1923_s8 = spop %1922 }
 0x26f   :  { %v538_v13 = vstv %s1923_s8 }
 0x270   :  { %v539_v14 = vmul.f32 %v538_v13, %v522_v11  ;;  %v540_v15 = vmul.f32 %v538_v13, %v523_v12 }
 0x272   :  { %v541_v16 = vadd.f32 %v539_v14, %v2449_v26  ;;  %v542_v17 = vadd.f32 %v540_v15, %v2451_v30  ;;  %v1886_v26 = vld [vmem:[#allocation11 + $0x40] sm:$0xff] }
 0x273   :  { %752 = vmatpush.bf16.msrb.mxu3 %v1886_v26  ;;  %v1898_v30 = vld [vmem:[#allocation14 + $0x20] sm:$0xff] }
 0x274   :  { %v543_v18 = vpack.c.bf16 %v542_v17, %v541_v16  ;;  %833 = vmatpush.bf16.msra.mxu0 %v1898_v30  ;;  %v1904_v30 = vld [vmem:[#allocation17] sm:$0xff] }
 0x276   :  { %1667 = vmatmul.msk.bf16.vlgmr.msrb.gmra.mxu0 %vm498_vm0, %v543_v18  ;;  %1668 = vmatmul.msk.bf16.vlgmr.msrb.gmra.mxu1 %vm498_vm0, %v543_v18 }
 0x277   :  { %950 = vmatpush.bf16.msrb.mxu1 %v1905_v29 }
 0x278   :  { %834 = vmatpush.bf16.msra.mxu0 %v1897_v48 }
 0x27b   :  { %951 = vmatpush.bf16.msrb.mxu1 %v1904_v30  ;;  %v1909_v30 = vld [vmem:[#allocation17 + $0x8] sm:$0xff] }
 0x27c   :  { %835 = vmatpush.bf16.msra.mxu0 %v1896_v50  ;;  %1124 = vmatpush.bf16.msra.mxu3 %v1909_v30 }
 0x280   :  { %836 = vmatpush.bf16.msra.mxu0 %v1895_v52 }
 0x284   :  { %837 = vmatpush.bf16.msra.mxu0 %v1894_v54 }
 0x286   :  { %872 = vmatmul.bf16.vlgmr.msra.gmra.mxu1 %v2279_v53 }
 0x2f3   :  { %v574_v32 = vpop.f32.mrf.mxu0  ;;  %v588_v33 = vpop.f32.mrf.mxu1 }
 0x2f4   :  { %v575_v36 = vadd.f32 %v574_v32, %v548_v34  ;;  %v589_v37 = vadd.f32 %v588_v33, %v549_v35 }
 0x2f6   :  { %v593_v42 = vmax.f32 %v575_v36, 0.0  ;;  %v594_v43 = vmax.f32 %v589_v37, 0.0 }
 0x2fb   :  { %v576_v38 = vpop.f32.mrf.mxu0  ;;  %v590_v39 = vpop.f32.mrf.mxu1 }
 0x2fc   :  { %v577_v40 = vadd.f32 %v576_v38, %v548_v34  ;;  %v591_v41 = vadd.f32 %v590_v39, %v549_v35 }
 0x2fe   :  { %v595_v44 = vmax.f32 %v577_v40, 0.0  ;;  %v596_v45 = vmax.f32 %v591_v41, 0.0 }
 0x300   :  { %v597_v46 = vpack.c.bf16 %v595_v44, %v593_v42  ;;  %v598_v47 = vpack.c.bf16 %v596_v45, %v594_v43 }
 0x302   :  { %739 = vmatmul.bf16.vlgmr.msrb.gmra.mxu2 %v597_v46  ;;  %753 = vmatmul.bf16.vlgmr.msrb.gmra.mxu3 %v598_v47 }
 0x303   :  { %v873_v3 = vpop.f32.mrf.mxu1 }
 0x30b   :  { %v875_v4 = vpop.f32.mrf.mxu1 }
 0x385   :  { %v740_v55 = vpop.f32.mrf.mxu2  ;;  %v754_v56 = vpop.f32.mrf.mxu3 }
 0x386   :  { %v741_v58 = vadd.f32 %v1942_v57, %v740_v55 }
 0x388   :  { %v755_v60 = vadd.f32 %v754_v56, %v741_v58 }
 0x38a   :  { %v759_v0 = vmax.f32 %v755_v60, 0.0  ;;  %v1907_v60 = vld [vmem:[#allocation17 + $0x8] sm:$0xff] }
 0x38b   :  { %1037 = vmatpush.bf16.msra.mxu2 %v1907_v60 }
 0x38d   :  { %v742_v59 = vpop.f32.mrf.mxu2  ;;  %v756_v62 = vpop.f32.mrf.mxu3 }
 0x38e   :  { %v743_v61 = vadd.f32 %v1942_v57, %v742_v59 }
 0x390   :  { %v757_v63 = vadd.f32 %v756_v62, %v743_v61  ;;  %v1906_v61 = vld [vmem:[#allocation17] sm:$0xff] }
 0x391   :  { %1038 = vmatpush.bf16.msra.mxu2 %v1906_v61 }
 0x392   :  { %v760_v1 = vmax.f32 %v757_v63, 0.0 }
 0x394   :  { %v761_v2 = vpack.c.bf16 %v760_v1, %v759_v0 }
 0x396   :  { %838 = vmatmul.bf16.vlgmr.msra.gmra.mxu0 %v761_v2 }
 0x413   :  { %v839_v6 = vpop.f32.mrf.mxu0 }
 0x414   :  { %v2475_v7 = vadd.f32 %v2472_v5, %v839_v6 }
 0x416   :  { %v877_v8 = vadd.f32 %v873_v3, %v2475_v7 }
 0x418   :  { %1948 = vtanh.f32 %v877_v8  ;;  %v1773_v10 = vmul.f32 -1.442695, %v877_v8 }
 0x41a   :  { %1950 = vpow2.f32 %v1773_v10 }
 0x41e   :  { %v1949_v9 = vpop.eup %1948 }
 0x41f   :  { %900 = vrot.lane.b32.xlu0 %v1949_v9, %s2269_s7 }
 0x420   :  { %v1951_v11 = vpop.eup %1950 }
 0x421   :  { %v881_v12 = vadd.f32 1.0, %v1951_v11 }
 0x423   :  { %1952 = vrcp.f32 %v881_v12  ;;  %v893_v18 = vand.u32 2147483648, %v881_v12  ;;  %vm887_vm5 = vweird.f32 %v881_v12  ;;  %v891_v19 = vand.u32 2147483647, %v881_v12 }
 0x425   :  { %v894_v21 = vor.u32 1.1754944e-38, %v893_v18  ;;  %vm892_vm7 = vcmp.eq.f32.partialorder %v891_v19, 8.507059e+37 }
 0x429   :  { %v1953_v13 = vpop.eup %1952 }
 0x42a   :  { %v883_v14 = vmul.f32 %v1953_v13, %v881_v12  ;;  %vm888_vm4 = vweird.f32 %v1953_v13 }
 0x42b   :  { %vm889_vm6 = vmor %vm887_vm5, %vm888_vm4 }
 0x42c   :  { %v884_v15 = vsub.f32 1.0, %v883_v14 }
 0x42e   :  { %v885_v16 = vmul.f32 %v1953_v13, %v884_v15 }
 0x430   :  { %v886_v17 = vadd.f32 %v1953_v13, %v885_v16 }
 0x432   :  { %v890_v20 = vsel %vm889_vm6, %v1953_v13, %v886_v17 }
 0x433   :  { %v895_v23 = vsel %vm892_vm7, %v894_v21, %v890_v20 }
 0x434   :  { %v898_v25 = vmul.f32 0.0, %v895_v23 }
 0x491   :  { %v901_v22 = vpop.permute.xlu0 %900 }
 0x492   :  { %v903_v24 = vmul.f32 %v901_v22, %v895_v23 }
 0x494   :  { %905 = vrot.lane.b32.xlu1 %v903_v24, %s2280_s2 }
 0x506   :  { %v906_v26 = vpop.permute.xlu1 %905 }
 0x507   :  { %v908_v27 = vadd.f32 %v906_v26, %v898_v25 }
 0x509   :  { %1954 = vtanh.f32 %v908_v27  ;;  %v982_v55 = vrot.slane %v908_v27, 6 }
 0x50f   :  { %v1955_v28 = vpop.eup %1954 }
 0x510   :  { %911 = vrot.lane.b32.xlu1 %v1955_v28, %s2269_s7 }
 0x582   :  { %v912_v31 = vpop.permute.xlu1 %911 }
 0x583   :  { %v2481_v32 = vmul.f32 %v912_v31, %v895_v23  ;;  %v1908_v31 = vld [vmem:[#allocation17] sm:$0xff] }
 0x584   :  { %1125 = vmatpush.bf16.msra.mxu3 %v1908_v31 }
 0x585   :  { %v921_v33 = vpack.c.bf16 %v2481_v32, %v2481_v32 }
 0x587   :  { %927 = vrot.lane.b32.xlu2 %v921_v33, %s2280_s2 }
 0x5e1   :  { %v928_v34 = vpop.permute.xlu2 %927 }
 0x5e2   :  { %1782 = vmatmul.msk.bf16.vlgmr.msrb.gmra.mxu1 %vm860_vm8, %v928_v34 }
 0x65f   :  { %v953_v35 = vpop.f32.mrf.mxu1 }
 0x660   :  { %v958_v36 = vrot.slane %v953_v35, 6 }
 0x662   :  { %v960_v37 = vadd.f32 %v958_v36, %v2475_v7 }
 0x664   :  { %1956 = vtanh.f32 %v960_v37  ;;  %v1783_v40 = vmul.f32 -1.442695, %v960_v37 }
 0x666   :  { %1958 = vpow2.f32 %v1783_v40 }
 0x667   :  { %v955_v38 = vpop.f32.mrf.mxu1 }
 0x66a   :  { %v1957_v39 = vpop.eup %1956 }
 0x66b   :  { %986 = vrot.lane.b32.xlu2 %v1957_v39, %s2269_s7 }
 0x66c   :  { %v1959_v41 = vpop.eup %1958 }
 0x66d   :  { %v964_v42 = vadd.f32 1.0, %v1959_v41 }
 0x66f   :  { %1960 = vrcp.f32 %v964_v42  ;;  %v976_v48 = vand.u32 2147483648, %v964_v42  ;;  %vm970_vm10 = vweird.f32 %v964_v42  ;;  %v974_v49 = vand.u32 2147483647, %v964_v42 }
 0x671   :  { %v977_v51 = vor.u32 1.1754944e-38, %v976_v48  ;;  %vm975_vm12 = vcmp.eq.f32.partialorder %v974_v49, 8.507059e+37 }
 0x675   :  { %v1961_v43 = vpop.eup %1960 }
 0x676   :  { %v966_v44 = vmul.f32 %v1961_v43, %v964_v42  ;;  %vm971_vm9 = vweird.f32 %v1961_v43 }
 0x677   :  { %vm972_vm11 = vmor %vm970_vm10, %vm971_vm9 }
 0x678   :  { %v967_v45 = vsub.f32 1.0, %v966_v44 }
 0x67a   :  { %v968_v46 = vmul.f32 %v1961_v43, %v967_v45 }
 0x67c   :  { %v969_v47 = vadd.f32 %v1961_v43, %v968_v46 }
 0x67e   :  { %v973_v50 = vsel %vm972_vm11, %v1961_v43, %v969_v47 }
 0x67f   :  { %v978_v53 = vsel %vm975_vm12, %v977_v51, %v973_v50 }
 0x680   :  { %v984_v56 = vmul.f32 %v982_v55, %v978_v53 }
 0x6c5   :  { %v987_v52 = vpop.permute.xlu2 %986 }
 0x6c6   :  { %v989_v54 = vmul.f32 %v987_v52, %v978_v53 }
 0x6c8   :  { %991 = vrot.lane.b32.xlu1 %v989_v54, %s2280_s2 }
 0x73a   :  { %v992_v57 = vpop.permute.xlu1 %991 }
 0x73b   :  { %v994_v58 = vadd.f32 %v992_v57, %v984_v56 }
 0x73d   :  { %1962 = vtanh.f32 %v994_v58  ;;  %v1069_v25 = vrot.slane %v994_v58, 6 }
 0x743   :  { %v1963_v59 = vpop.eup %1962 }
 0x744   :  { %997 = vrot.lane.b32.xlu2 %v1963_v59, %s2269_s7 }
 0x79e   :  { %v998_v62 = vpop.permute.xlu2 %997 }
 0x79f   :  { %v2491_v63 = vmul.f32 %v998_v62, %v978_v53  ;;  %v1911_v62 = vld [vmem:[#allocation17 + $0x8] sm:$0xff] }
 0x7a0   :  { %1211 = vmatpush.bf16.msrb.mxu0 %v1911_v62 }
 0x7a1   :  { %v1007_v0 = vpack.c.bf16 %v2491_v63, %v2491_v63 }
 0x7a3   :  { %v1013_v1 = vrot.slane %v1007_v0, 1  ;;  %v1910_v0 = vld [vmem:[#allocation17] sm:$0xff] }
 0x7a4   :  { %1212 = vmatpush.bf16.msrb.mxu0 %v1910_v0 }
 0x7a5   :  { %1014 = vrot.lane.b32.xlu1 %v1013_v1, %s2280_s2 }
 0x817   :  { %v1015_v2 = vpop.permute.xlu1 %1014 }
 0x818   :  { %1792 = vmatmul.msk.bf16.vlgmr.msra.gmra.mxu2 %vm860_vm8, %v1015_v2 }
 0x89b   :  { %v1040_v3 = vpop.f32.mrf.mxu2 }
 0x89c   :  { %v1045_v4 = vrot.slane %v1040_v3, 4 }
 0x89e   :  { %v1047_v6 = vadd.f32 %v1045_v4, %v2475_v7 }
 0x8a0   :  { %1964 = vtanh.f32 %v1047_v6  ;;  %v1793_v10 = vmul.f32 -1.442695, %v1047_v6 }
 0x8a2   :  { %1966 = vpow2.f32 %v1793_v10 }
 0x8a3   :  { %v1042_v8 = vpop.f32.mrf.mxu2 }
 0x8a4   :  { %v841_v8 = vpop.f32.mrf.mxu0 }
 0x8a6   :  { %v1965_v9 = vpop.eup %1964 }
 0x8a7   :  { %1073 = vrot.lane.b32.xlu2 %v1965_v9, %s2269_s7  ;;  %v2518_v9 = vadd.f32 %v2472_v5, %v841_v8 }
 0x8a8   :  { %v1967_v11 = vpop.eup %1966 }
 0x8a9   :  { %v1051_v12 = vadd.f32 1.0, %v1967_v11 }
 0x8ab   :  { %1968 = vrcp.f32 %v1051_v12  ;;  %v1063_v18 = vand.u32 2147483648, %v1051_v12  ;;  %vm1057_vm14 = vweird.f32 %v1051_v12  ;;  %v1061_v19 = vand.u32 2147483647, %v1051_v12 }
 0x8ad   :  { %v1064_v21 = vor.u32 1.1754944e-38, %v1063_v18  ;;  %vm1062_vm0 = vcmp.eq.f32.partialorder %v1061_v19, 8.507059e+37 }
 0x8b1   :  { %v1969_v13 = vpop.eup %1968 }
 0x8b2   :  { %v1053_v14 = vmul.f32 %v1969_v13, %v1051_v12  ;;  %vm1058_vm13 = vweird.f32 %v1969_v13 }
 0x8b3   :  { %vm1059_vm15 = vmor %vm1057_vm14, %vm1058_vm13 }
 0x8b4   :  { %v1054_v15 = vsub.f32 1.0, %v1053_v14 }
 0x8b6   :  { %v1055_v16 = vmul.f32 %v1969_v13, %v1054_v15 }
 0x8b8   :  { %v1056_v17 = vadd.f32 %v1969_v13, %v1055_v16 }
 0x8ba   :  { %v1060_v20 = vsel %vm1059_vm15, %v1969_v13, %v1056_v17 }
 0x8bb   :  { %v1065_v23 = vsel %vm1062_vm0, %v1064_v21, %v1060_v20 }
 0x8bc   :  { %v1071_v26 = vmul.f32 %v1069_v25, %v1065_v23 }
 0x901   :  { %v1074_v22 = vpop.permute.xlu2 %1073 }
 0x902   :  { %v1076_v24 = vmul.f32 %v1074_v22, %v1065_v23 }
 0x904   :  { %1078 = vrot.lane.b32.xlu0 %v1076_v24, %s2280_s2 }
 0x976   :  { %v1079_v27 = vpop.permute.xlu0 %1078 }
 0x977   :  { %v1081_v28 = vadd.f32 %v1079_v27, %v1071_v26 }
 0x979   :  { %1970 = vtanh.f32 %v1081_v28  ;;  %v1156_v57 = vrot.slane %v1081_v28, 6 }
 0x97f   :  { %v1971_v29 = vpop.eup %1970 }
 0x980   :  { %1084 = vrot.lane.b32.xlu1 %v1971_v29, %s2269_s7 }
 0x9f2   :  { %v1085_v33 = vpop.permute.xlu1 %1084 }
 0x9f3   :  { %v2501_v34 = vmul.f32 %v1085_v33, %v1065_v23 }
 0x9f5   :  { %v1094_v35 = vpack.c.bf16 %v2501_v34, %v2501_v34 }
 0x9f7   :  { %v1100_v36 = vrot.slane %v1094_v35, 2  ;;  %v1913_v35 = vld [vmem:[#allocation17 + $0x8] sm:$0xff] }
 0x9f8   :  { %1293 = vmatpush.bf16.msra.mxu1 %v1913_v35 }
 0x9f9   :  { %1101 = vrot.lane.b32.xlu2 %v1100_v36, %s2280_s2  ;;  %v1912_v36 = vld [vmem:[#allocation17] sm:$0xff] }
 0x9fc   :  { %1294 = vmatpush.bf16.msra.mxu1 %v1912_v36 }
 0xa53   :  { %v1102_v37 = vpop.permute.xlu2 %1101 }
 0xa54   :  { %1802 = vmatmul.msk.bf16.vlgmr.msra.gmra.mxu3 %vm860_vm8, %v1102_v37 }
 0xad7   :  { %v1127_v38 = vpop.f32.mrf.mxu3 }
 0xad8   :  { %v1132_v39 = vrot.slane %v1127_v38, 2 }
 0xada   :  { %v1134_v40 = vadd.f32 %v1132_v39, %v2475_v7 }
 0xadc   :  { %1972 = vtanh.f32 %v1134_v40  ;;  %v1803_v43 = vmul.f32 -1.442695, %v1134_v40 }
 0xade   :  { %1974 = vpow2.f32 %v1803_v43 }
 0xadf   :  { %v1129_v41 = vpop.f32.mrf.mxu3 }
 0xae2   :  { %v1973_v42 = vpop.eup %1972 }
 0xae3   :  { %1160 = vrot.lane.b32.xlu0 %v1973_v42, %s2269_s7 }
 0xae4   :  { %v1975_v44 = vpop.eup %1974 }
 0xae5   :  { %v1138_v45 = vadd.f32 1.0, %v1975_v44 }
 0xae7   :  { %1976 = vrcp.f32 %v1138_v45  ;;  %v1150_v51 = vand.u32 2147483648, %v1138_v45  ;;  %vm1144_vm2 = vweird.f32 %v1138_v45  ;;  %v1148_v52 = vand.u32 2147483647, %v1138_v45 }
 0xae9   :  { %v1151_v53 = vor.u32 1.1754944e-38, %v1150_v51  ;;  %vm1149_vm4 = vcmp.eq.f32.partialorder %v1148_v52, 8.507059e+37 }
 0xaed   :  { %v1977_v46 = vpop.eup %1976 }
 0xaee   :  { %v1140_v47 = vmul.f32 %v1977_v46, %v1138_v45  ;;  %vm1145_vm1 = vweird.f32 %v1977_v46 }
 0xaef   :  { %vm1146_vm3 = vmor %vm1144_vm2, %vm1145_vm1 }
 0xaf0   :  { %v1141_v48 = vsub.f32 1.0, %v1140_v47 }
 0xaf2   :  { %v1142_v49 = vmul.f32 %v1977_v46, %v1141_v48 }
 0xaf4   :  { %v1143_v50 = vadd.f32 %v1977_v46, %v1142_v49 }
 0xaf6   :  { %v1147_v7 = vsel %vm1146_vm3, %v1977_v46, %v1143_v50 }
 0xaf7   :  { %v1152_v55 = vsel %vm1149_vm4, %v1151_v53, %v1147_v7 }
 0xaf8   :  { %v1158_v58 = vmul.f32 %v1156_v57, %v1152_v55 }
 0xb55   :  { %v1161_v54 = vpop.permute.xlu0 %1160 }
 0xb56   :  { %v1163_v56 = vmul.f32 %v1161_v54, %v1152_v55 }
 0xb58   :  { %1165 = vrot.lane.b32.xlu1 %v1163_v56, %s2280_s2 }
 0xbca   :  { %v1166_v59 = vpop.permute.xlu1 %1165 }
 0xbcb   :  { %v1168_v60 = vadd.f32 %v1166_v59, %v1158_v58 }
 0xbcd   :  { %1978 = vtanh.f32 %v1168_v60  ;;  %v1240_v28 = vrot.slane %v1168_v60, 6 }
 0xbd3   :  { %v1979_v61 = vpop.eup %1978 }
 0xbd4   :  { %1171 = vrot.lane.b32.xlu2 %v1979_v61, %s2269_s7 }
 0xc2e   :  { %v1172_v1 = vpop.permute.xlu2 %1171 }
 0xc2f   :  { %v2511_v2 = vmul.f32 %v1172_v1, %v1152_v55 }
 0xc31   :  { %v1181_v3 = vpack.c.bf16 %v2511_v2, %v2511_v2 }
 0xc33   :  { %v1187_v4 = vrot.slane %v1181_v3, 3  ;;  %v1915_v3 = vld [vmem:[#allocation17 + $0x8] sm:$0xff] }
 0xc34   :  { %1379 = vmatpush.bf16.msrb.mxu2 %v1915_v3 }
 0xc35   :  { %1188 = vrot.lane.b32.xlu0 %v1187_v4, %s2280_s2  ;;  %v1914_v4 = vld [vmem:[#allocation17] sm:$0xff] }
 0xc38   :  { %1380 = vmatpush.bf16.msrb.mxu2 %v1914_v4 }
 0xca7   :  { %v1189_v6 = vpop.permute.xlu0 %1188 }
 0xca8   :  { %1812 = vmatmul.msk.bf16.vlgmr.msrb.gmra.mxu0 %vm860_vm8, %v1189_v6 }
 0xd25   :  { %v1214_v10 = vpop.f32.mrf.mxu0 }
 0xd26   :  { %v1218_v11 = vadd.f32 %v1214_v10, %v2518_v9 }
 0xd28   :  { %1980 = vtanh.f32 %v1218_v11  ;;  %v1813_v14 = vmul.f32 -1.442695, %v1218_v11 }
 0xd2a   :  { %1982 = vpow2.f32 %v1813_v14 }
 0xd2d   :  { %v1216_v12 = vpop.f32.mrf.mxu0 }
 0xd2e   :  { %v1981_v13 = vpop.eup %1980 }
 0xd2f   :  { %1244 = vrot.lane.b32.xlu1 %v1981_v13, %s2269_s7 }
 0xd30   :  { %v1983_v15 = vpop.eup %1982 }
 0xd31   :  { %v1222_v16 = vadd.f32 1.0, %v1983_v15 }
 0xd33   :  { %1984 = vrcp.f32 %v1222_v16  ;;  %v1234_v5 = vand.u32 2147483648, %v1222_v16  ;;  %vm1228_vm6 = vweird.f32 %v1222_v16  ;;  %v1232_v22 = vand.u32 2147483647, %v1222_v16 }
 0xd35   :  { %v1235_v24 = vor.u32 1.1754944e-38, %v1234_v5  ;;  %vm1233_vm9 = vcmp.eq.f32.partialorder %v1232_v22, 8.507059e+37 }
 0xd39   :  { %v1985_v17 = vpop.eup %1984 }
 0xd3a   :  { %v1224_v18 = vmul.f32 %v1985_v17, %v1222_v16  ;;  %vm1229_vm5 = vweird.f32 %v1985_v17 }
 0xd3b   :  { %vm1230_vm7 = vmor %vm1228_vm6, %vm1229_vm5  ;;  %vm919_vm5 = vcmask 254976   ;;  %vm1179_vm6 = vcmask 261126  }
 0xd3c   :  { %v1225_v19 = vsub.f32 1.0, %v1224_v18 }
 0xd3e   :  { %v1226_v20 = vmul.f32 %v1985_v17, %v1225_v19 }
 0xd40   :  { %v1227_v21 = vadd.f32 %v1985_v17, %v1226_v20 }
 0xd42   :  { %v1231_v23 = vsel %vm1230_vm7, %v1985_v17, %v1227_v21  ;;  %vm1092_vm7 = vcmask 259076  }
 0xd43   :  { %v1236_v26 = vsel %vm1233_vm9, %v1235_v24, %v1231_v23  ;;  %vm1005_vm9 = vcmask 257026  }
 0xd44   :  { %v1242_v29 = vmul.f32 %v1240_v28, %v1236_v26 }
 0xda1   :  { %v1245_v25 = vpop.permute.xlu1 %1244 }
 0xda2   :  { %v1247_v27 = vmul.f32 %v1245_v25, %v1236_v26 }
 0xda4   :  { %1249 = vrot.lane.b32.xlu2 %v1247_v27, %s2280_s2 }
 0xdfe   :  { %v1250_v30 = vpop.permute.xlu2 %1249 }
 0xdff   :  { %v1252_v31 = vadd.f32 %v1250_v30, %v1242_v29 }
 0xe01   :  { %1986 = vtanh.f32 %v1252_v31  ;;  %v1325_v60 = vrot.slane %v1252_v31, 6 }
 0xe07   :  { %v1987_v33 = vpop.eup %1986 }
 0xe08   :  { %1255 = vrot.lane.b32.xlu0 %v1987_v33, %s2269_s7 }
 0xe7a   :  { %v1256_v37 = vpop.permute.xlu0 %1255 }
 0xe7b   :  { %v2524_v38 = vmul.f32 %v1256_v37, %v1236_v26 }
 0xe7d   :  { %v1264_v39 = vpack.c.bf16 %v2524_v38, %v2524_v38 }
 0xe7f   :  { %1270 = vrot.lane.b32.xlu1 %v1264_v39, %s2280_s2 }
 0xef1   :  { %v1271_v40 = vpop.permute.xlu1 %1270 }
 0xef2   :  { %1822 = vmatmul.msk.bf16.vlgmr.msra.gmra.mxu1 %vm860_vm8, %v1271_v40  ;;  %v1917_v40 = vld [vmem:[#allocation17 + $0x8] sm:$0xff] }
 0xef3   :  { %1465 = vmatpush.bf16.msrb.mxu3 %v1917_v40 }
 0xf6f   :  { %v1296_v41 = vpop.f32.mrf.mxu1 }
 0xf70   :  { %v1301_v42 = vrot.slane %v1296_v41, 6  ;;  %v1916_v41 = vld [vmem:[#allocation17] sm:$0xff] }
 0xf71   :  { %1466 = vmatpush.bf16.msrb.mxu3 %v1916_v41 }
 0xf72   :  { %v1303_v43 = vadd.f32 %v1301_v42, %v2518_v9 }
 0xf74   :  { %1988 = vtanh.f32 %v1303_v43  ;;  %v1823_v46 = vmul.f32 -1.442695, %v1303_v43 }
 0xf76   :  { %1990 = vpow2.f32 %v1823_v46 }
 0xf77   :  { %v1298_v44 = vpop.f32.mrf.mxu1 }
 0xf7a   :  { %v1989_v45 = vpop.eup %1988 }
 0xf7b   :  { %1329 = vrot.lane.b32.xlu2 %v1989_v45, %s2269_s7 }
 0xf7c   :  { %v1991_v47 = vpop.eup %1990 }
 0xf7d   :  { %v1307_v48 = vadd.f32 1.0, %v1991_v47 }
 0xf7f   :  { %1992 = vrcp.f32 %v1307_v48  ;;  %v1319_v53 = vand.u32 2147483648, %v1307_v48  ;;  %vm1313_vm11 = vweird.f32 %v1307_v48  ;;  %v1317_v54 = vand.u32 2147483647, %v1307_v48 }
 0xf81   :  { %v1320_v56 = vor.u32 1.1754944e-38, %v1319_v53  ;;  %vm1318_vm13 = vcmp.eq.f32.partialorder %v1317_v54, 8.507059e+37 }
 0xf85   :  { %v1993_v49 = vpop.eup %1992 }
 0xf86   :  { %v1309_v50 = vmul.f32 %v1993_v49, %v1307_v48  ;;  %vm1314_vm10 = vweird.f32 %v1993_v49 }
 0xf87   :  { %vm1315_vm12 = vmor %vm1313_vm11, %vm1314_vm10 }
 0xf88   :  { %v1310_v51 = vsub.f32 1.0, %v1309_v50 }
 0xf8a   :  { %v1311_v52 = vmul.f32 %v1993_v49, %v1310_v51 }
 0xf8c   :  { %v1312_v7 = vadd.f32 %v1993_v49, %v1311_v52 }
 0xf8e   :  { %v1316_v55 = vsel %vm1315_vm12, %v1993_v49, %v1312_v7 }
 0xf8f   :  { %v1321_v58 = vsel %vm1318_vm13, %v1320_v56, %v1316_v55 }
 0xf90   :  { %v1327_v61 = vmul.f32 %v1325_v60, %v1321_v58 }
 0xfd5   :  { %v1330_v57 = vpop.permute.xlu2 %1329 }
 0xfd6   :  { %v1332_v59 = vmul.f32 %v1330_v57, %v1321_v58 }
 0xfd8   :  { %1334 = vrot.lane.b32.xlu0 %v1332_v59, %s2280_s2 }
0x104a   :  { %v1335_v62 = vpop.permute.xlu0 %1334 }
0x104b   :  { %v1337_v0 = vadd.f32 %v1335_v62, %v1327_v61 }
0x104d   :  { %1994 = vtanh.f32 %v1337_v0  ;;  %v1411_v33 = vrot.slane %v1337_v0, 6 }
0x1053   :  { %v1995_v1 = vpop.eup %1994 }
0x1054   :  { %1340 = vrot.lane.b32.xlu1 %v1995_v1, %s2269_s7 }
0x10c6   :  { %v1341_v6 = vpop.permute.xlu1 %1340 }
0x10c7   :  { %v2534_v8 = vmul.f32 %v1341_v6, %v1321_v58 }
0x10c9   :  { %v1349_v10 = vpack.c.bf16 %v2534_v8, %v2534_v8 }
0x10cb   :  { %v1355_v11 = vrot.slane %v1349_v10, 1 }
0x10cd   :  { %1356 = vrot.lane.b32.xlu2 %v1355_v11, %s2280_s2 }
0x1127   :  { %v1357_v12 = vpop.permute.xlu2 %1356 }
0x1128   :  { %1832 = vmatmul.msk.bf16.vlgmr.msrb.gmra.mxu2 %vm860_vm8, %v1357_v12 }
0x11ab   :  { %v1382_v13 = vpop.f32.mrf.mxu2 }
0x11ac   :  { %v1387_v14 = vrot.slane %v1382_v13, 4 }
0x11ae   :  { %v1389_v15 = vadd.f32 %v1387_v14, %v2518_v9 }
0x11b0   :  { %1996 = vtanh.f32 %v1389_v15  ;;  %v1833_v18 = vmul.f32 -1.442695, %v1389_v15 }
0x11b2   :  { %1998 = vpow2.f32 %v1833_v18 }
0x11b3   :  { %v1384_v16 = vpop.f32.mrf.mxu2 }
0x11b6   :  { %v1997_v17 = vpop.eup %1996 }
0x11b7   :  { %1415 = vrot.lane.b32.xlu0 %v1997_v17, %s2269_s7 }
0x11b8   :  { %v1999_v19 = vpop.eup %1998 }
0x11b9   :  { %v1393_v20 = vadd.f32 1.0, %v1999_v19 }
0x11bb   :  { %2000 = vrcp.f32 %v1393_v20  ;;  %v1405_v25 = vand.u32 2147483648, %v1393_v20  ;;  %vm1399_vm15 = vweird.f32 %v1393_v20  ;;  %v1403_v26 = vand.u32 2147483647, %v1393_v20 }
0x11bd   :  { %v1406_v28 = vor.u32 1.1754944e-38, %v1405_v25  ;;  %vm1404_vm1 = vcmp.eq.f32.partialorder %v1403_v26, 8.507059e+37 }
0x11c1   :  { %v2001_v21 = vpop.eup %2000 }
0x11c2   :  { %v1395_v5 = vmul.f32 %v2001_v21, %v1393_v20  ;;  %vm1400_vm14 = vweird.f32 %v2001_v21 }
0x11c3   :  { %vm1401_vm0 = vmor %vm1399_vm15, %vm1400_vm14 }
0x11c4   :  { %v1396_v22 = vsub.f32 1.0, %v1395_v5 }
0x11c6   :  { %v1397_v23 = vmul.f32 %v2001_v21, %v1396_v22 }
0x11c8   :  { %v1398_v24 = vadd.f32 %v2001_v21, %v1397_v23 }
0x11ca   :  { %v1402_v27 = vsel %vm1401_vm0, %v2001_v21, %v1398_v24 }
0x11cb   :  { %v1407_v30 = vsel %vm1404_vm1, %v1406_v28, %v1402_v27 }
0x11cc   :  { %v1413_v35 = vmul.f32 %v1411_v33, %v1407_v30 }
0x1229   :  { %v1416_v29 = vpop.permute.xlu0 %1415 }
0x122a   :  { %v1418_v31 = vmul.f32 %v1416_v29, %v1407_v30 }
0x122c   :  { %1420 = vrot.lane.b32.xlu1 %v1418_v31, %s2280_s2 }
0x129e   :  { %v1421_v36 = vpop.permute.xlu1 %1420 }
0x129f   :  { %v1423_v37 = vadd.f32 %v1421_v36, %v1413_v35 }
0x12a1   :  { %2002 = vtanh.f32 %v1423_v37  ;;  %v1497_v4 = vrot.slane %v1423_v37, 6 }
0x12a7   :  { %v2003_v39 = vpop.eup %2002 }
0x12a8   :  { %1426 = vrot.lane.b32.xlu2 %v2003_v39, %s2269_s7 }
0x1302   :  { %v1427_v42 = vpop.permute.xlu2 %1426 }
0x1303   :  { %v1429_v43 = vmul.f32 %v1427_v42, %v1407_v30 }
0x1305   :  { %v1435_v44 = vpack.c.bf16 %v1429_v43, %v1429_v43 }
0x1307   :  { %v1441_v45 = vrot.slane %v1435_v44, 2 }
0x1309   :  { %1442 = vrot.lane.b32.xlu0 %v1441_v45, %s2280_s2 }
0x137b   :  { %v1443_v46 = vpop.permute.xlu0 %1442 }
0x137c   :  { %1842 = vmatmul.msk.bf16.vlgmr.msrb.gmra.mxu3 %vm860_vm8, %v1443_v46 }
0x13ff   :  { %v1468_v47 = vpop.f32.mrf.mxu3 }
0x1400   :  { %v1473_v48 = vrot.slane %v1468_v47, 2 }
0x1402   :  { %v1475_v49 = vadd.f32 %v1473_v48, %v2518_v9 }
0x1404   :  { %2004 = vtanh.f32 %v1475_v49  ;;  %v1843_v52 = vmul.f32 -1.442695, %v1475_v49 }
0x1406   :  { %2006 = vpow2.f32 %v1843_v52 }
0x1407   :  { %v1470_v50 = vpop.f32.mrf.mxu3 }
0x140a   :  { %v2005_v51 = vpop.eup %2004 }
0x140b   :  { %1501 = vrot.lane.b32.xlu1 %v2005_v51, %s2269_s7 }
0x140c   :  { %v2007_v7 = vpop.eup %2006 }
0x140d   :  { %v1479_v53 = vadd.f32 1.0, %v2007_v7 }
0x140f   :  { %2008 = vrcp.f32 %v1479_v53  ;;  %v1491_v58 = vand.u32 2147483648, %v1479_v53  ;;  %vm1485_vm2 = vweird.f32 %v1479_v53  ;;  %v1489_v59 = vand.u32 2147483647, %v1479_v53 }
0x1411   :  { %v1492_v60 = vor.u32 1.1754944e-38, %v1491_v58  ;;  %vm1490_vm4 = vcmp.eq.f32.partialorder %v1489_v59, 8.507059e+37 }
0x1413   :  { %916 = vrot.lane.b32.xlu1 %v2481_v32, %s2280_s2 }
0x1415   :  { %v2009_v54 = vpop.eup %2008 }
0x1416   :  { %v1481_v9 = vmul.f32 %v2009_v54, %v1479_v53  ;;  %vm1486_vm8 = vweird.f32 %v2009_v54 }
0x1417   :  { %vm1487_vm3 = vmor %vm1485_vm2, %vm1486_vm8 }
0x1418   :  { %v1482_v55 = vsub.f32 1.0, %v1481_v9 }
0x141a   :  { %v1483_v56 = vmul.f32 %v2009_v54, %v1482_v55 }
0x141b   :  { %1176 = vrot.lane.b32.xlu1 %v2511_v2, %s2280_s2 }
0x141c   :  { %v1484_v57 = vadd.f32 %v2009_v54, %v1483_v56 }
0x141e   :  { %v1488_v32 = vsel %vm1487_vm3, %v2009_v54, %v1484_v57 }
0x141f   :  { %v1493_v61 = vsel %vm1490_vm4, %v1492_v60, %v1488_v32 }
0x1420   :  { %v1499_v6 = vmul.f32 %v1497_v4, %v1493_v61 }
0x1423   :  { %1431 = vrot.lane.b32.xlu1 %v1429_v43, %s2280_s2 }
0x147d   :  { %v1502_v2 = vpop.permute.xlu1 %1501 }
0x147e   :  { %v1504_v62 = vmul.f32 %v1502_v2, %v1493_v61 }
0x1480   :  { %1506 = vrot.lane.b32.xlu2 %v1504_v62, %s2280_s2 }
0x1485   :  { %v917_v0 = vpop.permute.xlu1 %916 }
0x1486   :  { %920 = vst.msk [vmem:[%s2608_s14] sm:$0x3] %vm919_vm5, %v917_v0 }
0x1488   :  { %1002 = vrot.lane.b32.xlu2 %v2491_v63, %s2280_s2 }
0x148d   :  { %v1177_v1 = vpop.permute.xlu1 %1176 }
0x148e   :  { %1180 = vst.msk [vmem:[%s2608_s14] sm:$0xc0] %vm1179_vm6, %v1177_v1 }
0x1490   :  { %1260 = vrot.lane.b32.xlu2 %v2524_v38, %s2280_s2 }
0x1495   :  { %v1432_v3 = vpop.permute.xlu1 %1431 }
0x1496   :  { %1434 = vst.msk [vmem:[%s2608_s14 + $0x8] sm:$0x30] %vm1092_vm7, %v1432_v3 }
0x14da   :  { %v1507_v63 = vpop.permute.xlu2 %1506 }
0x14db   :  { %v1509_v10 = vadd.f32 %v1507_v63, %v1499_v6 }
0x14dd   :  { %2010 = vtanh.f32 %v1509_v10 }
0x14e2   :  { %v1003_v11 = vpop.permute.xlu2 %1002 }
0x14e3   :  { %v2011_v12 = vpop.eup %2010  ;;  %1006 = vst.msk [vmem:[%s2608_s14] sm:$0xc] %vm1005_vm9, %v1003_v11 }
0x14e4   :  { %1512 = vrot.lane.b32.xlu0 %v2011_v12, %s2269_s7 }
0x14ea   :  { %v1261_v38 = vpop.permute.xlu2 %1260 }
0x14eb   :  { %1263 = vst.msk [vmem:[%s2608_s14 + $0x8] sm:$0x3] %vm919_vm5, %v1261_v38 }
0x14ec   :  { %1089 = vrot.lane.b32.xlu0 %v2501_v34, %s2280_s2 }
0x14f4   :  { %1345 = vrot.lane.b32.xlu0 %v2534_v8, %s2280_s2 }
0x1556   :  { %v1513_v13 = vpop.permute.xlu0 %1512 }
0x1557   :  { %v1515_v14 = vmul.f32 %v1513_v13, %v1493_v61 }
0x1559   :  { %1517 = vrot.lane.b32.xlu2 %v1515_v14, %s2280_s2 }
0x155e   :  { %v1090_v15 = vpop.permute.xlu0 %1089 }
0x155f   :  { %1093 = vst.msk [vmem:[%s2608_s14] sm:$0x30] %vm1092_vm7, %v1090_v15 }
0x1566   :  { %v1346_v16 = vpop.permute.xlu0 %1345 }
0x1567   :  { %1348 = vst.msk [vmem:[%s2608_s14 + $0x8] sm:$0xc] %vm1005_vm9, %v1346_v16 }
0x15b3   :  { %v1518_v17 = vpop.permute.xlu2 %1517 }
0x15b4   :  { %1520 = vst.msk [vmem:[%s2608_s14 + $0x8] sm:$0xc0] %vm1179_vm6, %v1518_v17 }
0x15b5   :  { %1525 = vsyncpa [#allocation4], 1 }
0x15b6   :  { %1526 = vsyncpa [#allocation6], 1 }
0x15b7   :  { %1527 = vsyncpa [#allocation9], 1 }
0x15b8   :  { %1528 = vsyncpa [#allocation12], 1 }
0x15b9   :  { %1529 = vsyncpa [#allocation15], 1 }
0x15ba   :  { %1530 = vsyncpa [#allocation18], 1 }

// kernel: semantic_comm_forward.5
= control target key start
LH: loop header
LB: loop body
LE: loop exit
PB: predicated region body
PF: predicated region fallthrough
CT: control target
= control target key end

     0   :  { %s4459_s0 = inlined_call_operand.vmem [shape: f32[16,32], index: 0, kind: input, shape index: {}]   ;;  %s4460_s1 = inlined_call_operand.hbm [shape: bf16[32,36864], index: 1, kind: input, shape index: {}]   ;;  %s4461_s2 = inlined_call_operand.hbm [shape: f32[1,36864], index: 2, kind: input, shape index: {}]   ;;  %s4462_s3 = inlined_call_operand.hbm [shape: f32[16,35632], index: 3, kind: output, shape index: {}]  }
   0x1   :  { %4463 = sst [smem:[#allocation11_spill]] %s4460_s1 }
   0x2   :  { %8 = vsyncpa [#allocation3], 0 }
   0x3   :  { %10 = vsyncpa [#allocation3 + $0x1], 0 }
   0x4   :  { %11 = vsyncpa [#allocation6], 0 }
   0x5   :  { %13 = vsyncpa [#allocation6 + $0x1], 0 }
   0x6   :  { %14 = vsyncpa [#allocation4], 0 }
   0x7   :  { %16 = vsyncpa [#allocation4 + $0x1], 0  ;;  %s3580_s12 = smov 0   ;;  %s3582_s13 = smov 0  }
   0x8   :  { %s3584_s14 = smov 0   ;;  %s3586_s15 = smov 0  }
   0x9 LB: > { %s3601_s16 = sadd.s32 4294967295, %s3552_s15   ;;  %s2543_s17 = sadd.s32 4294967294, %s3552_s15   ;;  %s3552_s15 = sphi %s3586_s15, %s4474_s15   ;;  %s3548_s14 = sphi %s3584_s14, %s4473_s14   ;;  %s3544_s13 = sphi %s3582_s13, %s4472_s13   ;;  %s3540_s12 = sphi %s3580_s12, %s4471_s12  }
   0xa   : > { %s3605_s18 = sadd.s32 1, %s3552_s15   ;;  %s50_s19 = sadd.s32 1, %s3548_s14 }
   0xb   : > { %s47_s20 = ssub.s32 %s3552_s15, %s3605_s18  ;;  %p57_p0 = scmp.ne.s32.totalorder %s3548_s14, %s3544_s13 }
   0xc   : > { %p48_p1 = scmp.eq.s32.totalorder %s47_s20, 0  ;;  %p58_p2 = scmp.eq.s32.totalorder %s3552_s15, 0 }
   0xd   : > { %p63_p3 = scmp.ne.s32.totalorder %s3544_s13, %s3540_s12  ;;  %p64_p4 = scmp.eq.s32.totalorder %s3601_s16, 0 }
   0xe   : > { %s3617_s21 = scalar_select %p48_p1, %s3548_s14, %s50_s19  }
   0xf   : > { %p59_p5 = por %p58_p2, %p57_p0  ;;  %p3619_p6 = por %p64_p4, %p63_p3 }
  0x10   : > { %p113_p7 = scmp.eq.s32.totalorder %s3601_s16, 3  ;;  %p119_p8 = scmp.eq.s32.totalorder %s2543_s17, 3 }
  0x11   : > { %p3372_p9 = scmp.lt.s32.totalorder %s3552_s15, 4  ;;  %s3634_s25 = sand.u32 1, %s3548_s14  }
  0x12   : > { %p3625_p10 = por %p113_p7, %p57_p0  ;;  %p3629_p11 = por %p119_p8, %p63_p3 }
  0x13   : > { %s3204_s26 = smul.u32 288, %s3552_s15  ;;  %s4467_s1 = sld [smem:[#allocation11_spill]] }
  0x14   : > { %s3352_s27 = smul.u32 1152, %s3634_s25  ;;  %p3641_p12 = pnand %p3372_p9, %p59_p5 }
  0x15   : > { %p2547_p13 = scmp.ge.s32.totalorder %s3552_s15, 1  ;;  %s143_s8 = scalar_lea.sflag [#allocation3], %s3634_s25 }
  0x16   : > { %s146_s6 = scalar_lea.vmem [#allocation2], %s3352_s27  ;;  %p3415_p1 = pneg %p3641_p12 }
  0x17   : > { %s154_s7 = sshll.u32 %s146_s6, 4  ;;  %s155_s7 = int_to_ptr.vmem [resolvable:$true] %s154_s7 }
  0x19   : > { %s151_s30 = scalar_lea.hbm %s4467_s1, %s3204_s26  ;;  %s3418_s19 = scalar_lea.hbm %s4467_s1, 4608 }
  0x1a   : > { %s152_s5 = sshll.u32 %s151_s30, 4  ;;  %s153_s5 = int_to_ptr.hbm [resolvable:$true] %s152_s5 }
  0x1b   : > { %s3411_s9 = sshra.s32 %s153_s5, 4  ;;  %s3412_s9 = int_to_ptr.hbm [resolvable:$true] %s3411_s9 }
  0x1c   : > { %s3413_s10 = scalar_lea.hbm %s3412_s9, 1152  ;;  %p3419_p4 = scmp.lt.s32.totalorder %s3412_s9, %s4467_s1 }
  0x1d   : > { %p3414_p0 = scmp.ne.s32.totalorder %s3412_s9, %s3413_s10  ;;  %p3420_p5 = scmp.lt.s32.totalorder %s3418_s19, %s3413_s10 }
  0x1f   : > { %p3416_p2 = pnand %p3415_p1, %p3414_p0  ;;  %p3421_p7 = por %p3420_p5, %p3419_p4 }
  0x21   : > { %p3417_p3 = pneg %p3416_p2 }
  0x23   : > { %p3422_p8 = pnand %p3421_p7, %p3417_p3 }
  0x25   : > { %3425 = shalt.err (!%p3422_p8)
}
  0x26   : > { %s3554_s27 = smov 18432   ;;  %s3555_s28 = smov 4608  }
  0x27   : > { %s3556_s29 = smov 288   ;;  %p181_p9 = scmp.lt.s32.totalorder %s3552_s15, 5 }
  0x28   : > { %3364 = dma.hbm_to_vmem [thread:$0]  (!%p3641_p12), %s153_s5, 18432, %s155_s7, %s143_s8, %s3554_s27, %s3555_s28, %s3556_s29  }
  0x29   : > { %s3353_s30 = smul.u32 72, %s3634_s25  ;;  %p3664_p0 = pnand %p2547_p13, %p181_p9 }
  0x2a   : > { %s169_s9 = smul.u32 72, %s3552_s15  ;;  %s165_s1 = scalar_lea.sflag [#allocation6], %s3634_s25 }
  0x2b   : > { %s168_s19 = scalar_lea.vmem [#allocation5], %s3353_s30  ;;  %s3448_s28 = scalar_lea.hbm %s4461_s2, 288 }
  0x2c   : > { %s172_s17 = scalar_lea.hbm %s4461_s2, %s169_s9  ;;  %s176_s20 = sshll.u32 %s168_s19, 4  ;;  %s177_s20 = int_to_ptr.vmem [resolvable:$true] %s176_s20 }
  0x2d   : > { %s174_s26 = sshll.u32 %s172_s17, 4  ;;  %s175_s26 = int_to_ptr.hbm [resolvable:$true] %s174_s26 }
  0x2e   : > { %s3441_s5 = sshra.s32 %s175_s26, 4  ;;  %s3442_s5 = int_to_ptr.hbm [resolvable:$true] %s3441_s5 }
  0x2f   : > { %s3443_s7 = scalar_lea.hbm %s3442_s5, 72  ;;  %p3449_p4 = scmp.lt.s32.totalorder %s3442_s5, %s4461_s2 }
  0x30   : > { %p3444_p2 = scmp.ne.s32.totalorder %s3442_s5, %s3443_s7  ;;  %p3450_p5 = scmp.lt.s32.totalorder %s3448_s28, %s3443_s7 }
  0x32   : > { %p3446_p13 = pnand %p3444_p2, %p3415_p1  ;;  %p3451_p7 = por %p3450_p5, %p3449_p4 }
  0x34   : > { %p3447_p3 = pneg %p3446_p13 }
  0x36   : > { %p3452_p8 = pnand %p3451_p7, %p3447_p3 }
  0x38   : > { %3455 = shalt.err (!%p3452_p8)
}
  0x39   : > { %3367 = dma.hbm_to_vmem [thread:$0]  (!%p3641_p12), %s175_s26, 1152, %s177_s20, %s165_s1  }
  0x3a   : > { %185 = sbr.rel (%p3664_p0) target bundleno = 528 (0x210), region = 32  ;;  %s3687_s25 = sand.u32 (!%p3664_p0), 1, %s3544_s13  }
  0x3b   : > { %s3354_s30 = smul.u32 (!%p3664_p0), 1152, %s3687_s25  ;;  %s188_s10 = scalar_lea.sflag (!%p3664_p0), [#allocation3], %s3687_s25 }
  0x3d   : > { %s3693_s11 = scalar_lea.vmem (!%p3664_p0), [#allocation2], %s3354_s30 }
  0x3f   : > { %3527 = dma.done.wait (%p3619_p6), %s188_s10, 18432  }
  0x40   : > { %3529 = vsyncadd (%p3619_p6), %s188_s10, 4294948864  ;;  %s3355_s1 = smul.u32 72, %s3687_s25  ;;  %s198_s4 = scalar_lea.sflag [#allocation6], %s3687_s25 }
  0x42   : > { %s3701_s6 = scalar_lea.vmem [#allocation5], %s3355_s1 }
  0x43   : > { %3531 = dma.done.wait (%p3619_p6), %s198_s4, 1152  }
  0x44   : > { %3533 = vsyncadd (%p3619_p6), %s198_s4, 4294966144  ;;  %v2838_v0 = vld [vmem:[%s3693_s11 + $0x240] sm:$0xf]  ;;  %v3277_v2 = vld [vmem:[%s3693_s11 + $0x244] sm:$0xf]  ;;  %vm1267_vm0 = vcmask 261120  }
  0x45   : > { %v3313_v1 = vld [vmem:[%s3693_s11 + $0x35c] sm:$0xf0]  ;;  %v2840_v4 = vld [vmem:[%s3693_s11 + $0x360] sm:$0xf0]  ;;  %v2846_v5 = vld [vmem:[%s3693_s11 + $0x248] sm:$0xf] }
  0x46   : > { %v2839_v3 = vor.u32 %v3313_v1, %v2838_v0  ;;  %v3314_v6 = vld [vmem:[%s3693_s11 + $0x364] sm:$0xf0]  ;;  %v2843_v7 = vor.u32 %v3277_v2, %v2840_v4  ;;  %v3278_v9 = vld [vmem:[%s3693_s11 + $0x24c] sm:$0xf]  ;;  %v2550_v11 = vld [vmem:[%s3693_s11] sm:$0xf] }
  0x47   : > { %v2847_v8 = vor.u32 %v3314_v6, %v2846_v5  ;;  %v2848_v10 = vld [vmem:[%s3693_s11 + $0x368] sm:$0xf0]  ;;  %v3241_v13 = vld [vmem:[%s3693_s11 + $0x11c] sm:$0xf0]  ;;  %v3205_v14 = vld [vmem:[%s3693_s11 + $0x4] sm:$0xf] }
  0x48   : > { %1277 = vmatpush.bf16.msra.mxu0 %v2839_v3  ;;  %v2851_v12 = vor.u32 %v3278_v9, %v2848_v10  ;;  %v2552_v15 = vld [vmem:[%s3693_s11 + $0x120] sm:$0xf0]  ;;  %1291 = vmatpush.bf16.msra.mxu1 %v2843_v7  ;;  %v2551_v16 = vor.u32 %v3241_v13, %v2550_v11  ;;  %v2558_v18 = vld [vmem:[%s3693_s11 + $0x8] sm:$0xf]  ;;  %v3206_v20 = vld [vmem:[%s3693_s11 + $0xc] sm:$0xf] }
  0x49   : > { %1305 = vmatpush.bf16.msra.mxu2 %v2847_v8  ;;  %v2555_v17 = vor.u32 %v3205_v14, %v2552_v15  ;;  %v3242_v19 = vld [vmem:[%s3693_s11 + $0x124] sm:$0xf0]  ;;  %v2560_v22 = vld [vmem:[%s3693_s11 + $0x128] sm:$0xf0]  ;;  %v238_v23 = vld [vmem:[%s4459_s0] sm:$0xff]  ;;  %s3957_s26 = scalar_lea.vmem [#allocation7], %s3354_s30 }
  0x4a   : > { %1319 = vmatpush.bf16.msra.mxu3 %v2851_v12  ;;  %v2559_v21 = vor.u32 %v3242_v19, %v2558_v18  ;;  %v239_v24 = vld [vmem:[%s4459_s0 + $0x8] sm:$0xff]  ;;  %v2563_v25 = vor.u32 %v3206_v20, %v2560_v22  ;;  %v2862_v27 = vld [vmem:[%s3693_s11 + $0x258] sm:$0xf]  ;;  %v3280_v29 = vld [vmem:[%s3693_s11 + $0x25c] sm:$0xf]  ;;  %s2424_s5 = scalar_lea.sflag [#allocation4], %s3687_s25 }
  0x4b   : > { %v3729_v26 = vpack.c.bf16 %v239_v24, %v238_v23  ;;  %v3316_v28 = vld [vmem:[%s3693_s11 + $0x374] sm:$0xf0]  ;;  %v2864_v31 = vld [vmem:[%s3693_s11 + $0x378] sm:$0xf0]  ;;  %v2854_v32 = vld [vmem:[%s3693_s11 + $0x250] sm:$0xf] }
  0x4c   : > { %1278 = vmatpush.bf16.msra.mxu0 %v2551_v16  ;;  %v2863_v30 = vor.u32 %v3316_v28, %v2862_v27  ;;  %v3315_v33 = vld [vmem:[%s3693_s11 + $0x36c] sm:$0xf0]  ;;  %1292 = vmatpush.bf16.msra.mxu1 %v2555_v17  ;;  %v2867_v34 = vor.u32 %v3280_v29, %v2864_v31  ;;  %v3279_v36 = vld [vmem:[%s3693_s11 + $0x254] sm:$0xf]  ;;  %v2574_v38 = vld [vmem:[%s3693_s11 + $0x18] sm:$0xf] }
  0x4d   : > { %1306 = vmatpush.bf16.msra.mxu2 %v2559_v21  ;;  %v2855_v35 = vor.u32 %v3315_v33, %v2854_v32  ;;  %v2856_v37 = vld [vmem:[%s3693_s11 + $0x370] sm:$0xf0]  ;;  %v3244_v40 = vld [vmem:[%s3693_s11 + $0x134] sm:$0xf0]  ;;  %v3208_v41 = vld [vmem:[%s3693_s11 + $0x1c] sm:$0xf] }
  0x4e   : > { %1320 = vmatpush.bf16.msra.mxu3 %v2563_v25  ;;  %v2859_v39 = vor.u32 %v3279_v36, %v2856_v37  ;;  %v2576_v42 = vld [vmem:[%s3693_s11 + $0x138] sm:$0xf0]  ;;  %v2575_v43 = vor.u32 %v3244_v40, %v2574_v38  ;;  %v2566_v45 = vld [vmem:[%s3693_s11 + $0x10] sm:$0xf]  ;;  %v3207_v47 = vld [vmem:[%s3693_s11 + $0x14] sm:$0xf] }
  0x4f   : > { %3124 = vmatmul.msk.bf16.vlgmr.msra.gmra.mxu0 %vm1267_vm0, %v3729_v26  ;;  %v2579_v44 = vor.u32 %v3208_v41, %v2576_v42  ;;  %v3243_v46 = vld [vmem:[%s3693_s11 + $0x12c] sm:$0xf0]  ;;  %3125 = vmatmul.msk.bf16.vlgmr.msra.gmra.mxu1 %vm1267_vm0, %v3729_v26  ;;  %v2568_v48 = vld [vmem:[%s3693_s11 + $0x130] sm:$0xf0]  ;;  %v2878_v49 = vld [vmem:[%s3693_s11 + $0x268] sm:$0xf] }
  0x50   : > { %3126 = vmatmul.msk.bf16.vlgmr.msra.gmra.mxu2 %vm1267_vm0, %v3729_v26  ;;  %v3318_v50 = vld [vmem:[%s3693_s11 + $0x384] sm:$0xf0]  ;;  %1333 = vmatpush.bf16.msrb.mxu0 %v2855_v35  ;;  %v2567_v51 = vor.u32 %v3243_v46, %v2566_v45  ;;  %v3282_v53 = vld [vmem:[%s3693_s11 + $0x26c] sm:$0xf]  ;;  %v2870_v55 = vld [vmem:[%s3693_s11 + $0x260] sm:$0xf]  ;;  %v2571_v56 = vor.u32 %v3207_v47, %v2568_v48 }
  0x51   : > { %1361 = vmatpush.bf16.msrb.mxu2 %v2863_v30  ;;  %3127 = vmatmul.msk.bf16.vlgmr.msra.gmra.mxu3 %vm1267_vm0, %v3729_v26  ;;  %v2879_v52 = vor.u32 %v3318_v50, %v2878_v49  ;;  %v2880_v54 = vld [vmem:[%s3693_s11 + $0x388] sm:$0xf0]  ;;  %v3317_v58 = vld [vmem:[%s3693_s11 + $0x37c] sm:$0xf0]  ;;  %v3281_v59 = vld [vmem:[%s3693_s11 + $0x264] sm:$0xf] }
  0x52   : > { %1375 = vmatpush.bf16.msrb.mxu3 %v2867_v34  ;;  %1347 = vmatpush.bf16.msrb.mxu1 %v2859_v39  ;;  %v2883_v57 = vor.u32 %v3282_v53, %v2880_v54  ;;  %v2872_v60 = vld [vmem:[%s3693_s11 + $0x380] sm:$0xf0]  ;;  %v2871_v61 = vor.u32 %v3317_v58, %v2870_v55  ;;  %v2590_v63 = vld [vmem:[%s3693_s11 + $0x28] sm:$0xf]  ;;  %v3210_v1 = vld [vmem:[%s3693_s11 + $0x2c] sm:$0xf] }
  0x53   : > { %v2875_v62 = vor.u32 %v3281_v59, %v2872_v60  ;;  %v3246_v0 = vld [vmem:[%s3693_s11 + $0x144] sm:$0xf0]  ;;  %v2592_v3 = vld [vmem:[%s3693_s11 + $0x148] sm:$0xf0]  ;;  %v2582_v4 = vld [vmem:[%s3693_s11 + $0x20] sm:$0xf] }
  0x54   : > { %v2591_v2 = vor.u32 %v3246_v0, %v2590_v63  ;;  %v3245_v5 = vld [vmem:[%s3693_s11 + $0x13c] sm:$0xf0]  ;;  %1334 = vmatpush.bf16.msrb.mxu0 %v2567_v51  ;;  %v2595_v6 = vor.u32 %v3210_v1, %v2592_v3  ;;  %v3209_v7 = vld [vmem:[%s3693_s11 + $0x24] sm:$0xf]  ;;  %v2894_v11 = vld [vmem:[%s3693_s11 + $0x278] sm:$0xf] }
  0x55   : > { %1362 = vmatpush.bf16.msrb.mxu2 %v2575_v43  ;;  %v2584_v8 = vld [vmem:[%s3693_s11 + $0x140] sm:$0xf0]  ;;  %v2583_v9 = vor.u32 %v3245_v5, %v2582_v4  ;;  %v3320_v12 = vld [vmem:[%s3693_s11 + $0x394] sm:$0xf0]  ;;  %v3284_v13 = vld [vmem:[%s3693_s11 + $0x27c] sm:$0xf] }
  0x56   : > { %1376 = vmatpush.bf16.msrb.mxu3 %v2579_v44  ;;  %1348 = vmatpush.bf16.msrb.mxu1 %v2571_v56  ;;  %v2587_v10 = vor.u32 %v3209_v7, %v2584_v8  ;;  %v2896_v14 = vld [vmem:[%s3693_s11 + $0x398] sm:$0xf0]  ;;  %v2886_v15 = vld [vmem:[%s3693_s11 + $0x270] sm:$0xf]  ;;  %v3283_v17 = vld [vmem:[%s3693_s11 + $0x274] sm:$0xf]  ;;  %v2895_v19 = vor.u32 %v3320_v12, %v2894_v11 }
  0x57   : > { %v3319_v16 = vld [vmem:[%s3693_s11 + $0x38c] sm:$0xf0]  ;;  %v2888_v18 = vld [vmem:[%s3693_s11 + $0x390] sm:$0xf0]  ;;  %v2899_v20 = vor.u32 %v3284_v13, %v2896_v14  ;;  %v2606_v22 = vld [vmem:[%s3693_s11 + $0x38] sm:$0xf] }
  0x58   : > { %1389 = vmatpush.bf16.msra.mxu0 %v2871_v61  ;;  %v2887_v21 = vor.u32 %v3319_v16, %v2886_v15  ;;  %v3248_v23 = vld [vmem:[%s3693_s11 + $0x154] sm:$0xf0]  ;;  %v3212_v24 = vld [vmem:[%s3693_s11 + $0x3c] sm:$0xf]  ;;  %v2891_v25 = vor.u32 %v3283_v17, %v2888_v18  ;;  %v2598_v28 = vld [vmem:[%s3693_s11 + $0x30] sm:$0xf] }
  0x59   : > { %1417 = vmatpush.bf16.msra.mxu2 %v2879_v52  ;;  %v2608_v27 = vld [vmem:[%s3693_s11 + $0x158] sm:$0xf0]  ;;  %v3247_v29 = vld [vmem:[%s3693_s11 + $0x14c] sm:$0xf0]  ;;  %v3211_v30 = vld [vmem:[%s3693_s11 + $0x34] sm:$0xf]  ;;  %v2607_v32 = vor.u32 %v3248_v23, %v2606_v22 }
  0x5a   : > { %1431 = vmatpush.bf16.msra.mxu3 %v2883_v57  ;;  %1403 = vmatpush.bf16.msra.mxu1 %v2875_v62  ;;  %v2600_v31 = vld [vmem:[%s3693_s11 + $0x150] sm:$0xf0]  ;;  %v2611_v33 = vor.u32 %v3212_v24, %v2608_v27  ;;  %v2599_v34 = vor.u32 %v3247_v29, %v2598_v28  ;;  %v2910_v36 = vld [vmem:[%s3693_s11 + $0x288] sm:$0xf]  ;;  %v3286_v38 = vld [vmem:[%s3693_s11 + $0x28c] sm:$0xf] }
  0x5b   : > { %v2603_v35 = vor.u32 %v3211_v30, %v2600_v31  ;;  %v3322_v37 = vld [vmem:[%s3693_s11 + $0x3a4] sm:$0xf0]  ;;  %v2912_v39 = vld [vmem:[%s3693_s11 + $0x3a8] sm:$0xf0]  ;;  %v2902_v40 = vld [vmem:[%s3693_s11 + $0x280] sm:$0xf] }
  0x5c   : > { %1390 = vmatpush.bf16.msra.mxu0 %v2583_v9  ;;  %v3321_v41 = vld [vmem:[%s3693_s11 + $0x39c] sm:$0xf0]  ;;  %v3285_v42 = vld [vmem:[%s3693_s11 + $0x284] sm:$0xf]  ;;  %v2911_v44 = vor.u32 %v3322_v37, %v2910_v36  ;;  %v2915_v45 = vor.u32 %v3286_v38, %v2912_v39  ;;  %v2622_v47 = vld [vmem:[%s3693_s11 + $0x48] sm:$0xf] }
  0x5d   : > { %1418 = vmatpush.bf16.msra.mxu2 %v2591_v2  ;;  %v2904_v43 = vld [vmem:[%s3693_s11 + $0x3a0] sm:$0xf0]  ;;  %v2903_v46 = vor.u32 %v3321_v41, %v2902_v40  ;;  %v3250_v48 = vld [vmem:[%s3693_s11 + $0x164] sm:$0xf0]  ;;  %v3214_v49 = vld [vmem:[%s3693_s11 + $0x4c] sm:$0xf] }
  0x5e   : > { %1432 = vmatpush.bf16.msra.mxu3 %v2595_v6  ;;  %1404 = vmatpush.bf16.msra.mxu1 %v2587_v10  ;;  %v2907_v50 = vor.u32 %v3285_v42, %v2904_v43  ;;  %v2624_v51 = vld [vmem:[%s3693_s11 + $0x168] sm:$0xf0]  ;;  %v2614_v52 = vld [vmem:[%s3693_s11 + $0x40] sm:$0xf]  ;;  %v3213_v54 = vld [vmem:[%s3693_s11 + $0x44] sm:$0xf]  ;;  %v2623_v56 = vor.u32 %v3250_v48, %v2622_v47 }
  0x5f   : > { %3128 = vmatmul.msk.bf16.vlgmr.msrb.gmra.mxu0 %vm1267_vm0, %v3729_v26  ;;  %3129 = vmatmul.msk.bf16.vlgmr.msrb.gmra.mxu1 %vm1267_vm0, %v3729_v26  ;;  %v3249_v53 = vld [vmem:[%s3693_s11 + $0x15c] sm:$0xf0]  ;;  %v2616_v55 = vld [vmem:[%s3693_s11 + $0x160] sm:$0xf0]  ;;  %v2627_v57 = vor.u32 %v3214_v49, %v2624_v51  ;;  %v2926_v60 = vld [vmem:[%s3693_s11 + $0x298] sm:$0xf] }
  0x60   : > { %3130 = vmatmul.msk.bf16.vlgmr.msrb.gmra.mxu2 %vm1267_vm0, %v3729_v26  ;;  %1445 = vmatpush.bf16.msrb.mxu0 %v2887_v21  ;;  %v2615_v58 = vor.u32 %v3249_v53, %v2614_v52  ;;  %v2619_v59 = vor.u32 %v3213_v54, %v2616_v55  ;;  %v3324_v61 = vld [vmem:[%s3693_s11 + $0x3b4] sm:$0xf0]  ;;  %v3288_v62 = vld [vmem:[%s3693_s11 + $0x29c] sm:$0xf]  ;;  %v2918_v0 = vld [vmem:[%s3693_s11 + $0x290] sm:$0xf] }
  0x61   : > { %3131 = vmatmul.msk.bf16.vlgmr.msrb.gmra.mxu3 %vm1267_vm0, %v3729_v26  ;;  %1473 = vmatpush.bf16.msrb.mxu2 %v2895_v19  ;;  %v2928_v63 = vld [vmem:[%s3693_s11 + $0x3b8] sm:$0xf0]  ;;  %v3323_v1 = vld [vmem:[%s3693_s11 + $0x3ac] sm:$0xf0]  ;;  %v3287_v2 = vld [vmem:[%s3693_s11 + $0x294] sm:$0xf]  ;;  %v2927_v4 = vor.u32 %v3324_v61, %v2926_v60 }
  0x62   : > { %1487 = vmatpush.bf16.msrb.mxu3 %v2899_v20  ;;  %1459 = vmatpush.bf16.msrb.mxu1 %v2891_v25  ;;  %v2920_v3 = vld [vmem:[%s3693_s11 + $0x3b0] sm:$0xf0]  ;;  %v2931_v5 = vor.u32 %v3288_v62, %v2928_v63  ;;  %v2919_v6 = vor.u32 %v3323_v1, %v2918_v0  ;;  %v2638_v7 = vld [vmem:[%s3693_s11 + $0x58] sm:$0xf]  ;;  %v3216_v9 = vld [vmem:[%s3693_s11 + $0x5c] sm:$0xf] }
  0x63   : > { %v3252_v8 = vld [vmem:[%s3693_s11 + $0x174] sm:$0xf0]  ;;  %v2923_v10 = vor.u32 %v3287_v2, %v2920_v3  ;;  %v2640_v11 = vld [vmem:[%s3693_s11 + $0x178] sm:$0xf0]  ;;  %v2630_v12 = vld [vmem:[%s3693_s11 + $0x50] sm:$0xf] }
  0x64   : > { %1446 = vmatpush.bf16.msrb.mxu0 %v2599_v34  ;;  %v3251_v13 = vld [vmem:[%s3693_s11 + $0x16c] sm:$0xf0]  ;;  %v3215_v14 = vld [vmem:[%s3693_s11 + $0x54] sm:$0xf]  ;;  %v2639_v16 = vor.u32 %v3252_v8, %v2638_v7  ;;  %v2643_v17 = vor.u32 %v3216_v9, %v2640_v11  ;;  %v2942_v20 = vld [vmem:[%s3693_s11 + $0x2a8] sm:$0xf] }
  0x65   : > { %1474 = vmatpush.bf16.msrb.mxu2 %v2607_v32  ;;  %v2632_v15 = vld [vmem:[%s3693_s11 + $0x170] sm:$0xf0]  ;;  %v2631_v18 = vor.u32 %v3251_v13, %v2630_v12  ;;  %v3326_v21 = vld [vmem:[%s3693_s11 + $0x3c4] sm:$0xf0]  ;;  %v3290_v22 = vld [vmem:[%s3693_s11 + $0x2ac] sm:$0xf] }
  0x66   : > { %1488 = vmatpush.bf16.msrb.mxu3 %v2611_v33  ;;  %1460 = vmatpush.bf16.msrb.mxu1 %v2603_v35  ;;  %v2635_v19 = vor.u32 %v3215_v14, %v2632_v15  ;;  %v2944_v23 = vld [vmem:[%s3693_s11 + $0x3c8] sm:$0xf0]  ;;  %v2934_v24 = vld [vmem:[%s3693_s11 + $0x2a0] sm:$0xf]  ;;  %v3289_v27 = vld [vmem:[%s3693_s11 + $0x2a4] sm:$0xf]  ;;  %v2943_v29 = vor.u32 %v3326_v21, %v2942_v20 }
  0x67   : > { %v3325_v25 = vld [vmem:[%s3693_s11 + $0x3bc] sm:$0xf0]  ;;  %v2936_v28 = vld [vmem:[%s3693_s11 + $0x3c0] sm:$0xf0]  ;;  %v2947_v30 = vor.u32 %v3290_v22, %v2944_v23  ;;  %v2654_v32 = vld [vmem:[%s3693_s11 + $0x68] sm:$0xf] }
  0x68   : > { %v2935_v31 = vor.u32 %v3325_v25, %v2934_v24  ;;  %v3254_v33 = vld [vmem:[%s3693_s11 + $0x184] sm:$0xf0]  ;;  %v3218_v34 = vld [vmem:[%s3693_s11 + $0x6c] sm:$0xf]  ;;  %v2939_v35 = vor.u32 %v3289_v27, %v2936_v28  ;;  %v2646_v37 = vld [vmem:[%s3693_s11 + $0x60] sm:$0xf] }
  0x69   : > { %v2656_v36 = vld [vmem:[%s3693_s11 + $0x188] sm:$0xf0]  ;;  %v3253_v38 = vld [vmem:[%s3693_s11 + $0x17c] sm:$0xf0]  ;;  %v3217_v39 = vld [vmem:[%s3693_s11 + $0x64] sm:$0xf]  ;;  %v2655_v41 = vor.u32 %v3254_v33, %v2654_v32 }
  0x6a   : > { %v2648_v40 = vld [vmem:[%s3693_s11 + $0x180] sm:$0xf0]  ;;  %v2659_v42 = vor.u32 %v3218_v34, %v2656_v36  ;;  %v2647_v43 = vor.u32 %v3253_v38, %v2646_v37  ;;  %v3292_v47 = vld [vmem:[%s3693_s11 + $0x2bc] sm:$0xf]  ;;  %v2950_v49 = vld [vmem:[%s3693_s11 + $0x2b0] sm:$0xf] }
  0x6b   : > { %v2960_v48 = vld [vmem:[%s3693_s11 + $0x3d8] sm:$0xf0]  ;;  %v3291_v51 = vld [vmem:[%s3693_s11 + $0x2b4] sm:$0xf]  ;;  %v2662_v61 = vld [vmem:[%s3693_s11 + $0x70] sm:$0xf] }
  0x6c   : > { %v2952_v52 = vld [vmem:[%s3693_s11 + $0x3d0] sm:$0xf0]  ;;  %v2963_v54 = vor.u32 %v3292_v47, %v2960_v48  ;;  %v2672_v60 = vld [vmem:[%s3693_s11 + $0x198] sm:$0xf0]  ;;  %v3255_v62 = vld [vmem:[%s3693_s11 + $0x18c] sm:$0xf0] }
  0x6d   : > { %v3219_v63 = vld [vmem:[%s3693_s11 + $0x74] sm:$0xf]  ;;  %v2663_v3 = vor.u32 %v3255_v62, %v2662_v61  ;;  %v3294_v7 = vld [vmem:[%s3693_s11 + $0x2cc] sm:$0xf]  ;;  %v2966_v9 = vld [vmem:[%s3693_s11 + $0x2c0] sm:$0xf] }
  0x6e   : > { %v2664_v0 = vld [vmem:[%s3693_s11 + $0x190] sm:$0xf0]  ;;  %v2976_v8 = vld [vmem:[%s3693_s11 + $0x3e8] sm:$0xf0]  ;;  %v3293_v11 = vld [vmem:[%s3693_s11 + $0x2c4] sm:$0xf] }
  0x6f   : > { %3132 = vmatmul.msk.bf16.vlgmr.msra.gmra.mxu0 %vm1267_vm0, %v3729_v26  ;;  %3133 = vmatmul.msk.bf16.vlgmr.msra.gmra.mxu1 %vm1267_vm0, %v3729_v26  ;;  %v2968_v12 = vld [vmem:[%s3693_s11 + $0x3e0] sm:$0xf0]  ;;  %v2979_v14 = vor.u32 %v3294_v7, %v2976_v8  ;;  %v2688_v20 = vld [vmem:[%s3693_s11 + $0x1a8] sm:$0xf0]  ;;  %v2678_v21 = vld [vmem:[%s3693_s11 + $0x80] sm:$0xf] }
  0x70   : > { %3134 = vmatmul.msk.bf16.vlgmr.msra.gmra.mxu2 %vm1267_vm0, %v3729_v26  ;;  %1501 = vmatpush.bf16.msra.mxu0 %v2903_v46  ;;  %v3328_v46 = vld [vmem:[%s3693_s11 + $0x3d4] sm:$0xf0]  ;;  %v3257_v22 = vld [vmem:[%s3693_s11 + $0x19c] sm:$0xf0]  ;;  %v3221_v23 = vld [vmem:[%s3693_s11 + $0x84] sm:$0xf] }
  0x71   : > { %3135 = vmatmul.msk.bf16.vlgmr.msra.gmra.mxu3 %vm1267_vm0, %v3729_v26  ;;  %1529 = vmatpush.bf16.msra.mxu2 %v2911_v44  ;;  %v2651_v44 = vor.u32 %v3217_v39, %v2648_v40  ;;  %v2680_v24 = vld [vmem:[%s3693_s11 + $0x1a0] sm:$0xf0]  ;;  %v2679_v28 = vor.u32 %v3257_v22, %v2678_v21  ;;  %v3296_v32 = vld [vmem:[%s3693_s11 + $0x2dc] sm:$0xf]  ;;  %v2982_v34 = vld [vmem:[%s3693_s11 + $0x2d0] sm:$0xf] }
  0x72   : > { %1543 = vmatpush.bf16.msra.mxu3 %v2915_v45  ;;  %1515 = vmatpush.bf16.msra.mxu1 %v2907_v50  ;;  %v2958_v45 = vld [vmem:[%s3693_s11 + $0x2b8] sm:$0xf]  ;;  %v3327_v50 = vld [vmem:[%s3693_s11 + $0x3cc] sm:$0xf0]  ;;  %v2992_v33 = vld [vmem:[%s3693_s11 + $0x3f8] sm:$0xf0] }
  0x73   : > { %v2959_v53 = vor.u32 %v3328_v46, %v2958_v45  ;;  %v2951_v55 = vor.u32 %v3327_v50, %v2950_v49  ;;  %v3295_v36 = vld [vmem:[%s3693_s11 + $0x2d4] sm:$0xf]  ;;  %v2995_v39 = vor.u32 %v3296_v32, %v2992_v33  ;;  %v2704_v45 = vld [vmem:[%s3693_s11 + $0x1b8] sm:$0xf0]  ;;  %v2694_v46 = vld [vmem:[%s3693_s11 + $0x90] sm:$0xf] }
  0x74   : > { %1502 = vmatpush.bf16.msra.mxu0 %v2615_v58  ;;  %v3220_v58 = vld [vmem:[%s3693_s11 + $0x7c] sm:$0xf]  ;;  %v2984_v37 = vld [vmem:[%s3693_s11 + $0x3f0] sm:$0xf0]  ;;  %v3259_v47 = vld [vmem:[%s3693_s11 + $0x1ac] sm:$0xf0] }
  0x75   : > { %1530 = vmatpush.bf16.msra.mxu2 %v2623_v56  ;;  %v2670_v56 = vld [vmem:[%s3693_s11 + $0x78] sm:$0xf]  ;;  %v2675_v2 = vor.u32 %v3220_v58, %v2672_v60  ;;  %v3223_v48 = vld [vmem:[%s3693_s11 + $0x94] sm:$0xf]  ;;  %v3334_v58 = vld [vmem:[%s3693_s11 + $0x404] sm:$0xf0] }
  0x76   : > { %1544 = vmatpush.bf16.msra.mxu3 %v2627_v57  ;;  %1516 = vmatpush.bf16.msra.mxu1 %v2619_v59  ;;  %v3256_v57 = vld [vmem:[%s3693_s11 + $0x194] sm:$0xf0]  ;;  %v2955_v59 = vor.u32 %v3291_v51, %v2952_v52  ;;  %v2696_v49 = vld [vmem:[%s3693_s11 + $0x1b0] sm:$0xf0]  ;;  %v2695_v52 = vor.u32 %v3259_v47, %v2694_v46  ;;  %v3008_v60 = vld [vmem:[%s3693_s11 + $0x408] sm:$0xf0] }
  0x77   : > { %v2671_v1 = vor.u32 %v3256_v57, %v2670_v56  ;;  %v3006_v57 = vld [vmem:[%s3693_s11 + $0x2e8] sm:$0xf]  ;;  %v2998_v61 = vld [vmem:[%s3693_s11 + $0x2e0] sm:$0xf]  ;;  %s2431_s7 = smul.u32 (%p3625_p10), 72, %s3601_s16 }
  0x78   : > { %v3333_v62 = vld [vmem:[%s3693_s11 + $0x3fc] sm:$0xf0]  ;;  %v2718_v8 = vld [vmem:[%s3693_s11 + $0xa8] sm:$0xf] }
  0x79   : > { %v2999_v7 = vor.u32 %v3333_v62, %v2998_v61  ;;  %v3227_v62 = vld [vmem:[%s3693_s11 + $0xb4] sm:$0xf]  ;;  %s2432_s8 = ssub.s32 (%p3625_p10), 279, %s2431_s7 }
  0x7a   : > { %p2433_p6 = scmp.lt.s32.totalorder (%p3625_p10), %s2432_s8, 72 }
  0x7f   : > { %3136 = vmatmul.msk.bf16.vlgmr.msrb.gmra.mxu0 %vm1267_vm0, %v3729_v26  ;;  %3137 = vmatmul.msk.bf16.vlgmr.msrb.gmra.mxu1 %vm1267_vm0, %v3729_v26 }
  0x80   : > { %3138 = vmatmul.msk.bf16.vlgmr.msrb.gmra.mxu2 %vm1267_vm0, %v3729_v26  ;;  %1557 = vmatpush.bf16.msrb.mxu0 %v2919_v6  ;;  %v3330_v6 = vld [vmem:[%s3693_s11 + $0x3e4] sm:$0xf0] }
  0x81   : > { %3139 = vmatmul.msk.bf16.vlgmr.msrb.gmra.mxu3 %vm1267_vm0, %v3729_v26  ;;  %1585 = vmatpush.bf16.msrb.mxu2 %v2927_v4  ;;  %v2667_v4 = vor.u32 %v3219_v63, %v2664_v0  ;;  %v3297_v0 = vld [vmem:[%s3693_s11 + $0x2e4] sm:$0xf] }
  0x82   : > { %1599 = vmatpush.bf16.msrb.mxu3 %v2931_v5  ;;  %1571 = vmatpush.bf16.msrb.mxu1 %v2923_v10  ;;  %v2974_v5 = vld [vmem:[%s3693_s11 + $0x2c8] sm:$0xf]  ;;  %v3329_v10 = vld [vmem:[%s3693_s11 + $0x3dc] sm:$0xf0] }
  0x83   : > { %v2975_v13 = vor.u32 %v3330_v6, %v2974_v5  ;;  %v2967_v15 = vor.u32 %v3329_v10, %v2966_v9  ;;  %v3262_v9 = vld [vmem:[%s3693_s11 + $0x1c4] sm:$0xf0]  ;;  %v3226_v10 = vld [vmem:[%s3693_s11 + $0xac] sm:$0xf] }
  0x84   : > { %1558 = vmatpush.bf16.msrb.mxu0 %v2631_v18  ;;  %v3222_v18 = vld [vmem:[%s3693_s11 + $0x8c] sm:$0xf] }
  0x85   : > { %1586 = vmatpush.bf16.msrb.mxu2 %v2639_v16  ;;  %v2686_v16 = vld [vmem:[%s3693_s11 + $0x88] sm:$0xf]  ;;  %v2691_v27 = vor.u32 %v3222_v18, %v2688_v20 }
  0x86   : > { %1600 = vmatpush.bf16.msrb.mxu3 %v2643_v17  ;;  %1572 = vmatpush.bf16.msrb.mxu1 %v2635_v19  ;;  %v3258_v17 = vld [vmem:[%s3693_s11 + $0x1a4] sm:$0xf0]  ;;  %v2971_v19 = vor.u32 %v3293_v11, %v2968_v12  ;;  %v2720_v12 = vld [vmem:[%s3693_s11 + $0x1c8] sm:$0xf0] }
  0x87   : > { %v2687_v25 = vor.u32 %v3258_v17, %v2686_v16  ;;  %v3225_v16 = vld [vmem:[%s3693_s11 + $0xa4] sm:$0xf]  ;;  %v2723_v20 = vor.u32 %v3226_v10, %v2720_v12  ;;  %v4014_v12 = vld [vmem:[%s3701_s6 + $0x8] sm:$0xff] }
  0x88   : > { %v2712_v17 = vld [vmem:[%s3693_s11 + $0x1c0] sm:$0xf0] }
  0x8f   : > { %3140 = vmatmul.msk.bf16.vlgmr.msra.gmra.mxu0 %vm1267_vm0, %v3729_v26  ;;  %3141 = vmatmul.msk.bf16.vlgmr.msra.gmra.mxu1 %vm1267_vm0, %v3729_v26 }
  0x90   : > { %3142 = vmatmul.msk.bf16.vlgmr.msra.gmra.mxu2 %vm1267_vm0, %v3729_v26  ;;  %1613 = vmatpush.bf16.msra.mxu0 %v2935_v31  ;;  %v3332_v31 = vld [vmem:[%s3693_s11 + $0x3f4] sm:$0xf0] }
  0x91   : > { %3143 = vmatmul.msk.bf16.vlgmr.msra.gmra.mxu3 %vm1267_vm0, %v3729_v26  ;;  %1641 = vmatpush.bf16.msra.mxu2 %v2943_v29  ;;  %v2683_v29 = vor.u32 %v3221_v23, %v2680_v24  ;;  %v2715_v23 = vor.u32 %v3225_v16, %v2712_v17  ;;  %v3338_v16 = vld [vmem:[%s3693_s11 + $0x424] sm:$0xf0]  ;;  %v3302_v17 = vld [vmem:[%s3693_s11 + $0x30c] sm:$0xf] }
  0x92   : > { %1655 = vmatpush.bf16.msra.mxu3 %v2947_v30  ;;  %1627 = vmatpush.bf16.msra.mxu1 %v2939_v35  ;;  %v2990_v30 = vld [vmem:[%s3693_s11 + $0x2d8] sm:$0xf]  ;;  %v3331_v35 = vld [vmem:[%s3693_s11 + $0x3ec] sm:$0xf0] }
  0x93   : > { %v2991_v38 = vor.u32 %v3332_v31, %v2990_v30  ;;  %v2983_v40 = vor.u32 %v3331_v35, %v2982_v34  ;;  %v3022_v34 = vld [vmem:[%s3693_s11 + $0x2f8] sm:$0xf] }
  0x94   : > { %1614 = vmatpush.bf16.msra.mxu0 %v2647_v43  ;;  %v3224_v43 = vld [vmem:[%s3693_s11 + $0x9c] sm:$0xf]  ;;  %v3336_v35 = vld [vmem:[%s3693_s11 + $0x414] sm:$0xf0] }
  0x95   : > { %1642 = vmatpush.bf16.msra.mxu2 %v2655_v41  ;;  %v2702_v41 = vld [vmem:[%s3693_s11 + $0x98] sm:$0xf]  ;;  %v2707_v51 = vor.u32 %v3224_v43, %v2704_v45  ;;  %v3016_v45 = vld [vmem:[%s3693_s11 + $0x410] sm:$0xf0] }
  0x96   : > { %1656 = vmatpush.bf16.msra.mxu3 %v2659_v42  ;;  %1628 = vmatpush.bf16.msra.mxu1 %v2651_v44  ;;  %v3260_v42 = vld [vmem:[%s3693_s11 + $0x1b4] sm:$0xf0]  ;;  %v2987_v44 = vor.u32 %v3295_v36, %v2984_v37  ;;  %v3300_v36 = vld [vmem:[%s3693_s11 + $0x2fc] sm:$0xf] }
  0x97   : > { %v2703_v50 = vor.u32 %v3260_v42, %v2702_v41 }
  0x9f   : > { %3144 = vmatmul.msk.bf16.vlgmr.msrb.gmra.mxu0 %vm1267_vm0, %v3729_v26  ;;  %3145 = vmatmul.msk.bf16.vlgmr.msrb.gmra.mxu1 %vm1267_vm0, %v3729_v26 }
  0xa0   : > { %3146 = vmatmul.msk.bf16.vlgmr.msrb.gmra.mxu2 %vm1267_vm0, %v3729_v26  ;;  %1669 = vmatpush.bf16.msrb.mxu0 %v2951_v55 }
  0xa1   : > { %3147 = vmatmul.msk.bf16.vlgmr.msrb.gmra.mxu3 %vm1267_vm0, %v3729_v26  ;;  %1697 = vmatpush.bf16.msrb.mxu2 %v2959_v53  ;;  %v2699_v53 = vor.u32 %v3223_v48, %v2696_v49  ;;  %v3023_v49 = vor.u32 %v3336_v35, %v3022_v34 }
  0xa2   : > { %1711 = vmatpush.bf16.msrb.mxu3 %v2963_v54  ;;  %1683 = vmatpush.bf16.msrb.mxu1 %v2955_v59  ;;  %v3940_v54 = vld [vmem:[%s3701_s6] sm:$0xff] }
  0xa3   : > { %v403_v55 = vperm.slane %v3940_v54, 0  ;;  %v404_v56 = vperm.slane %v3940_v54, 1  ;;  %v3298_v59 = vld [vmem:[%s3693_s11 + $0x2ec] sm:$0xf]  ;;  %v406_v18 = vperm.slane %v3940_v54, 3  ;;  %v407_v32 = vperm.slane %v3940_v54, 4 }
  0xa4   : > { %1670 = vmatpush.bf16.msrb.mxu0 %v2663_v3  ;;  %v3011_v6 = vor.u32 %v3298_v59, %v3008_v60  ;;  %v408_v33 = vperm.slane %v3940_v54, 5  ;;  %v2726_v59 = vld [vmem:[%s3693_s11 + $0xb0] sm:$0xf]  ;;  %v409_v61 = vperm.slane %v3940_v54, 6 }
  0xa5   : > { %1698 = vmatpush.bf16.msrb.mxu2 %v2671_v1  ;;  %v3000_v1 = vld [vmem:[%s3693_s11 + $0x400] sm:$0xf0]  ;;  %v3263_v60 = vld [vmem:[%s3693_s11 + $0x1cc] sm:$0xf0] }
  0xa6   : > { %1712 = vmatpush.bf16.msrb.mxu3 %v2675_v2  ;;  %1684 = vmatpush.bf16.msrb.mxu1 %v2667_v4  ;;  %v3007_v4 = vor.u32 %v3334_v58, %v3006_v57  ;;  %v3003_v11 = vor.u32 %v3297_v0, %v3000_v1  ;;  %v2736_v57 = vld [vmem:[%s3693_s11 + $0x1d8] sm:$0xf0]  ;;  %v410_v0 = vperm.slane %v3940_v54, 7 }
  0xaf   : > { %3148 = vmatmul.msk.bf16.vlgmr.msra.gmra.mxu0 %vm1267_vm0, %v3729_v26  ;;  %3149 = vmatmul.msk.bf16.vlgmr.msra.gmra.mxu1 %vm1267_vm0, %v3729_v26 }
  0xb0   : > { %3150 = vmatmul.msk.bf16.vlgmr.msra.gmra.mxu2 %vm1267_vm0, %v3729_v26  ;;  %1725 = vmatpush.bf16.msra.mxu0 %v2967_v15  ;;  %v405_v15 = vperm.slane %v3940_v54, 2 }
  0xb1   : > { %3151 = vmatmul.msk.bf16.vlgmr.msra.gmra.mxu3 %vm1267_vm0, %v3729_v26  ;;  %1753 = vmatpush.bf16.msra.mxu2 %v2975_v13  ;;  %v2710_v13 = vld [vmem:[%s3693_s11 + $0xa0] sm:$0xf] }
  0xb2   : > { %1767 = vmatpush.bf16.msra.mxu3 %v2979_v14  ;;  %1739 = vmatpush.bf16.msra.mxu1 %v2971_v19  ;;  %v3261_v14 = vld [vmem:[%s3693_s11 + $0x1bc] sm:$0xf0]  ;;  %v2719_v19 = vor.u32 %v3262_v9, %v2718_v8 }
  0xb3   : > { %v2711_v21 = vor.u32 %v3261_v14, %v2710_v13  ;;  %v411_v13 = vperm.slane %v4014_v12, 0  ;;  %v412_v14 = vperm.slane %v4014_v12, 1 }
  0xb4   : > { %1726 = vmatpush.bf16.msra.mxu0 %v2679_v28 }
  0xb5   : > { %1754 = vmatpush.bf16.msra.mxu2 %v2687_v25 }
  0xb6   : > { %1768 = vmatpush.bf16.msra.mxu3 %v2691_v27  ;;  %1740 = vmatpush.bf16.msra.mxu1 %v2683_v29 }
  0xbf   : > { %3152 = vmatmul.msk.bf16.vlgmr.msrb.gmra.mxu0 %vm1267_vm0, %v3729_v26  ;;  %3153 = vmatmul.msk.bf16.vlgmr.msrb.gmra.mxu1 %vm1267_vm0, %v3729_v26 }
  0xc0   : > { %3154 = vmatmul.msk.bf16.vlgmr.msrb.gmra.mxu2 %vm1267_vm0, %v3729_v26  ;;  %1781 = vmatpush.bf16.msrb.mxu0 %v2983_v40  ;;  %v3335_v40 = vld [vmem:[%s3693_s11 + $0x40c] sm:$0xf0] }
  0xc1   : > { %3155 = vmatmul.msk.bf16.vlgmr.msrb.gmra.mxu3 %vm1267_vm0, %v3729_v26  ;;  %1809 = vmatpush.bf16.msrb.mxu2 %v2991_v38  ;;  %v3024_v38 = vld [vmem:[%s3693_s11 + $0x418] sm:$0xf0] }
  0xc2   : > { %1823 = vmatpush.bf16.msrb.mxu3 %v2995_v39  ;;  %1795 = vmatpush.bf16.msrb.mxu1 %v2987_v44  ;;  %v3014_v39 = vld [vmem:[%s3693_s11 + $0x2f0] sm:$0xf]  ;;  %v3299_v44 = vld [vmem:[%s3693_s11 + $0x2f4] sm:$0xf] }
  0xc3   : > { %v3019_v58 = vor.u32 %v3299_v44, %v3016_v45  ;;  %v2744_v44 = vld [vmem:[%s3693_s11 + $0x1e0] sm:$0xf0]  ;;  %v414_v45 = vperm.slane %v4014_v12, 3 }
  0xc4   : > { %1782 = vmatpush.bf16.msrb.mxu0 %v2695_v52 }
  0xc5   : > { %1810 = vmatpush.bf16.msrb.mxu2 %v2703_v50  ;;  %v2734_v50 = vld [vmem:[%s3693_s11 + $0xb8] sm:$0xf] }
  0xc6   : > { %1824 = vmatpush.bf16.msrb.mxu3 %v2707_v51  ;;  %1796 = vmatpush.bf16.msrb.mxu1 %v2699_v53  ;;  %v3264_v51 = vld [vmem:[%s3693_s11 + $0x1d4] sm:$0xf0]  ;;  %v3027_v53 = vor.u32 %v3300_v36, %v3024_v38  ;;  %v2752_v38 = vld [vmem:[%s3693_s11 + $0x1e8] sm:$0xf0] }
  0xc7   : > { %v2735_v1 = vor.u32 %v3264_v51, %v2734_v50 }
  0xcc   : > { %v1280_v63 = vpop.f32.mrf.mxu0  ;;  %v1294_v3 = vpop.f32.mrf.mxu1 }
  0xcd   : > { %v1281_v2 = vadd.f32 %v1280_v63, %v403_v55  ;;  %v1295_v5 = vadd.f32 %v1294_v3, %v404_v56  ;;  %v2728_v63 = vld [vmem:[%s3693_s11 + $0x1d0] sm:$0xf0]  ;;  %v2727_v3 = vor.u32 %v3263_v60, %v2726_v59  ;;  %v415_v59 = vperm.slane %v4014_v12, 4 }
  0xce   : > { %v416_v60 = vperm.slane %v4014_v12, 5 }
  0xcf   : > { %2279 = vst [vmem:[%s3957_s26] sm:$0xff] %v1281_v2  ;;  %3156 = vmatmul.msk.bf16.vlgmr.msra.gmra.mxu0 %vm1267_vm0, %v3729_v26  ;;  %3157 = vmatmul.msk.bf16.vlgmr.msra.gmra.mxu1 %vm1267_vm0, %v3729_v26 }
  0xd0   : > { %2280 = vst [vmem:[%s3957_s26 + $0x8] sm:$0xff] %v1295_v5  ;;  %3158 = vmatmul.msk.bf16.vlgmr.msra.gmra.mxu2 %vm1267_vm0, %v3729_v26  ;;  %1837 = vmatpush.bf16.msra.mxu0 %v2999_v7  ;;  %v2731_v5 = vor.u32 %v3227_v62, %v2728_v63  ;;  %v3340_v62 = vld [vmem:[%s3693_s11 + $0x434] sm:$0xf0]  ;;  %v3304_v63 = vld [vmem:[%s3693_s11 + $0x31c] sm:$0xf] }
  0xd1   : > { %3159 = vmatmul.msk.bf16.vlgmr.msra.gmra.mxu3 %vm1267_vm0, %v3729_v26  ;;  %1865 = vmatpush.bf16.msra.mxu2 %v3007_v4 }
  0xd2   : > { %1879 = vmatpush.bf16.msra.mxu3 %v3011_v6  ;;  %1851 = vmatpush.bf16.msra.mxu1 %v3003_v11 }
  0xd3   : > { %v1308_v22 = vpop.f32.mrf.mxu2 }
  0xd4   : > { %v1309_v24 = vadd.f32 %v1308_v22, %v405_v15  ;;  %v1322_v25 = vpop.f32.mrf.mxu3  ;;  %v1282_v27 = vpop.f32.mrf.mxu0  ;;  %1838 = vmatpush.bf16.msra.mxu0 %v2711_v21  ;;  %v3337_v21 = vld [vmem:[%s3693_s11 + $0x41c] sm:$0xf0] }
  0xd5   : > { %v1323_v28 = vadd.f32 %v1322_v25, %v406_v18  ;;  %v1283_v29 = vadd.f32 %v1282_v27, %v403_v55  ;;  %v1296_v30 = vpop.f32.mrf.mxu1  ;;  %1866 = vmatpush.bf16.msra.mxu2 %v2719_v19  ;;  %v3015_v55 = vor.u32 %v3335_v40, %v3014_v39  ;;  %v3040_v19 = vld [vmem:[%s3693_s11 + $0x428] sm:$0xf0]  ;;  %v3301_v25 = vld [vmem:[%s3693_s11 + $0x304] sm:$0xf]  ;;  %v2742_v40 = vld [vmem:[%s3693_s11 + $0xc0] sm:$0xf] }
  0xd6   : > { %2281 = vst [vmem:[%s3957_s26 + $0x10] sm:$0xff] %v1309_v24  ;;  %v1297_v31 = vadd.f32 %v1296_v30, %v404_v56  ;;  %1880 = vmatpush.bf16.msra.mxu3 %v2723_v20  ;;  %1852 = vmatpush.bf16.msra.mxu1 %v2715_v23  ;;  %v3228_v56 = vld [vmem:[%s3693_s11 + $0xbc] sm:$0xf]  ;;  %v3030_v20 = vld [vmem:[%s3693_s11 + $0x300] sm:$0xf]  ;;  %v3043_v35 = vor.u32 %v3302_v17, %v3040_v19 }
  0xd7   : > { %2282 = vst [vmem:[%s3957_s26 + $0x18] sm:$0xff] %v1323_v28  ;;  %v2739_v2 = vor.u32 %v3228_v56, %v2736_v57  ;;  %v3032_v27 = vld [vmem:[%s3693_s11 + $0x420] sm:$0xf0]  ;;  %v3031_v36 = vor.u32 %v3337_v21, %v3030_v20  ;;  %v2768_v19 = vld [vmem:[%s3693_s11 + $0x1f8] sm:$0xf0] }
  0xd8   : > { %2351 = vst [vmem:[%s3957_s26 + $0x240] sm:$0xff] %v1283_v29  ;;  %v3035_v39 = vor.u32 %v3301_v25, %v3032_v27  ;;  %v2758_v21 = vld [vmem:[%s3693_s11 + $0xd0] sm:$0xf]  ;;  %v2760_v25 = vld [vmem:[%s3693_s11 + $0x1f0] sm:$0xf0]  ;;  %v418_v27 = vperm.slane %v4014_v12, 7 }
  0xd9   : > { %2352 = vst [vmem:[%s3957_s26 + $0x248] sm:$0xff] %v1297_v31 }
  0xdb   : > { %v1310_v37 = vpop.f32.mrf.mxu2 }
  0xdc   : > { %v1311_v41 = vadd.f32 %v1310_v37, %v405_v15  ;;  %v1324_v42 = vpop.f32.mrf.mxu3  ;;  %v1336_v43 = vpop.f32.mrf.mxu0  ;;  %v3038_v15 = vld [vmem:[%s3693_s11 + $0x308] sm:$0xf]  ;;  %v3230_v37 = vld [vmem:[%s3693_s11 + $0xcc] sm:$0xf] }
  0xdd   : > { %v1325_v46 = vadd.f32 %v1324_v42, %v406_v18  ;;  %v1337_v47 = vadd.f32 %v1336_v43, %v407_v32  ;;  %v1350_v48 = vpop.f32.mrf.mxu1  ;;  %v3039_v31 = vor.u32 %v3338_v16, %v3038_v15  ;;  %v413_v42 = vperm.slane %v4014_v12, 2  ;;  %v3229_v43 = vld [vmem:[%s3693_s11 + $0xc4] sm:$0xf] }
  0xde   : > { %2353 = vst [vmem:[%s3957_s26 + $0x250] sm:$0xff] %v1311_v41  ;;  %v1351_v52 = vadd.f32 %v1350_v48, %v408_v33  ;;  %v3265_v41 = vld [vmem:[%s3693_s11 + $0x1dc] sm:$0xf0]  ;;  %v2747_v50 = vor.u32 %v3229_v43, %v2744_v44  ;;  %v3342_v43 = vld [vmem:[%s3693_s11 + $0x444] sm:$0xf0] }
  0xdf   : > { %2354 = vst [vmem:[%s3957_s26 + $0x258] sm:$0xff] %v1325_v46  ;;  %3160 = vmatmul.msk.bf16.vlgmr.msrb.gmra.mxu0 %vm1267_vm0, %v3729_v26  ;;  %3161 = vmatmul.msk.bf16.vlgmr.msrb.gmra.mxu1 %vm1267_vm0, %v3729_v26  ;;  %v2743_v48 = vor.u32 %v3265_v41, %v2742_v40  ;;  %v3306_v44 = vld [vmem:[%s3693_s11 + $0x32c] sm:$0xf] }
  0xe0   : > { %2283 = vst [vmem:[%s3957_s26 + $0x20] sm:$0xff] %v1337_v47  ;;  %3162 = vmatmul.msk.bf16.vlgmr.msrb.gmra.mxu2 %vm1267_vm0, %v3729_v26  ;;  %1893 = vmatpush.bf16.msrb.mxu0 %v3015_v55  ;;  %v2755_v47 = vor.u32 %v3230_v37, %v2752_v38 }
  0xe1   : > { %2284 = vst [vmem:[%s3957_s26 + $0x28] sm:$0xff] %v1351_v52  ;;  %3163 = vmatmul.msk.bf16.vlgmr.msrb.gmra.mxu3 %vm1267_vm0, %v3729_v26  ;;  %1921 = vmatpush.bf16.msrb.mxu2 %v3023_v49 }
  0xe2   : > { %1935 = vmatpush.bf16.msrb.mxu3 %v3027_v53  ;;  %1907 = vmatpush.bf16.msrb.mxu1 %v3019_v58 }
  0xe3   : > { %v1364_v4 = vpop.f32.mrf.mxu2 }
  0xe4   : > { %v1365_v6 = vadd.f32 %v1364_v4, %v409_v61  ;;  %v1378_v7 = vpop.f32.mrf.mxu3  ;;  %v1338_v8 = vpop.f32.mrf.mxu0  ;;  %1894 = vmatpush.bf16.msrb.mxu0 %v2727_v3  ;;  %v3339_v3 = vld [vmem:[%s3693_s11 + $0x42c] sm:$0xf0] }
  0xe5   : > { %v1379_v9 = vadd.f32 %v1378_v7, %v410_v0  ;;  %v1339_v54 = vadd.f32 %v1338_v8, %v407_v32  ;;  %v1352_v10 = vpop.f32.mrf.mxu1  ;;  %1922 = vmatpush.bf16.msrb.mxu2 %v2735_v1  ;;  %v2750_v32 = vld [vmem:[%s3693_s11 + $0xc8] sm:$0xf]  ;;  %v3056_v1 = vld [vmem:[%s3693_s11 + $0x438] sm:$0xf0]  ;;  %v3303_v7 = vld [vmem:[%s3693_s11 + $0x314] sm:$0xf] }
  0xe6   : > { %2285 = vst [vmem:[%s3957_s26 + $0x30] sm:$0xff] %v1365_v6  ;;  %v1353_v11 = vadd.f32 %v1352_v10, %v408_v33  ;;  %1936 = vmatpush.bf16.msrb.mxu3 %v2739_v2  ;;  %1908 = vmatpush.bf16.msrb.mxu1 %v2731_v5  ;;  %v3266_v33 = vld [vmem:[%s3693_s11 + $0x1e4] sm:$0xf0]  ;;  %v3046_v2 = vld [vmem:[%s3693_s11 + $0x310] sm:$0xf]  ;;  %v3059_v16 = vor.u32 %v3304_v63, %v3056_v1 }
  0xe7   : > { %2286 = vst [vmem:[%s3957_s26 + $0x38] sm:$0xff] %v1379_v9  ;;  %v2751_v46 = vor.u32 %v3266_v33, %v2750_v32  ;;  %v3048_v8 = vld [vmem:[%s3693_s11 + $0x430] sm:$0xf0]  ;;  %v3047_v17 = vor.u32 %v3339_v3, %v3046_v2  ;;  %v2784_v1 = vld [vmem:[%s3693_s11 + $0x208] sm:$0xf0] }
  0xe8   : > { %2355 = vst [vmem:[%s3957_s26 + $0x260] sm:$0xff] %v1339_v54  ;;  %v3051_v20 = vor.u32 %v3303_v7, %v3048_v8  ;;  %v2774_v3 = vld [vmem:[%s3693_s11 + $0xe0] sm:$0xf]  ;;  %v2776_v7 = vld [vmem:[%s3693_s11 + $0x200] sm:$0xf0] }
  0xe9   : > { %2356 = vst [vmem:[%s3957_s26 + $0x268] sm:$0xff] %v1353_v11 }
  0xeb   : > { %v1366_v18 = vpop.f32.mrf.mxu2 }
  0xec   : > { %v1367_v22 = vadd.f32 %v1366_v18, %v409_v61  ;;  %v1380_v23 = vpop.f32.mrf.mxu3  ;;  %v1392_v24 = vpop.f32.mrf.mxu0  ;;  %v3054_v61 = vld [vmem:[%s3693_s11 + $0x318] sm:$0xf]  ;;  %v3232_v18 = vld [vmem:[%s3693_s11 + $0xdc] sm:$0xf] }
  0xed   : > { %v1381_v28 = vadd.f32 %v1380_v23, %v410_v0  ;;  %v1393_v29 = vadd.f32 %v1392_v24, %v411_v13  ;;  %v1406_v30 = vpop.f32.mrf.mxu1  ;;  %v3055_v11 = vor.u32 %v3340_v62, %v3054_v61  ;;  %v417_v23 = vperm.slane %v4014_v12, 6  ;;  %v3231_v24 = vld [vmem:[%s3693_s11 + $0xd4] sm:$0xf] }
  0xee   : > { %2357 = vst [vmem:[%s3957_s26 + $0x270] sm:$0xff] %v1367_v22  ;;  %v1407_v34 = vadd.f32 %v1406_v30, %v412_v14  ;;  %v3267_v22 = vld [vmem:[%s3693_s11 + $0x1ec] sm:$0xf0]  ;;  %v2763_v32 = vor.u32 %v3231_v24, %v2760_v25  ;;  %v3344_v24 = vld [vmem:[%s3693_s11 + $0x454] sm:$0xf0] }
  0xef   : > { %2358 = vst [vmem:[%s3957_s26 + $0x278] sm:$0xff] %v1381_v28  ;;  %3164 = vmatmul.msk.bf16.vlgmr.msra.gmra.mxu0 %vm1267_vm0, %v3729_v26  ;;  %3165 = vmatmul.msk.bf16.vlgmr.msra.gmra.mxu1 %vm1267_vm0, %v3729_v26  ;;  %v2759_v30 = vor.u32 %v3267_v22, %v2758_v21  ;;  %v3308_v25 = vld [vmem:[%s3693_s11 + $0x33c] sm:$0xf] }
  0xf0   : > { %2287 = vst [vmem:[%s3957_s26 + $0x40] sm:$0xff] %v1393_v29  ;;  %3166 = vmatmul.msk.bf16.vlgmr.msra.gmra.mxu2 %vm1267_vm0, %v3729_v26  ;;  %1949 = vmatpush.bf16.msra.mxu0 %v3031_v36  ;;  %v2771_v29 = vor.u32 %v3232_v18, %v2768_v19 }
  0xf1   : > { %2288 = vst [vmem:[%s3957_s26 + $0x48] sm:$0xff] %v1407_v34  ;;  %3167 = vmatmul.msk.bf16.vlgmr.msra.gmra.mxu3 %vm1267_vm0, %v3729_v26  ;;  %1977 = vmatpush.bf16.msra.mxu2 %v3039_v31 }
  0xf2   : > { %1991 = vmatpush.bf16.msra.mxu3 %v3043_v35  ;;  %1963 = vmatpush.bf16.msra.mxu1 %v3035_v39  ;;  %v4089_v39 = vld [vmem:[%s3701_s6 + $0x10] sm:$0xff] }
  0xf3   : > { %v1420_v49 = vpop.f32.mrf.mxu2  ;;  %v419_v40 = vperm.slane %v4089_v39, 0  ;;  %v420_v41 = vperm.slane %v4089_v39, 1  ;;  %v422_v8 = vperm.slane %v4089_v39, 3  ;;  %v423_v21 = vperm.slane %v4089_v39, 4 }
  0xf4   : > { %v1421_v51 = vadd.f32 %v1420_v49, %v413_v42  ;;  %v1434_v52 = vpop.f32.mrf.mxu3  ;;  %v1394_v53 = vpop.f32.mrf.mxu0  ;;  %1950 = vmatpush.bf16.msra.mxu0 %v2743_v48  ;;  %v3341_v48 = vld [vmem:[%s3693_s11 + $0x43c] sm:$0xf0]  ;;  %v424_v22 = vperm.slane %v4089_v39, 5 }
  0xf5   : > { %v1435_v55 = vadd.f32 %v1434_v52, %v414_v45  ;;  %v1395_v56 = vadd.f32 %v1394_v53, %v411_v13  ;;  %v1408_v57 = vpop.f32.mrf.mxu1  ;;  %1978 = vmatpush.bf16.msra.mxu2 %v2751_v46  ;;  %v2766_v13 = vld [vmem:[%s3693_s11 + $0xd8] sm:$0xf]  ;;  %v3072_v46 = vld [vmem:[%s3693_s11 + $0x448] sm:$0xf0]  ;;  %v3305_v52 = vld [vmem:[%s3693_s11 + $0x324] sm:$0xf] }
  0xf6   : > { %2289 = vst [vmem:[%s3957_s26 + $0x50] sm:$0xff] %v1421_v51  ;;  %v1409_v58 = vadd.f32 %v1408_v57, %v412_v14  ;;  %1992 = vmatpush.bf16.msra.mxu3 %v2755_v47  ;;  %1964 = vmatpush.bf16.msra.mxu1 %v2747_v50  ;;  %v3268_v14 = vld [vmem:[%s3693_s11 + $0x1f4] sm:$0xf0]  ;;  %v3062_v47 = vld [vmem:[%s3693_s11 + $0x320] sm:$0xf]  ;;  %v3075_v62 = vor.u32 %v3306_v44, %v3072_v46 }
  0xf7   : > { %2290 = vst [vmem:[%s3957_s26 + $0x58] sm:$0xff] %v1435_v55  ;;  %v2767_v28 = vor.u32 %v3268_v14, %v2766_v13  ;;  %v3064_v53 = vld [vmem:[%s3693_s11 + $0x440] sm:$0xf0]  ;;  %v3063_v63 = vor.u32 %v3341_v48, %v3062_v47  ;;  %v2800_v46 = vld [vmem:[%s3693_s11 + $0x218] sm:$0xf0] }
  0xf8   : > { %2359 = vst [vmem:[%s3957_s26 + $0x280] sm:$0xff] %v1395_v56  ;;  %v3067_v2 = vor.u32 %v3305_v52, %v3064_v53  ;;  %v2790_v48 = vld [vmem:[%s3693_s11 + $0xf0] sm:$0xf]  ;;  %v2792_v52 = vld [vmem:[%s3693_s11 + $0x210] sm:$0xf0]  ;;  %v426_v53 = vperm.slane %v4089_v39, 7 }
  0xf9   : > { %2360 = vst [vmem:[%s3957_s26 + $0x288] sm:$0xff] %v1409_v58 }
  0xfb   : > { %v1422_v0 = vpop.f32.mrf.mxu2 }
  0xfc   : > { %v1423_v4 = vadd.f32 %v1422_v0, %v413_v42  ;;  %v1436_v5 = vpop.f32.mrf.mxu3  ;;  %v1448_v6 = vpop.f32.mrf.mxu0  ;;  %v3070_v42 = vld [vmem:[%s3693_s11 + $0x328] sm:$0xf]  ;;  %v3234_v0 = vld [vmem:[%s3693_s11 + $0xec] sm:$0xf] }
  0xfd   : > { %v1437_v9 = vadd.f32 %v1436_v5, %v414_v45  ;;  %v1449_v54 = vadd.f32 %v1448_v6, %v415_v59  ;;  %v1462_v10 = vpop.f32.mrf.mxu1  ;;  %v3071_v58 = vor.u32 %v3342_v43, %v3070_v42  ;;  %v421_v5 = vperm.slane %v4089_v39, 2  ;;  %v3233_v6 = vld [vmem:[%s3693_s11 + $0xe4] sm:$0xf] }
  0xfe   : > { %2361 = vst [vmem:[%s3957_s26 + $0x290] sm:$0xff] %v1423_v4  ;;  %v1463_v15 = vadd.f32 %v1462_v10, %v416_v60  ;;  %v3269_v4 = vld [vmem:[%s3693_s11 + $0x1fc] sm:$0xf0]  ;;  %v2779_v13 = vor.u32 %v3233_v6, %v2776_v7  ;;  %v3346_v6 = vld [vmem:[%s3693_s11 + $0x464] sm:$0xf0] }
  0xff   : > { %2362 = vst [vmem:[%s3957_s26 + $0x298] sm:$0xff] %v1437_v9  ;;  %3168 = vmatmul.msk.bf16.vlgmr.msrb.gmra.mxu0 %vm1267_vm0, %v3729_v26  ;;  %3169 = vmatmul.msk.bf16.vlgmr.msrb.gmra.mxu1 %vm1267_vm0, %v3729_v26  ;;  %v2775_v10 = vor.u32 %v3269_v4, %v2774_v3  ;;  %v3310_v7 = vld [vmem:[%s3693_s11 + $0x34c] sm:$0xf] }
 0x100   : > { %2291 = vst [vmem:[%s3957_s26 + $0x60] sm:$0xff] %v1449_v54  ;;  %3170 = vmatmul.msk.bf16.vlgmr.msrb.gmra.mxu2 %vm1267_vm0, %v3729_v26  ;;  %2005 = vmatpush.bf16.msrb.mxu0 %v3047_v17  ;;  %v2787_v54 = vor.u32 %v3234_v0, %v2784_v1 }
 0x101   : > { %2292 = vst [vmem:[%s3957_s26 + $0x68] sm:$0xff] %v1463_v15  ;;  %3171 = vmatmul.msk.bf16.vlgmr.msrb.gmra.mxu3 %vm1267_vm0, %v3729_v26  ;;  %2033 = vmatpush.bf16.msrb.mxu2 %v3055_v11 }
 0x102   : > { %2047 = vmatpush.bf16.msrb.mxu3 %v3059_v16  ;;  %2019 = vmatpush.bf16.msrb.mxu1 %v3051_v20 }
 0x103   : > { %v1476_v31 = vpop.f32.mrf.mxu2 }
 0x104   : > { %v1477_v33 = vadd.f32 %v1476_v31, %v417_v23  ;;  %v1490_v34 = vpop.f32.mrf.mxu3  ;;  %v1450_v35 = vpop.f32.mrf.mxu0  ;;  %2006 = vmatpush.bf16.msrb.mxu0 %v2759_v30  ;;  %v3343_v30 = vld [vmem:[%s3693_s11 + $0x44c] sm:$0xf0] }
 0x105   : > { %v1491_v36 = vadd.f32 %v1490_v34, %v418_v27  ;;  %v1451_v12 = vadd.f32 %v1450_v35, %v415_v59  ;;  %v1464_v37 = vpop.f32.mrf.mxu1  ;;  %2034 = vmatpush.bf16.msrb.mxu2 %v2767_v28  ;;  %v2782_v59 = vld [vmem:[%s3693_s11 + $0xe8] sm:$0xf]  ;;  %v3088_v28 = vld [vmem:[%s3693_s11 + $0x458] sm:$0xf0]  ;;  %v3307_v34 = vld [vmem:[%s3693_s11 + $0x334] sm:$0xf] }
 0x106   : > { %2293 = vst [vmem:[%s3957_s26 + $0x70] sm:$0xff] %v1477_v33  ;;  %v1465_v38 = vadd.f32 %v1464_v37, %v416_v60  ;;  %2048 = vmatpush.bf16.msrb.mxu3 %v2771_v29  ;;  %2020 = vmatpush.bf16.msrb.mxu1 %v2763_v32  ;;  %v3270_v60 = vld [vmem:[%s3693_s11 + $0x204] sm:$0xf0]  ;;  %v3078_v29 = vld [vmem:[%s3693_s11 + $0x330] sm:$0xf]  ;;  %v3091_v43 = vor.u32 %v3308_v25, %v3088_v28 }
 0x107   : > { %2294 = vst [vmem:[%s3957_s26 + $0x78] sm:$0xff] %v1491_v36  ;;  %v2783_v9 = vor.u32 %v3270_v60, %v2782_v59  ;;  %v3080_v35 = vld [vmem:[%s3693_s11 + $0x450] sm:$0xf0]  ;;  %v3079_v44 = vor.u32 %v3343_v30, %v3078_v29  ;;  %v2816_v28 = vld [vmem:[%s3693_s11 + $0x228] sm:$0xf0] }
 0x108   : > { %2363 = vst [vmem:[%s3957_s26 + $0x2a0] sm:$0xff] %v1451_v12  ;;  %v3083_v47 = vor.u32 %v3307_v34, %v3080_v35  ;;  %v2806_v30 = vld [vmem:[%s3693_s11 + $0x100] sm:$0xf]  ;;  %v2808_v34 = vld [vmem:[%s3693_s11 + $0x220] sm:$0xf0] }
 0x109   : > { %2364 = vst [vmem:[%s3957_s26 + $0x2a8] sm:$0xff] %v1465_v38 }
 0x10b   : > { %v1478_v45 = vpop.f32.mrf.mxu2 }
 0x10c   : > { %v1479_v49 = vadd.f32 %v1478_v45, %v417_v23  ;;  %v1492_v50 = vpop.f32.mrf.mxu3  ;;  %v1504_v51 = vpop.f32.mrf.mxu0  ;;  %v3086_v23 = vld [vmem:[%s3693_s11 + $0x338] sm:$0xf]  ;;  %v3236_v45 = vld [vmem:[%s3693_s11 + $0xfc] sm:$0xf] }
 0x10d   : > { %v1493_v55 = vadd.f32 %v1492_v50, %v418_v27  ;;  %v1505_v56 = vadd.f32 %v1504_v51, %v419_v40  ;;  %v1518_v57 = vpop.f32.mrf.mxu1  ;;  %v3087_v38 = vor.u32 %v3344_v24, %v3086_v23  ;;  %v425_v50 = vperm.slane %v4089_v39, 6  ;;  %v3235_v51 = vld [vmem:[%s3693_s11 + $0xf4] sm:$0xf] }
 0x10e   : > { %2365 = vst [vmem:[%s3957_s26 + $0x2b0] sm:$0xff] %v1479_v49  ;;  %v1519_v61 = vadd.f32 %v1518_v57, %v420_v41  ;;  %v3271_v49 = vld [vmem:[%s3693_s11 + $0x20c] sm:$0xf0]  ;;  %v2795_v59 = vor.u32 %v3235_v51, %v2792_v52  ;;  %v3348_v51 = vld [vmem:[%s3693_s11 + $0x474] sm:$0xf0] }
 0x10f   : > { %2366 = vst [vmem:[%s3957_s26 + $0x2b8] sm:$0xff] %v1493_v55  ;;  %3172 = vmatmul.msk.bf16.vlgmr.msra.gmra.mxu0 %vm1267_vm0, %v3729_v26  ;;  %3173 = vmatmul.msk.bf16.vlgmr.msra.gmra.mxu1 %vm1267_vm0, %v3729_v26  ;;  %v2791_v57 = vor.u32 %v3271_v49, %v2790_v48  ;;  %v3312_v52 = vld [vmem:[%s3693_s11 + $0x35c] sm:$0xf] }
 0x110   : > { %2295 = vst [vmem:[%s3957_s26 + $0x80] sm:$0xff] %v1505_v56  ;;  %3174 = vmatmul.msk.bf16.vlgmr.msra.gmra.mxu2 %vm1267_vm0, %v3729_v26  ;;  %2061 = vmatpush.bf16.msra.mxu0 %v3063_v63  ;;  %v2803_v56 = vor.u32 %v3236_v45, %v2800_v46 }
 0x111   : > { %2296 = vst [vmem:[%s3957_s26 + $0x88] sm:$0xff] %v1519_v61  ;;  %3175 = vmatmul.msk.bf16.vlgmr.msra.gmra.mxu3 %vm1267_vm0, %v3729_v26  ;;  %2089 = vmatpush.bf16.msra.mxu2 %v3071_v58 }
 0x112   : > { %2103 = vmatpush.bf16.msra.mxu3 %v3075_v62  ;;  %2075 = vmatpush.bf16.msra.mxu1 %v3067_v2  ;;  %v4164_v2 = vld [vmem:[%s3701_s6 + $0x18] sm:$0xff] }
 0x113   : > { %v1532_v11 = vpop.f32.mrf.mxu2  ;;  %v427_v3 = vperm.slane %v4164_v2, 0  ;;  %v428_v4 = vperm.slane %v4164_v2, 1  ;;  %v430_v35 = vperm.slane %v4164_v2, 3  ;;  %v431_v48 = vperm.slane %v4164_v2, 4 }
 0x114   : > { %v1533_v14 = vadd.f32 %v1532_v11, %v421_v5  ;;  %v1546_v15 = vpop.f32.mrf.mxu3  ;;  %v1506_v16 = vpop.f32.mrf.mxu0  ;;  %2062 = vmatpush.bf16.msra.mxu0 %v2775_v10  ;;  %v3345_v10 = vld [vmem:[%s3693_s11 + $0x45c] sm:$0xf0]  ;;  %v432_v49 = vperm.slane %v4164_v2, 5 }
 0x115   : > { %v1547_v17 = vadd.f32 %v1546_v15, %v422_v8  ;;  %v1507_v18 = vadd.f32 %v1506_v16, %v419_v40  ;;  %v1520_v19 = vpop.f32.mrf.mxu1  ;;  %2090 = vmatpush.bf16.msra.mxu2 %v2783_v9  ;;  %v2798_v40 = vld [vmem:[%s3693_s11 + $0xf8] sm:$0xf]  ;;  %v3104_v9 = vld [vmem:[%s3693_s11 + $0x468] sm:$0xf0]  ;;  %v3309_v15 = vld [vmem:[%s3693_s11 + $0x344] sm:$0xf] }
 0x116   : > { %2297 = vst [vmem:[%s3957_s26 + $0x90] sm:$0xff] %v1533_v14  ;;  %v1521_v20 = vadd.f32 %v1520_v19, %v420_v41  ;;  %2104 = vmatpush.bf16.msra.mxu3 %v2787_v54  ;;  %2076 = vmatpush.bf16.msra.mxu1 %v2779_v13  ;;  %v3272_v41 = vld [vmem:[%s3693_s11 + $0x214] sm:$0xf0]  ;;  %v3094_v54 = vld [vmem:[%s3693_s11 + $0x340] sm:$0xf]  ;;  %v3107_v24 = vor.u32 %v3310_v7, %v3104_v9 }
 0x117   : > { %2298 = vst [vmem:[%s3957_s26 + $0x98] sm:$0xff] %v1547_v17  ;;  %v2799_v55 = vor.u32 %v3272_v41, %v2798_v40  ;;  %v3096_v16 = vld [vmem:[%s3693_s11 + $0x460] sm:$0xf0]  ;;  %v3095_v25 = vor.u32 %v3345_v10, %v3094_v54  ;;  %v2832_v9 = vld [vmem:[%s3693_s11 + $0x238] sm:$0xf0] }
 0x118   : > { %2367 = vst [vmem:[%s3957_s26 + $0x2c0] sm:$0xff] %v1507_v18  ;;  %v3099_v29 = vor.u32 %v3309_v15, %v3096_v16  ;;  %v2822_v10 = vld [vmem:[%s3693_s11 + $0x110] sm:$0xf]  ;;  %v2824_v15 = vld [vmem:[%s3693_s11 + $0x230] sm:$0xf0]  ;;  %v434_v16 = vperm.slane %v4164_v2, 7 }
 0x119   : > { %2368 = vst [vmem:[%s3957_s26 + $0x2c8] sm:$0xff] %v1521_v20 }
 0x11b   : > { %v1534_v27 = vpop.f32.mrf.mxu2 }
 0x11c   : > { %v1535_v31 = vadd.f32 %v1534_v27, %v421_v5  ;;  %v1548_v32 = vpop.f32.mrf.mxu3  ;;  %v1560_v33 = vpop.f32.mrf.mxu0  ;;  %v3102_v5 = vld [vmem:[%s3693_s11 + $0x348] sm:$0xf]  ;;  %v3238_v27 = vld [vmem:[%s3693_s11 + $0x10c] sm:$0xf] }
 0x11d   : > { %v1549_v36 = vadd.f32 %v1548_v32, %v422_v8  ;;  %v1561_v12 = vadd.f32 %v1560_v33, %v423_v21  ;;  %v1574_v37 = vpop.f32.mrf.mxu1  ;;  %v3103_v20 = vor.u32 %v3346_v6, %v3102_v5  ;;  %v429_v32 = vperm.slane %v4164_v2, 2  ;;  %v3237_v33 = vld [vmem:[%s3693_s11 + $0x104] sm:$0xf] }
 0x11e   : > { %2369 = vst [vmem:[%s3957_s26 + $0x2d0] sm:$0xff] %v1535_v31  ;;  %v1575_v42 = vadd.f32 %v1574_v37, %v424_v22  ;;  %v3273_v31 = vld [vmem:[%s3693_s11 + $0x21c] sm:$0xf0]  ;;  %v2811_v40 = vor.u32 %v3237_v33, %v2808_v34 }
 0x11f   : > { %2370 = vst [vmem:[%s3957_s26 + $0x2d8] sm:$0xff] %v1549_v36  ;;  %3176 = vmatmul.msk.bf16.vlgmr.msrb.gmra.mxu0 %vm1267_vm0, %v3729_v26  ;;  %3177 = vmatmul.msk.bf16.vlgmr.msrb.gmra.mxu1 %vm1267_vm0, %v3729_v26  ;;  %v2807_v37 = vor.u32 %v3273_v31, %v2806_v30 }
 0x120   : > { %2299 = vst [vmem:[%s3957_s26 + $0xa0] sm:$0xff] %v1561_v12  ;;  %3178 = vmatmul.msk.bf16.vlgmr.msrb.gmra.mxu2 %vm1267_vm0, %v3729_v26  ;;  %2117 = vmatpush.bf16.msrb.mxu0 %v3079_v44  ;;  %v2819_v12 = vor.u32 %v3238_v27, %v2816_v28 }
 0x121   : > { %2300 = vst [vmem:[%s3957_s26 + $0xa8] sm:$0xff] %v1575_v42  ;;  %3179 = vmatmul.msk.bf16.vlgmr.msrb.gmra.mxu3 %vm1267_vm0, %v3729_v26  ;;  %2145 = vmatpush.bf16.msrb.mxu2 %v3087_v38 }
 0x122   : > { %2159 = vmatpush.bf16.msrb.mxu3 %v3091_v43  ;;  %2131 = vmatpush.bf16.msrb.mxu1 %v3083_v47 }
 0x123   : > { %v1588_v58 = vpop.f32.mrf.mxu2 }
 0x124   : > { %v1589_v60 = vadd.f32 %v1588_v58, %v425_v50  ;;  %v1602_v61 = vpop.f32.mrf.mxu3  ;;  %v1562_v62 = vpop.f32.mrf.mxu0  ;;  %2118 = vmatpush.bf16.msrb.mxu0 %v2791_v57  ;;  %v3347_v57 = vld [vmem:[%s3693_s11 + $0x46c] sm:$0xf0] }
 0x125   : > { %v1603_v63 = vadd.f32 %v1602_v61, %v426_v53  ;;  %v1563_v39 = vadd.f32 %v1562_v62, %v423_v21  ;;  %v1576_v0 = vpop.f32.mrf.mxu1  ;;  %2146 = vmatpush.bf16.msrb.mxu2 %v2799_v55  ;;  %v2814_v21 = vld [vmem:[%s3693_s11 + $0x108] sm:$0xf]  ;;  %v3120_v55 = vld [vmem:[%s3693_s11 + $0x478] sm:$0xf0]  ;;  %v3311_v61 = vld [vmem:[%s3693_s11 + $0x354] sm:$0xf] }
 0x126   : > { %2301 = vst [vmem:[%s3957_s26 + $0xb0] sm:$0xff] %v1589_v60  ;;  %v1577_v1 = vadd.f32 %v1576_v0, %v424_v22  ;;  %2160 = vmatpush.bf16.msrb.mxu3 %v2803_v56  ;;  %2132 = vmatpush.bf16.msrb.mxu1 %v2795_v59  ;;  %v3274_v22 = vld [vmem:[%s3693_s11 + $0x224] sm:$0xf0]  ;;  %v3110_v56 = vld [vmem:[%s3693_s11 + $0x350] sm:$0xf]  ;;  %v3123_v6 = vor.u32 %v3312_v52, %v3120_v55 }
 0x127   : > { %2302 = vst [vmem:[%s3957_s26 + $0xb8] sm:$0xff] %v1603_v63  ;;  %v2815_v36 = vor.u32 %v3274_v22, %v2814_v21  ;;  %v3112_v62 = vld [vmem:[%s3693_s11 + $0x470] sm:$0xf0]  ;;  %v3111_v7 = vor.u32 %v3347_v57, %v3110_v56 }
 0x128   : > { %2371 = vst [vmem:[%s3957_s26 + $0x2e0] sm:$0xff] %v1563_v39  ;;  %v3115_v54 = vor.u32 %v3311_v61, %v3112_v62 }
 0x129   : > { %2372 = vst [vmem:[%s3957_s26 + $0x2e8] sm:$0xff] %v1577_v1 }
 0x12b   : > { %v1590_v8 = vpop.f32.mrf.mxu2 }
 0x12c   : > { %v1591_v11 = vadd.f32 %v1590_v8, %v425_v50  ;;  %v1604_v13 = vpop.f32.mrf.mxu3  ;;  %v1616_v14 = vpop.f32.mrf.mxu0  ;;  %v3118_v50 = vld [vmem:[%s3693_s11 + $0x358] sm:$0xf]  ;;  %v3240_v8 = vld [vmem:[%s3693_s11 + $0x11c] sm:$0xf] }
 0x12d   : > { %v1605_v17 = vadd.f32 %v1604_v13, %v426_v53  ;;  %v1617_v18 = vadd.f32 %v1616_v14, %v427_v3  ;;  %v1630_v19 = vpop.f32.mrf.mxu1  ;;  %v3119_v1 = vor.u32 %v3348_v51, %v3118_v50  ;;  %v433_v13 = vperm.slane %v4164_v2, 6  ;;  %v3239_v14 = vld [vmem:[%s3693_s11 + $0x114] sm:$0xf] }
 0x12e   : > { %2373 = vst [vmem:[%s3957_s26 + $0x2f0] sm:$0xff] %v1591_v11  ;;  %v1631_v23 = vadd.f32 %v1630_v19, %v428_v4  ;;  %v3275_v11 = vld [vmem:[%s3693_s11 + $0x22c] sm:$0xf0]  ;;  %v2827_v21 = vor.u32 %v3239_v14, %v2824_v15 }
 0x12f   : > { %2374 = vst [vmem:[%s3957_s26 + $0x2f8] sm:$0xff] %v1605_v17  ;;  %3180 = vmatmul.msk.bf16.vlgmr.msra.gmra.mxu0 %vm1267_vm0, %v3729_v26  ;;  %3181 = vmatmul.msk.bf16.vlgmr.msra.gmra.mxu1 %vm1267_vm0, %v3729_v26  ;;  %v2823_v19 = vor.u32 %v3275_v11, %v2822_v10 }
 0x130   : > { %2303 = vst [vmem:[%s3957_s26 + $0xc0] sm:$0xff] %v1617_v18  ;;  %3182 = vmatmul.msk.bf16.vlgmr.msra.gmra.mxu2 %vm1267_vm0, %v3729_v26  ;;  %2173 = vmatpush.bf16.msra.mxu0 %v3095_v25  ;;  %v2835_v18 = vor.u32 %v3240_v8, %v2832_v9 }
 0x131   : > { %2304 = vst [vmem:[%s3957_s26 + $0xc8] sm:$0xff] %v1631_v23  ;;  %3183 = vmatmul.msk.bf16.vlgmr.msra.gmra.mxu3 %vm1267_vm0, %v3729_v26  ;;  %2201 = vmatpush.bf16.msra.mxu2 %v3103_v20 }
 0x132   : > { %2215 = vmatpush.bf16.msra.mxu3 %v3107_v24  ;;  %2187 = vmatpush.bf16.msra.mxu1 %v3099_v29  ;;  %v4239_v29 = vld [vmem:[%s3701_s6 + $0x20] sm:$0xff] }
 0x133   : > { %v1644_v38 = vpop.f32.mrf.mxu2  ;;  %v435_v30 = vperm.slane %v4239_v29, 0  ;;  %v436_v31 = vperm.slane %v4239_v29, 1  ;;  %v439_v50 = vperm.slane %v4239_v29, 4  ;;  %v440_v51 = vperm.slane %v4239_v29, 5 }
 0x134   : > { %v1645_v41 = vadd.f32 %v1644_v38, %v429_v32  ;;  %v1658_v42 = vpop.f32.mrf.mxu3  ;;  %v1618_v43 = vpop.f32.mrf.mxu0  ;;  %2174 = vmatpush.bf16.msra.mxu0 %v2807_v37  ;;  %v441_v61 = vperm.slane %v4239_v29, 6  ;;  %v442_v62 = vperm.slane %v4239_v29, 7 }
 0x135   : > { %v1659_v44 = vadd.f32 %v1658_v42, %v430_v35  ;;  %v1619_v45 = vadd.f32 %v1618_v43, %v427_v3  ;;  %v1632_v46 = vpop.f32.mrf.mxu1  ;;  %2202 = vmatpush.bf16.msra.mxu2 %v2815_v36  ;;  %v2830_v3 = vld [vmem:[%s3693_s11 + $0x118] sm:$0xf] }
 0x136   : > { %2305 = vst [vmem:[%s3957_s26 + $0xd0] sm:$0xff] %v1645_v41  ;;  %v1633_v47 = vadd.f32 %v1632_v46, %v428_v4  ;;  %2216 = vmatpush.bf16.msra.mxu3 %v2819_v12  ;;  %2188 = vmatpush.bf16.msra.mxu1 %v2811_v40  ;;  %v3276_v4 = vld [vmem:[%s3693_s11 + $0x234] sm:$0xf0]  ;;  %v437_v40 = vperm.slane %v4239_v29, 2  ;;  %v438_v41 = vperm.slane %v4239_v29, 3 }
 0x137   : > { %2306 = vst [vmem:[%s3957_s26 + $0xd8] sm:$0xff] %v1659_v44  ;;  %v2831_v17 = vor.u32 %v3276_v4, %v2830_v3 }
 0x138   : > { %2375 = vst [vmem:[%s3957_s26 + $0x300] sm:$0xff] %v1619_v45 }
 0x139   : > { %2376 = vst [vmem:[%s3957_s26 + $0x308] sm:$0xff] %v1633_v47 }
 0x13b   : > { %v1646_v53 = vpop.f32.mrf.mxu2 }
 0x13c   : > { %v1647_v58 = vadd.f32 %v1646_v53, %v429_v32  ;;  %v1660_v59 = vpop.f32.mrf.mxu3  ;;  %v1672_v60 = vpop.f32.mrf.mxu0 }
 0x13d   : > { %v1661_v63 = vadd.f32 %v1660_v59, %v430_v35  ;;  %v1673_v39 = vadd.f32 %v1672_v60, %v431_v48  ;;  %v1686_v0 = vpop.f32.mrf.mxu1 }
 0x13e   : > { %2377 = vst [vmem:[%s3957_s26 + $0x310] sm:$0xff] %v1647_v58  ;;  %v1687_v5 = vadd.f32 %v1686_v0, %v432_v49 }
 0x13f   : > { %2378 = vst [vmem:[%s3957_s26 + $0x318] sm:$0xff] %v1661_v63  ;;  %3184 = vmatmul.msk.bf16.vlgmr.msrb.gmra.mxu0 %vm1267_vm0, %v3729_v26  ;;  %3185 = vmatmul.msk.bf16.vlgmr.msrb.gmra.mxu1 %vm1267_vm0, %v3729_v26 }
 0x140   : > { %2307 = vst [vmem:[%s3957_s26 + $0xe0] sm:$0xff] %v1673_v39  ;;  %3186 = vmatmul.msk.bf16.vlgmr.msrb.gmra.mxu2 %vm1267_vm0, %v3729_v26  ;;  %2229 = vmatpush.bf16.msrb.mxu0 %v3111_v7  ;;  %v4282_v7 = vld [vmem:[%s3701_s6 + $0x28] sm:$0xff] }
 0x141   : > { %2308 = vst [vmem:[%s3957_s26 + $0xe8] sm:$0xff] %v1687_v5  ;;  %3187 = vmatmul.msk.bf16.vlgmr.msrb.gmra.mxu3 %vm1267_vm0, %v3729_v26  ;;  %2257 = vmatpush.bf16.msrb.mxu2 %v3119_v1  ;;  %v444_v8 = vperm.slane %v4282_v7, 1 }
 0x142   : > { %2271 = vmatpush.bf16.msrb.mxu3 %v3123_v6  ;;  %2243 = vmatpush.bf16.msrb.mxu1 %v3115_v54 }
 0x143   : > { %v1700_v20 = vpop.f32.mrf.mxu2 }
 0x144   : > { %v1701_v22 = vadd.f32 %v1700_v20, %v433_v13  ;;  %v1714_v23 = vpop.f32.mrf.mxu3  ;;  %v1674_v24 = vpop.f32.mrf.mxu0  ;;  %2230 = vmatpush.bf16.msrb.mxu0 %v2823_v19 }
 0x145   : > { %v1715_v25 = vadd.f32 %v1714_v23, %v434_v16  ;;  %v1675_v27 = vadd.f32 %v1674_v24, %v431_v48  ;;  %v1688_v2 = vpop.f32.mrf.mxu1  ;;  %2258 = vmatpush.bf16.msrb.mxu2 %v2831_v17  ;;  %v445_v17 = vperm.slane %v4282_v7, 2 }
 0x146   : > { %2309 = vst [vmem:[%s3957_s26 + $0xf0] sm:$0xff] %v1701_v22  ;;  %v1689_v28 = vadd.f32 %v1688_v2, %v432_v49  ;;  %2272 = vmatpush.bf16.msrb.mxu3 %v2835_v18  ;;  %2244 = vmatpush.bf16.msrb.mxu1 %v2827_v21  ;;  %v446_v18 = vperm.slane %v4282_v7, 3  ;;  %v447_v2 = vperm.slane %v4282_v7, 4 }
 0x147   : > { %2310 = vst [vmem:[%s3957_s26 + $0xf8] sm:$0xff] %v1715_v25 }
 0x148   : > { %2379 = vst [vmem:[%s3957_s26 + $0x320] sm:$0xff] %v1675_v27 }
 0x149   : > { %2380 = vst [vmem:[%s3957_s26 + $0x328] sm:$0xff] %v1689_v28  ;;  %v448_v28 = vperm.slane %v4282_v7, 5 }
 0x14b   : > { %v1702_v32 = vpop.f32.mrf.mxu2 }
 0x14c   : > { %v1703_v33 = vadd.f32 %v1702_v32, %v433_v13  ;;  %v1716_v34 = vpop.f32.mrf.mxu3  ;;  %v1728_v35 = vpop.f32.mrf.mxu0 }
 0x14d   : > { %v1717_v36 = vadd.f32 %v1716_v34, %v434_v16  ;;  %v1729_v12 = vadd.f32 %v1728_v35, %v435_v30  ;;  %v1742_v37 = vpop.f32.mrf.mxu1 }
 0x14e   : > { %2381 = vst [vmem:[%s3957_s26 + $0x330] sm:$0xff] %v1703_v33  ;;  %v1743_v38 = vadd.f32 %v1742_v37, %v436_v31  ;;  %v450_v37 = vperm.slane %v4282_v7, 7 }
 0x14f   : > { %2382 = vst [vmem:[%s3957_s26 + $0x338] sm:$0xff] %v1717_v36  ;;  %3188 = vmatmul.msk.bf16.vlgmr.msra.gmra.mxu0 %vm1267_vm0, %v3729_v26  ;;  %3189 = vmatmul.msk.bf16.vlgmr.msra.gmra.mxu1 %vm1267_vm0, %v3729_v26 }
 0x150   : > { %2311 = vst [vmem:[%s3957_s26 + $0x100] sm:$0xff] %v1729_v12  ;;  %3190 = vmatmul.msk.bf16.vlgmr.msra.gmra.mxu2 %vm1267_vm0, %v3729_v26  ;;  %v449_v12 = vperm.slane %v4282_v7, 6 }
 0x151   : > { %2312 = vst [vmem:[%s3957_s26 + $0x108] sm:$0xff] %v1743_v38  ;;  %3191 = vmatmul.msk.bf16.vlgmr.msra.gmra.mxu3 %vm1267_vm0, %v3729_v26 }
 0x153   : > { %v1756_v42 = vpop.f32.mrf.mxu2 }
 0x154   : > { %v1757_v43 = vadd.f32 %v1756_v42, %v437_v40  ;;  %v1770_v44 = vpop.f32.mrf.mxu3  ;;  %v1730_v45 = vpop.f32.mrf.mxu0 }
 0x155   : > { %v1771_v46 = vadd.f32 %v1770_v44, %v438_v41  ;;  %v1731_v47 = vadd.f32 %v1730_v45, %v435_v30  ;;  %v1744_v48 = vpop.f32.mrf.mxu1 }
 0x156   : > { %2313 = vst [vmem:[%s3957_s26 + $0x110] sm:$0xff] %v1757_v43  ;;  %v1745_v49 = vadd.f32 %v1744_v48, %v436_v31 }
 0x157   : > { %2314 = vst [vmem:[%s3957_s26 + $0x118] sm:$0xff] %v1771_v46 }
 0x158   : > { %2383 = vst [vmem:[%s3957_s26 + $0x340] sm:$0xff] %v1731_v47  ;;  %v4309_v47 = vld [vmem:[%s3701_s6 + $0x30] sm:$0xff] }
 0x159   : > { %2384 = vst [vmem:[%s3957_s26 + $0x348] sm:$0xff] %v1745_v49  ;;  %v451_v48 = vperm.slane %v4309_v47, 0  ;;  %v452_v49 = vperm.slane %v4309_v47, 1 }
 0x15b   : > { %v1758_v52 = vpop.f32.mrf.mxu2 }
 0x15c   : > { %v1759_v53 = vadd.f32 %v1758_v52, %v437_v40  ;;  %v1772_v55 = vpop.f32.mrf.mxu3  ;;  %v1784_v56 = vpop.f32.mrf.mxu0 }
 0x15d   : > { %v1773_v57 = vadd.f32 %v1772_v55, %v438_v41  ;;  %v1785_v58 = vadd.f32 %v1784_v56, %v439_v50  ;;  %v1798_v59 = vpop.f32.mrf.mxu1 }
 0x15e   : > { %2385 = vst [vmem:[%s3957_s26 + $0x350] sm:$0xff] %v1759_v53  ;;  %v1799_v60 = vadd.f32 %v1798_v59, %v440_v51  ;;  %v453_v59 = vperm.slane %v4309_v47, 2 }
 0x15f   : > { %2386 = vst [vmem:[%s3957_s26 + $0x358] sm:$0xff] %v1773_v57  ;;  %3192 = vmatmul.msk.bf16.vlgmr.msrb.gmra.mxu0 %vm1267_vm0, %v3729_v26  ;;  %3193 = vmatmul.msk.bf16.vlgmr.msrb.gmra.mxu1 %vm1267_vm0, %v3729_v26 }
 0x160   : > { %2315 = vst [vmem:[%s3957_s26 + $0x120] sm:$0xff] %v1785_v58  ;;  %3194 = vmatmul.msk.bf16.vlgmr.msrb.gmra.mxu2 %vm1267_vm0, %v3729_v26 }
 0x161   : > { %2316 = vst [vmem:[%s3957_s26 + $0x128] sm:$0xff] %v1799_v60  ;;  %3195 = vmatmul.msk.bf16.vlgmr.msrb.gmra.mxu3 %vm1267_vm0, %v3729_v26  ;;  %v443_v26 = vperm.slane %v4282_v7, 0  ;;  %v454_v60 = vperm.slane %v4309_v47, 3 }
 0x163   : > { %v1812_v63 = vpop.f32.mrf.mxu2 }
 0x164   : > { %v1813_v39 = vadd.f32 %v1812_v63, %v441_v61  ;;  %v1826_v0 = vpop.f32.mrf.mxu3  ;;  %v1786_v1 = vpop.f32.mrf.mxu0 }
 0x165   : > { %v1827_v3 = vadd.f32 %v1826_v0, %v442_v62  ;;  %v1787_v4 = vadd.f32 %v1786_v1, %v439_v50  ;;  %v1800_v5 = vpop.f32.mrf.mxu1 }
 0x166   : > { %2317 = vst [vmem:[%s3957_s26 + $0x130] sm:$0xff] %v1813_v39  ;;  %v1801_v6 = vadd.f32 %v1800_v5, %v440_v51  ;;  %v455_v5 = vperm.slane %v4309_v47, 4 }
 0x167   : > { %2318 = vst [vmem:[%s3957_s26 + $0x138] sm:$0xff] %v1827_v3 }
 0x168   : > { %2387 = vst [vmem:[%s3957_s26 + $0x360] sm:$0xff] %v1787_v4 }
 0x169   : > { %2388 = vst [vmem:[%s3957_s26 + $0x368] sm:$0xff] %v1801_v6  ;;  %v456_v6 = vperm.slane %v4309_v47, 5 }
 0x16b   : > { %v1814_v9 = vpop.f32.mrf.mxu2 }
 0x16c   : > { %v1815_v54 = vadd.f32 %v1814_v9, %v441_v61  ;;  %v1828_v10 = vpop.f32.mrf.mxu3  ;;  %v1840_v11 = vpop.f32.mrf.mxu0 }
 0x16d   : > { %v1829_v13 = vadd.f32 %v1828_v10, %v442_v62  ;;  %v1841_v14 = vadd.f32 %v1840_v11, %v443_v26  ;;  %v1854_v15 = vpop.f32.mrf.mxu1 }
 0x16e   : > { %2389 = vst [vmem:[%s3957_s26 + $0x370] sm:$0xff] %v1815_v54  ;;  %v1855_v16 = vadd.f32 %v1854_v15, %v444_v8  ;;  %v458_v15 = vperm.slane %v4309_v47, 7 }
 0x16f   : > { %2390 = vst [vmem:[%s3957_s26 + $0x378] sm:$0xff] %v1829_v13 }
 0x170   : > { %2319 = vst [vmem:[%s3957_s26 + $0x140] sm:$0xff] %v1841_v14  ;;  %v457_v14 = vperm.slane %v4309_v47, 6 }
 0x171   : > { %2320 = vst [vmem:[%s3957_s26 + $0x148] sm:$0xff] %v1855_v16 }
 0x173   : > { %v1868_v19 = vpop.f32.mrf.mxu2 }
 0x174   : > { %v1869_v20 = vadd.f32 %v1868_v19, %v445_v17  ;;  %v1882_v21 = vpop.f32.mrf.mxu3  ;;  %v1842_v22 = vpop.f32.mrf.mxu0 }
 0x175   : > { %v1883_v23 = vadd.f32 %v1882_v21, %v446_v18  ;;  %v1843_v24 = vadd.f32 %v1842_v22, %v443_v26  ;;  %v1856_v25 = vpop.f32.mrf.mxu1 }
 0x176   : > { %2321 = vst [vmem:[%s3957_s26 + $0x150] sm:$0xff] %v1869_v20  ;;  %v1857_v27 = vadd.f32 %v1856_v25, %v444_v8 }
 0x177   : > { %2322 = vst [vmem:[%s3957_s26 + $0x158] sm:$0xff] %v1883_v23 }
 0x178   : > { %2391 = vst [vmem:[%s3957_s26 + $0x380] sm:$0xff] %v1843_v24  ;;  %v4336_v24 = vld [vmem:[%s3701_s6 + $0x38] sm:$0xff] }
 0x179   : > { %2392 = vst [vmem:[%s3957_s26 + $0x388] sm:$0xff] %v1857_v27  ;;  %v459_v25 = vperm.slane %v4336_v24, 0  ;;  %v460_v27 = vperm.slane %v4336_v24, 1 }
 0x17b   : > { %v1870_v29 = vpop.f32.mrf.mxu2 }
 0x17c   : > { %v1871_v30 = vadd.f32 %v1870_v29, %v445_v17  ;;  %v1884_v31 = vpop.f32.mrf.mxu3  ;;  %v1896_v32 = vpop.f32.mrf.mxu0 }
 0x17d   : > { %v1885_v33 = vadd.f32 %v1884_v31, %v446_v18  ;;  %v1897_v34 = vadd.f32 %v1896_v32, %v447_v2  ;;  %v1910_v35 = vpop.f32.mrf.mxu1 }
 0x17e   : > { %2393 = vst [vmem:[%s3957_s26 + $0x390] sm:$0xff] %v1871_v30  ;;  %v1911_v36 = vadd.f32 %v1910_v35, %v448_v28  ;;  %v461_v35 = vperm.slane %v4336_v24, 2 }
 0x17f   : > { %2394 = vst [vmem:[%s3957_s26 + $0x398] sm:$0xff] %v1885_v33 }
 0x180   : > { %2323 = vst [vmem:[%s3957_s26 + $0x160] sm:$0xff] %v1897_v34 }
 0x181   : > { %2324 = vst [vmem:[%s3957_s26 + $0x168] sm:$0xff] %v1911_v36  ;;  %v462_v36 = vperm.slane %v4336_v24, 3 }
 0x183   : > { %v1924_v38 = vpop.f32.mrf.mxu2 }
 0x184   : > { %v1925_v40 = vadd.f32 %v1924_v38, %v449_v12  ;;  %v1938_v41 = vpop.f32.mrf.mxu3  ;;  %v1898_v42 = vpop.f32.mrf.mxu0 }
 0x185   : > { %v1939_v43 = vadd.f32 %v1938_v41, %v450_v37  ;;  %v1899_v44 = vadd.f32 %v1898_v42, %v447_v2  ;;  %v1912_v45 = vpop.f32.mrf.mxu1 }
 0x186   : > { %2325 = vst [vmem:[%s3957_s26 + $0x170] sm:$0xff] %v1925_v40  ;;  %v1913_v46 = vadd.f32 %v1912_v45, %v448_v28  ;;  %v463_v45 = vperm.slane %v4336_v24, 4 }
 0x187   : > { %2326 = vst [vmem:[%s3957_s26 + $0x178] sm:$0xff] %v1939_v43 }
 0x188   : > { %2395 = vst [vmem:[%s3957_s26 + $0x3a0] sm:$0xff] %v1899_v44 }
 0x189   : > { %2396 = vst [vmem:[%s3957_s26 + $0x3a8] sm:$0xff] %v1913_v46  ;;  %v464_v46 = vperm.slane %v4336_v24, 5 }
 0x18b   : > { %v1926_v50 = vpop.f32.mrf.mxu2 }
 0x18c   : > { %v1927_v51 = vadd.f32 %v1926_v50, %v449_v12  ;;  %v1940_v52 = vpop.f32.mrf.mxu3  ;;  %v1952_v53 = vpop.f32.mrf.mxu0 }
 0x18d   : > { %v1941_v55 = vadd.f32 %v1940_v52, %v450_v37  ;;  %v1953_v56 = vadd.f32 %v1952_v53, %v451_v48  ;;  %v1966_v57 = vpop.f32.mrf.mxu1 }
 0x18e   : > { %2397 = vst [vmem:[%s3957_s26 + $0x3b0] sm:$0xff] %v1927_v51  ;;  %v1967_v58 = vadd.f32 %v1966_v57, %v452_v49  ;;  %v466_v57 = vperm.slane %v4336_v24, 7 }
 0x18f   : > { %2398 = vst [vmem:[%s3957_s26 + $0x3b8] sm:$0xff] %v1941_v55 }
 0x190   : > { %2327 = vst [vmem:[%s3957_s26 + $0x180] sm:$0xff] %v1953_v56  ;;  %v465_v56 = vperm.slane %v4336_v24, 6 }
 0x191   : > { %2328 = vst [vmem:[%s3957_s26 + $0x188] sm:$0xff] %v1967_v58 }
 0x193   : > { %v1980_v61 = vpop.f32.mrf.mxu2 }
 0x194   : > { %v1981_v62 = vadd.f32 %v1980_v61, %v453_v59  ;;  %v1994_v63 = vpop.f32.mrf.mxu3  ;;  %v1954_v39 = vpop.f32.mrf.mxu0 }
 0x195   : > { %v1995_v0 = vadd.f32 %v1994_v63, %v454_v60  ;;  %v1955_v1 = vadd.f32 %v1954_v39, %v451_v48  ;;  %v1968_v3 = vpop.f32.mrf.mxu1 }
 0x196   : > { %2329 = vst [vmem:[%s3957_s26 + $0x190] sm:$0xff] %v1981_v62  ;;  %v1969_v4 = vadd.f32 %v1968_v3, %v452_v49 }
 0x197   : > { %2330 = vst [vmem:[%s3957_s26 + $0x198] sm:$0xff] %v1995_v0 }
 0x198   : > { %2399 = vst [vmem:[%s3957_s26 + $0x3c0] sm:$0xff] %v1955_v1  ;;  %v4363_v1 = vld [vmem:[%s3701_s6 + $0x40] sm:$0xff] }
 0x199   : > { %2400 = vst [vmem:[%s3957_s26 + $0x3c8] sm:$0xff] %v1969_v4  ;;  %v467_v3 = vperm.slane %v4363_v1, 0  ;;  %v468_v4 = vperm.slane %v4363_v1, 1 }
 0x19b   : > { %v1982_v7 = vpop.f32.mrf.mxu2 }
 0x19c   : > { %v1983_v26 = vadd.f32 %v1982_v7, %v453_v59  ;;  %v1996_v8 = vpop.f32.mrf.mxu3  ;;  %v2008_v9 = vpop.f32.mrf.mxu0 }
 0x19d   : > { %v1997_v54 = vadd.f32 %v1996_v8, %v454_v60  ;;  %v2009_v10 = vadd.f32 %v2008_v9, %v455_v5  ;;  %v2022_v11 = vpop.f32.mrf.mxu1 }
 0x19e   : > { %2401 = vst [vmem:[%s3957_s26 + $0x3d0] sm:$0xff] %v1983_v26  ;;  %v2023_v13 = vadd.f32 %v2022_v11, %v456_v6  ;;  %v469_v11 = vperm.slane %v4363_v1, 2 }
 0x19f   : > { %2402 = vst [vmem:[%s3957_s26 + $0x3d8] sm:$0xff] %v1997_v54 }
 0x1a0   : > { %2331 = vst [vmem:[%s3957_s26 + $0x1a0] sm:$0xff] %v2009_v10 }
 0x1a1   : > { %2332 = vst [vmem:[%s3957_s26 + $0x1a8] sm:$0xff] %v2023_v13  ;;  %v470_v13 = vperm.slane %v4363_v1, 3 }
 0x1a3   : > { %v2036_v16 = vpop.f32.mrf.mxu2 }
 0x1a4   : > { %v2037_v17 = vadd.f32 %v2036_v16, %v457_v14  ;;  %v2050_v18 = vpop.f32.mrf.mxu3  ;;  %v2010_v19 = vpop.f32.mrf.mxu0 }
 0x1a5   : > { %v2051_v20 = vadd.f32 %v2050_v18, %v458_v15  ;;  %v2011_v21 = vadd.f32 %v2010_v19, %v455_v5  ;;  %v2024_v22 = vpop.f32.mrf.mxu1 }
 0x1a6   : > { %2333 = vst [vmem:[%s3957_s26 + $0x1b0] sm:$0xff] %v2037_v17  ;;  %v2025_v23 = vadd.f32 %v2024_v22, %v456_v6  ;;  %v471_v22 = vperm.slane %v4363_v1, 4 }
 0x1a7   : > { %2334 = vst [vmem:[%s3957_s26 + $0x1b8] sm:$0xff] %v2051_v20 }
 0x1a8   : > { %2403 = vst [vmem:[%s3957_s26 + $0x3e0] sm:$0xff] %v2011_v21 }
 0x1a9   : > { %2404 = vst [vmem:[%s3957_s26 + $0x3e8] sm:$0xff] %v2025_v23  ;;  %v472_v23 = vperm.slane %v4363_v1, 5 }
 0x1ab   : > { %v2038_v2 = vpop.f32.mrf.mxu2 }
 0x1ac   : > { %v2039_v28 = vadd.f32 %v2038_v2, %v457_v14  ;;  %v2052_v29 = vpop.f32.mrf.mxu3  ;;  %v2064_v30 = vpop.f32.mrf.mxu0 }
 0x1ad   : > { %v2053_v31 = vadd.f32 %v2052_v29, %v458_v15  ;;  %v2065_v32 = vadd.f32 %v2064_v30, %v459_v25  ;;  %v2078_v33 = vpop.f32.mrf.mxu1 }
 0x1ae   : > { %2405 = vst [vmem:[%s3957_s26 + $0x3f0] sm:$0xff] %v2039_v28  ;;  %v2079_v34 = vadd.f32 %v2078_v33, %v460_v27  ;;  %v474_v33 = vperm.slane %v4363_v1, 7 }
 0x1af   : > { %2406 = vst [vmem:[%s3957_s26 + $0x3f8] sm:$0xff] %v2053_v31 }
 0x1b0   : > { %2335 = vst [vmem:[%s3957_s26 + $0x1c0] sm:$0xff] %v2065_v32  ;;  %v473_v32 = vperm.slane %v4363_v1, 6 }
 0x1b1   : > { %2336 = vst [vmem:[%s3957_s26 + $0x1c8] sm:$0xff] %v2079_v34 }
 0x1b3   : > { %v2092_v12 = vpop.f32.mrf.mxu2 }
 0x1b4   : > { %v2093_v37 = vadd.f32 %v2092_v12, %v461_v35  ;;  %v2106_v38 = vpop.f32.mrf.mxu3  ;;  %v2066_v40 = vpop.f32.mrf.mxu0 }
 0x1b5   : > { %v2107_v41 = vadd.f32 %v2106_v38, %v462_v36  ;;  %v2067_v42 = vadd.f32 %v2066_v40, %v459_v25  ;;  %v2080_v43 = vpop.f32.mrf.mxu1 }
 0x1b6   : > { %2337 = vst [vmem:[%s3957_s26 + $0x1d0] sm:$0xff] %v2093_v37  ;;  %v2081_v44 = vadd.f32 %v2080_v43, %v460_v27 }
 0x1b7   : > { %2338 = vst [vmem:[%s3957_s26 + $0x1d8] sm:$0xff] %v2107_v41 }
 0x1b8   : > { %2407 = vst [vmem:[%s3957_s26 + $0x400] sm:$0xff] %v2067_v42 }
 0x1b9   : > { %2408 = vst [vmem:[%s3957_s26 + $0x408] sm:$0xff] %v2081_v44 }
 0x1bb   : > { %v2094_v47 = vpop.f32.mrf.mxu2 }
 0x1bc   : > { %v2095_v48 = vadd.f32 %v2094_v47, %v461_v35  ;;  %v2108_v49 = vpop.f32.mrf.mxu3  ;;  %v2120_v50 = vpop.f32.mrf.mxu0 }
 0x1bd   : > { %v2109_v51 = vadd.f32 %v2108_v49, %v462_v36  ;;  %v2121_v52 = vadd.f32 %v2120_v50, %v463_v45  ;;  %v2134_v53 = vpop.f32.mrf.mxu1 }
 0x1be   : > { %2409 = vst [vmem:[%s3957_s26 + $0x410] sm:$0xff] %v2095_v48  ;;  %v2135_v55 = vadd.f32 %v2134_v53, %v464_v46 }
 0x1bf   : > { %2410 = vst [vmem:[%s3957_s26 + $0x418] sm:$0xff] %v2109_v51 }
 0x1c0   : > { %2339 = vst [vmem:[%s3957_s26 + $0x1e0] sm:$0xff] %v2121_v52 }
 0x1c1   : > { %2340 = vst [vmem:[%s3957_s26 + $0x1e8] sm:$0xff] %v2135_v55 }
 0x1c3   : > { %v2148_v58 = vpop.f32.mrf.mxu2 }
 0x1c4   : > { %v2149_v59 = vadd.f32 %v2148_v58, %v465_v56  ;;  %v2162_v60 = vpop.f32.mrf.mxu3  ;;  %v2122_v61 = vpop.f32.mrf.mxu0 }
 0x1c5   : > { %v2163_v62 = vadd.f32 %v2162_v60, %v466_v57  ;;  %v2123_v63 = vadd.f32 %v2122_v61, %v463_v45  ;;  %v2136_v39 = vpop.f32.mrf.mxu1 }
 0x1c6   : > { %2341 = vst [vmem:[%s3957_s26 + $0x1f0] sm:$0xff] %v2149_v59  ;;  %v2137_v0 = vadd.f32 %v2136_v39, %v464_v46 }
 0x1c7   : > { %2342 = vst [vmem:[%s3957_s26 + $0x1f8] sm:$0xff] %v2163_v62 }
 0x1c8   : > { %2411 = vst [vmem:[%s3957_s26 + $0x420] sm:$0xff] %v2123_v63 }
 0x1c9   : > { %2412 = vst [vmem:[%s3957_s26 + $0x428] sm:$0xff] %v2137_v0 }
 0x1cb   : > { %v2150_v5 = vpop.f32.mrf.mxu2 }
 0x1cc   : > { %v2151_v6 = vadd.f32 %v2150_v5, %v465_v56  ;;  %v2164_v7 = vpop.f32.mrf.mxu3  ;;  %v2176_v26 = vpop.f32.mrf.mxu0 }
 0x1cd   : > { %v2165_v8 = vadd.f32 %v2164_v7, %v466_v57  ;;  %v2177_v9 = vadd.f32 %v2176_v26, %v467_v3  ;;  %v2190_v54 = vpop.f32.mrf.mxu1 }
 0x1ce   : > { %2413 = vst [vmem:[%s3957_s26 + $0x430] sm:$0xff] %v2151_v6  ;;  %v2191_v10 = vadd.f32 %v2190_v54, %v468_v4 }
 0x1cf   : > { %2414 = vst [vmem:[%s3957_s26 + $0x438] sm:$0xff] %v2165_v8 }
 0x1d0   : > { %2343 = vst [vmem:[%s3957_s26 + $0x200] sm:$0xff] %v2177_v9 }
 0x1d1   : > { %2344 = vst [vmem:[%s3957_s26 + $0x208] sm:$0xff] %v2191_v10 }
 0x1d3   : > { %v2204_v14 = vpop.f32.mrf.mxu2 }
 0x1d4   : > { %v2205_v15 = vadd.f32 %v2204_v14, %v469_v11  ;;  %v2218_v16 = vpop.f32.mrf.mxu3  ;;  %v2178_v17 = vpop.f32.mrf.mxu0 }
 0x1d5   : > { %v2219_v18 = vadd.f32 %v2218_v16, %v470_v13  ;;  %v2179_v19 = vadd.f32 %v2178_v17, %v467_v3  ;;  %v2192_v20 = vpop.f32.mrf.mxu1 }
 0x1d6   : > { %2345 = vst [vmem:[%s3957_s26 + $0x210] sm:$0xff] %v2205_v15  ;;  %v2193_v21 = vadd.f32 %v2192_v20, %v468_v4 }
 0x1d7   : > { %2346 = vst [vmem:[%s3957_s26 + $0x218] sm:$0xff] %v2219_v18 }
 0x1d8   : > { %2415 = vst [vmem:[%s3957_s26 + $0x440] sm:$0xff] %v2179_v19 }
 0x1d9   : > { %2416 = vst [vmem:[%s3957_s26 + $0x448] sm:$0xff] %v2193_v21 }
 0x1db   : > { %v2206_v24 = vpop.f32.mrf.mxu2 }
 0x1dc   : > { %v2207_v25 = vadd.f32 %v2206_v24, %v469_v11  ;;  %v2220_v27 = vpop.f32.mrf.mxu3  ;;  %v2232_v2 = vpop.f32.mrf.mxu0 }
 0x1dd   : > { %v2221_v28 = vadd.f32 %v2220_v27, %v470_v13  ;;  %v2233_v29 = vadd.f32 %v2232_v2, %v471_v22  ;;  %v2246_v30 = vpop.f32.mrf.mxu1 }
 0x1de   : > { %2417 = vst [vmem:[%s3957_s26 + $0x450] sm:$0xff] %v2207_v25  ;;  %v2247_v31 = vadd.f32 %v2246_v30, %v472_v23 }
 0x1df   : > { %2418 = vst [vmem:[%s3957_s26 + $0x458] sm:$0xff] %v2221_v28 }
 0x1e0   : > { %2347 = vst [vmem:[%s3957_s26 + $0x220] sm:$0xff] %v2233_v29 }
 0x1e1   : > { %2348 = vst [vmem:[%s3957_s26 + $0x228] sm:$0xff] %v2247_v31 }
 0x1e3   : > { %v2260_v34 = vpop.f32.mrf.mxu2 }
 0x1e4   : > { %v2261_v35 = vadd.f32 %v2260_v34, %v473_v32  ;;  %v2274_v36 = vpop.f32.mrf.mxu3  ;;  %v2234_v12 = vpop.f32.mrf.mxu0 }
 0x1e5   : > { %v2275_v37 = vadd.f32 %v2274_v36, %v474_v33  ;;  %v2235_v38 = vadd.f32 %v2234_v12, %v471_v22  ;;  %v2248_v40 = vpop.f32.mrf.mxu1 }
 0x1e6   : > { %2349 = vst [vmem:[%s3957_s26 + $0x230] sm:$0xff] %v2261_v35  ;;  %v2249_v41 = vadd.f32 %v2248_v40, %v472_v23 }
 0x1e7   : > { %2350 = vst [vmem:[%s3957_s26 + $0x238] sm:$0xff] %v2275_v37 }
 0x1e8   : > { %2419 = vst [vmem:[%s3957_s26 + $0x460] sm:$0xff] %v2235_v38 }
 0x1e9   : > { %2420 = vst [vmem:[%s3957_s26 + $0x468] sm:$0xff] %v2249_v41 }
 0x1eb   : > { %v2262_v42 = vpop.f32.mrf.mxu2  ;;  %2430 = sbr.rel (!%p3625_p10) target bundleno = 528 (0x210), region = 44 }
 0x1ec   : > { %v2263_v43 = vadd.f32 %v2262_v42, %v473_v32  ;;  %v2276_v44 = vpop.f32.mrf.mxu3 }
 0x1ed   : > { %v2277_v45 = vadd.f32 %v2276_v44, %v474_v33 }
 0x1ee   : > { %2421 = vst [vmem:[%s3957_s26 + $0x470] sm:$0xff] %v2263_v43 }
 0x1ef   : > { %2422 = vst [vmem:[%s3957_s26 + $0x478] sm:$0xff] %v2277_v45 }
 0x1f0   : > { %s4476_s8 = smov (!%p2433_p6, %s2432_s8), 72 }
 0x1f1   : > { %s3196_s27 = sshll.u32 %s4476_s8, 4 }
 0x1f2   : > { %s2436_s28 = ssub.s32 1152, %s3196_s27 }
 0x1f3   : > { %s2437_s29 = sshll.u32 %s2436_s28, 4 }
 0x1f4   : > { %2438 = vsyncadd %s2424_s5, %s2437_s29  ;;  %p4403_p12 = scmp.ne.s32.totalorder %s3196_s27, 0  ;;  %s3349_s9 = smul.u32 576, %s3601_s16 }
 0x1f5   : > { %s3199_s30 = sshll.u32 %s4476_s8, 3  ;;  %s2444_s10 = sshll.u32 %s3957_s26, 4  ;;  %s4413_s10 = int_to_ptr.vmem [resolvable:$true] %s2444_s10 }
 0x1f6   : > { %s2441_s4 = scalar_lea.hbm %s4462_s3, %s3349_s9  ;;  %s3351_s22 = sshll.u32 %s4476_s8, 8 }
 0x1f7   : > { %s2446_s6 = sshll.u32 %s2441_s4, 4  ;;  %s3471_s17 = sshra.s32 %s4413_s10, 4  ;;  %s4416_s6 = int_to_ptr.hbm [resolvable:$true] %s2446_s6  ;;  %s3472_s17 = int_to_ptr.vmem [resolvable:$true] %s3471_s17 }
 0x1f8   : > { %s3473_s19 = sshrl.u32 %s3351_s22, 4  ;;  %s3557_s16 = smov [#allocation7]  }
 0x1f9   : > { %s3478_s20 = scalar_lea.vmem %s3472_s17, %s3473_s19  ;;  %s3482_s26 = scalar_lea.vmem %s3557_s16, 2304 }
 0x1fa   : > { %p3479_p10 = scmp.ne.s32.totalorder %s3472_s17, %s3478_s20  ;;  %p3484_p0 = scmp.lt.s32.totalorder %s3482_s26, %s3478_s20 }
 0x1fc   : > { %p3480_p1 = pnand %p3479_p10, %p4403_p12 }
 0x1fe   : > { %p3481_p9 = pneg %p3480_p1 }
 0x200   : > { %p3486_p2 = pnand %p3484_p0, %p3481_p9 }
 0x202   : > { %3489 = shalt.err (!%p3486_p2)
}
 0x203   : > { %s3490_s7 = sshra.s32 %s4416_s6, 4  ;;  %s3501_s9 = scalar_lea.hbm %s4462_s3, 4464  ;;  %s3491_s7 = int_to_ptr.hbm [resolvable:$true] %s3490_s7 }
 0x204   : > { %s3497_s27 = scalar_lea.hbm %s3491_s7, %s3473_s19  ;;  %p3502_p5 = scmp.lt.s32.totalorder %s3491_s7, %s4462_s3 }
 0x205   : > { %p3498_p13 = scmp.ne.s32.totalorder %s3491_s7, %s3497_s27  ;;  %p3503_p7 = scmp.lt.s32.totalorder %s3501_s9, %s3497_s27 }
 0x207   : > { %p3499_p3 = pnand %p3498_p13, %p4403_p12  ;;  %p3504_p8 = por %p3503_p7, %p3502_p5 }
 0x209   : > { %p3500_p4 = pneg %p3499_p3 }
 0x20b   : > { %p3505_p6 = pnand %p3504_p8, %p3500_p4 }
 0x20d   : > { %3508 = shalt.err (!%p3505_p6)
}
 0x20e   : > { %s3558_s4 = smov 9216   ;;  %s3559_s17 = smov 35712  }
 0x20f   : > { %2452 = dma.vmem_to_hbm [thread:$0]  (%p4403_p12), %s4413_s10, %s3351_s22, %s4416_s6, %s2424_s5, %s3558_s4, %s3559_s17, %s3199_s30  }
 0x210 PF: > { %p3373_p10 = scmp.ge.s32.totalorder %s3552_s15, 2  ;;  %s2461_s19 = sand.u32 1, %s3540_s12  }
 0x211   : > { %s2462_s20 = scalar_lea.sflag [#allocation4], %s2461_s19 }
 0x212   : > { %p3369_p1 = pnand %p3373_p10, %p3629_p11 }
 0x214   : > { %p3370_p9 = pneg %p3369_p1 }
 0x216   : > { %3535 = dma.done.wait (%p3370_p9), %s2462_s20, 18432  }
 0x217   : > { %3537 = vsyncadd (%p3370_p9), %s2462_s20, 4294948864  ;;  %p19_p0 = scmp.ge.s32.totalorder %s3605_s18, 6   ;;  %s4471_s12 = smov %s3544_s13 }
 0x218   : > { %s4472_s13 = smov %s3548_s14  ;;  %s4473_s14 = smov %s3617_s21 }
 0x219   : > { %s4474_s15 = smov %s3605_s18  ;;  %21 = sbr.rel (!%p19_p0) target bundleno = 9 (0x9), region = 90 }
 0x21e   :  { %2468 = vsyncpa [#allocation3], 1 }
 0x21f   :  { %2470 = vsyncpa [#allocation3 + $0x1], 1 }
 0x220   :  { %2471 = vsyncpa [#allocation6], 1 }
 0x221   :  { %2473 = vsyncpa [#allocation6 + $0x1], 1 }
 0x222   :  { %2474 = vsyncpa [#allocation4], 1 }
 0x223   :  { %2476 = vsyncpa [#allocation4 + $0x1], 1 }

// kernel: semantic_comm_forward.3
= control target key start
LH: loop header
LB: loop body
LE: loop exit
PB: predicated region body
PF: predicated region fallthrough
CT: control target
= control target key end

     0   :  { %9 = vsyncpa [#allocation3], 0  ;;  %s4810_s0 = inlined_call_operand.vmem [shape: f32[16,128], index: 0, kind: input, shape index: {}]   ;;  %s4811_s1 = inlined_call_operand.hbm [shape: bf16[128,512], index: 1, kind: input, shape index: {}]   ;;  %s4812_s2 = inlined_call_operand.hbm [shape: f32[1,512], index: 2, kind: input, shape index: {}]   ;;  %s4813_s3 = inlined_call_operand.hbm [shape: bf16[128,512], index: 3, kind: input, shape index: {}]   ;;  %s4814_s4 = inlined_call_operand.vmem [shape: f32[16,128], index: 4, kind: output, shape index: {}]  }
   0x1   :  { %10 = vsyncpa [#allocation5], 0  ;;  %s31_s17 = sshll.u32 %s4812_s2, 4  ;;  %s4615_s18 = smov [#allocation4]   ;;  %s32_s17 = int_to_ptr.hbm [resolvable:$true] %s31_s17 }
   0x2   :  { %s33_s19 = sshll.u32 %s4615_s18, 4  ;;  %s17_s22 = sshll.u32 %s4811_s1, 4  ;;  %s34_s19 = int_to_ptr.vmem [resolvable:$true] %s33_s19  ;;  %s18_s22 = int_to_ptr.hbm [resolvable:$true] %s17_s22 }
   0x3   :  { %36 = dma.hbm_to_vmem [thread:$0]  %s32_s17, 64, %s34_s19, [#allocation5]  }
   0x4   :  { %s4616_s23 = smov [#allocation2]   ;;  %s4617_s25 = smov 256  }
   0x5   :  { %s19_s24 = sshll.u32 %s4616_s23, 4  ;;  %s4618_s26 = smov 16   ;;  %s20_s24 = int_to_ptr.vmem [resolvable:$true] %s19_s24 }
   0x6   :  { %25 = dma.hbm_to_vmem [thread:$0]  %s18_s22, 4096, %s20_s24, [#allocation3], %s4617_s25, %s4617_s25, %s4618_s26  }
   0x7   :  { %s41_s2 = sshll.u32 %s4813_s3, 4  ;;  %s4619_s29 = smov [#allocation6]   ;;  %s42_s2 = int_to_ptr.hbm [resolvable:$true] %s41_s2 }
   0x8   :  { %s43_s30 = sshll.u32 %s4619_s29, 4  ;;  %s44_s30 = int_to_ptr.vmem [resolvable:$true] %s43_s30 }
   0x9   :  { %49 = dma.hbm_to_vmem [thread:$0]  %s42_s2, 4096, %s44_s30, [#allocation5], %s4617_s25, %s4617_s25, %s4618_s26  }
   0xa   :  { %4611 = dma.done.wait [#allocation3], 4096  }
   0xb   :  { %4612 = vsyncadd [#allocation3], 4294963200 }
   0xc   :  { %4613 = dma.done.wait [#allocation5], 4160  }
   0xd   :  { %4614 = vsyncadd [#allocation5], 4294963136  ;;  %v3055_v0 = vld [vmem:[#allocation2 + $0xe0] sm:$0xf]  ;;  %v4147_v1 = vld [vmem:[#allocation2 + $0xec] sm:$0xf0] }
   0xe   :  { %v4145_v2 = vld [vmem:[#allocation2 + $0xe4] sm:$0xf]  ;;  %v3056_v3 = vor.u32 %v4147_v1, %v3055_v0  ;;  %v3057_v4 = vld [vmem:[#allocation2 + $0xf0] sm:$0xf0]  ;;  %v4146_v5 = vld [vmem:[#allocation2 + $0xec] sm:$0xf] }
   0xf   :  { %v3065_v6 = vld [vmem:[#allocation2 + $0xf8] sm:$0xf0]  ;;  %v3060_v7 = vor.u32 %v4145_v2, %v3057_v4  ;;  %v3063_v9 = vld [vmem:[#allocation2 + $0xe8] sm:$0xf]  ;;  %v4148_v10 = vld [vmem:[#allocation2 + $0xf4] sm:$0xf0] }
  0x10   :  { %v3068_v8 = vor.u32 %v4146_v5, %v3065_v6  ;;  %v3039_v11 = vld [vmem:[#allocation2 + $0xc0] sm:$0xf]  ;;  %268 = vmatpush.bf16.msra.mxu0 %v3056_v3  ;;  %v3064_v12 = vor.u32 %v4148_v10, %v3063_v9  ;;  %v4143_v13 = vld [vmem:[#allocation2 + $0xcc] sm:$0xf0]  ;;  %v4141_v14 = vld [vmem:[#allocation2 + $0xc4] sm:$0xf] }
  0x11   :  { %v3041_v15 = vld [vmem:[#allocation2 + $0xd0] sm:$0xf0]  ;;  %282 = vmatpush.bf16.msra.mxu1 %v3060_v7  ;;  %v3040_v16 = vor.u32 %v4143_v13, %v3039_v11  ;;  %v4142_v18 = vld [vmem:[#allocation2 + $0xcc] sm:$0xf]  ;;  %v3049_v19 = vld [vmem:[#allocation2 + $0xd8] sm:$0xf0] }
  0x12   :  { %310 = vmatpush.bf16.msra.mxu3 %v3068_v8  ;;  %v3044_v17 = vor.u32 %v4141_v14, %v3041_v15  ;;  %v3047_v20 = vld [vmem:[#allocation2 + $0xc8] sm:$0xf]  ;;  %296 = vmatpush.bf16.msra.mxu2 %v3064_v12  ;;  %v3052_v21 = vor.u32 %v4142_v18, %v3049_v19  ;;  %v4144_v22 = vld [vmem:[#allocation2 + $0xd4] sm:$0xf0]  ;;  %v3023_v23 = vld [vmem:[#allocation2 + $0xa0] sm:$0xf] }
  0x13   :  { %v4139_v24 = vld [vmem:[#allocation2 + $0xac] sm:$0xf0]  ;;  %v3048_v25 = vor.u32 %v4144_v22, %v3047_v20  ;;  %v4137_v26 = vld [vmem:[#allocation2 + $0xa4] sm:$0xf]  ;;  %v3025_v27 = vld [vmem:[#allocation2 + $0xb0] sm:$0xf0] }
  0x14   :  { %v4138_v28 = vld [vmem:[#allocation2 + $0xac] sm:$0xf]  ;;  %269 = vmatpush.bf16.msra.mxu0 %v3040_v16  ;;  %v3024_v29 = vor.u32 %v4139_v24, %v3023_v23  ;;  %v3033_v30 = vld [vmem:[#allocation2 + $0xb8] sm:$0xf0]  ;;  %v3031_v31 = vld [vmem:[#allocation2 + $0xa8] sm:$0xf]  ;;  %v3028_v33 = vor.u32 %v4137_v26, %v3025_v27 }
  0x15   :  { %v4140_v32 = vld [vmem:[#allocation2 + $0xb4] sm:$0xf0]  ;;  %283 = vmatpush.bf16.msra.mxu1 %v3044_v17  ;;  %v3036_v34 = vor.u32 %v4138_v28, %v3033_v30  ;;  %v3007_v35 = vld [vmem:[#allocation2 + $0x80] sm:$0xf]  ;;  %v4135_v36 = vld [vmem:[#allocation2 + $0x8c] sm:$0xf0] }
  0x16   :  { %311 = vmatpush.bf16.msra.mxu3 %v3052_v21  ;;  %v4133_v37 = vld [vmem:[#allocation2 + $0x84] sm:$0xf]  ;;  %297 = vmatpush.bf16.msra.mxu2 %v3048_v25  ;;  %v3032_v38 = vor.u32 %v4140_v32, %v3031_v31  ;;  %v3009_v39 = vld [vmem:[#allocation2 + $0x90] sm:$0xf0]  ;;  %v4134_v40 = vld [vmem:[#allocation2 + $0x8c] sm:$0xf]  ;;  %v3008_v44 = vor.u32 %v4135_v36, %v3007_v35 }
  0x17   :  { %v3017_v41 = vld [vmem:[#allocation2 + $0x98] sm:$0xf0]  ;;  %v3015_v42 = vld [vmem:[#allocation2 + $0x88] sm:$0xf]  ;;  %v4136_v43 = vld [vmem:[#allocation2 + $0x94] sm:$0xf0]  ;;  %v3012_v45 = vor.u32 %v4133_v37, %v3009_v39 }
  0x18   :  { %270 = vmatpush.bf16.msra.mxu0 %v3024_v29  ;;  %v3020_v46 = vor.u32 %v4134_v40, %v3017_v41  ;;  %v2991_v47 = vld [vmem:[#allocation2 + $0x60] sm:$0xf]  ;;  %v4131_v48 = vld [vmem:[#allocation2 + $0x6c] sm:$0xf0]  ;;  %v4129_v49 = vld [vmem:[#allocation2 + $0x64] sm:$0xf]  ;;  %v3016_v50 = vor.u32 %v4136_v43, %v3015_v42 }
  0x19   :  { %284 = vmatpush.bf16.msra.mxu1 %v3028_v33  ;;  %v2993_v51 = vld [vmem:[#allocation2 + $0x70] sm:$0xf0]  ;;  %v4130_v52 = vld [vmem:[#allocation2 + $0x6c] sm:$0xf]  ;;  %v3001_v53 = vld [vmem:[#allocation2 + $0x78] sm:$0xf0]  ;;  %v2992_v56 = vor.u32 %v4131_v48, %v2991_v47 }
  0x1a   :  { %312 = vmatpush.bf16.msra.mxu3 %v3036_v34  ;;  %298 = vmatpush.bf16.msra.mxu2 %v3032_v38  ;;  %v2999_v54 = vld [vmem:[#allocation2 + $0x68] sm:$0xf]  ;;  %v4132_v55 = vld [vmem:[#allocation2 + $0x74] sm:$0xf0]  ;;  %v2996_v57 = vor.u32 %v4129_v49, %v2993_v51  ;;  %v3004_v58 = vor.u32 %v4130_v52, %v3001_v53  ;;  %v2975_v59 = vld [vmem:[#allocation2 + $0x40] sm:$0xf] }
  0x1b   :  { %v4127_v60 = vld [vmem:[#allocation2 + $0x4c] sm:$0xf0]  ;;  %v4125_v61 = vld [vmem:[#allocation2 + $0x44] sm:$0xf]  ;;  %v3000_v62 = vor.u32 %v4132_v55, %v2999_v54  ;;  %v2977_v63 = vld [vmem:[#allocation2 + $0x50] sm:$0xf0] }
  0x1c   :  { %271 = vmatpush.bf16.msra.mxu0 %v3008_v44  ;;  %v4126_v0 = vld [vmem:[#allocation2 + $0x4c] sm:$0xf]  ;;  %v2985_v1 = vld [vmem:[#allocation2 + $0x58] sm:$0xf0]  ;;  %v2983_v2 = vld [vmem:[#allocation2 + $0x48] sm:$0xf]  ;;  %v2976_v4 = vor.u32 %v4127_v60, %v2975_v59  ;;  %v2980_v5 = vor.u32 %v4125_v61, %v2977_v63 }
  0x1d   :  { %285 = vmatpush.bf16.msra.mxu1 %v3012_v45  ;;  %v4128_v3 = vld [vmem:[#allocation2 + $0x54] sm:$0xf0]  ;;  %v2988_v6 = vor.u32 %v4126_v0, %v2985_v1  ;;  %v2959_v7 = vld [vmem:[#allocation2 + $0x20] sm:$0xf]  ;;  %v4123_v8 = vld [vmem:[#allocation2 + $0x2c] sm:$0xf0] }
  0x1e   :  { %313 = vmatpush.bf16.msra.mxu3 %v3020_v46  ;;  %299 = vmatpush.bf16.msra.mxu2 %v3016_v50  ;;  %v4121_v9 = vld [vmem:[#allocation2 + $0x24] sm:$0xf]  ;;  %v2984_v10 = vor.u32 %v4128_v3, %v2983_v2  ;;  %v2961_v11 = vld [vmem:[#allocation2 + $0x30] sm:$0xf0]  ;;  %v4122_v12 = vld [vmem:[#allocation2 + $0x2c] sm:$0xf]  ;;  %v2960_v16 = vor.u32 %v4123_v8, %v2959_v7 }
  0x1f   :  { %v2969_v13 = vld [vmem:[#allocation2 + $0x38] sm:$0xf0]  ;;  %v2967_v14 = vld [vmem:[#allocation2 + $0x28] sm:$0xf]  ;;  %v4124_v15 = vld [vmem:[#allocation2 + $0x34] sm:$0xf0]  ;;  %v2964_v20 = vor.u32 %v4121_v9, %v2961_v11 }
  0x20   :  { %272 = vmatpush.bf16.msra.mxu0 %v2992_v56  ;;  %v2943_v17 = vld [vmem:[#allocation2] sm:$0xf]  ;;  %v4119_v18 = vld [vmem:[#allocation2 + $0xc] sm:$0xf0]  ;;  %v4117_v19 = vld [vmem:[#allocation2 + $0x4] sm:$0xf]  ;;  %v2972_v21 = vor.u32 %v4122_v12, %v2969_v13  ;;  %v2968_v25 = vor.u32 %v4124_v15, %v2967_v14 }
  0x21   :  { %286 = vmatpush.bf16.msra.mxu1 %v2996_v57  ;;  %v2945_v22 = vld [vmem:[#allocation2 + $0x10] sm:$0xf0]  ;;  %v4118_v23 = vld [vmem:[#allocation2 + $0xc] sm:$0xf]  ;;  %v2953_v24 = vld [vmem:[#allocation2 + $0x18] sm:$0xf0]  ;;  %v2944_v32 = vor.u32 %v4119_v18, %v2943_v17 }
  0x22   :  { %314 = vmatpush.bf16.msra.mxu3 %v3004_v58  ;;  %300 = vmatpush.bf16.msra.mxu2 %v3000_v62  ;;  %v2951_v26 = vld [vmem:[#allocation2 + $0x8] sm:$0xf]  ;;  %v4120_v27 = vld [vmem:[#allocation2 + $0x14] sm:$0xf0]  ;;  %v3183_v28 = vld [vmem:[#allocation6 + $0xe0] sm:$0xf]  ;;  %v2948_v36 = vor.u32 %v4117_v19, %v2945_v22  ;;  %v2956_v37 = vor.u32 %v4118_v23, %v2953_v24 }
  0x23   :  { %v4179_v29 = vld [vmem:[#allocation6 + $0xec] sm:$0xf0]  ;;  %v4177_v30 = vld [vmem:[#allocation6 + $0xe4] sm:$0xf]  ;;  %v3185_v31 = vld [vmem:[#allocation6 + $0xf0] sm:$0xf0]  ;;  %v2952_v41 = vor.u32 %v4120_v27, %v2951_v26 }
  0x24   :  { %273 = vmatpush.bf16.msra.mxu0 %v2976_v4  ;;  %v4178_v33 = vld [vmem:[#allocation6 + $0xec] sm:$0xf]  ;;  %v3193_v34 = vld [vmem:[#allocation6 + $0xf8] sm:$0xf0]  ;;  %v3191_v35 = vld [vmem:[#allocation6 + $0xe8] sm:$0xf]  ;;  %v3184_v42 = vor.u32 %v4179_v29, %v3183_v28  ;;  %v3188_v43 = vor.u32 %v4177_v30, %v3185_v31 }
  0x25   :  { %287 = vmatpush.bf16.msra.mxu1 %v2980_v5  ;;  %v4180_v38 = vld [vmem:[#allocation6 + $0xf4] sm:$0xf0]  ;;  %v63_v39 = vld [vmem:[%s4810_s0] sm:$0xff]  ;;  %v64_v40 = vld [vmem:[%s4810_s0 + $0x8] sm:$0xff]  ;;  %v3196_v44 = vor.u32 %v4178_v33, %v3193_v34 }
  0x26   :  { %315 = vmatpush.bf16.msra.mxu3 %v2988_v6  ;;  %301 = vmatpush.bf16.msra.mxu2 %v2984_v10  ;;  %v3167_v45 = vld [vmem:[#allocation6 + $0xc0] sm:$0xf]  ;;  %v4175_v46 = vld [vmem:[#allocation6 + $0xcc] sm:$0xf0]  ;;  %v4173_v47 = vld [vmem:[#allocation6 + $0xc4] sm:$0xf]  ;;  %v3192_v48 = vor.u32 %v4180_v38, %v3191_v35  ;;  %v65_v52 = vpack.c.bf16 %v64_v40, %v63_v39 }
  0x27   :  { %v3169_v49 = vld [vmem:[#allocation6 + $0xd0] sm:$0xf0]  ;;  %v4174_v50 = vld [vmem:[#allocation6 + $0xcc] sm:$0xf]  ;;  %v3177_v51 = vld [vmem:[#allocation6 + $0xd8] sm:$0xf0]  ;;  %v3168_v55 = vor.u32 %v4175_v46, %v3167_v45 }
  0x28   :  { %274 = vmatpush.bf16.msra.mxu0 %v2960_v16  ;;  %v3175_v53 = vld [vmem:[#allocation6 + $0xc8] sm:$0xf]  ;;  %v4176_v54 = vld [vmem:[#allocation6 + $0xd4] sm:$0xf0]  ;;  %v3172_v56 = vor.u32 %v4173_v47, %v3169_v49  ;;  %v3180_v57 = vor.u32 %v4174_v50, %v3177_v51  ;;  %v3151_v58 = vld [vmem:[#allocation6 + $0xa0] sm:$0xf] }
  0x29   :  { %288 = vmatpush.bf16.msra.mxu1 %v2964_v20  ;;  %v4171_v59 = vld [vmem:[#allocation6 + $0xac] sm:$0xf0]  ;;  %v4169_v60 = vld [vmem:[#allocation6 + $0xa4] sm:$0xf]  ;;  %v3176_v61 = vor.u32 %v4176_v54, %v3175_v53  ;;  %v3153_v62 = vld [vmem:[#allocation6 + $0xb0] sm:$0xf0] }
  0x2a   :  { %316 = vmatpush.bf16.msra.mxu3 %v2972_v21  ;;  %302 = vmatpush.bf16.msra.mxu2 %v2968_v25  ;;  %v4170_v63 = vld [vmem:[#allocation6 + $0xac] sm:$0xf]  ;;  %v3161_v0 = vld [vmem:[#allocation6 + $0xb8] sm:$0xf0]  ;;  %v3159_v1 = vld [vmem:[#allocation6 + $0xa8] sm:$0xf]  ;;  %v3152_v3 = vor.u32 %v4171_v59, %v3151_v58  ;;  %v3156_v4 = vor.u32 %v4169_v60, %v3153_v62 }
  0x2b   :  { %v4172_v2 = vld [vmem:[#allocation6 + $0xb4] sm:$0xf0]  ;;  %v3164_v5 = vor.u32 %v4170_v63, %v3161_v0  ;;  %v3135_v6 = vld [vmem:[#allocation6 + $0x80] sm:$0xf]  ;;  %v4167_v7 = vld [vmem:[#allocation6 + $0x8c] sm:$0xf0] }
  0x2c   :  { %275 = vmatpush.bf16.msra.mxu0 %v2944_v32  ;;  %v4165_v8 = vld [vmem:[#allocation6 + $0x84] sm:$0xf]  ;;  %v3160_v9 = vor.u32 %v4172_v2, %v3159_v1  ;;  %v3137_v10 = vld [vmem:[#allocation6 + $0x90] sm:$0xf0]  ;;  %v4166_v11 = vld [vmem:[#allocation6 + $0x8c] sm:$0xf]  ;;  %v3136_v15 = vor.u32 %v4167_v7, %v3135_v6 }
  0x2d   :  { %289 = vmatpush.bf16.msra.mxu1 %v2948_v36  ;;  %v3145_v12 = vld [vmem:[#allocation6 + $0x98] sm:$0xf0]  ;;  %v3143_v13 = vld [vmem:[#allocation6 + $0x88] sm:$0xf]  ;;  %v4168_v14 = vld [vmem:[#allocation6 + $0x94] sm:$0xf0]  ;;  %v3140_v16 = vor.u32 %v4165_v8, %v3137_v10 }
  0x2e   :  { %317 = vmatpush.bf16.msra.mxu3 %v2956_v37  ;;  %303 = vmatpush.bf16.msra.mxu2 %v2952_v41  ;;  %v3148_v17 = vor.u32 %v4166_v11, %v3145_v12  ;;  %v3119_v18 = vld [vmem:[#allocation6 + $0x60] sm:$0xf]  ;;  %v4163_v19 = vld [vmem:[#allocation6 + $0x6c] sm:$0xf0]  ;;  %v4161_v20 = vld [vmem:[#allocation6 + $0x64] sm:$0xf]  ;;  %v3144_v21 = vor.u32 %v4168_v14, %v3143_v13 }
  0x2f   :  { %276 = vmatmul.bf16.vlgmr.msra.gmra.mxu0 %v65_v52  ;;  %v3121_v22 = vld [vmem:[#allocation6 + $0x70] sm:$0xf0]  ;;  %v4162_v23 = vld [vmem:[#allocation6 + $0x6c] sm:$0xf]  ;;  %v3129_v24 = vld [vmem:[#allocation6 + $0x78] sm:$0xf0]  ;;  %v3120_v27 = vor.u32 %v4163_v19, %v3119_v18 }
  0x30   :  { %516 = vmatpush.bf16.msrb.mxu0 %v3184_v42  ;;  %290 = vmatmul.bf16.vlgmr.msra.gmra.mxu1 %v65_v52  ;;  %v3127_v25 = vld [vmem:[#allocation6 + $0x68] sm:$0xf]  ;;  %v4164_v26 = vld [vmem:[#allocation6 + $0x74] sm:$0xf0]  ;;  %v3124_v28 = vor.u32 %v4161_v20, %v3121_v22  ;;  %v3132_v29 = vor.u32 %v4162_v23, %v3129_v24  ;;  %v3103_v30 = vld [vmem:[#allocation6 + $0x40] sm:$0xf] }
  0x31   :  { %529 = vmatpush.bf16.msrb.mxu1 %v3188_v43  ;;  %318 = vmatmul.bf16.vlgmr.msra.gmra.mxu3 %v65_v52  ;;  %v4159_v31 = vld [vmem:[#allocation6 + $0x4c] sm:$0xf0]  ;;  %v4157_v32 = vld [vmem:[#allocation6 + $0x44] sm:$0xf]  ;;  %v3128_v33 = vor.u32 %v4164_v26, %v3127_v25  ;;  %v3105_v34 = vld [vmem:[#allocation6 + $0x50] sm:$0xf0] }
  0x32   :  { %555 = vmatpush.bf16.msrb.mxu3 %v3196_v44  ;;  %542 = vmatpush.bf16.msrb.mxu2 %v3192_v48  ;;  %v4158_v35 = vld [vmem:[#allocation6 + $0x4c] sm:$0xf]  ;;  %v3113_v36 = vld [vmem:[#allocation6 + $0x58] sm:$0xf0]  ;;  %v3111_v37 = vld [vmem:[#allocation6 + $0x48] sm:$0xf]  ;;  %v3104_v39 = vor.u32 %v4159_v31, %v3103_v30  ;;  %v3108_v40 = vor.u32 %v4157_v32, %v3105_v34 }
  0x33   :  { %304 = vmatmul.bf16.vlgmr.msra.gmra.mxu2 %v65_v52  ;;  %v4160_v38 = vld [vmem:[#allocation6 + $0x54] sm:$0xf0]  ;;  %v3116_v41 = vor.u32 %v4158_v35, %v3113_v36  ;;  %v3087_v42 = vld [vmem:[#allocation6 + $0x20] sm:$0xf]  ;;  %v4155_v43 = vld [vmem:[#allocation6 + $0x2c] sm:$0xf0] }
  0x34   :  { %517 = vmatpush.bf16.msrb.mxu0 %v3168_v55  ;;  %v4153_v44 = vld [vmem:[#allocation6 + $0x24] sm:$0xf]  ;;  %v3112_v45 = vor.u32 %v4160_v38, %v3111_v37  ;;  %v3089_v46 = vld [vmem:[#allocation6 + $0x30] sm:$0xf0]  ;;  %v4154_v47 = vld [vmem:[#allocation6 + $0x2c] sm:$0xf]  ;;  %v3088_v51 = vor.u32 %v4155_v43, %v3087_v42 }
  0x35   :  { %530 = vmatpush.bf16.msrb.mxu1 %v3172_v56  ;;  %v3097_v48 = vld [vmem:[#allocation6 + $0x38] sm:$0xf0]  ;;  %v3095_v49 = vld [vmem:[#allocation6 + $0x28] sm:$0xf]  ;;  %v4156_v50 = vld [vmem:[#allocation6 + $0x34] sm:$0xf0]  ;;  %v3092_v52 = vor.u32 %v4153_v44, %v3089_v46 }
  0x36   :  { %556 = vmatpush.bf16.msrb.mxu3 %v3180_v57  ;;  %543 = vmatpush.bf16.msrb.mxu2 %v3176_v61  ;;  %v3100_v53 = vor.u32 %v4154_v47, %v3097_v48  ;;  %v3071_v54 = vld [vmem:[#allocation6] sm:$0xf]  ;;  %v4151_v55 = vld [vmem:[#allocation6 + $0xc] sm:$0xf0]  ;;  %v4149_v56 = vld [vmem:[#allocation6 + $0x4] sm:$0xf]  ;;  %v3096_v57 = vor.u32 %v4156_v50, %v3095_v49 }
  0x37   :  { %v3073_v58 = vld [vmem:[#allocation6 + $0x10] sm:$0xf0]  ;;  %v4150_v59 = vld [vmem:[#allocation6 + $0xc] sm:$0xf]  ;;  %v3081_v60 = vld [vmem:[#allocation6 + $0x18] sm:$0xf0]  ;;  %v3072_v63 = vor.u32 %v4151_v55, %v3071_v54 }
  0x38   :  { %518 = vmatpush.bf16.msrb.mxu0 %v3152_v3  ;;  %v3079_v61 = vld [vmem:[#allocation6 + $0x8] sm:$0xf]  ;;  %v4152_v62 = vld [vmem:[#allocation6 + $0x14] sm:$0xf0]  ;;  %v3076_v0 = vor.u32 %v4149_v56, %v3073_v58  ;;  %v3084_v1 = vor.u32 %v4150_v59, %v3081_v60  ;;  %v4620_v3 = vmov 0  }
  0x39   :  { %531 = vmatpush.bf16.msrb.mxu1 %v3156_v4  ;;  %v3080_v2 = vor.u32 %v4152_v62, %v3079_v61  ;;  %v4665_v6 = vld [vmem:[#allocation4] sm:$0xf]  ;;  %v3316_v19 = vld [vmem:[#allocation6 + $0xf0] sm:$0xf0]  ;;  %v3322_v20 = vld [vmem:[#allocation6 + $0xe8] sm:$0xf] }
  0x3a   :  { %557 = vmatpush.bf16.msrb.mxu3 %v3164_v5  ;;  %544 = vmatpush.bf16.msrb.mxu2 %v3160_v9  ;;  %v100_v7 = vperm.slane %v4665_v6, 0  ;;  %v101_v8 = vperm.slane %v4665_v6, 1  ;;  %v103_v22 = vperm.slane %v4665_v6, 3  ;;  %v4210_v25 = vld [vmem:[#allocation6 + $0xec] sm:$0xf] }
  0x3b   :  { %v3324_v26 = vld [vmem:[#allocation6 + $0xf8] sm:$0xf0]  ;;  %v4207_v30 = vld [vmem:[#allocation6 + $0xcc] sm:$0xf0]  ;;  %v4205_v31 = vld [vmem:[#allocation6 + $0xc4] sm:$0xf] }
  0x3c   :  { %519 = vmatpush.bf16.msrb.mxu0 %v3136_v15  ;;  %v3314_v15 = vld [vmem:[#allocation6 + $0xe0] sm:$0xf]  ;;  %v3300_v34 = vld [vmem:[#allocation6 + $0xd0] sm:$0xf0]  ;;  %v3306_v35 = vld [vmem:[#allocation6 + $0xc8] sm:$0xf] }
  0x3d   :  { %532 = vmatpush.bf16.msrb.mxu1 %v3140_v16  ;;  %v4211_v16 = vld [vmem:[#allocation6 + $0xec] sm:$0xf0]  ;;  %v4208_v36 = vld [vmem:[#allocation6 + $0xd4] sm:$0xf0]  ;;  %v3308_v42 = vld [vmem:[#allocation6 + $0xd8] sm:$0xf0] }
  0x3e   :  { %558 = vmatpush.bf16.msrb.mxu3 %v3148_v17  ;;  %545 = vmatpush.bf16.msrb.mxu2 %v3144_v21  ;;  %v4209_v17 = vld [vmem:[#allocation6 + $0xe4] sm:$0xf]  ;;  %v3315_v18 = vor.u32 %v4211_v16, %v3314_v15  ;;  %v4212_v21 = vld [vmem:[#allocation6 + $0xf4] sm:$0xf0]  ;;  %v4203_v46 = vld [vmem:[#allocation6 + $0xac] sm:$0xf0] }
  0x3f   :  { %v3319_v23 = vor.u32 %v4209_v17, %v3316_v19  ;;  %v3323_v24 = vor.u32 %v4212_v21, %v3322_v20  ;;  %v4201_v47 = vld [vmem:[#allocation6 + $0xa4] sm:$0xf]  ;;  %v3284_v49 = vld [vmem:[#allocation6 + $0xb0] sm:$0xf0]  ;;  %v3290_v50 = vld [vmem:[#allocation6 + $0xa8] sm:$0xf] }
  0x40   :  { %520 = vmatpush.bf16.msrb.mxu0 %v3120_v27  ;;  %v102_v27 = vperm.slane %v4665_v6, 2  ;;  %v4202_v54 = vld [vmem:[#allocation6 + $0xac] sm:$0xf]  ;;  %v3292_v55 = vld [vmem:[#allocation6 + $0xb8] sm:$0xf0] }
  0x41   :  { %533 = vmatpush.bf16.msrb.mxu1 %v3124_v28  ;;  %v3327_v28 = vor.u32 %v4210_v25, %v3324_v26  ;;  %v3295_v56 = vor.u32 %v4202_v54, %v3292_v55  ;;  %v4199_v58 = vld [vmem:[#allocation6 + $0x8c] sm:$0xf0]  ;;  %v4197_v59 = vld [vmem:[#allocation6 + $0x84] sm:$0xf]  ;;  %v3268_v61 = vld [vmem:[#allocation6 + $0x90] sm:$0xf0] }
  0x42   :  { %559 = vmatpush.bf16.msrb.mxu3 %v3132_v29  ;;  %546 = vmatpush.bf16.msrb.mxu2 %v3128_v33  ;;  %v3298_v29 = vld [vmem:[#allocation6 + $0xc0] sm:$0xf]  ;;  %v3274_v62 = vld [vmem:[#allocation6 + $0x88] sm:$0xf]  ;;  %v4195_v15 = vld [vmem:[#allocation6 + $0x6c] sm:$0xf0] }
  0x43   :  { %v3299_v33 = vor.u32 %v4207_v30, %v3298_v29  ;;  %v4193_v16 = vld [vmem:[#allocation6 + $0x64] sm:$0xf]  ;;  %v3258_v19 = vld [vmem:[#allocation6 + $0x68] sm:$0xf]  ;;  %v4196_v20 = vld [vmem:[#allocation6 + $0x74] sm:$0xf0] }
  0x44   :  { %521 = vmatpush.bf16.msrb.mxu0 %v3104_v39  ;;  %v3303_v39 = vor.u32 %v4205_v31, %v3300_v34  ;;  %v4194_v25 = vld [vmem:[#allocation6 + $0x6c] sm:$0xf]  ;;  %v3260_v26 = vld [vmem:[#allocation6 + $0x78] sm:$0xf0]  ;;  %v4188_v54 = vld [vmem:[#allocation6 + $0x34] sm:$0xf0] }
  0x45   :  { %534 = vmatpush.bf16.msrb.mxu1 %v3108_v40  ;;  %v3307_v40 = vor.u32 %v4208_v36, %v3306_v35  ;;  %v3263_v30 = vor.u32 %v4194_v25, %v3260_v26  ;;  %v3236_v36 = vld [vmem:[#allocation6 + $0x50] sm:$0xf0]  ;;  %v4186_v55 = vld [vmem:[#allocation6 + $0x2c] sm:$0xf] }
  0x46   :  { %560 = vmatpush.bf16.msrb.mxu3 %v3116_v41  ;;  %547 = vmatpush.bf16.msrb.mxu2 %v3112_v45  ;;  %v4206_v41 = vld [vmem:[#allocation6 + $0xcc] sm:$0xf]  ;;  %v3282_v45 = vld [vmem:[#allocation6 + $0xa0] sm:$0xf] }
  0x47   :  { %v3311_v44 = vor.u32 %v4206_v41, %v3308_v42  ;;  %v3283_v48 = vor.u32 %v4203_v46, %v3282_v45  ;;  %v4190_v41 = vld [vmem:[#allocation6 + $0x4c] sm:$0xf]  ;;  %v3244_v42 = vld [vmem:[#allocation6 + $0x58] sm:$0xf0]  ;;  %v3218_v46 = vld [vmem:[#allocation6 + $0x20] sm:$0xf] }
  0x48   :  { %522 = vmatpush.bf16.msrb.mxu0 %v3088_v51  ;;  %v4204_v51 = vld [vmem:[#allocation6 + $0xb4] sm:$0xf0]  ;;  %v3247_v45 = vor.u32 %v4190_v41, %v3244_v42 }
  0x49   :  { %535 = vmatpush.bf16.msrb.mxu1 %v3092_v52  ;;  %v3287_v52 = vor.u32 %v4201_v47, %v3284_v49  ;;  %v4187_v47 = vld [vmem:[#allocation6 + $0x2c] sm:$0xf0]  ;;  %v4185_v49 = vld [vmem:[#allocation6 + $0x24] sm:$0xf] }
  0x4a   :  { %561 = vmatpush.bf16.msrb.mxu3 %v3100_v53  ;;  %548 = vmatpush.bf16.msrb.mxu2 %v3096_v57  ;;  %v3291_v53 = vor.u32 %v4204_v51, %v3290_v50  ;;  %v3266_v57 = vld [vmem:[#allocation6 + $0x80] sm:$0xf]  ;;  %v3220_v50 = vld [vmem:[#allocation6 + $0x30] sm:$0xf0]  ;;  %v3226_v51 = vld [vmem:[#allocation6 + $0x28] sm:$0xf] }
  0x4b   :  { %v3267_v60 = vor.u32 %v4199_v58, %v3266_v57  ;;  %v3227_v58 = vor.u32 %v4188_v54, %v3226_v51 }
  0x4c   :  { %523 = vmatpush.bf16.msrb.mxu0 %v3072_v63  ;;  %v4200_v63 = vld [vmem:[#allocation6 + $0x94] sm:$0xf0] }
  0x4d   :  { %536 = vmatpush.bf16.msrb.mxu1 %v3076_v0  ;;  %v3271_v0 = vor.u32 %v4197_v59, %v3268_v61  ;;  %v4183_v61 = vld [vmem:[#allocation6 + $0xc] sm:$0xf0] }
  0x4e   :  { %562 = vmatpush.bf16.msrb.mxu3 %v3084_v1  ;;  %549 = vmatpush.bf16.msrb.mxu2 %v3080_v2  ;;  %v3275_v1 = vor.u32 %v4200_v63, %v3274_v62  ;;  %v4198_v2 = vld [vmem:[#allocation6 + $0x8c] sm:$0xf]  ;;  %v4181_v62 = vld [vmem:[#allocation6 + $0x4] sm:$0xf] }
  0x4f   :  { %524 = vmatmul.bf16.vlgmr.msrb.gmra.mxu0 %v4620_v3 }
  0x50   :  { %537 = vmatmul.bf16.vlgmr.msrb.gmra.mxu1 %v4620_v3  ;;  %829 = vmatpush.bf16.msra.mxu0 %v3315_v18  ;;  %v3252_v18 = vld [vmem:[#allocation6 + $0x70] sm:$0xf0] }
  0x51   :  { %563 = vmatmul.bf16.vlgmr.msrb.gmra.mxu3 %v4620_v3  ;;  %550 = vmatmul.bf16.vlgmr.msrb.gmra.mxu2 %v4620_v3  ;;  %v3276_v3 = vld [vmem:[#allocation6 + $0x98] sm:$0xf0] }
  0x52   :  { %842 = vmatpush.bf16.msra.mxu1 %v3319_v23  ;;  %855 = vmatpush.bf16.msra.mxu2 %v3323_v24  ;;  %v3255_v23 = vor.u32 %v4193_v16, %v3252_v18  ;;  %v3259_v24 = vor.u32 %v4196_v20, %v3258_v19  ;;  %v4182_v16 = vld [vmem:[#allocation6 + $0xc] sm:$0xf] }
  0x53   :  { %868 = vmatpush.bf16.msra.mxu3 %v3327_v28 }
  0x54   :  { %830 = vmatpush.bf16.msra.mxu0 %v3299_v33  ;;  %v3234_v33 = vld [vmem:[#allocation6 + $0x40] sm:$0xf] }
  0x56   :  { %843 = vmatpush.bf16.msra.mxu1 %v3303_v39  ;;  %856 = vmatpush.bf16.msra.mxu2 %v3307_v40  ;;  %v4192_v39 = vld [vmem:[#allocation6 + $0x54] sm:$0xf0] }
  0x57   :  { %869 = vmatpush.bf16.msra.mxu3 %v3311_v44 }
  0x58   :  { %831 = vmatpush.bf16.msra.mxu0 %v3283_v48  ;;  %v3219_v48 = vor.u32 %v4187_v47, %v3218_v46 }
  0x5a   :  { %844 = vmatpush.bf16.msra.mxu1 %v3287_v52  ;;  %857 = vmatpush.bf16.msra.mxu2 %v3291_v53  ;;  %v3223_v53 = vor.u32 %v4185_v49, %v3220_v50 }
  0x5b   :  { %870 = vmatpush.bf16.msra.mxu3 %v3295_v56  ;;  %v3228_v56 = vld [vmem:[#allocation6 + $0x38] sm:$0xf0] }
  0x5c   :  { %832 = vmatpush.bf16.msra.mxu0 %v3267_v60  ;;  %v3231_v59 = vor.u32 %v4186_v55, %v3228_v56  ;;  %v3202_v60 = vld [vmem:[#allocation6] sm:$0xf] }
  0x5e   :  { %845 = vmatpush.bf16.msra.mxu1 %v3271_v0  ;;  %858 = vmatpush.bf16.msra.mxu2 %v3275_v1 }
  0x62   :  { %846 = vmatpush.bf16.msra.mxu1 %v3255_v23  ;;  %859 = vmatpush.bf16.msra.mxu2 %v3259_v24 }
  0xac   :  { %v4661_v4 = vpop.f32.mrf.mxu0 }
  0xad   :  { %v4663_v5 = vpop.f32.mrf.mxu1  ;;  %v4694_v21 = vadd.f32 %v4661_v4, %v100_v7  ;;  %v4191_v4 = vld [vmem:[#allocation6 + $0x4c] sm:$0xf0] }
  0xae   :  { %v4699_v28 = vadd.f32 %v4663_v5, %v101_v8  ;;  %v3235_v35 = vor.u32 %v4191_v4, %v3234_v33 }
  0xb4   :  { %v4669_v9 = vpop.f32.mrf.mxu3  ;;  %v279_v10 = vpop.f32.mrf.mxu0 }
  0xb5   :  { %v4675_v12 = vadd.f32 %v279_v10, %v100_v7  ;;  %v293_v13 = vpop.f32.mrf.mxu1  ;;  %v3279_v10 = vor.u32 %v4198_v2, %v3276_v3  ;;  %v4189_v7 = vld [vmem:[#allocation6 + $0x44] sm:$0xf]  ;;  %v4706_v52 = vadd.f32 %v4669_v9, %v103_v22  ;;  %v3203_v2 = vor.u32 %v4183_v61, %v3202_v60  ;;  %v3204_v9 = vld [vmem:[#allocation6 + $0x10] sm:$0xf0]  ;;  %v4184_v3 = vld [vmem:[#allocation6 + $0x14] sm:$0xf0] }
  0xb6   :  { %v4671_v11 = vpop.f32.mrf.mxu2  ;;  %v4679_v14 = vadd.f32 %v293_v13, %v101_v8  ;;  %v3250_v13 = vld [vmem:[#allocation6 + $0x60] sm:$0xf]  ;;  %v3239_v8 = vor.u32 %v4189_v7, %v3236_v36 }
  0xb7   :  { %871 = vmatpush.bf16.msra.mxu3 %v3279_v10  ;;  %v3251_v17 = vor.u32 %v4195_v15, %v3250_v13  ;;  %v3207_v13 = vor.u32 %v4181_v62, %v3204_v9  ;;  %v3445_v9 = vld [vmem:[#allocation6 + $0xe0] sm:$0xf] }
  0xb8   :  { %847 = vmatpush.bf16.msra.mxu1 %v3239_v8 }
  0xb9   :  { %833 = vmatpush.bf16.msra.mxu0 %v3251_v17  ;;  %v3212_v17 = vld [vmem:[#allocation6 + $0x18] sm:$0xf0] }
  0xba   :  { %v3215_v19 = vor.u32 %v4182_v16, %v3212_v17  ;;  %v4244_v16 = vld [vmem:[#allocation6 + $0xf4] sm:$0xf0] }
  0xbb   :  { %872 = vmatpush.bf16.msra.mxu3 %v3263_v30 }
  0xbc   :  { %v321_v32 = vpop.f32.mrf.mxu3  ;;  %848 = vmatpush.bf16.msra.mxu1 %v3223_v53 }
  0xbd   :  { %v4685_v37 = vadd.f32 %v321_v32, %v103_v22  ;;  %834 = vmatpush.bf16.msra.mxu0 %v3235_v35  ;;  %v3210_v22 = vld [vmem:[#allocation6 + $0x8] sm:$0xf] }
  0xbe   :  { %v307_v38 = vpop.f32.mrf.mxu2  ;;  %v3211_v15 = vor.u32 %v4184_v3, %v3210_v22  ;;  %v4243_v22 = vld [vmem:[#allocation6 + $0xec] sm:$0xf0]  ;;  %v4241_v3 = vld [vmem:[#allocation6 + $0xe4] sm:$0xf] }
  0xbf   :  { %v4689_v43 = vadd.f32 %v307_v38, %v102_v27  ;;  %v3242_v38 = vld [vmem:[#allocation6 + $0x48] sm:$0xf]  ;;  %873 = vmatpush.bf16.msra.mxu3 %v3247_v45 }
  0xc0   :  { %v3243_v40 = vor.u32 %v4192_v39, %v3242_v38  ;;  %849 = vmatpush.bf16.msra.mxu1 %v3207_v13  ;;  %v3447_v13 = vld [vmem:[#allocation6 + $0xf0] sm:$0xf0] }
  0xc1   :  { %835 = vmatpush.bf16.msra.mxu0 %v3219_v48  ;;  %v3450_v17 = vor.u32 %v4241_v3, %v3447_v13  ;;  %v3389_v3 = vld [vmem:[#allocation6 + $0x68] sm:$0xf] }
  0xc2   :  { %860 = vmatpush.bf16.msra.mxu2 %v3243_v40 }
  0xc3   :  { %874 = vmatpush.bf16.msra.mxu3 %v3231_v59 }
  0xc4   :  { %1173 = vmatpush.bf16.msrb.mxu1 %v3450_v17  ;;  %v4226_v17 = vld [vmem:[#allocation6 + $0x6c] sm:$0xf] }
  0xc5   :  { %836 = vmatpush.bf16.msra.mxu0 %v3203_v2 }
  0xc6   :  { %861 = vmatpush.bf16.msra.mxu2 %v3227_v58 }
  0xc7   :  { %875 = vmatpush.bf16.msra.mxu3 %v3215_v19  ;;  %v4242_v19 = vld [vmem:[#allocation6 + $0xec] sm:$0xf] }
  0xca   :  { %862 = vmatpush.bf16.msra.mxu2 %v3211_v15  ;;  %v3453_v15 = vld [vmem:[#allocation6 + $0xe8] sm:$0xf] }
  0xcc   :  { %v525_v29 = vpop.f32.mrf.mxu0 }
  0xcd   :  { %v568_v31 = vadd.f32 %v525_v29, %v4694_v21  ;;  %v538_v32 = vpop.f32.mrf.mxu1  ;;  %v4712_v29 = vadd.f32 %v4671_v11, %v102_v27 }
  0xce   :  { %v569_v34 = vadd.f32 %v538_v32, %v4699_v28 }
  0xcf   :  { %v3197_v5 = vmul.f32 -1.442695, %v568_v31 }
  0xd0   :  { %v3198_v44 = vmul.f32 -1.442695, %v569_v34 }
  0xd1   :  { %4411 = vpow2.f32 %v3197_v5 }
  0xd2   :  { %4413 = vpow2.f32 %v3198_v44 }
  0xd4   :  { %v564_v57 = vpop.f32.mrf.mxu3  ;;  %v551_v0 = vpop.f32.mrf.mxu2 }
  0xd5   :  { %v571_v63 = vadd.f32 %v564_v57, %v4706_v52  ;;  %v527_v1 = vpop.f32.mrf.mxu0  ;;  %v540_v10 = vpop.f32.mrf.mxu1  ;;  %v570_v4 = vadd.f32 %v551_v0, %v4712_v29 }
  0xd6   :  { %v3446_v10 = vor.u32 %v4243_v22, %v3445_v9  ;;  %v4225_v9 = vld [vmem:[#allocation6 + $0x64] sm:$0xf]  ;;  %v3383_v22 = vld [vmem:[#allocation6 + $0x70] sm:$0xf0] }
  0xd7   :  { %v3199_v18 = vmul.f32 -1.442695, %v571_v63  ;;  %v4412_v20 = vpop.eup %4411 }
  0xd8   :  { %v4414_v23 = vpop.eup %4413  ;;  %v575_v24 = vadd.f32 1.0, %v4412_v20  ;;  %v3455_v20 = vld [vmem:[#allocation6 + $0xf8] sm:$0xf0]  ;;  %1160 = vmatpush.bf16.msrb.mxu0 %v3446_v10 }
  0xd9   :  { %4415 = vpow2.f32 %v3199_v18  ;;  %v594_v25 = vadd.f32 1.0, %v4414_v23  ;;  %v3454_v18 = vor.u32 %v4244_v16, %v3453_v15  ;;  %v3458_v23 = vor.u32 %v4242_v19, %v3455_v20  ;;  %v4228_v16 = vld [vmem:[#allocation6 + $0x74] sm:$0xf0] }
  0xda   :  { %4417 = vrcp.f32 %v575_v24  ;;  %v587_v39 = vand.u32 2147483648, %v575_v24  ;;  %v585_v6 = vand.u32 2147483647, %v575_v24  ;;  %vm581_vm2 = vweird.f32 %v575_v24 }
  0xdb   :  { %4419 = vrcp.f32 %v594_v25  ;;  %v606_v5 = vand.u32 2147483648, %v594_v25  ;;  %v604_v27 = vand.u32 2147483647, %v594_v25  ;;  %vm600_vm3 = vweird.f32 %v594_v25  ;;  %1186 = vmatpush.bf16.msrb.mxu2 %v3454_v18  ;;  %1199 = vmatpush.bf16.msrb.mxu3 %v3458_v23  ;;  %v3391_v18 = vld [vmem:[#allocation6 + $0x78] sm:$0xf0] }
  0xdc   :  { %v566_v26 = vpop.f32.mrf.mxu3  ;;  %v553_v30 = vpop.f32.mrf.mxu2  ;;  %v588_v44 = vor.u32 1.1754944e-38, %v587_v39  ;;  %vm586_vm5 = vcmp.eq.f32.partialorder %v585_v6, 8.507059e+37  ;;  %v4235_v39 = vld [vmem:[#allocation6 + $0xac] sm:$0xf0]  ;;  %v3415_v6 = vld [vmem:[#allocation6 + $0xb0] sm:$0xf0]  ;;  %v3386_v15 = vor.u32 %v4225_v9, %v3383_v22  ;;  %v3390_v19 = vor.u32 %v4228_v16, %v3389_v3 }
  0xdd   :  { %v607_v46 = vor.u32 1.1754944e-38, %v606_v5  ;;  %vm605_vm7 = vcmp.eq.f32.partialorder %v604_v27, 8.507059e+37  ;;  %v4237_v26 = vld [vmem:[#allocation6 + $0xc4] sm:$0xf]  ;;  %v4236_v27 = vld [vmem:[#allocation6 + $0xb4] sm:$0xf0]  ;;  %v3394_v20 = vor.u32 %v4226_v17, %v3391_v18 }
  0xde   :  { %v4233_v5 = vld [vmem:[#allocation6 + $0xa4] sm:$0xf]  ;;  %v3343_v3 = vld [vmem:[#allocation6 + $0x18] sm:$0xf0] }
  0xdf   :  { %v4416_v31 = vpop.eup %4415 }
  0xe0   :  { %v614_v32 = vadd.f32 1.0, %v4416_v31  ;;  %v4418_v33 = vpop.eup %4417  ;;  %v3431_v31 = vld [vmem:[#allocation6 + $0xd0] sm:$0xf0] }
  0xe1   :  { %v4420_v7 = vpop.eup %4419  ;;  %v577_v34 = vmul.f32 %v4418_v33, %v575_v24  ;;  %vm582_vm0 = vweird.f32 %v4418_v33  ;;  %v3429_v24 = vld [vmem:[#allocation6 + $0xc0] sm:$0xf] }
  0xe2   :  { %4421 = vrcp.f32 %v614_v32  ;;  %v596_v35 = vmul.f32 %v4420_v7, %v594_v25  ;;  %vm601_vm1 = vweird.f32 %v4420_v7  ;;  %vm583_vm4 = vmor %vm581_vm2, %vm582_vm0  ;;  %v626_v59 = vand.u32 2147483648, %v614_v32  ;;  %v4239_v25 = vld [vmem:[#allocation6 + $0xcc] sm:$0xf0] }
  0xe3   :  { %v578_v36 = vsub.f32 1.0, %v577_v34  ;;  %4423 = vtanh.f32 %v570_v4  ;;  %vm602_vm6 = vmor %vm600_vm3, %vm601_vm1  ;;  %vm620_vm9 = vweird.f32 %v614_v32  ;;  %v624_v60 = vand.u32 2147483647, %v614_v32  ;;  %v4238_v34 = vld [vmem:[#allocation6 + $0xcc] sm:$0xf] }
  0xe4   :  { %v597_v38 = vsub.f32 1.0, %v596_v35  ;;  %v627_v62 = vor.u32 1.1754944e-38, %v626_v59  ;;  %v3430_v30 = vor.u32 %v4239_v25, %v3429_v24  ;;  %v3434_v4 = vor.u32 %v4237_v26, %v3431_v31  ;;  %v3439_v35 = vld [vmem:[#allocation6 + $0xd8] sm:$0xf0]  ;;  %v3365_v25 = vld [vmem:[#allocation6 + $0x40] sm:$0xf] }
  0xe5   :  { %v579_v8 = vmul.f32 %v4418_v33, %v578_v36  ;;  %vm625_vm11 = vcmp.eq.f32.partialorder %v624_v60, 8.507059e+37  ;;  %v3442_v36 = vor.u32 %v4238_v34, %v3439_v35  ;;  %v4223_v26 = vld [vmem:[#allocation6 + $0x4c] sm:$0xf0]  ;;  %v3367_v31 = vld [vmem:[#allocation6 + $0x50] sm:$0xf0] }
  0xe6   :  { %v598_v11 = vmul.f32 %v4420_v7, %v597_v38  ;;  %1161 = vmatpush.bf16.msrb.mxu0 %v3430_v30  ;;  %1174 = vmatpush.bf16.msrb.mxu1 %v3434_v4  ;;  %v3413_v38 = vld [vmem:[#allocation6 + $0xa0] sm:$0xf]  ;;  %v4221_v30 = vld [vmem:[#allocation6 + $0x44] sm:$0xf]  ;;  %v3366_v4 = vor.u32 %v4223_v26, %v3365_v25  ;;  %v3373_v34 = vld [vmem:[#allocation6 + $0x48] sm:$0xf] }
  0xe7   :  { %v580_v41 = vadd.f32 %v4418_v33, %v579_v8  ;;  %1200 = vmatpush.bf16.msrb.mxu3 %v3442_v36  ;;  %v3414_v8 = vor.u32 %v4235_v39, %v3413_v38  ;;  %v4224_v35 = vld [vmem:[#allocation6 + $0x54] sm:$0xf0]  ;;  %v4222_v36 = vld [vmem:[#allocation6 + $0x4c] sm:$0xf] }
  0xe8   :  { %v4422_v40 = vpop.eup %4421  ;;  %v599_v45 = vadd.f32 %v4420_v7, %v598_v11  ;;  %v3421_v11 = vld [vmem:[#allocation6 + $0xa8] sm:$0xf] }
  0xe9   :  { %v616_v42 = vmul.f32 %v4422_v40, %v614_v32  ;;  %v584_v47 = vsel %vm583_vm4, %v4418_v33, %v580_v41  ;;  %v4424_v48 = vpop.eup %4423  ;;  %vm621_vm8 = vweird.f32 %v4422_v40  ;;  %v3437_v32 = vld [vmem:[#allocation6 + $0xc8] sm:$0xf]  ;;  %v4240_v33 = vld [vmem:[#allocation6 + $0xd4] sm:$0xf0]  ;;  %v3422_v41 = vor.u32 %v4236_v27, %v3421_v11  ;;  %v3349_v11 = vld [vmem:[#allocation6 + $0x20] sm:$0xf] }
  0xea   :  { %v589_v50 = vsel %vm586_vm5, %v588_v44, %v584_v47  ;;  %v603_v51 = vsel %vm602_vm6, %v4420_v7, %v599_v45  ;;  %vm622_vm10 = vmor %vm620_vm9, %vm621_vm8  ;;  %v3438_v7 = vor.u32 %v4240_v33, %v3437_v32  ;;  %v3423_v44 = vld [vmem:[#allocation6 + $0xb8] sm:$0xf0]  ;;  %1162 = vmatpush.bf16.msrb.mxu0 %v3414_v8  ;;  %v4231_v47 = vld [vmem:[#allocation6 + $0x8c] sm:$0xf0]  ;;  %v3374_v8 = vor.u32 %v4224_v35, %v3373_v34 }
  0xeb   :  { %v617_v49 = vsub.f32 1.0, %v616_v42  ;;  %v608_v53 = vsel %vm605_vm7, %v607_v46, %v603_v51  ;;  %v631_v54 = vmul.f32 %v4424_v48, %v589_v50  ;;  %v4234_v42 = vld [vmem:[#allocation6 + $0xac] sm:$0xf]  ;;  %v3397_v46 = vld [vmem:[#allocation6 + $0x80] sm:$0xf] }
  0xec   :  { %v630_v56 = vmul.f32 0.0, %v608_v53  ;;  %1187 = vmatpush.bf16.msrb.mxu2 %v3438_v7  ;;  %v3426_v45 = vor.u32 %v4234_v42, %v3423_v44  ;;  %v4229_v48 = vld [vmem:[#allocation6 + $0x84] sm:$0xf]  ;;  %v3399_v50 = vld [vmem:[#allocation6 + $0x90] sm:$0xf0]  ;;  %v3370_v7 = vor.u32 %v4221_v30, %v3367_v31 }
  0xed   :  { %v618_v55 = vmul.f32 %v4422_v40, %v617_v49  ;;  %v3398_v49 = vor.u32 %v4231_v47, %v3397_v46  ;;  %v3405_v51 = vld [vmem:[#allocation6 + $0x88] sm:$0xf]  ;;  %v4232_v53 = vld [vmem:[#allocation6 + $0x94] sm:$0xf0]  ;;  %v3351_v42 = vld [vmem:[#allocation6 + $0x30] sm:$0xf0] }
  0xee   :  { %v4715_v57 = vadd.f32 %v631_v54, %v630_v56  ;;  %1201 = vmatpush.bf16.msrb.mxu3 %v3426_v45  ;;  %v3402_v54 = vor.u32 %v4229_v48, %v3399_v50  ;;  %v4230_v56 = vld [vmem:[#allocation6 + $0x8c] sm:$0xf]  ;;  %v3357_v47 = vld [vmem:[#allocation6 + $0x28] sm:$0xf]  ;;  %v4220_v48 = vld [vmem:[#allocation6 + $0x34] sm:$0xf0] }
  0xef   :  { %v619_v58 = vadd.f32 %v4422_v40, %v618_v55  ;;  %v3406_v55 = vor.u32 %v4232_v53, %v3405_v51  ;;  %1163 = vmatpush.bf16.msrb.mxu0 %v3398_v49  ;;  %v4218_v49 = vld [vmem:[#allocation6 + $0x2c] sm:$0xf]  ;;  %v3358_v50 = vor.u32 %v4220_v48, %v3357_v47  ;;  %v3359_v51 = vld [vmem:[#allocation6 + $0x38] sm:$0xf0]  ;;  %v3333_v53 = vld [vmem:[#allocation6] sm:$0xf] }
  0xf0   :  { %4425 = vtanh.f32 %v4715_v57  ;;  %1188 = vmatpush.bf16.msrb.mxu2 %v3422_v41  ;;  %v4217_v41 = vld [vmem:[#allocation6 + $0x24] sm:$0xf] }
  0xf1   :  { %v623_v61 = vsel %vm622_vm10, %v4422_v40, %v619_v58  ;;  %v3418_v40 = vor.u32 %v4233_v5, %v3415_v6  ;;  %v3407_v58 = vld [vmem:[#allocation6 + $0x98] sm:$0xf0]  ;;  %v3354_v46 = vor.u32 %v4217_v41, %v3351_v42 }
  0xf2   :  { %v628_v0 = vsel %vm625_vm11, %v627_v62, %v623_v61  ;;  %v3410_v61 = vor.u32 %v4230_v56, %v3407_v58  ;;  %v3375_v6 = vld [vmem:[#allocation6 + $0x58] sm:$0xf0]  ;;  %v3362_v56 = vor.u32 %v4218_v49, %v3359_v51  ;;  %v4213_v58 = vld [vmem:[#allocation6 + $0x4] sm:$0xf] }
  0xf3   :  { %1175 = vmatpush.bf16.msrb.mxu1 %v3418_v40  ;;  %v3378_v27 = vor.u32 %v4222_v36, %v3375_v6  ;;  %v4219_v40 = vld [vmem:[#allocation6 + $0x2c] sm:$0xf0]  ;;  %v956_v6 = vrot.slane %v4715_v57, 6 }
  0xf4   :  { %1189 = vmatpush.bf16.msrb.mxu2 %v3406_v55  ;;  %1202 = vmatpush.bf16.msrb.mxu3 %v3410_v61  ;;  %v3350_v45 = vor.u32 %v4219_v40, %v3349_v11 }
  0xf6   :  { %v4426_v63 = vpop.eup %4425 }
  0xf7   :  { %v634_v1 = vmul.f32 %v4426_v63, %v628_v0  ;;  %1176 = vmatpush.bf16.msrb.mxu1 %v3402_v54  ;;  %v3381_v0 = vld [vmem:[#allocation6 + $0x60] sm:$0xf]  ;;  %v4215_v54 = vld [vmem:[#allocation6 + $0xc] sm:$0xf0] }
  0xf8   :  { %1190 = vmatpush.bf16.msrb.mxu2 %v3390_v19  ;;  %1203 = vmatpush.bf16.msrb.mxu3 %v3394_v20  ;;  %v3334_v61 = vor.u32 %v4215_v54, %v3333_v53 }
  0xf9   :  { %635 = vst [vmem:[%s4814_s4] sm:$0x3] %v634_v1  ;;  %v636_v2 = vpack.c.bf16 %v634_v1, %v634_v1  ;;  %v4227_v1 = vld [vmem:[#allocation6 + $0x6c] sm:$0xf0] }
  0xfb   :  { %837 = vmatmul.bf16.vlgmr.msra.gmra.mxu0 %v636_v2  ;;  %850 = vmatmul.bf16.vlgmr.msra.gmra.mxu1 %v636_v2 }
  0xfc   :  { %863 = vmatmul.bf16.vlgmr.msra.gmra.mxu2 %v636_v2  ;;  %876 = vmatmul.bf16.vlgmr.msra.gmra.mxu3 %v636_v2  ;;  %v3382_v2 = vor.u32 %v4227_v1, %v3381_v0  ;;  %v4216_v0 = vld [vmem:[#allocation6 + $0x14] sm:$0xf0]  ;;  %v4214_v1 = vld [vmem:[#allocation6 + $0xc] sm:$0xf] }
  0xfd   :  { %1177 = vmatpush.bf16.msrb.mxu1 %v3386_v15  ;;  %1191 = vmatpush.bf16.msrb.mxu2 %v3374_v8  ;;  %v3346_v16 = vor.u32 %v4214_v1, %v3343_v3  ;;  %v3578_v1 = vld [vmem:[#allocation6 + $0xf0] sm:$0xf0] }
  0xfe   :  { %1164 = vmatpush.bf16.msrb.mxu0 %v3382_v2  ;;  %1204 = vmatpush.bf16.msrb.mxu3 %v3378_v27 }
 0x101   :  { %1178 = vmatpush.bf16.msrb.mxu1 %v3370_v7  ;;  %1192 = vmatpush.bf16.msrb.mxu2 %v3358_v50 }
 0x102   :  { %1165 = vmatpush.bf16.msrb.mxu0 %v3366_v4  ;;  %1205 = vmatpush.bf16.msrb.mxu3 %v3362_v56 }
 0x105   :  { %1179 = vmatpush.bf16.msrb.mxu1 %v3354_v46 }
 0x106   :  { %1166 = vmatpush.bf16.msrb.mxu0 %v3350_v45  ;;  %1206 = vmatpush.bf16.msrb.mxu3 %v3346_v16  ;;  %v3560_v16 = vld [vmem:[#allocation6 + $0xc0] sm:$0xf] }
 0x10a   :  { %1167 = vmatpush.bf16.msrb.mxu0 %v3334_v61  ;;  %v3576_v61 = vld [vmem:[#allocation6 + $0xe0] sm:$0xf] }
 0x178   :  { %v838_v59 = vpop.f32.mrf.mxu0  ;;  %v851_v60 = vpop.f32.mrf.mxu1 }
 0x179   :  { %v885_v62 = vrot.slane %v838_v59, 6  ;;  %v886_v63 = vrot.slane %v851_v60, 6  ;;  %v3335_v59 = vld [vmem:[#allocation6 + $0x10] sm:$0xf0] }
 0x17b   :  { %v893_v10 = vadd.f32 %v885_v62, %v4694_v21  ;;  %v894_v13 = vadd.f32 %v886_v63, %v4699_v28  ;;  %v3338_v62 = vor.u32 %v4213_v58, %v3335_v59  ;;  %v3341_v63 = vld [vmem:[#allocation6 + $0x8] sm:$0xf] }
 0x17c   :  { %v3342_v22 = vor.u32 %v4216_v0, %v3341_v63  ;;  %v4273_v63 = vld [vmem:[#allocation6 + $0xe4] sm:$0xf] }
 0x17d   :  { %v3328_v23 = vmul.f32 -1.442695, %v893_v10  ;;  %v3329_v24 = vmul.f32 -1.442695, %v894_v13  ;;  %1180 = vmatpush.bf16.msrb.mxu1 %v3338_v62  ;;  %v4275_v62 = vld [vmem:[#allocation6 + $0xec] sm:$0xf0] }
 0x17e   :  { %1193 = vmatpush.bf16.msrb.mxu2 %v3342_v22  ;;  %v3577_v0 = vor.u32 %v4275_v62, %v3576_v61  ;;  %v3581_v22 = vor.u32 %v4273_v63, %v3578_v1  ;;  %v4257_v61 = vld [vmem:[#allocation6 + $0x64] sm:$0xf]  ;;  %v3514_v62 = vld [vmem:[#allocation6 + $0x70] sm:$0xf0]  ;;  %v3520_v63 = vld [vmem:[#allocation6 + $0x68] sm:$0xf] }
 0x17f   :  { %4427 = vpow2.f32 %v3328_v23  ;;  %v4723_v32 = vpop.f32.mrf.mxu2  ;;  %v877_v33 = vpop.f32.mrf.mxu3 }
 0x180   :  { %4429 = vpow2.f32 %v3329_v24  ;;  %v888_v38 = vrot.slane %v877_v33, 6  ;;  %v840_v39 = vpop.f32.mrf.mxu0  ;;  %v853_v5 = vpop.f32.mrf.mxu1  ;;  %v887_v17 = vrot.slane %v4723_v32, 6  ;;  %1491 = vmatpush.bf16.msra.mxu0 %v3577_v0 }
 0x181   :  { %1504 = vmatpush.bf16.msra.mxu1 %v3581_v22  ;;  %v4258_v22 = vld [vmem:[#allocation6 + $0x6c] sm:$0xf] }
 0x182   :  { %v896_v44 = vadd.f32 %v888_v38, %v4706_v52  ;;  %v895_v23 = vadd.f32 %v887_v17, %v4712_v29  ;;  %v4271_v17 = vld [vmem:[#allocation6 + $0xcc] sm:$0xf0] }
 0x184   :  { %v3330_v55 = vmul.f32 -1.442695, %v896_v44 }
 0x185   :  { %v4428_v60 = vpop.eup %4427 }
 0x186   :  { %v4430_v2 = vpop.eup %4429  ;;  %v900_v9 = vadd.f32 1.0, %v4428_v60  ;;  %4431 = vpow2.f32 %v3330_v55 }
 0x187   :  { %v919_v10 = vadd.f32 1.0, %v4430_v2  ;;  %v866_v13 = vpop.f32.mrf.mxu2  ;;  %v879_v15 = vpop.f32.mrf.mxu3  ;;  %v3584_v2 = vld [vmem:[#allocation6 + $0xe8] sm:$0xf] }
 0x188   :  { %4433 = vrcp.f32 %v900_v9  ;;  %v912_v33 = vand.u32 2147483648, %v900_v9  ;;  %v910_v34 = vand.u32 2147483647, %v900_v9  ;;  %vm906_vm14 = vweird.f32 %v900_v9  ;;  %v3586_v13 = vld [vmem:[#allocation6 + $0xf8] sm:$0xf0] }
 0x189   :  { %4435 = vrcp.f32 %v919_v10  ;;  %v931_v4 = vand.u32 2147483648, %v919_v10  ;;  %v929_v35 = vand.u32 2147483647, %v919_v10  ;;  %vm925_vm15 = vweird.f32 %v919_v10 }
 0x18a   :  { %v913_v39 = vor.u32 1.1754944e-38, %v912_v33  ;;  %vm911_vm2 = vcmp.eq.f32.partialorder %v910_v34, 8.507059e+37  ;;  %v4265_v34 = vld [vmem:[#allocation6 + $0xa4] sm:$0xf] }
 0x18b   :  { %v932_v11 = vor.u32 1.1754944e-38, %v931_v4  ;;  %vm930_vm3 = vcmp.eq.f32.partialorder %v929_v35, 8.507059e+37  ;;  %v3544_v4 = vld [vmem:[#allocation6 + $0xa0] sm:$0xf]  ;;  %v3546_v35 = vld [vmem:[#allocation6 + $0xb0] sm:$0xf0] }
 0x18c   :  { %v4432_v18 = vpop.eup %4431 }
 0x18d   :  { %v939_v19 = vadd.f32 1.0, %v4432_v18  ;;  %v4269_v18 = vld [vmem:[#allocation6 + $0xc4] sm:$0xf] }
 0x18e   :  { %v4434_v20 = vpop.eup %4433 }
 0x18f   :  { %v4436_v24 = vpop.eup %4435  ;;  %v902_v25 = vmul.f32 %v4434_v20, %v900_v9  ;;  %4437 = vrcp.f32 %v939_v19  ;;  %vm907_vm12 = vweird.f32 %v4434_v20  ;;  %v951_v57 = vand.u32 2147483648, %v939_v19  ;;  %v4276_v9 = vld [vmem:[#allocation6 + $0xf4] sm:$0xf0] }
 0x190   :  { %v921_v26 = vmul.f32 %v4436_v24, %v919_v10  ;;  %4439 = vtanh.f32 %v895_v23  ;;  %vm926_vm13 = vweird.f32 %v4436_v24  ;;  %vm908_vm0 = vmor %vm906_vm14, %vm907_vm12  ;;  %vm945_vm5 = vweird.f32 %v939_v19  ;;  %v4274_v10 = vld [vmem:[#allocation6 + $0xec] sm:$0xf]  ;;  %v3568_v23 = vld [vmem:[#allocation6 + $0xc8] sm:$0xf] }
 0x191   :  { %v903_v30 = vsub.f32 1.0, %v902_v25  ;;  %vm927_vm1 = vmor %vm925_vm15, %vm926_vm13  ;;  %v949_v51 = vand.u32 2147483647, %v939_v19  ;;  %v952_v54 = vor.u32 1.1754944e-38, %v951_v57  ;;  %v3585_v3 = vor.u32 %v4276_v9, %v3584_v2  ;;  %v3538_v57 = vld [vmem:[#allocation6 + $0x98] sm:$0xf0] }
 0x192   :  { %v922_v31 = vsub.f32 1.0, %v921_v26  ;;  %v3589_v15 = vor.u32 %v4274_v10, %v3586_v13  ;;  %v3517_v2 = vor.u32 %v4257_v61, %v3514_v62  ;;  %v4260_v9 = vld [vmem:[#allocation6 + $0x74] sm:$0xf0] }
 0x193   :  { %v904_v7 = vmul.f32 %v4434_v20, %v903_v30  ;;  %vm950_vm7 = vcmp.eq.f32.partialorder %v949_v51, 8.507059e+37  ;;  %1517 = vmatpush.bf16.msra.mxu2 %v3585_v3  ;;  %v4270_v30 = vld [vmem:[#allocation6 + $0xcc] sm:$0xf]  ;;  %v3522_v3 = vld [vmem:[#allocation6 + $0x78] sm:$0xf0]  ;;  %v3521_v10 = vor.u32 %v4260_v9, %v3520_v63 }
 0x194   :  { %v923_v32 = vmul.f32 %v4436_v24, %v922_v31  ;;  %1530 = vmatpush.bf16.msra.mxu3 %v3589_v15  ;;  %v3570_v31 = vld [vmem:[#allocation6 + $0xd8] sm:$0xf0]  ;;  %v3525_v13 = vor.u32 %v4258_v22, %v3522_v3 }
 0x195   :  { %v4438_v36 = vpop.eup %4437  ;;  %v905_v38 = vadd.f32 %v4434_v20, %v904_v7  ;;  %v3573_v33 = vor.u32 %v4270_v30, %v3570_v31  ;;  %v4267_v7 = vld [vmem:[#allocation6 + $0xac] sm:$0xf0]  ;;  %v3504_v30 = vld [vmem:[#allocation6 + $0x48] sm:$0xf]  ;;  %v4256_v31 = vld [vmem:[#allocation6 + $0x54] sm:$0xf0] }
 0x196   :  { %v924_v5 = vadd.f32 %v4436_v24, %v923_v32  ;;  %v941_v8 = vmul.f32 %v4438_v36, %v939_v19  ;;  %v4440_v40 = vpop.eup %4439  ;;  %vm946_vm4 = vweird.f32 %v4438_v36  ;;  %v3561_v19 = vor.u32 %v4271_v17, %v3560_v16  ;;  %v3496_v17 = vld [vmem:[#allocation6 + $0x40] sm:$0xf]  ;;  %v3474_v63 = vld [vmem:[#allocation6 + $0x18] sm:$0xf0] }
 0x197   :  { %v909_v27 = vsel %vm908_vm0, %v4434_v20, %v905_v38  ;;  %vm947_vm6 = vmor %vm945_vm5, %vm946_vm4  ;;  %v3562_v20 = vld [vmem:[#allocation6 + $0xd0] sm:$0xf0]  ;;  %v3545_v32 = vor.u32 %v4267_v7, %v3544_v4  ;;  %v4268_v38 = vld [vmem:[#allocation6 + $0xb4] sm:$0xf0] }
 0x198   :  { %v914_v41 = vsel %vm911_vm2, %v913_v39, %v909_v27  ;;  %v928_v42 = vsel %vm927_vm1, %v4436_v24, %v924_v5  ;;  %v942_v44 = vsub.f32 1.0, %v941_v8  ;;  %v4272_v24 = vld [vmem:[#allocation6 + $0xd4] sm:$0xf0]  ;;  %v3565_v25 = vor.u32 %v4269_v18, %v3562_v20  ;;  %1492 = vmatpush.bf16.msra.mxu0 %v3561_v19  ;;  %1531 = vmatpush.bf16.msra.mxu3 %v3573_v33  ;;  %v4266_v8 = vld [vmem:[#allocation6 + $0xac] sm:$0xf] }
 0x199   :  { %v933_v45 = vsel %vm930_vm3, %v932_v11, %v928_v42  ;;  %v959_v46 = vmul.f32 %v4440_v40, %v914_v41  ;;  %v3569_v26 = vor.u32 %v4272_v24, %v3568_v23  ;;  %v3549_v39 = vor.u32 %v4265_v34, %v3546_v35  ;;  %v3528_v27 = vld [vmem:[#allocation6 + $0x80] sm:$0xf]  ;;  %v4263_v40 = vld [vmem:[#allocation6 + $0x8c] sm:$0xf0]  ;;  %v4261_v41 = vld [vmem:[#allocation6 + $0x84] sm:$0xf] }
 0x19a   :  { %v958_v47 = vmul.f32 %v956_v6, %v933_v45  ;;  %v943_v48 = vmul.f32 %v4438_v36, %v942_v44  ;;  %1505 = vmatpush.bf16.msra.mxu1 %v3565_v25  ;;  %v3554_v6 = vld [vmem:[#allocation6 + $0xb8] sm:$0xf0]  ;;  %v3529_v42 = vor.u32 %v4263_v40, %v3528_v27  ;;  %v3530_v44 = vld [vmem:[#allocation6 + $0x90] sm:$0xf0]  ;;  %v3536_v45 = vld [vmem:[#allocation6 + $0x88] sm:$0xf] }
 0x19b   :  { %1518 = vmatpush.bf16.msra.mxu2 %v3569_v26  ;;  %v3557_v11 = vor.u32 %v4266_v8, %v3554_v6  ;;  %v4255_v18 = vld [vmem:[#allocation6 + $0x4c] sm:$0xf0]  ;;  %v4253_v19 = vld [vmem:[#allocation6 + $0x44] sm:$0xf]  ;;  %v3498_v20 = vld [vmem:[#allocation6 + $0x50] sm:$0xf0] }
 0x19c   :  { %v4729_v49 = vadd.f32 %v959_v46, %v958_v47  ;;  %v944_v50 = vadd.f32 %v4438_v36, %v943_v48  ;;  %1493 = vmatpush.bf16.msra.mxu0 %v3545_v32  ;;  %v4264_v46 = vld [vmem:[#allocation6 + $0x94] sm:$0xf0]  ;;  %v3533_v47 = vor.u32 %v4261_v41, %v3530_v44  ;;  %v3497_v25 = vor.u32 %v4255_v18, %v3496_v17  ;;  %v4254_v33 = vld [vmem:[#allocation6 + $0x4c] sm:$0xf]  ;;  %v3506_v35 = vld [vmem:[#allocation6 + $0x58] sm:$0xf0] }
 0x19d   :  { %1532 = vmatpush.bf16.msra.mxu3 %v3557_v11  ;;  %v3537_v48 = vor.u32 %v4264_v46, %v3536_v45  ;;  %v3501_v26 = vor.u32 %v4253_v19, %v3498_v20  ;;  %v3505_v32 = vor.u32 %v4256_v31, %v3504_v30  ;;  %v3482_v8 = vld [vmem:[#allocation6 + $0x30] sm:$0xf0]  ;;  %v3488_v40 = vld [vmem:[#allocation6 + $0x28] sm:$0xf]  ;;  %v4252_v41 = vld [vmem:[#allocation6 + $0x34] sm:$0xf0] }
 0x19e   :  { %4441 = vtanh.f32 %v4729_v49  ;;  %v948_v53 = vsel %vm947_vm6, %v4438_v36, %v944_v50  ;;  %v3552_v36 = vld [vmem:[#allocation6 + $0xa8] sm:$0xf]  ;;  %1506 = vmatpush.bf16.msra.mxu1 %v3549_v39  ;;  %v4262_v50 = vld [vmem:[#allocation6 + $0x8c] sm:$0xf]  ;;  %v4251_v39 = vld [vmem:[#allocation6 + $0x2c] sm:$0xf0]  ;;  %v3489_v44 = vor.u32 %v4252_v41, %v3488_v40 }
 0x19f   :  { %v953_v56 = vsel %vm950_vm7, %v952_v54, %v948_v53  ;;  %v3553_v5 = vor.u32 %v4268_v38, %v3552_v36  ;;  %v3541_v54 = vor.u32 %v4262_v50, %v3538_v57  ;;  %v3480_v36 = vld [vmem:[#allocation6 + $0x20] sm:$0xf]  ;;  %v3509_v38 = vor.u32 %v4254_v33, %v3506_v35  ;;  %v3490_v45 = vld [vmem:[#allocation6 + $0x38] sm:$0xf0]  ;;  %v4245_v57 = vld [vmem:[#allocation6 + $0x4] sm:$0xf] }
 0x1a0   :  { %1494 = vmatpush.bf16.msra.mxu0 %v3529_v42  ;;  %v3481_v11 = vor.u32 %v4251_v39, %v3480_v36  ;;  %v4250_v42 = vld [vmem:[#allocation6 + $0x2c] sm:$0xf]  ;;  %v3464_v46 = vld [vmem:[#allocation6] sm:$0xf]  ;;  %v1287_v35 = vrot.slane %v4729_v49, 6 }
 0x1a1   :  { %1519 = vmatpush.bf16.msra.mxu2 %v3553_v5  ;;  %1533 = vmatpush.bf16.msra.mxu3 %v3541_v54  ;;  %v4249_v5 = vld [vmem:[#allocation6 + $0x24] sm:$0xf]  ;;  %v3493_v50 = vor.u32 %v4250_v42, %v3490_v45 }
 0x1a2   :  { %1507 = vmatpush.bf16.msra.mxu1 %v3533_v47  ;;  %v3485_v27 = vor.u32 %v4249_v5, %v3482_v8  ;;  %v4247_v47 = vld [vmem:[#allocation6 + $0xc] sm:$0xf0] }
 0x1a3   :  { %v3465_v54 = vor.u32 %v4247_v47, %v3464_v46 }
 0x1a4   :  { %v4442_v55 = vpop.eup %4441 }
 0x1a5   :  { %v962_v58 = vmul.f32 %v4442_v55, %v953_v56  ;;  %1520 = vmatpush.bf16.msra.mxu2 %v3537_v48  ;;  %1534 = vmatpush.bf16.msra.mxu3 %v3525_v13 }
 0x1a6   :  { %1508 = vmatpush.bf16.msra.mxu1 %v3517_v2 }
 0x1a7   :  { %963 = vst [vmem:[%s4814_s4] sm:$0xc] %v962_v58  ;;  %v964_v59 = vpack.c.bf16 %v962_v58, %v962_v58  ;;  %v3512_v58 = vld [vmem:[#allocation6 + $0x60] sm:$0xf] }
 0x1a9   :  { %v998_v60 = vrot.slane %v964_v59, 1  ;;  %v4259_v59 = vld [vmem:[#allocation6 + $0x6c] sm:$0xf0]  ;;  %1521 = vmatpush.bf16.msra.mxu2 %v3521_v10  ;;  %1535 = vmatpush.bf16.msra.mxu3 %v3509_v38 }
 0x1aa   :  { %1509 = vmatpush.bf16.msra.mxu1 %v3501_v26 }
 0x1ab   :  { %1168 = vmatmul.bf16.vlgmr.msrb.gmra.mxu0 %v998_v60  ;;  %1181 = vmatmul.bf16.vlgmr.msrb.gmra.mxu1 %v998_v60 }
 0x1ac   :  { %1194 = vmatmul.bf16.vlgmr.msrb.gmra.mxu2 %v998_v60  ;;  %1207 = vmatmul.bf16.vlgmr.msrb.gmra.mxu3 %v998_v60  ;;  %v3513_v60 = vor.u32 %v4259_v59, %v3512_v58  ;;  %v4248_v58 = vld [vmem:[#allocation6 + $0x14] sm:$0xf0]  ;;  %v4246_v59 = vld [vmem:[#allocation6 + $0xc] sm:$0xf] }
 0x1ad   :  { %1522 = vmatpush.bf16.msra.mxu2 %v3505_v32  ;;  %1536 = vmatpush.bf16.msra.mxu3 %v3493_v50  ;;  %v3477_v9 = vor.u32 %v4246_v59, %v3474_v63  ;;  %v3709_v59 = vld [vmem:[#allocation6 + $0xf0] sm:$0xf0] }
 0x1ae   :  { %1495 = vmatpush.bf16.msra.mxu0 %v3513_v60  ;;  %1510 = vmatpush.bf16.msra.mxu1 %v3485_v27 }
 0x1b1   :  { %1523 = vmatpush.bf16.msra.mxu2 %v3489_v44  ;;  %1537 = vmatpush.bf16.msra.mxu3 %v3477_v9  ;;  %v3691_v9 = vld [vmem:[#allocation6 + $0xc0] sm:$0xf] }
 0x1b2   :  { %1496 = vmatpush.bf16.msra.mxu0 %v3497_v25 }
 0x1b6   :  { %1497 = vmatpush.bf16.msra.mxu0 %v3481_v11 }
 0x1ba   :  { %1498 = vmatpush.bf16.msra.mxu0 %v3465_v54  ;;  %v3707_v54 = vld [vmem:[#allocation6 + $0xe0] sm:$0xf] }
 0x228   :  { %v1169_v51 = vpop.f32.mrf.mxu0  ;;  %v1182_v53 = vpop.f32.mrf.mxu1 }
 0x229   :  { %v1216_v55 = vrot.slane %v1169_v51, 4  ;;  %v1217_v56 = vrot.slane %v1182_v53, 4  ;;  %v3466_v51 = vld [vmem:[#allocation6 + $0x10] sm:$0xf0] }
 0x22b   :  { %v1224_v0 = vadd.f32 %v1216_v55, %v4694_v21  ;;  %v1225_v1 = vadd.f32 %v1217_v56, %v4699_v28  ;;  %v3469_v55 = vor.u32 %v4245_v57, %v3466_v51  ;;  %v3472_v56 = vld [vmem:[#allocation6 + $0x8] sm:$0xf] }
 0x22c   :  { %v3473_v62 = vor.u32 %v4248_v58, %v3472_v56  ;;  %v4305_v56 = vld [vmem:[#allocation6 + $0xe4] sm:$0xf] }
 0x22d   :  { %v3459_v15 = vmul.f32 -1.442695, %v1224_v0  ;;  %v3460_v16 = vmul.f32 -1.442695, %v1225_v1  ;;  %1511 = vmatpush.bf16.msra.mxu1 %v3469_v55  ;;  %v4307_v55 = vld [vmem:[#allocation6 + $0xec] sm:$0xf0] }
 0x22e   :  { %1524 = vmatpush.bf16.msra.mxu2 %v3473_v62  ;;  %v3708_v58 = vor.u32 %v4307_v55, %v3707_v54  ;;  %v3712_v62 = vor.u32 %v4305_v56, %v3709_v59  ;;  %v4289_v54 = vld [vmem:[#allocation6 + $0x64] sm:$0xf]  ;;  %v3645_v55 = vld [vmem:[#allocation6 + $0x70] sm:$0xf0]  ;;  %v3651_v56 = vld [vmem:[#allocation6 + $0x68] sm:$0xf] }
 0x22f   :  { %4443 = vpow2.f32 %v3459_v15  ;;  %v4737_v23 = vpop.f32.mrf.mxu2  ;;  %v1208_v24 = vpop.f32.mrf.mxu3 }
 0x230   :  { %4445 = vpow2.f32 %v3460_v16  ;;  %v1219_v4 = vrot.slane %v1208_v24, 4  ;;  %v1171_v7 = vpop.f32.mrf.mxu0  ;;  %v1184_v34 = vpop.f32.mrf.mxu1  ;;  %v1218_v22 = vrot.slane %v4737_v23, 4  ;;  %1822 = vmatpush.bf16.msrb.mxu0 %v3708_v58 }
 0x231   :  { %1835 = vmatpush.bf16.msrb.mxu1 %v3712_v62  ;;  %v4290_v62 = vld [vmem:[#allocation6 + $0x6c] sm:$0xf] }
 0x232   :  { %v1227_v6 = vadd.f32 %v1219_v4, %v4706_v52  ;;  %v1226_v15 = vadd.f32 %v1218_v22, %v4712_v29  ;;  %v4303_v22 = vld [vmem:[#allocation6 + $0xcc] sm:$0xf0] }
 0x234   :  { %v3461_v48 = vmul.f32 -1.442695, %v1227_v6 }
 0x235   :  { %v4444_v53 = vpop.eup %4443 }
 0x236   :  { %v4446_v60 = vpop.eup %4445  ;;  %v1231_v61 = vadd.f32 1.0, %v4444_v53  ;;  %4447 = vpow2.f32 %v3461_v48 }
 0x237   :  { %v1250_v0 = vadd.f32 1.0, %v4446_v60  ;;  %v1197_v1 = vpop.f32.mrf.mxu2  ;;  %v1210_v2 = vpop.f32.mrf.mxu3  ;;  %v3715_v60 = vld [vmem:[#allocation6 + $0xe8] sm:$0xf] }
 0x238   :  { %4449 = vrcp.f32 %v1231_v61  ;;  %v1243_v24 = vand.u32 2147483648, %v1231_v61  ;;  %v1241_v30 = vand.u32 2147483647, %v1231_v61  ;;  %vm1237_vm10 = vweird.f32 %v1231_v61  ;;  %v3717_v1 = vld [vmem:[#allocation6 + $0xf8] sm:$0xf0] }
 0x239   :  { %4451 = vrcp.f32 %v1250_v0  ;;  %v1262_v25 = vand.u32 2147483648, %v1250_v0  ;;  %v1260_v31 = vand.u32 2147483647, %v1250_v0  ;;  %vm1256_vm11 = vweird.f32 %v1250_v0 }
 0x23a   :  { %v1244_v7 = vor.u32 1.1754944e-38, %v1243_v24  ;;  %vm1242_vm14 = vcmp.eq.f32.partialorder %v1241_v30, 8.507059e+37  ;;  %v4297_v30 = vld [vmem:[#allocation6 + $0xa4] sm:$0xf] }
 0x23b   :  { %v1263_v36 = vor.u32 1.1754944e-38, %v1262_v25  ;;  %vm1261_vm15 = vcmp.eq.f32.partialorder %v1260_v31, 8.507059e+37  ;;  %v3675_v25 = vld [vmem:[#allocation6 + $0xa0] sm:$0xf]  ;;  %v3677_v31 = vld [vmem:[#allocation6 + $0xb0] sm:$0xf0] }
 0x23c   :  { %v4448_v3 = vpop.eup %4447 }
 0x23d   :  { %v1270_v10 = vadd.f32 1.0, %v4448_v3  ;;  %v4301_v3 = vld [vmem:[#allocation6 + $0xc4] sm:$0xf] }
 0x23e   :  { %v4450_v13 = vpop.eup %4449 }
 0x23f   :  { %v4452_v16 = vpop.eup %4451  ;;  %v1233_v17 = vmul.f32 %v4450_v13, %v1231_v61  ;;  %4453 = vrcp.f32 %v1270_v10  ;;  %vm1238_vm8 = vweird.f32 %v4450_v13  ;;  %v1282_v49 = vand.u32 2147483648, %v1270_v10  ;;  %v4308_v61 = vld [vmem:[#allocation6 + $0xf4] sm:$0xf0] }
 0x240   :  { %v1252_v18 = vmul.f32 %v4452_v16, %v1250_v0  ;;  %4455 = vtanh.f32 %v1226_v15  ;;  %vm1257_vm9 = vweird.f32 %v4452_v16  ;;  %vm1239_vm12 = vmor %vm1237_vm10, %vm1238_vm8  ;;  %vm1276_vm1 = vweird.f32 %v1270_v10  ;;  %v4306_v0 = vld [vmem:[#allocation6 + $0xec] sm:$0xf]  ;;  %v3699_v15 = vld [vmem:[#allocation6 + $0xc8] sm:$0xf] }
 0x241   :  { %v1234_v19 = vsub.f32 1.0, %v1233_v17  ;;  %vm1258_vm13 = vmor %vm1256_vm11, %vm1257_vm9  ;;  %v1280_v45 = vand.u32 2147483647, %v1270_v10  ;;  %v1283_v47 = vor.u32 1.1754944e-38, %v1282_v49  ;;  %v3716_v63 = vor.u32 %v4308_v61, %v3715_v60  ;;  %v3669_v49 = vld [vmem:[#allocation6 + $0x98] sm:$0xf0] }
 0x242   :  { %v1253_v20 = vsub.f32 1.0, %v1252_v18  ;;  %v3720_v2 = vor.u32 %v4306_v0, %v3717_v1  ;;  %v3648_v60 = vor.u32 %v4289_v54, %v3645_v55  ;;  %v4292_v61 = vld [vmem:[#allocation6 + $0x74] sm:$0xf0] }
 0x243   :  { %v1235_v26 = vmul.f32 %v4450_v13, %v1234_v19  ;;  %vm1281_vm3 = vcmp.eq.f32.partialorder %v1280_v45, 8.507059e+37  ;;  %1848 = vmatpush.bf16.msrb.mxu2 %v3716_v63  ;;  %v4302_v19 = vld [vmem:[#allocation6 + $0xcc] sm:$0xf]  ;;  %v3653_v63 = vld [vmem:[#allocation6 + $0x78] sm:$0xf0]  ;;  %v3652_v0 = vor.u32 %v4292_v61, %v3651_v56 }
 0x244   :  { %v1254_v23 = vmul.f32 %v4452_v16, %v1253_v20  ;;  %1861 = vmatpush.bf16.msrb.mxu3 %v3720_v2  ;;  %v3701_v20 = vld [vmem:[#allocation6 + $0xd8] sm:$0xf0]  ;;  %v3656_v1 = vor.u32 %v4290_v62, %v3653_v63 }
 0x245   :  { %v4454_v33 = vpop.eup %4453  ;;  %v1236_v4 = vadd.f32 %v4450_v13, %v1235_v26  ;;  %v3704_v24 = vor.u32 %v4302_v19, %v3701_v20  ;;  %v4299_v26 = vld [vmem:[#allocation6 + $0xac] sm:$0xf0]  ;;  %v4286_v19 = vld [vmem:[#allocation6 + $0x4c] sm:$0xf] }
 0x246   :  { %v1255_v34 = vadd.f32 %v4452_v16, %v1254_v23  ;;  %v1272_v32 = vmul.f32 %v4454_v33, %v1270_v10  ;;  %v4456_v39 = vpop.eup %4455  ;;  %vm1277_vm0 = vweird.f32 %v4454_v33  ;;  %v3692_v10 = vor.u32 %v4303_v22, %v3691_v9  ;;  %v3627_v22 = vld [vmem:[#allocation6 + $0x40] sm:$0xf] }
 0x247   :  { %v1240_v38 = vsel %vm1239_vm12, %v4450_v13, %v1236_v4  ;;  %vm1278_vm2 = vmor %vm1276_vm1, %vm1277_vm0  ;;  %v3693_v13 = vld [vmem:[#allocation6 + $0xd0] sm:$0xf0]  ;;  %v3676_v23 = vor.u32 %v4299_v26, %v3675_v25  ;;  %v4300_v4 = vld [vmem:[#allocation6 + $0xb4] sm:$0xf0] }
 0x248   :  { %v1245_v5 = vsel %vm1242_vm14, %v1244_v7, %v1240_v38  ;;  %v1259_v8 = vsel %vm1258_vm13, %v4452_v16, %v1255_v34  ;;  %v1273_v6 = vsub.f32 1.0, %v1272_v32  ;;  %v4304_v16 = vld [vmem:[#allocation6 + $0xd4] sm:$0xf0]  ;;  %v3696_v17 = vor.u32 %v4301_v3, %v3693_v13  ;;  %1823 = vmatpush.bf16.msrb.mxu0 %v3692_v10  ;;  %1862 = vmatpush.bf16.msrb.mxu3 %v3704_v24  ;;  %v4298_v32 = vld [vmem:[#allocation6 + $0xac] sm:$0xf] }
 0x249   :  { %v1264_v11 = vsel %vm1261_vm15, %v1263_v36, %v1259_v8  ;;  %v1290_v27 = vmul.f32 %v4456_v39, %v1245_v5  ;;  %v3700_v18 = vor.u32 %v4304_v16, %v3699_v15  ;;  %v3680_v7 = vor.u32 %v4297_v30, %v3677_v31  ;;  %v3659_v38 = vld [vmem:[#allocation6 + $0x80] sm:$0xf]  ;;  %v4295_v39 = vld [vmem:[#allocation6 + $0x8c] sm:$0xf0]  ;;  %v4293_v5 = vld [vmem:[#allocation6 + $0x84] sm:$0xf] }
 0x24a   :  { %v1289_v40 = vmul.f32 %v1287_v35, %v1264_v11  ;;  %v1274_v41 = vmul.f32 %v4454_v33, %v1273_v6  ;;  %1836 = vmatpush.bf16.msrb.mxu1 %v3696_v17  ;;  %v3685_v35 = vld [vmem:[#allocation6 + $0xb8] sm:$0xf0]  ;;  %v3660_v8 = vor.u32 %v4295_v39, %v3659_v38  ;;  %v3661_v6 = vld [vmem:[#allocation6 + $0x90] sm:$0xf0]  ;;  %v3667_v11 = vld [vmem:[#allocation6 + $0x88] sm:$0xf] }
 0x24b   :  { %1849 = vmatpush.bf16.msrb.mxu2 %v3700_v18  ;;  %v3688_v36 = vor.u32 %v4298_v32, %v3685_v35  ;;  %v4287_v3 = vld [vmem:[#allocation6 + $0x4c] sm:$0xf0]  ;;  %v4285_v10 = vld [vmem:[#allocation6 + $0x44] sm:$0xf]  ;;  %v3629_v13 = vld [vmem:[#allocation6 + $0x50] sm:$0xf0] }
 0x24c   :  { %v4743_v42 = vadd.f32 %v1290_v27, %v1289_v40  ;;  %v1275_v44 = vadd.f32 %v4454_v33, %v1274_v41  ;;  %1824 = vmatpush.bf16.msrb.mxu0 %v3676_v23  ;;  %v4296_v27 = vld [vmem:[#allocation6 + $0x94] sm:$0xf0]  ;;  %v3664_v40 = vor.u32 %v4293_v5, %v3661_v6  ;;  %v3628_v15 = vor.u32 %v4287_v3, %v3627_v22  ;;  %v3635_v17 = vld [vmem:[#allocation6 + $0x48] sm:$0xf]  ;;  %v3637_v30 = vld [vmem:[#allocation6 + $0x58] sm:$0xf0] }
 0x24d   :  { %1863 = vmatpush.bf16.msrb.mxu3 %v3688_v36  ;;  %v3668_v41 = vor.u32 %v4296_v27, %v3667_v11  ;;  %v3632_v16 = vor.u32 %v4285_v10, %v3629_v13  ;;  %v4288_v18 = vld [vmem:[#allocation6 + $0x54] sm:$0xf0]  ;;  %v3611_v23 = vld [vmem:[#allocation6 + $0x20] sm:$0xf]  ;;  %v3640_v31 = vor.u32 %v4286_v19, %v3637_v30  ;;  %v3619_v36 = vld [vmem:[#allocation6 + $0x28] sm:$0xf] }
 0x24e   :  { %4457 = vtanh.f32 %v4743_v42  ;;  %v1279_v46 = vsel %vm1278_vm2, %v4454_v33, %v1275_v44  ;;  %v3683_v33 = vld [vmem:[#allocation6 + $0xa8] sm:$0xf]  ;;  %1837 = vmatpush.bf16.msrb.mxu1 %v3680_v7  ;;  %v4294_v44 = vld [vmem:[#allocation6 + $0x8c] sm:$0xf]  ;;  %v3636_v26 = vor.u32 %v4288_v18, %v3635_v17  ;;  %v3613_v7 = vld [vmem:[#allocation6 + $0x30] sm:$0xf0] }
 0x24f   :  { %v1284_v50 = vsel %vm1281_vm3, %v1283_v47, %v1279_v46  ;;  %v3684_v34 = vor.u32 %v4300_v4, %v3683_v33  ;;  %v3672_v47 = vor.u32 %v4294_v44, %v3669_v49  ;;  %v4283_v33 = vld [vmem:[#allocation6 + $0x2c] sm:$0xf0]  ;;  %v4281_v4 = vld [vmem:[#allocation6 + $0x24] sm:$0xf]  ;;  %v4284_v38 = vld [vmem:[#allocation6 + $0x34] sm:$0xf0] }
 0x250   :  { %1825 = vmatpush.bf16.msrb.mxu0 %v3660_v8  ;;  %v3612_v32 = vor.u32 %v4283_v33, %v3611_v23  ;;  %v3616_v35 = vor.u32 %v4281_v4, %v3613_v7  ;;  %v4282_v39 = vld [vmem:[#allocation6 + $0x2c] sm:$0xf]  ;;  %v3620_v5 = vor.u32 %v4284_v38, %v3619_v36  ;;  %v3621_v8 = vld [vmem:[#allocation6 + $0x38] sm:$0xf0]  ;;  %v3595_v6 = vld [vmem:[#allocation6] sm:$0xf] }
 0x251   :  { %1850 = vmatpush.bf16.msrb.mxu2 %v3684_v34  ;;  %1864 = vmatpush.bf16.msrb.mxu3 %v3672_v47  ;;  %v4279_v11 = vld [vmem:[#allocation6 + $0xc] sm:$0xf0]  ;;  %v3597_v44 = vld [vmem:[#allocation6 + $0x10] sm:$0xf0]  ;;  %v4280_v47 = vld [vmem:[#allocation6 + $0x14] sm:$0xf0] }
 0x252   :  { %1838 = vmatpush.bf16.msrb.mxu1 %v3664_v40  ;;  %v3624_v40 = vor.u32 %v4282_v39, %v3621_v8 }
 0x254   :  { %v4458_v48 = vpop.eup %4457 }
 0x255   :  { %v1293_v57 = vmul.f32 %v4458_v48, %v1284_v50  ;;  %1851 = vmatpush.bf16.msrb.mxu2 %v3668_v41  ;;  %1865 = vmatpush.bf16.msrb.mxu3 %v3656_v1  ;;  %v4277_v41 = vld [vmem:[#allocation6 + $0x4] sm:$0xf] }
 0x256   :  { %1839 = vmatpush.bf16.msrb.mxu1 %v3648_v60 }
 0x257   :  { %1294 = vst [vmem:[%s4814_s4] sm:$0x30] %v1293_v57  ;;  %v1295_v51 = vpack.c.bf16 %v1293_v57, %v1293_v57  ;;  %v3643_v57 = vld [vmem:[#allocation6 + $0x60] sm:$0xf] }
 0x259   :  { %v1329_v53 = vrot.slane %v1295_v51, 2  ;;  %v4291_v51 = vld [vmem:[#allocation6 + $0x6c] sm:$0xf0]  ;;  %1852 = vmatpush.bf16.msrb.mxu2 %v3652_v0  ;;  %1866 = vmatpush.bf16.msrb.mxu3 %v3640_v31 }
 0x25a   :  { %1840 = vmatpush.bf16.msrb.mxu1 %v3632_v16 }
 0x25b   :  { %1499 = vmatmul.bf16.vlgmr.msra.gmra.mxu0 %v1329_v53  ;;  %1512 = vmatmul.bf16.vlgmr.msra.gmra.mxu1 %v1329_v53 }
 0x25c   :  { %1525 = vmatmul.bf16.vlgmr.msra.gmra.mxu2 %v1329_v53  ;;  %1538 = vmatmul.bf16.vlgmr.msra.gmra.mxu3 %v1329_v53  ;;  %v3644_v53 = vor.u32 %v4291_v51, %v3643_v57 }
 0x25d   :  { %1853 = vmatpush.bf16.msrb.mxu2 %v3636_v26  ;;  %1867 = vmatpush.bf16.msrb.mxu3 %v3624_v40  ;;  %v3838_v40 = vld [vmem:[#allocation6 + $0xe0] sm:$0xf] }
 0x25e   :  { %1826 = vmatpush.bf16.msrb.mxu0 %v3644_v53  ;;  %1841 = vmatpush.bf16.msrb.mxu1 %v3616_v35  ;;  %v3605_v53 = vld [vmem:[#allocation6 + $0x18] sm:$0xf0] }
 0x261   :  { %1854 = vmatpush.bf16.msrb.mxu2 %v3620_v5 }
 0x262   :  { %1827 = vmatpush.bf16.msrb.mxu0 %v3628_v15 }
 0x266   :  { %1828 = vmatpush.bf16.msrb.mxu0 %v3612_v32 }
 0x2d8   :  { %v1500_v45 = vpop.f32.mrf.mxu0  ;;  %v1513_v46 = vpop.f32.mrf.mxu1 }
 0x2d9   :  { %v1547_v48 = vrot.slane %v1500_v45, 2  ;;  %v1548_v50 = vrot.slane %v1513_v46, 2  ;;  %v3596_v45 = vor.u32 %v4279_v11, %v3595_v6  ;;  %v3603_v46 = vld [vmem:[#allocation6 + $0x8] sm:$0xf] }
 0x2da   :  { %v3604_v51 = vor.u32 %v4280_v47, %v3603_v46  ;;  %v4340_v46 = vld [vmem:[#allocation6 + $0xf4] sm:$0xf0] }
 0x2db   :  { %v1555_v58 = vadd.f32 %v1547_v48, %v4694_v21  ;;  %v1556_v59 = vadd.f32 %v1548_v50, %v4699_v28  ;;  %v4278_v48 = vld [vmem:[#allocation6 + $0xc] sm:$0xf]  ;;  %1829 = vmatpush.bf16.msrb.mxu0 %v3596_v45  ;;  %v3840_v45 = vld [vmem:[#allocation6 + $0xf0] sm:$0xf0] }
 0x2dc   :  { %1855 = vmatpush.bf16.msrb.mxu2 %v3604_v51 }
 0x2dd   :  { %v3590_v2 = vmul.f32 -1.442695, %v1555_v58  ;;  %v3591_v9 = vmul.f32 -1.442695, %v1556_v59  ;;  %v3608_v58 = vor.u32 %v4278_v48, %v3605_v53  ;;  %v3822_v53 = vld [vmem:[#allocation6 + $0xc0] sm:$0xf] }
 0x2df   :  { %4459 = vpow2.f32 %v3590_v2  ;;  %v4751_v21 = vpop.f32.mrf.mxu2  ;;  %v1539_v28 = vpop.f32.mrf.mxu3  ;;  %1868 = vmatpush.bf16.msrb.mxu3 %v3608_v58  ;;  %v3824_v58 = vld [vmem:[#allocation6 + $0xd0] sm:$0xf0] }
 0x2e0   :  { %4461 = vpow2.f32 %v3591_v9  ;;  %v1550_v20 = vrot.slane %v1539_v28, 2  ;;  %v1502_v24 = vpop.f32.mrf.mxu0  ;;  %v1515_v25 = vpop.f32.mrf.mxu1  ;;  %v1549_v59 = vrot.slane %v4751_v21, 2 }
 0x2e2   :  { %v1558_v34 = vadd.f32 %v1550_v20, %v4706_v52  ;;  %v3600_v52 = vor.u32 %v4277_v41, %v3597_v44  ;;  %v1557_v63 = vadd.f32 %v1549_v59, %v4712_v29  ;;  %v1618_v20 = vrot.slane %v4743_v42, 6  ;;  %v4339_v41 = vld [vmem:[#allocation6 + $0xec] sm:$0xf0]  ;;  %v4337_v44 = vld [vmem:[#allocation6 + $0xe4] sm:$0xf] }
 0x2e3   :  { %v3843_v47 = vor.u32 %v4337_v44, %v3840_v45  ;;  %v3830_v59 = vld [vmem:[#allocation6 + $0xc8] sm:$0xf] }
 0x2e4   :  { %v3592_v27 = vmul.f32 -1.442695, %v1558_v34  ;;  %1842 = vmatpush.bf16.msrb.mxu1 %v3600_v52  ;;  %v3846_v52 = vld [vmem:[#allocation6 + $0xe8] sm:$0xf] }
 0x2e5   :  { %v4460_v49 = vpop.eup %4459  ;;  %v3847_v48 = vor.u32 %v4340_v46, %v3846_v52  ;;  %v3758_v52 = vld [vmem:[#allocation6 + $0x40] sm:$0xf]  ;;  %v4319_v46 = vld [vmem:[#allocation6 + $0x4c] sm:$0xf0] }
 0x2e6   :  { %v4462_v50 = vpop.eup %4461  ;;  %v1562_v57 = vadd.f32 1.0, %v4460_v49  ;;  %4463 = vpow2.f32 %v3592_v27  ;;  %v3839_v49 = vor.u32 %v4339_v41, %v3838_v40 }
 0x2e7   :  { %v1581_v54 = vadd.f32 1.0, %v4462_v50  ;;  %v1528_v55 = vpop.f32.mrf.mxu2  ;;  %v1541_v56 = vpop.f32.mrf.mxu3  ;;  %v4338_v50 = vld [vmem:[#allocation6 + $0xec] sm:$0xf]  ;;  %2164 = vmatpush.bf16.msra.mxu2 %v3847_v48  ;;  %v3759_v48 = vor.u32 %v4319_v46, %v3758_v52 }
 0x2e8   :  { %4465 = vrcp.f32 %v1562_v57  ;;  %v1574_v3 = vand.u32 2147483648, %v1562_v57  ;;  %v1572_v28 = vand.u32 2147483647, %v1562_v57  ;;  %vm1568_vm6 = vweird.f32 %v1562_v57  ;;  %2138 = vmatpush.bf16.msra.mxu0 %v3839_v49  ;;  %2151 = vmatpush.bf16.msra.mxu1 %v3843_v47  ;;  %v4333_v55 = vld [vmem:[#allocation6 + $0xc4] sm:$0xf] }
 0x2e9   :  { %4467 = vrcp.f32 %v1581_v54  ;;  %v1593_v10 = vand.u32 2147483648, %v1581_v54  ;;  %v1591_v15 = vand.u32 2147483647, %v1581_v54  ;;  %vm1587_vm7 = vweird.f32 %v1581_v54  ;;  %v4317_v47 = vld [vmem:[#allocation6 + $0x44] sm:$0xf] }
 0x2ea   :  { %v1575_v29 = vor.u32 1.1754944e-38, %v1574_v3  ;;  %vm1573_vm10 = vcmp.eq.f32.partialorder %v1572_v28, 8.507059e+37  ;;  %v4332_v28 = vld [vmem:[#allocation6 + $0xb4] sm:$0xf0] }
 0x2eb   :  { %v1594_v24 = vor.u32 1.1754944e-38, %v1593_v10  ;;  %vm1592_vm11 = vcmp.eq.f32.partialorder %v1591_v15, 8.507059e+37  ;;  %v3808_v10 = vld [vmem:[#allocation6 + $0xb0] sm:$0xf0] }
 0x2ec   :  { %v4464_v60 = vpop.eup %4463 }
 0x2ed   :  { %v1601_v61 = vadd.f32 1.0, %v4464_v60  ;;  %v4336_v60 = vld [vmem:[#allocation6 + $0xd4] sm:$0xf0] }
 0x2ee   :  { %v4466_v62 = vpop.eup %4465 }
 0x2ef   :  { %v4468_v0 = vpop.eup %4467  ;;  %v1564_v1 = vmul.f32 %v4466_v62, %v1562_v57  ;;  %4469 = vrcp.f32 %v1601_v61  ;;  %vm1569_vm4 = vweird.f32 %v4466_v62  ;;  %v1613_v42 = vand.u32 2147483648, %v1601_v61  ;;  %v3848_v57 = vld [vmem:[#allocation6 + $0xf8] sm:$0xf0] }
 0x2f0   :  { %v1583_v2 = vmul.f32 %v4468_v0, %v1581_v54  ;;  %4471 = vtanh.f32 %v1557_v63  ;;  %vm1588_vm5 = vweird.f32 %v4468_v0  ;;  %vm1570_vm8 = vmor %vm1568_vm6, %vm1569_vm4  ;;  %vm1607_vm13 = vweird.f32 %v1601_v61  ;;  %v4335_v54 = vld [vmem:[#allocation6 + $0xcc] sm:$0xf0]  ;;  %v4334_v63 = vld [vmem:[#allocation6 + $0xcc] sm:$0xf] }
 0x2f1   :  { %v1565_v9 = vsub.f32 1.0, %v1564_v1  ;;  %vm1589_vm9 = vmor %vm1587_vm7, %vm1588_vm5  ;;  %v1611_v36 = vand.u32 2147483647, %v1601_v61  ;;  %v1614_v39 = vor.u32 1.1754944e-38, %v1613_v42  ;;  %v3851_v51 = vor.u32 %v4338_v50, %v3848_v57  ;;  %v4321_v42 = vld [vmem:[#allocation6 + $0x64] sm:$0xf] }
 0x2f2   :  { %v1584_v22 = vsub.f32 1.0, %v1583_v2  ;;  %v3823_v56 = vor.u32 %v4335_v54, %v3822_v53  ;;  %v3806_v2 = vld [vmem:[#allocation6 + $0xa0] sm:$0xf]  ;;  %v3760_v50 = vld [vmem:[#allocation6 + $0x50] sm:$0xf0] }
 0x2f3   :  { %v1566_v13 = vmul.f32 %v4466_v62, %v1565_v9  ;;  %vm1612_vm15 = vcmp.eq.f32.partialorder %v1611_v36, 8.507059e+37  ;;  %2177 = vmatpush.bf16.msra.mxu3 %v3851_v51  ;;  %v4331_v9 = vld [vmem:[#allocation6 + $0xac] sm:$0xf0]  ;;  %v3766_v57 = vld [vmem:[#allocation6 + $0x48] sm:$0xf] }
 0x2f4   :  { %v1585_v21 = vmul.f32 %v4468_v0, %v1584_v22  ;;  %2139 = vmatpush.bf16.msra.mxu0 %v3823_v56  ;;  %v4329_v22 = vld [vmem:[#allocation6 + $0xa4] sm:$0xf]  ;;  %v3807_v3 = vor.u32 %v4331_v9, %v3806_v2  ;;  %v4320_v51 = vld [vmem:[#allocation6 + $0x54] sm:$0xf0]  ;;  %v3750_v2 = vld [vmem:[#allocation6 + $0x28] sm:$0xf] }
 0x2f5   :  { %v4470_v16 = vpop.eup %4469  ;;  %v1567_v17 = vadd.f32 %v4466_v62, %v1566_v13  ;;  %v3814_v13 = vld [vmem:[#allocation6 + $0xa8] sm:$0xf]  ;;  %v3767_v56 = vor.u32 %v4320_v51, %v3766_v57 }
 0x2f6   :  { %v1586_v18 = vadd.f32 %v4468_v0, %v1585_v21  ;;  %v1603_v19 = vmul.f32 %v4470_v16, %v1601_v61  ;;  %v4472_v26 = vpop.eup %4471  ;;  %vm1608_vm12 = vweird.f32 %v4470_v16  ;;  %v3827_v61 = vor.u32 %v4333_v55, %v3824_v58  ;;  %v4318_v58 = vld [vmem:[#allocation6 + $0x4c] sm:$0xf] }
 0x2f7   :  { %v1571_v25 = vsel %vm1570_vm8, %v4466_v62, %v1567_v17  ;;  %vm1609_vm14 = vmor %vm1607_vm13, %vm1608_vm12  ;;  %v3831_v62 = vor.u32 %v4336_v60, %v3830_v59  ;;  %v3811_v21 = vor.u32 %v4329_v22, %v3808_v10  ;;  %v3815_v15 = vor.u32 %v4332_v28, %v3814_v13  ;;  %v3816_v17 = vld [vmem:[#allocation6 + $0xb8] sm:$0xf0]  ;;  %v3742_v60 = vld [vmem:[#allocation6 + $0x20] sm:$0xf] }
 0x2f8   :  { %v1576_v30 = vsel %vm1573_vm10, %v1575_v29, %v1571_v25  ;;  %v1590_v23 = vsel %vm1589_vm9, %v4468_v0, %v1586_v18  ;;  %v1604_v31 = vsub.f32 1.0, %v1603_v19  ;;  %v3832_v0 = vld [vmem:[#allocation6 + $0xd8] sm:$0xf0]  ;;  %2152 = vmatpush.bf16.msra.mxu1 %v3827_v61  ;;  %2140 = vmatpush.bf16.msra.mxu0 %v3807_v3  ;;  %v3790_v18 = vld [vmem:[#allocation6 + $0x80] sm:$0xf]  ;;  %v3763_v55 = vor.u32 %v4317_v47, %v3760_v50 }
 0x2f9   :  { %v1595_v33 = vsel %vm1592_vm11, %v1594_v24, %v1590_v23  ;;  %v1621_v4 = vmul.f32 %v4472_v26, %v1576_v30  ;;  %v3835_v1 = vor.u32 %v4334_v63, %v3832_v0  ;;  %2165 = vmatpush.bf16.msra.mxu2 %v3831_v62  ;;  %v4327_v19 = vld [vmem:[#allocation6 + $0x8c] sm:$0xf0]  ;;  %v3792_v25 = vld [vmem:[#allocation6 + $0x90] sm:$0xf0]  ;;  %v3798_v26 = vld [vmem:[#allocation6 + $0x88] sm:$0xf] }
 0x2fa   :  { %v1620_v7 = vmul.f32 %v1618_v20, %v1595_v33  ;;  %v1605_v34 = vmul.f32 %v4470_v16, %v1604_v31  ;;  %v4325_v20 = vld [vmem:[#allocation6 + $0x84] sm:$0xf]  ;;  %v3791_v24 = vor.u32 %v4327_v19, %v3790_v18  ;;  %v4328_v30 = vld [vmem:[#allocation6 + $0x94] sm:$0xf0]  ;;  %v4326_v33 = vld [vmem:[#allocation6 + $0x8c] sm:$0xf] }
 0x2fb   :  { %2178 = vmatpush.bf16.msra.mxu3 %v3835_v1  ;;  %v3795_v23 = vor.u32 %v4325_v20, %v3792_v25  ;;  %v3799_v31 = vor.u32 %v4328_v30, %v3798_v26  ;;  %v3768_v59 = vld [vmem:[#allocation6 + $0x58] sm:$0xf0]  ;;  %v4315_v61 = vld [vmem:[#allocation6 + $0x2c] sm:$0xf0]  ;;  %v4313_v0 = vld [vmem:[#allocation6 + $0x24] sm:$0xf] }
 0x2fc   :  { %v4757_v32 = vadd.f32 %v1621_v4, %v1620_v7  ;;  %v1606_v35 = vadd.f32 %v4470_v16, %v1605_v34  ;;  %2153 = vmatpush.bf16.msra.mxu1 %v3811_v21  ;;  %v3800_v4 = vld [vmem:[#allocation6 + $0x98] sm:$0xf0]  ;;  %2141 = vmatpush.bf16.msra.mxu0 %v3791_v24  ;;  %v3774_v34 = vld [vmem:[#allocation6 + $0x60] sm:$0xf]  ;;  %v3771_v62 = vor.u32 %v4318_v58, %v3768_v59  ;;  %v3744_v1 = vld [vmem:[#allocation6 + $0x30] sm:$0xf0] }
 0x2fd   :  { %2166 = vmatpush.bf16.msra.mxu2 %v3815_v15  ;;  %v3803_v7 = vor.u32 %v4326_v33, %v3800_v4  ;;  %v3743_v63 = vor.u32 %v4315_v61, %v3742_v60  ;;  %v3747_v9 = vor.u32 %v4313_v0, %v3744_v1  ;;  %v4316_v22 = vld [vmem:[#allocation6 + $0x34] sm:$0xf0]  ;;  %v4314_v3 = vld [vmem:[#allocation6 + $0x2c] sm:$0xf]  ;;  %v3752_v10 = vld [vmem:[#allocation6 + $0x38] sm:$0xf0] }
 0x2fe   :  { %4473 = vtanh.f32 %v4757_v32  ;;  %v1610_v38 = vsel %vm1609_vm14, %v4470_v16, %v1606_v35  ;;  %v4330_v16 = vld [vmem:[#allocation6 + $0xac] sm:$0xf]  ;;  %v4323_v35 = vld [vmem:[#allocation6 + $0x6c] sm:$0xf0]  ;;  %v3751_v21 = vor.u32 %v4316_v22, %v3750_v2  ;;  %v3755_v15 = vor.u32 %v4314_v3, %v3752_v10  ;;  %v3728_v25 = vld [vmem:[#allocation6 + $0x10] sm:$0xf0] }
 0x2ff   :  { %v1615_v8 = vsel %vm1612_vm15, %v1614_v39, %v1610_v38  ;;  %v3819_v29 = vor.u32 %v4330_v16, %v3816_v17  ;;  %v3775_v36 = vor.u32 %v4323_v35, %v3774_v34  ;;  %v3776_v38 = vld [vmem:[#allocation6 + $0x70] sm:$0xf0]  ;;  %v3782_v39 = vld [vmem:[#allocation6 + $0x68] sm:$0xf]  ;;  %v3726_v16 = vld [vmem:[#allocation6] sm:$0xf] }
 0x300   :  { %2154 = vmatpush.bf16.msra.mxu1 %v3795_v23  ;;  %v4311_v17 = vld [vmem:[#allocation6 + $0xc] sm:$0xf0]  ;;  %v3734_v26 = vld [vmem:[#allocation6 + $0x8] sm:$0xf]  ;;  %v4312_v30 = vld [vmem:[#allocation6 + $0x14] sm:$0xf0] }
 0x301   :  { %2179 = vmatpush.bf16.msra.mxu3 %v3819_v29  ;;  %2167 = vmatpush.bf16.msra.mxu2 %v3799_v31  ;;  %v4309_v29 = vld [vmem:[#allocation6 + $0x4] sm:$0xf]  ;;  %v3727_v24 = vor.u32 %v4311_v17, %v3726_v16  ;;  %v3735_v31 = vor.u32 %v4312_v30, %v3734_v26  ;;  %v4310_v33 = vld [vmem:[#allocation6 + $0xc] sm:$0xf]  ;;  %v3736_v4 = vld [vmem:[#allocation6 + $0x18] sm:$0xf0] }
 0x302   :  { %2142 = vmatpush.bf16.msra.mxu0 %v3775_v36  ;;  %v3731_v23 = vor.u32 %v4309_v29, %v3728_v25  ;;  %v3739_v35 = vor.u32 %v4310_v33, %v3736_v4  ;;  %v1937_v60 = vrot.slane %v4757_v32, 6  ;;  %v3971_v25 = vld [vmem:[#allocation6 + $0xf0] sm:$0xf0]  ;;  %v3977_v26 = vld [vmem:[#allocation6 + $0xe8] sm:$0xf] }
 0x303   :  { %v4372_v30 = vld [vmem:[#allocation6 + $0xf4] sm:$0xf0]  ;;  %v4370_v33 = vld [vmem:[#allocation6 + $0xec] sm:$0xf]  ;;  %v3979_v4 = vld [vmem:[#allocation6 + $0xf8] sm:$0xf0] }
 0x304   :  { %v4474_v5 = vpop.eup %4473 }
 0x305   :  { %v1624_v6 = vmul.f32 %v4474_v5, %v1615_v8  ;;  %2180 = vmatpush.bf16.msra.mxu3 %v3803_v7  ;;  %v4324_v5 = vld [vmem:[#allocation6 + $0x74] sm:$0xf0]  ;;  %v3779_v8 = vor.u32 %v4321_v42, %v3776_v38 }
 0x306   :  { %2143 = vmatpush.bf16.msra.mxu0 %v3759_v48 }
 0x307   :  { %1625 = vst [vmem:[%s4814_s4] sm:$0xc0] %v1624_v6  ;;  %v1626_v11 = vpack.c.bf16 %v1624_v6, %v1624_v6  ;;  %v3783_v6 = vor.u32 %v4324_v5, %v3782_v39  ;;  %2155 = vmatpush.bf16.msra.mxu1 %v3779_v8 }
 0x309   :  { %v1660_v27 = vrot.slane %v1626_v11, 3  ;;  %v4322_v11 = vld [vmem:[#allocation6 + $0x6c] sm:$0xf]  ;;  %2168 = vmatpush.bf16.msra.mxu2 %v3783_v6 }
 0x30a   :  { %2144 = vmatpush.bf16.msra.mxu0 %v3743_v63 }
 0x30b   :  { %1830 = vmatmul.bf16.vlgmr.msrb.gmra.mxu0 %v1660_v27  ;;  %1843 = vmatmul.bf16.vlgmr.msrb.gmra.mxu1 %v1660_v27 }
 0x30c   :  { %1856 = vmatmul.bf16.vlgmr.msrb.gmra.mxu2 %v1660_v27  ;;  %1869 = vmatmul.bf16.vlgmr.msrb.gmra.mxu3 %v1660_v27  ;;  %v3784_v27 = vld [vmem:[#allocation6 + $0x78] sm:$0xf0] }
 0x30d   :  { %v3787_v44 = vor.u32 %v4322_v11, %v3784_v27  ;;  %2156 = vmatpush.bf16.msra.mxu1 %v3763_v55  ;;  %2169 = vmatpush.bf16.msra.mxu2 %v3767_v56 }
 0x30e   :  { %2145 = vmatpush.bf16.msra.mxu0 %v3727_v24 }
 0x30f   :  { %2181 = vmatpush.bf16.msra.mxu3 %v3787_v44 }
 0x311   :  { %2157 = vmatpush.bf16.msra.mxu1 %v3747_v9  ;;  %2170 = vmatpush.bf16.msra.mxu2 %v3751_v21 }
 0x313   :  { %2182 = vmatpush.bf16.msra.mxu3 %v3771_v62 }
 0x315   :  { %2158 = vmatpush.bf16.msra.mxu1 %v3731_v23  ;;  %2171 = vmatpush.bf16.msra.mxu2 %v3735_v31  ;;  %v3978_v31 = vor.u32 %v4372_v30, %v3977_v26 }
 0x317   :  { %2183 = vmatpush.bf16.msra.mxu3 %v3755_v15 }
 0x319   :  { %2495 = vmatpush.bf16.msrb.mxu2 %v3978_v31 }
 0x31b   :  { %2184 = vmatpush.bf16.msra.mxu3 %v3739_v35  ;;  %v4367_v35 = vld [vmem:[#allocation6 + $0xcc] sm:$0xf0] }
 0x388   :  { %v1831_v40 = vpop.f32.mrf.mxu0  ;;  %v1844_v41 = vpop.f32.mrf.mxu1 }
 0x389   :  { %v1874_v49 = vadd.f32 %v1831_v40, %v4675_v12  ;;  %v1875_v45 = vadd.f32 %v1844_v41, %v4679_v14 }
 0x38b   :  { %v3721_v53 = vmul.f32 -1.442695, %v1874_v49  ;;  %v3722_v54 = vmul.f32 -1.442695, %v1875_v45 }
 0x38d   :  { %4475 = vpow2.f32 %v3721_v53 }
 0x38e   :  { %4477 = vpow2.f32 %v3722_v54 }
 0x38f   :  { %v1857_v13 = vpop.f32.mrf.mxu2  ;;  %v1870_v28 = vpop.f32.mrf.mxu3 }
 0x390   :  { %v1877_v18 = vadd.f32 %v1870_v28, %v4685_v37  ;;  %v1833_v19 = vpop.f32.mrf.mxu0  ;;  %v1846_v20 = vpop.f32.mrf.mxu1  ;;  %v1876_v27 = vadd.f32 %v1857_v13, %v4689_v43 }
 0x391   :  { %v4371_v19 = vld [vmem:[#allocation6 + $0xec] sm:$0xf0]  ;;  %v4369_v20 = vld [vmem:[#allocation6 + $0xe4] sm:$0xf] }
 0x392   :  { %v3723_v7 = vmul.f32 -1.442695, %v1877_v18  ;;  %v3969_v18 = vld [vmem:[#allocation6 + $0xe0] sm:$0xf]  ;;  %v3974_v23 = vor.u32 %v4369_v20, %v3971_v25  ;;  %v4356_v20 = vld [vmem:[#allocation6 + $0x74] sm:$0xf0] }
 0x393   :  { %v4476_v34 = vpop.eup %4475  ;;  %v3970_v24 = vor.u32 %v4371_v19, %v3969_v18  ;;  %v3915_v25 = vld [vmem:[#allocation6 + $0x78] sm:$0xf0] }
 0x394   :  { %v4478_v42 = vpop.eup %4477  ;;  %v1881_v36 = vadd.f32 1.0, %v4476_v34  ;;  %4479 = vpow2.f32 %v3723_v7  ;;  %v3982_v7 = vor.u32 %v4370_v33, %v3979_v4  ;;  %2482 = vmatpush.bf16.msrb.mxu1 %v3974_v23  ;;  %v3953_v34 = vld [vmem:[#allocation6 + $0xc0] sm:$0xf]  ;;  %v4351_v4 = vld [vmem:[#allocation6 + $0x4c] sm:$0xf0] }
 0x395   :  { %v1900_v38 = vadd.f32 1.0, %v4478_v42  ;;  %2469 = vmatpush.bf16.msrb.mxu0 %v3970_v24  ;;  %v4365_v42 = vld [vmem:[#allocation6 + $0xc4] sm:$0xf]  ;;  %v4354_v24 = vld [vmem:[#allocation6 + $0x6c] sm:$0xf] }
 0x396   :  { %4481 = vrcp.f32 %v1881_v36  ;;  %v1893_v52 = vand.u32 2147483648, %v1881_v36  ;;  %v1891_v48 = vand.u32 2147483647, %v1881_v36  ;;  %vm1887_vm2 = vweird.f32 %v1881_v36  ;;  %2508 = vmatpush.bf16.msrb.mxu3 %v3982_v7  ;;  %v3889_v33 = vld [vmem:[#allocation6 + $0x40] sm:$0xf] }
 0x397   :  { %4483 = vrcp.f32 %v1900_v38  ;;  %v1859_v39 = vpop.f32.mrf.mxu2  ;;  %v1872_v5 = vpop.f32.mrf.mxu3  ;;  %v1912_v46 = vand.u32 2147483648, %v1900_v38  ;;  %v1910_v57 = vand.u32 2147483647, %v1900_v38  ;;  %vm1906_vm3 = vweird.f32 %v1900_v38  ;;  %v4349_v7 = vld [vmem:[#allocation6 + $0x44] sm:$0xf] }
 0x398   :  { %v1894_v54 = vor.u32 1.1754944e-38, %v1893_v52  ;;  %vm1892_vm6 = vcmp.eq.f32.partialorder %v1891_v48, 8.507059e+37  ;;  %v3961_v39 = vld [vmem:[#allocation6 + $0xc8] sm:$0xf]  ;;  %v4368_v5 = vld [vmem:[#allocation6 + $0xd4] sm:$0xf0]  ;;  %v3918_v30 = vor.u32 %v4354_v24, %v3915_v25 }
 0x399   :  { %v1913_v58 = vor.u32 1.1754944e-38, %v1912_v46  ;;  %vm1911_vm7 = vcmp.eq.f32.partialorder %v1910_v57, 8.507059e+37  ;;  %v3939_v52 = vld [vmem:[#allocation6 + $0xb0] sm:$0xf0]  ;;  %v3945_v46 = vld [vmem:[#allocation6 + $0xa8] sm:$0xf] }
 0x39a   :  { %v4480_v8 = vpop.eup %4479  ;;  %v4362_v57 = vld [vmem:[#allocation6 + $0xac] sm:$0xf] }
 0x39b   :  { %v1920_v6 = vadd.f32 1.0, %v4480_v8 }
 0x39c   :  { %v4482_v11 = vpop.eup %4481 }
 0x39d   :  { %v4484_v40 = vpop.eup %4483  ;;  %v1883_v41 = vmul.f32 %v4482_v11, %v1881_v36  ;;  %4485 = vrcp.f32 %v1920_v6  ;;  %vm1888_vm0 = vweird.f32 %v4482_v11  ;;  %v1932_v13 = vand.u32 2147483648, %v1920_v6 }
 0x39e   :  { %v1902_v44 = vmul.f32 %v4484_v40, %v1900_v38  ;;  %4487 = vtanh.f32 %v1876_v27  ;;  %vm1907_vm1 = vweird.f32 %v4484_v40  ;;  %vm1889_vm4 = vmor %vm1887_vm2, %vm1888_vm0  ;;  %vm1926_vm9 = vweird.f32 %v1920_v6  ;;  %v3955_v38 = vld [vmem:[#allocation6 + $0xd0] sm:$0xf0]  ;;  %v3963_v27 = vld [vmem:[#allocation6 + $0xd8] sm:$0xf0] }
 0x39f   :  { %v1884_v49 = vsub.f32 1.0, %v1883_v41  ;;  %vm1908_vm5 = vmor %vm1906_vm3, %vm1907_vm1  ;;  %v1930_v28 = vand.u32 2147483647, %v1920_v6  ;;  %v1933_v21 = vor.u32 1.1754944e-38, %v1932_v13  ;;  %v3954_v36 = vor.u32 %v4367_v35, %v3953_v34  ;;  %v3937_v41 = vld [vmem:[#allocation6 + $0xa0] sm:$0xf] }
 0x3a0   :  { %v1903_v45 = vsub.f32 1.0, %v1902_v44  ;;  %v3958_v8 = vor.u32 %v4365_v42, %v3955_v38  ;;  %v4363_v44 = vld [vmem:[#allocation6 + $0xac] sm:$0xf0]  ;;  %v3891_v34 = vld [vmem:[#allocation6 + $0x50] sm:$0xf0] }
 0x3a1   :  { %v1885_v47 = vmul.f32 %v4482_v11, %v1884_v49  ;;  %vm1931_vm11 = vcmp.eq.f32.partialorder %v1930_v28, 8.507059e+37  ;;  %2470 = vmatpush.bf16.msrb.mxu0 %v3954_v36  ;;  %v4361_v49 = vld [vmem:[#allocation6 + $0xa4] sm:$0xf]  ;;  %v3905_v28 = vld [vmem:[#allocation6 + $0x60] sm:$0xf]  ;;  %v3890_v36 = vor.u32 %v4351_v4, %v3889_v33  ;;  %v3894_v38 = vor.u32 %v4349_v7, %v3891_v34 }
 0x3a2   :  { %v1904_v50 = vmul.f32 %v4484_v40, %v1903_v45  ;;  %2483 = vmatpush.bf16.msrb.mxu1 %v3958_v8  ;;  %v3938_v45 = vor.u32 %v4363_v44, %v3937_v41  ;;  %v3942_v48 = vor.u32 %v4361_v49, %v3939_v52  ;;  %v4350_v8 = vld [vmem:[#allocation6 + $0x4c] sm:$0xf]  ;;  %v3899_v41 = vld [vmem:[#allocation6 + $0x58] sm:$0xf0]  ;;  %v3873_v44 = vld [vmem:[#allocation6 + $0x20] sm:$0xf] }
 0x3a3   :  { %v4486_v51 = vpop.eup %4485  ;;  %v1886_v53 = vadd.f32 %v4482_v11, %v1885_v47  ;;  %v4364_v47 = vld [vmem:[#allocation6 + $0xb4] sm:$0xf0]  ;;  %v3902_v49 = vor.u32 %v4350_v8, %v3899_v41  ;;  %v4345_v52 = vld [vmem:[#allocation6 + $0x24] sm:$0xf] }
 0x3a4   :  { %v1905_v55 = vadd.f32 %v4484_v40, %v1904_v50  ;;  %v1922_v56 = vmul.f32 %v4486_v51, %v1920_v6  ;;  %v4488_v61 = vpop.eup %4487  ;;  %vm1927_vm8 = vweird.f32 %v4486_v51  ;;  %v3962_v6 = vor.u32 %v4368_v5, %v3961_v39  ;;  %v3897_v39 = vld [vmem:[#allocation6 + $0x48] sm:$0xf]  ;;  %v4352_v5 = vld [vmem:[#allocation6 + $0x54] sm:$0xf0] }
 0x3a5   :  { %v1890_v59 = vsel %vm1889_vm4, %v4482_v11, %v1886_v53  ;;  %vm1928_vm10 = vmor %vm1926_vm9, %vm1927_vm8  ;;  %v4366_v11 = vld [vmem:[#allocation6 + $0xcc] sm:$0xf]  ;;  %v3946_v50 = vor.u32 %v4364_v47, %v3945_v46  ;;  %2471 = vmatpush.bf16.msrb.mxu0 %v3938_v45  ;;  %v4347_v45 = vld [vmem:[#allocation6 + $0x2c] sm:$0xf0] }
 0x3a6   :  { %v1895_v62 = vsel %vm1892_vm6, %v1894_v54, %v1890_v59  ;;  %v1909_v63 = vsel %vm1908_vm5, %v4484_v40, %v1905_v55  ;;  %v1923_v0 = vsub.f32 1.0, %v1922_v56  ;;  %v3966_v40 = vor.u32 %v4366_v11, %v3963_v27  ;;  %2496 = vmatpush.bf16.msrb.mxu2 %v3962_v6  ;;  %2484 = vmatpush.bf16.msrb.mxu1 %v3942_v48  ;;  %v3921_v54 = vld [vmem:[#allocation6 + $0x80] sm:$0xf]  ;;  %v4359_v55 = vld [vmem:[#allocation6 + $0x8c] sm:$0xf0] }
 0x3a7   :  { %v1914_v1 = vsel %vm1911_vm7, %v1913_v58, %v1909_v63  ;;  %v1940_v2 = vmul.f32 %v4488_v61, %v1895_v62  ;;  %v4357_v56 = vld [vmem:[#allocation6 + $0x84] sm:$0xf]  ;;  %v3922_v58 = vor.u32 %v4359_v55, %v3921_v54  ;;  %v3923_v59 = vld [vmem:[#allocation6 + $0x90] sm:$0xf0]  ;;  %v4360_v61 = vld [vmem:[#allocation6 + $0x94] sm:$0xf0]  ;;  %v3874_v48 = vor.u32 %v4347_v45, %v3873_v44 }
 0x3a8   :  { %v1939_v9 = vmul.f32 %v1937_v60, %v1914_v1  ;;  %v1924_v22 = vmul.f32 %v4486_v51, %v1923_v0  ;;  %2509 = vmatpush.bf16.msrb.mxu3 %v3966_v40  ;;  %v3929_v60 = vld [vmem:[#allocation6 + $0x88] sm:$0xf]  ;;  %v3926_v62 = vor.u32 %v4357_v56, %v3923_v59  ;;  %v4358_v0 = vld [vmem:[#allocation6 + $0x8c] sm:$0xf]  ;;  %v3931_v1 = vld [vmem:[#allocation6 + $0x98] sm:$0xf0]  ;;  %v3898_v40 = vor.u32 %v4352_v5, %v3897_v39 }
 0x3a9   :  { %v3930_v63 = vor.u32 %v4360_v61, %v3929_v60  ;;  %2472 = vmatpush.bf16.msrb.mxu0 %v3922_v58  ;;  %v3875_v46 = vld [vmem:[#allocation6 + $0x30] sm:$0xf0]  ;;  %v3883_v55 = vld [vmem:[#allocation6 + $0x38] sm:$0xf0]  ;;  %v3857_v56 = vld [vmem:[#allocation6] sm:$0xf] }
 0x3aa   :  { %v4768_v3 = vadd.f32 %v1940_v2, %v1939_v9  ;;  %v1925_v10 = vadd.f32 %v4486_v51, %v1924_v22  ;;  %2497 = vmatpush.bf16.msrb.mxu2 %v3946_v50  ;;  %v3934_v22 = vor.u32 %v4358_v0, %v3931_v1  ;;  %2485 = vmatpush.bf16.msrb.mxu1 %v3926_v62  ;;  %v4343_v58 = vld [vmem:[#allocation6 + $0xc] sm:$0xf0]  ;;  %v4341_v61 = vld [vmem:[#allocation6 + $0x4] sm:$0xf]  ;;  %v3859_v62 = vld [vmem:[#allocation6 + $0x10] sm:$0xf0] }
 0x3ab   :  { %v3878_v50 = vor.u32 %v4345_v52, %v3875_v46  ;;  %v3858_v0 = vor.u32 %v4343_v58, %v3857_v56  ;;  %v3862_v1 = vor.u32 %v4341_v61, %v3859_v62  ;;  %v4403_v61 = vld [vmem:[#allocation6 + $0xec] sm:$0xf0]  ;;  %v4401_v62 = vld [vmem:[#allocation6 + $0xe4] sm:$0xf] }
 0x3ac   :  { %4489 = vtanh.f32 %v4768_v3  ;;  %v1929_v32 = vsel %vm1928_vm10, %v4486_v51, %v1925_v10  ;;  %v3947_v51 = vld [vmem:[#allocation6 + $0xb8] sm:$0xf0] }
 0x3ad   :  { %v1934_v16 = vsel %vm1931_vm11, %v1933_v21, %v1929_v32  ;;  %v3950_v53 = vor.u32 %v4362_v57, %v3947_v51  ;;  %v4355_v32 = vld [vmem:[#allocation6 + $0x6c] sm:$0xf0]  ;;  %v3881_v57 = vld [vmem:[#allocation6 + $0x28] sm:$0xf]  ;;  %v4348_v51 = vld [vmem:[#allocation6 + $0x34] sm:$0xf0] }
 0x3ae   :  { %2498 = vmatpush.bf16.msrb.mxu2 %v3930_v63  ;;  %v3906_v21 = vor.u32 %v4355_v32, %v3905_v28  ;;  %v3882_v54 = vor.u32 %v4348_v51, %v3881_v57  ;;  %v3867_v32 = vld [vmem:[#allocation6 + $0x18] sm:$0xf0] }
 0x3af   :  { %2510 = vmatpush.bf16.msrb.mxu3 %v3950_v53  ;;  %v4346_v53 = vld [vmem:[#allocation6 + $0x2c] sm:$0xf] }
 0x3b0   :  { %2473 = vmatpush.bf16.msrb.mxu0 %v3906_v21  ;;  %v3886_v60 = vor.u32 %v4346_v53, %v3883_v55 }
 0x3b2   :  { %v4490_v15 = vpop.eup %4489 }
 0x3b3   :  { %v1943_v17 = vmul.f32 %v4490_v15, %v1934_v16  ;;  %2511 = vmatpush.bf16.msrb.mxu3 %v3934_v22  ;;  %v4353_v15 = vld [vmem:[#allocation6 + $0x64] sm:$0xf]  ;;  %v3907_v16 = vld [vmem:[#allocation6 + $0x70] sm:$0xf0]  ;;  %v4342_v22 = vld [vmem:[#allocation6 + $0xc] sm:$0xf] }
 0x3b4   :  { %v3910_v19 = vor.u32 %v4353_v15, %v3907_v16  ;;  %2474 = vmatpush.bf16.msrb.mxu0 %v3890_v36 }
 0x3b5   :  { %1944 = vst [vmem:[%s4814_s4 + $0x8] sm:$0x3] %v1943_v17  ;;  %v1945_v29 = vpack.c.bf16 %v1943_v17, %v1943_v17  ;;  %v3913_v17 = vld [vmem:[#allocation6 + $0x68] sm:$0xf] }
 0x3b6   :  { %v3914_v26 = vor.u32 %v4356_v20, %v3913_v17  ;;  %2486 = vmatpush.bf16.msrb.mxu1 %v3910_v19  ;;  %v3870_v17 = vor.u32 %v4342_v22, %v3867_v32  ;;  %v4084_v32 = vld [vmem:[#allocation6 + $0xc0] sm:$0xf] }
 0x3b7   :  { %2146 = vmatmul.bf16.vlgmr.msra.gmra.mxu0 %v1945_v29  ;;  %2159 = vmatmul.bf16.vlgmr.msra.gmra.mxu1 %v1945_v29 }
 0x3b8   :  { %2172 = vmatmul.bf16.vlgmr.msra.gmra.mxu2 %v1945_v29  ;;  %2185 = vmatmul.bf16.vlgmr.msra.gmra.mxu3 %v1945_v29 }
 0x3b9   :  { %2499 = vmatpush.bf16.msrb.mxu2 %v3914_v26  ;;  %2512 = vmatpush.bf16.msrb.mxu3 %v3918_v30 }
 0x3ba   :  { %2487 = vmatpush.bf16.msrb.mxu1 %v3894_v38  ;;  %2475 = vmatpush.bf16.msrb.mxu0 %v3874_v48 }
 0x3bd   :  { %2500 = vmatpush.bf16.msrb.mxu2 %v3898_v40  ;;  %2513 = vmatpush.bf16.msrb.mxu3 %v3902_v49 }
 0x3be   :  { %2488 = vmatpush.bf16.msrb.mxu1 %v3878_v50  ;;  %2476 = vmatpush.bf16.msrb.mxu0 %v3858_v0  ;;  %v4102_v0 = vld [vmem:[#allocation6 + $0xf0] sm:$0xf0] }
 0x3c1   :  { %2501 = vmatpush.bf16.msrb.mxu2 %v3882_v54  ;;  %2514 = vmatpush.bf16.msrb.mxu3 %v3886_v60  ;;  %v4100_v60 = vld [vmem:[#allocation6 + $0xe0] sm:$0xf] }
 0x3c2   :  { %2489 = vmatpush.bf16.msrb.mxu1 %v3862_v1  ;;  %v4108_v1 = vld [vmem:[#allocation6 + $0xe8] sm:$0xf] }
 0x3c5   :  { %2515 = vmatpush.bf16.msrb.mxu3 %v3870_v17  ;;  %v4086_v17 = vld [vmem:[#allocation6 + $0xd0] sm:$0xf0] }
 0x434   :  { %v2147_v2 = vpop.f32.mrf.mxu0  ;;  %v2160_v9 = vpop.f32.mrf.mxu1 }
 0x435   :  { %v2194_v10 = vrot.slane %v2147_v2, 6  ;;  %v2195_v13 = vrot.slane %v2160_v9, 6  ;;  %v3865_v2 = vld [vmem:[#allocation6 + $0x8] sm:$0xf]  ;;  %v4344_v9 = vld [vmem:[#allocation6 + $0x14] sm:$0xf0] }
 0x436   :  { %v3866_v28 = vor.u32 %v4344_v9, %v3865_v2  ;;  %v4404_v2 = vld [vmem:[#allocation6 + $0xf4] sm:$0xf0]  ;;  %v4105_v9 = vor.u32 %v4401_v62, %v4102_v0  ;;  %v4046_v0 = vld [vmem:[#allocation6 + $0x78] sm:$0xf0] }
 0x437   :  { %v2202_v29 = vadd.f32 %v2194_v10, %v4675_v12  ;;  %v2203_v18 = vadd.f32 %v2195_v13, %v4679_v14  ;;  %v4109_v22 = vor.u32 %v4404_v2, %v4108_v1  ;;  %v4388_v62 = vld [vmem:[#allocation6 + $0x74] sm:$0xf0] }
 0x438   :  { %2502 = vmatpush.bf16.msrb.mxu2 %v3866_v28  ;;  %2813 = vmatpush.bf16.msra.mxu1 %v4105_v9 }
 0x439   :  { %v3852_v23 = vmul.f32 -1.442695, %v2202_v29  ;;  %v3853_v31 = vmul.f32 -1.442695, %v2203_v18 }
 0x43b   :  { %4491 = vpow2.f32 %v3852_v23  ;;  %v4776_v35 = vpop.f32.mrf.mxu2  ;;  %v2186_v42 = vpop.f32.mrf.mxu3 }
 0x43c   :  { %4493 = vpow2.f32 %v3853_v31  ;;  %v2197_v6 = vrot.slane %v2186_v42, 6  ;;  %v2149_v11 = vpop.f32.mrf.mxu0  ;;  %v2162_v27 = vpop.f32.mrf.mxu1  ;;  %v2196_v29 = vrot.slane %v4776_v35, 6  ;;  %2826 = vmatpush.bf16.msra.mxu2 %v4109_v22 }
 0x43e   :  { %v2205_v47 = vadd.f32 %v2197_v6, %v4685_v37  ;;  %v2204_v24 = vadd.f32 %v2196_v29, %v4689_v43  ;;  %v2265_v6 = vrot.slane %v4768_v3, 6  ;;  %v4092_v29 = vld [vmem:[#allocation6 + $0xc8] sm:$0xf] }
 0x440   :  { %v3854_v59 = vmul.f32 -1.442695, %v2205_v47 }
 0x441   :  { %v4492_v63 = vpop.eup %4491 }
 0x442   :  { %v4494_v10 = vpop.eup %4493  ;;  %v2209_v13 = vadd.f32 1.0, %v4492_v63  ;;  %4495 = vpow2.f32 %v3854_v59  ;;  %v4101_v63 = vor.u32 %v4403_v61, %v4100_v60 }
 0x443   :  { %v2228_v21 = vadd.f32 1.0, %v4494_v10  ;;  %v2175_v15 = vpop.f32.mrf.mxu2  ;;  %v2188_v16 = vpop.f32.mrf.mxu3  ;;  %v4402_v10 = vld [vmem:[#allocation6 + $0xec] sm:$0xf] }
 0x444   :  { %4497 = vrcp.f32 %v2209_v13  ;;  %v2221_v33 = vand.u32 2147483648, %v2209_v13  ;;  %v2219_v34 = vand.u32 2147483647, %v2209_v13  ;;  %vm2215_vm14 = vweird.f32 %v2209_v13  ;;  %2800 = vmatpush.bf16.msra.mxu0 %v4101_v63  ;;  %v4397_v15 = vld [vmem:[#allocation6 + $0xc4] sm:$0xf] }
 0x445   :  { %4499 = vrcp.f32 %v2228_v21  ;;  %v2240_v4 = vand.u32 2147483648, %v2228_v21  ;;  %v2238_v42 = vand.u32 2147483647, %v2228_v21  ;;  %vm2234_vm15 = vweird.f32 %v2228_v21  ;;  %v4386_v63 = vld [vmem:[#allocation6 + $0x6c] sm:$0xf] }
 0x446   :  { %v2222_v39 = vor.u32 1.1754944e-38, %v2221_v33  ;;  %vm2220_vm2 = vcmp.eq.f32.partialorder %v2219_v34, 8.507059e+37  ;;  %v4396_v34 = vld [vmem:[#allocation6 + $0xb4] sm:$0xf0]  ;;  %v4049_v2 = vor.u32 %v4386_v63, %v4046_v0 }
 0x447   :  { %v2241_v11 = vor.u32 1.1754944e-38, %v2240_v4  ;;  %vm2239_vm3 = vcmp.eq.f32.partialorder %v2238_v42, 8.507059e+37  ;;  %v4070_v4 = vld [vmem:[#allocation6 + $0xb0] sm:$0xf0] }
 0x448   :  { %v4496_v18 = vpop.eup %4495 }
 0x449   :  { %v2248_v19 = vadd.f32 1.0, %v4496_v18  ;;  %v4400_v18 = vld [vmem:[#allocation6 + $0xd4] sm:$0xf0] }
 0x44a   :  { %v4498_v20 = vpop.eup %4497 }
 0x44b   :  { %v4500_v25 = vpop.eup %4499  ;;  %v2211_v26 = vmul.f32 %v4498_v20, %v2209_v13  ;;  %4501 = vrcp.f32 %v2248_v19  ;;  %vm2216_vm12 = vweird.f32 %v4498_v20  ;;  %v2260_v3 = vand.u32 2147483648, %v2248_v19  ;;  %v4110_v13 = vld [vmem:[#allocation6 + $0xf8] sm:$0xf0] }
 0x44c   :  { %v2230_v30 = vmul.f32 %v4500_v25, %v2228_v21  ;;  %4503 = vtanh.f32 %v2204_v24  ;;  %vm2235_vm13 = vweird.f32 %v4500_v25  ;;  %vm2217_vm0 = vmor %vm2215_vm14, %vm2216_vm12  ;;  %vm2254_vm5 = vweird.f32 %v2248_v19  ;;  %v4399_v21 = vld [vmem:[#allocation6 + $0xcc] sm:$0xf0]  ;;  %v4398_v24 = vld [vmem:[#allocation6 + $0xcc] sm:$0xf] }
 0x44d   :  { %v2212_v23 = vsub.f32 1.0, %v2211_v26  ;;  %vm2236_vm1 = vmor %vm2234_vm15, %vm2235_vm13  ;;  %v2258_v57 = vand.u32 2147483647, %v2248_v19  ;;  %v2261_v53 = vor.u32 1.1754944e-38, %v2260_v3  ;;  %v4113_v28 = vor.u32 %v4402_v10, %v4110_v13  ;;  %v4020_v10 = vld [vmem:[#allocation6 + $0x40] sm:$0xf] }
 0x44e   :  { %v2231_v31 = vsub.f32 1.0, %v2230_v30  ;;  %v4085_v16 = vor.u32 %v4399_v21, %v4084_v32  ;;  %v4068_v30 = vld [vmem:[#allocation6 + $0xa0] sm:$0xf]  ;;  %v4383_v13 = vld [vmem:[#allocation6 + $0x4c] sm:$0xf0] }
 0x44f   :  { %v2213_v7 = vmul.f32 %v4498_v20, %v2212_v23  ;;  %vm2259_vm7 = vcmp.eq.f32.partialorder %v2258_v57, 8.507059e+37  ;;  %2839 = vmatpush.bf16.msra.mxu3 %v4113_v28  ;;  %v4395_v23 = vld [vmem:[#allocation6 + $0xac] sm:$0xf0]  ;;  %v4381_v28 = vld [vmem:[#allocation6 + $0x44] sm:$0xf] }
 0x450   :  { %v2232_v35 = vmul.f32 %v4500_v25, %v2231_v31  ;;  %2801 = vmatpush.bf16.msra.mxu0 %v4085_v16  ;;  %v4393_v31 = vld [vmem:[#allocation6 + $0xa4] sm:$0xf]  ;;  %v4069_v33 = vor.u32 %v4395_v23, %v4068_v30  ;;  %v4022_v32 = vld [vmem:[#allocation6 + $0x50] sm:$0xf0]  ;;  %v4021_v16 = vor.u32 %v4383_v13, %v4020_v10  ;;  %v4030_v30 = vld [vmem:[#allocation6 + $0x58] sm:$0xf0] }
 0x451   :  { %v4502_v36 = vpop.eup %4501  ;;  %v2214_v38 = vadd.f32 %v4498_v20, %v2213_v7  ;;  %v4076_v7 = vld [vmem:[#allocation6 + $0xa8] sm:$0xf]  ;;  %v4004_v23 = vld [vmem:[#allocation6 + $0x20] sm:$0xf] }
 0x452   :  { %v2233_v5 = vadd.f32 %v4500_v25, %v2232_v35  ;;  %v2250_v8 = vmul.f32 %v4502_v36, %v2248_v19  ;;  %v4504_v40 = vpop.eup %4503  ;;  %vm2255_vm4 = vweird.f32 %v4502_v36  ;;  %v4089_v19 = vor.u32 %v4397_v15, %v4086_v17 }
 0x453   :  { %v2218_v27 = vsel %vm2217_vm0, %v4498_v20, %v2214_v38  ;;  %vm2256_vm6 = vmor %vm2254_vm5, %vm2255_vm4  ;;  %v4093_v20 = vor.u32 %v4400_v18, %v4092_v29  ;;  %v4073_v35 = vor.u32 %v4393_v31, %v4070_v4  ;;  %v4077_v42 = vor.u32 %v4396_v34, %v4076_v7  ;;  %v4078_v38 = vld [vmem:[#allocation6 + $0xb8] sm:$0xf0]  ;;  %v4028_v29 = vld [vmem:[#allocation6 + $0x48] sm:$0xf] }
 0x454   :  { %v2223_v41 = vsel %vm2220_vm2, %v2222_v39, %v2218_v27  ;;  %v2237_v44 = vsel %vm2236_vm1, %v4500_v25, %v2233_v5  ;;  %v2251_v49 = vsub.f32 1.0, %v2250_v8  ;;  %v4094_v25 = vld [vmem:[#allocation6 + $0xd8] sm:$0xf0]  ;;  %2814 = vmatpush.bf16.msra.mxu1 %v4089_v19  ;;  %2802 = vmatpush.bf16.msra.mxu0 %v4069_v33  ;;  %v4052_v5 = vld [vmem:[#allocation6 + $0x80] sm:$0xf]  ;;  %v4025_v17 = vor.u32 %v4381_v28, %v4022_v32 }
 0x455   :  { %v2242_v45 = vsel %vm2239_vm3, %v2241_v11, %v2237_v44  ;;  %v2268_v52 = vmul.f32 %v4504_v40, %v2223_v41  ;;  %v4097_v26 = vor.u32 %v4398_v24, %v4094_v25  ;;  %2827 = vmatpush.bf16.msra.mxu2 %v4093_v20  ;;  %v4391_v8 = vld [vmem:[#allocation6 + $0x8c] sm:$0xf0]  ;;  %v4054_v27 = vld [vmem:[#allocation6 + $0x90] sm:$0xf0]  ;;  %v4060_v40 = vld [vmem:[#allocation6 + $0x88] sm:$0xf] }
 0x456   :  { %v2267_v46 = vmul.f32 %v2265_v6, %v2242_v45  ;;  %v2252_v47 = vmul.f32 %v4502_v36, %v2251_v49  ;;  %v4389_v6 = vld [vmem:[#allocation6 + $0x84] sm:$0xf]  ;;  %v4053_v11 = vor.u32 %v4391_v8, %v4052_v5  ;;  %v4392_v41 = vld [vmem:[#allocation6 + $0x94] sm:$0xf0]  ;;  %v4390_v45 = vld [vmem:[#allocation6 + $0x8c] sm:$0xf] }
 0x457   :  { %2840 = vmatpush.bf16.msra.mxu3 %v4097_v26  ;;  %v4057_v44 = vor.u32 %v4389_v6, %v4054_v27  ;;  %v4061_v49 = vor.u32 %v4392_v41, %v4060_v40  ;;  %v4384_v18 = vld [vmem:[#allocation6 + $0x54] sm:$0xf0]  ;;  %v4382_v19 = vld [vmem:[#allocation6 + $0x4c] sm:$0xf]  ;;  %v4379_v33 = vld [vmem:[#allocation6 + $0x2c] sm:$0xf0] }
 0x458   :  { %v4782_v48 = vadd.f32 %v2268_v52, %v2267_v46  ;;  %v2253_v50 = vadd.f32 %v4502_v36, %v2252_v47  ;;  %2815 = vmatpush.bf16.msra.mxu1 %v4073_v35  ;;  %v4062_v52 = vld [vmem:[#allocation6 + $0x98] sm:$0xf0]  ;;  %2803 = vmatpush.bf16.msra.mxu0 %v4053_v11  ;;  %v4029_v26 = vor.u32 %v4384_v18, %v4028_v29  ;;  %v4377_v4 = vld [vmem:[#allocation6 + $0x24] sm:$0xf]  ;;  %v4006_v7 = vld [vmem:[#allocation6 + $0x30] sm:$0xf0] }
 0x459   :  { %2828 = vmatpush.bf16.msra.mxu2 %v4077_v42  ;;  %v4033_v31 = vor.u32 %v4382_v19, %v4030_v30  ;;  %v4005_v35 = vor.u32 %v4379_v33, %v4004_v23  ;;  %v4009_v42 = vor.u32 %v4377_v4, %v4006_v7  ;;  %v4014_v8 = vld [vmem:[#allocation6 + $0x38] sm:$0xf0]  ;;  %v3988_v6 = vld [vmem:[#allocation6] sm:$0xf]  ;;  %v4375_v11 = vld [vmem:[#allocation6 + $0xc] sm:$0xf0] }
 0x45a   :  { %4505 = vtanh.f32 %v4782_v48  ;;  %v2257_v51 = vsel %vm2256_vm6, %v4502_v36, %v2253_v50  ;;  %v4394_v36 = vld [vmem:[#allocation6 + $0xac] sm:$0xf]  ;;  %v4065_v50 = vor.u32 %v4390_v45, %v4062_v52  ;;  %v4373_v41 = vld [vmem:[#allocation6 + $0x4] sm:$0xf]  ;;  %v3989_v45 = vor.u32 %v4375_v11, %v3988_v6 }
 0x45b   :  { %v2262_v55 = vsel %vm2259_vm7, %v2261_v53, %v2257_v51  ;;  %v4081_v39 = vor.u32 %v4394_v36, %v4078_v38  ;;  %v4036_v51 = vld [vmem:[#allocation6 + $0x60] sm:$0xf]  ;;  %v4387_v53 = vld [vmem:[#allocation6 + $0x6c] sm:$0xf0]  ;;  %v4012_v36 = vld [vmem:[#allocation6 + $0x28] sm:$0xf] }
 0x45c   :  { %2816 = vmatpush.bf16.msra.mxu1 %v4057_v44  ;;  %v4380_v38 = vld [vmem:[#allocation6 + $0x34] sm:$0xf0]  ;;  %v3990_v44 = vld [vmem:[#allocation6 + $0x10] sm:$0xf0] }
 0x45d   :  { %2841 = vmatpush.bf16.msra.mxu3 %v4081_v39  ;;  %2829 = vmatpush.bf16.msra.mxu2 %v4061_v49  ;;  %v4378_v39 = vld [vmem:[#allocation6 + $0x2c] sm:$0xf]  ;;  %v4013_v5 = vor.u32 %v4380_v38, %v4012_v36  ;;  %v3993_v52 = vor.u32 %v4373_v41, %v3990_v44 }
 0x45e   :  { %v4017_v40 = vor.u32 %v4378_v39, %v4014_v8 }
 0x460   :  { %v4506_v54 = vpop.eup %4505 }
 0x461   :  { %v2271_v56 = vmul.f32 %v4506_v54, %v2262_v55  ;;  %2842 = vmatpush.bf16.msra.mxu3 %v4065_v50  ;;  %v4037_v54 = vor.u32 %v4387_v53, %v4036_v51  ;;  %v4385_v55 = vld [vmem:[#allocation6 + $0x64] sm:$0xf]  ;;  %v4374_v50 = vld [vmem:[#allocation6 + $0xc] sm:$0xf]  ;;  %v3998_v53 = vld [vmem:[#allocation6 + $0x18] sm:$0xf0] }
 0x463   :  { %2272 = vst [vmem:[%s4814_s4 + $0x8] sm:$0xc] %v2271_v56  ;;  %v2273_v58 = vpack.c.bf16 %v2271_v56, %v2271_v56  ;;  %v4038_v56 = vld [vmem:[#allocation6 + $0x70] sm:$0xf0]  ;;  %2804 = vmatpush.bf16.msra.mxu0 %v4037_v54 }
 0x464   :  { %v4041_v61 = vor.u32 %v4385_v55, %v4038_v56 }
 0x465   :  { %v2307_v59 = vrot.slane %v2273_v58, 1  ;;  %v4044_v58 = vld [vmem:[#allocation6 + $0x68] sm:$0xf]  ;;  %2843 = vmatpush.bf16.msra.mxu3 %v4049_v2 }
 0x466   :  { %v4045_v1 = vor.u32 %v4388_v62, %v4044_v58  ;;  %2817 = vmatpush.bf16.msra.mxu1 %v4041_v61  ;;  %v4001_v58 = vor.u32 %v4374_v50, %v3998_v53 }
 0x467   :  { %2477 = vmatmul.bf16.vlgmr.msrb.gmra.mxu0 %v2307_v59  ;;  %2490 = vmatmul.bf16.vlgmr.msrb.gmra.mxu1 %v2307_v59 }
 0x468   :  { %2503 = vmatmul.bf16.vlgmr.msrb.gmra.mxu2 %v2307_v59  ;;  %2516 = vmatmul.bf16.vlgmr.msrb.gmra.mxu3 %v2307_v59 }
 0x469   :  { %2830 = vmatpush.bf16.msra.mxu2 %v4045_v1  ;;  %2805 = vmatpush.bf16.msra.mxu0 %v4021_v16 }
 0x46a   :  { %2818 = vmatpush.bf16.msra.mxu1 %v4025_v17  ;;  %2844 = vmatpush.bf16.msra.mxu3 %v4033_v31 }
 0x46d   :  { %2831 = vmatpush.bf16.msra.mxu2 %v4029_v26  ;;  %2806 = vmatpush.bf16.msra.mxu0 %v4005_v35 }
 0x46e   :  { %2819 = vmatpush.bf16.msra.mxu1 %v4009_v42  ;;  %2845 = vmatpush.bf16.msra.mxu3 %v4017_v40 }
 0x471   :  { %2832 = vmatpush.bf16.msra.mxu2 %v4013_v5  ;;  %2807 = vmatpush.bf16.msra.mxu0 %v3989_v45 }
 0x472   :  { %2820 = vmatpush.bf16.msra.mxu1 %v3993_v52  ;;  %2846 = vmatpush.bf16.msra.mxu3 %v4001_v58 }
 0x4e4   :  { %v2478_v46 = vpop.f32.mrf.mxu0  ;;  %v2491_v47 = vpop.f32.mrf.mxu1 }
 0x4e5   :  { %v2525_v3 = vrot.slane %v2478_v46, 4  ;;  %v2526_v57 = vrot.slane %v2491_v47, 4  ;;  %v3996_v46 = vld [vmem:[#allocation6 + $0x8] sm:$0xf]  ;;  %v4376_v47 = vld [vmem:[#allocation6 + $0x14] sm:$0xf0] }
 0x4e6   :  { %v3997_v51 = vor.u32 %v4376_v47, %v3996_v46 }
 0x4e7   :  { %v2533_v59 = vadd.f32 %v2525_v3, %v4675_v12  ;;  %v2534_v60 = vadd.f32 %v2526_v57, %v4679_v14 }
 0x4e8   :  { %2833 = vmatpush.bf16.msra.mxu2 %v3997_v51 }
 0x4e9   :  { %v3983_v9 = vmul.f32 -1.442695, %v2533_v59  ;;  %v3984_v22 = vmul.f32 -1.442695, %v2534_v60 }
 0x4eb   :  { %4507 = vpow2.f32 %v3983_v9  ;;  %v4790_v21 = vpop.f32.mrf.mxu2  ;;  %v2517_v15 = vpop.f32.mrf.mxu3 }
 0x4ec   :  { %4509 = vpow2.f32 %v3984_v22  ;;  %v2528_v20 = vrot.slane %v2517_v15, 4  ;;  %v2480_v24 = vpop.f32.mrf.mxu0  ;;  %v2493_v25 = vpop.f32.mrf.mxu1  ;;  %v2527_v59 = vrot.slane %v4790_v21, 4 }
 0x4ee   :  { %v2536_v34 = vadd.f32 %v2528_v20, %v4685_v37  ;;  %v2535_v63 = vadd.f32 %v2527_v59, %v4689_v43  ;;  %v2596_v20 = vrot.slane %v4782_v48, 6 }
 0x4f0   :  { %v3985_v27 = vmul.f32 -1.442695, %v2536_v34 }
 0x4f1   :  { %v4508_v49 = vpop.eup %4507 }
 0x4f2   :  { %v4510_v3 = vpop.eup %4509  ;;  %v2540_v57 = vadd.f32 1.0, %v4508_v49  ;;  %4511 = vpow2.f32 %v3985_v27 }
 0x4f3   :  { %v2559_v54 = vadd.f32 1.0, %v4510_v3  ;;  %v2506_v55 = vpop.f32.mrf.mxu2  ;;  %v2519_v56 = vpop.f32.mrf.mxu3 }
 0x4f4   :  { %4513 = vrcp.f32 %v2540_v57  ;;  %v2552_v10 = vand.u32 2147483648, %v2540_v57  ;;  %v2550_v32 = vand.u32 2147483647, %v2540_v57  ;;  %vm2546_vm10 = vweird.f32 %v2540_v57 }
 0x4f5   :  { %4515 = vrcp.f32 %v2559_v54  ;;  %v2571_v13 = vand.u32 2147483648, %v2559_v54  ;;  %v2569_v15 = vand.u32 2147483647, %v2559_v54  ;;  %vm2565_vm11 = vweird.f32 %v2559_v54 }
 0x4f6   :  { %v2553_v29 = vor.u32 1.1754944e-38, %v2552_v10  ;;  %vm2551_vm14 = vcmp.eq.f32.partialorder %v2550_v32, 8.507059e+37 }
 0x4f7   :  { %v2572_v24 = vor.u32 1.1754944e-38, %v2571_v13  ;;  %vm2570_vm15 = vcmp.eq.f32.partialorder %v2569_v15, 8.507059e+37 }
 0x4f8   :  { %v4512_v60 = vpop.eup %4511 }
 0x4f9   :  { %v2579_v61 = vadd.f32 1.0, %v4512_v60 }
 0x4fa   :  { %v4514_v62 = vpop.eup %4513 }
 0x4fb   :  { %v4516_v0 = vpop.eup %4515  ;;  %v2542_v1 = vmul.f32 %v4514_v62, %v2540_v57  ;;  %4517 = vrcp.f32 %v2579_v61  ;;  %vm2547_vm8 = vweird.f32 %v4514_v62  ;;  %v2591_v48 = vand.u32 2147483648, %v2579_v61 }
 0x4fc   :  { %v2561_v2 = vmul.f32 %v4516_v0, %v2559_v54  ;;  %4519 = vtanh.f32 %v2535_v63  ;;  %vm2566_vm9 = vweird.f32 %v4516_v0  ;;  %vm2548_vm12 = vmor %vm2546_vm10, %vm2547_vm8  ;;  %vm2585_vm1 = vweird.f32 %v2579_v61 }
 0x4fd   :  { %v2543_v9 = vsub.f32 1.0, %v2542_v1  ;;  %vm2567_vm13 = vmor %vm2565_vm11, %vm2566_vm9  ;;  %v2589_v36 = vand.u32 2147483647, %v2579_v61  ;;  %v2592_v39 = vor.u32 1.1754944e-38, %v2591_v48 }
 0x4fe   :  { %v2562_v22 = vsub.f32 1.0, %v2561_v2 }
 0x4ff   :  { %v2544_v28 = vmul.f32 %v4514_v62, %v2543_v9  ;;  %vm2590_vm3 = vcmp.eq.f32.partialorder %v2589_v36, 8.507059e+37 }
 0x500   :  { %v2563_v21 = vmul.f32 %v4516_v0, %v2562_v22 }
 0x501   :  { %v4518_v16 = vpop.eup %4517  ;;  %v2545_v17 = vadd.f32 %v4514_v62, %v2544_v28 }
 0x502   :  { %v2564_v18 = vadd.f32 %v4516_v0, %v2563_v21  ;;  %v2581_v19 = vmul.f32 %v4518_v16, %v2579_v61  ;;  %v4520_v26 = vpop.eup %4519  ;;  %vm2586_vm0 = vweird.f32 %v4518_v16 }
 0x503   :  { %v2549_v25 = vsel %vm2548_vm12, %v4514_v62, %v2545_v17  ;;  %vm2587_vm2 = vmor %vm2585_vm1, %vm2586_vm0 }
 0x504   :  { %v2554_v30 = vsel %vm2551_vm14, %v2553_v29, %v2549_v25  ;;  %v2568_v23 = vsel %vm2567_vm13, %v4516_v0, %v2564_v18  ;;  %v2582_v31 = vsub.f32 1.0, %v2581_v19 }
 0x505   :  { %v2573_v33 = vsel %vm2570_vm15, %v2572_v24, %v2568_v23  ;;  %v2599_v4 = vmul.f32 %v4520_v26, %v2554_v30 }
 0x506   :  { %v2598_v7 = vmul.f32 %v2596_v20, %v2573_v33  ;;  %v2583_v34 = vmul.f32 %v4518_v16, %v2582_v31 }
 0x508   :  { %v4796_v35 = vadd.f32 %v2599_v4, %v2598_v7  ;;  %v2584_v42 = vadd.f32 %v4518_v16, %v2583_v34 }
 0x50a   :  { %4521 = vtanh.f32 %v4796_v35  ;;  %v2588_v38 = vsel %vm2587_vm2, %v4518_v16, %v2584_v42  ;;  %v2927_v20 = vrot.slane %v4796_v35, 6 }
 0x50b   :  { %v2593_v8 = vsel %vm2590_vm3, %v2592_v39, %v2588_v38 }
 0x510   :  { %v4522_v5 = vpop.eup %4521 }
 0x511   :  { %v2602_v6 = vmul.f32 %v4522_v5, %v2593_v8 }
 0x513   :  { %2603 = vst [vmem:[%s4814_s4 + $0x8] sm:$0x30] %v2602_v6  ;;  %v2604_v11 = vpack.c.bf16 %v2602_v6, %v2602_v6 }
 0x515   :  { %v2638_v27 = vrot.slane %v2604_v11, 2 }
 0x517   :  { %2808 = vmatmul.bf16.vlgmr.msra.gmra.mxu0 %v2638_v27  ;;  %2821 = vmatmul.bf16.vlgmr.msra.gmra.mxu1 %v2638_v27 }
 0x518   :  { %2834 = vmatmul.bf16.vlgmr.msra.gmra.mxu2 %v2638_v27  ;;  %2847 = vmatmul.bf16.vlgmr.msra.gmra.mxu3 %v2638_v27 }
 0x594   :  { %v2809_v40 = vpop.f32.mrf.mxu0  ;;  %v2822_v41 = vpop.f32.mrf.mxu1 }
 0x595   :  { %v2856_v44 = vrot.slane %v2809_v40, 2  ;;  %v2857_v49 = vrot.slane %v2822_v41, 2 }
 0x597   :  { %v2864_v45 = vadd.f32 %v2856_v44, %v4675_v12  ;;  %v2865_v52 = vadd.f32 %v2857_v49, %v4679_v14 }
 0x599   :  { %v4114_v46 = vmul.f32 -1.442695, %v2864_v45  ;;  %v4115_v47 = vmul.f32 -1.442695, %v2865_v52 }
 0x59b   :  { %4523 = vpow2.f32 %v4114_v46  ;;  %v2835_v50 = vpop.f32.mrf.mxu2  ;;  %v2848_v3 = vpop.f32.mrf.mxu3 }
 0x59c   :  { %4525 = vpow2.f32 %v4115_v47  ;;  %v2859_v57 = vrot.slane %v2848_v3, 2  ;;  %v2811_v51 = vpop.f32.mrf.mxu0  ;;  %v2824_v53 = vpop.f32.mrf.mxu1  ;;  %v2858_v14 = vrot.slane %v2835_v50, 2 }
 0x59e   :  { %v2867_v54 = vadd.f32 %v2859_v57, %v4685_v37  ;;  %v2866_v1 = vadd.f32 %v2858_v14, %v4689_v43 }
 0x5a0   :  { %v4116_v55 = vmul.f32 -1.442695, %v2867_v54 }
 0x5a1   :  { %v4524_v56 = vpop.eup %4523 }
 0x5a2   :  { %v4526_v58 = vpop.eup %4525  ;;  %v2871_v59 = vadd.f32 1.0, %v4524_v56  ;;  %4527 = vpow2.f32 %v4116_v55 }
 0x5a3   :  { %v2890_v60 = vadd.f32 1.0, %v4526_v58  ;;  %v2837_v12 = vpop.f32.mrf.mxu2  ;;  %v2850_v61 = vpop.f32.mrf.mxu3 }
 0x5a4   :  { %4529 = vrcp.f32 %v2871_v59  ;;  %v2883_v13 = vand.u32 2147483648, %v2871_v59  ;;  %v2881_v21 = vand.u32 2147483647, %v2871_v59  ;;  %vm2877_vm6 = vweird.f32 %v2871_v59 }
 0x5a5   :  { %4531 = vrcp.f32 %v2890_v60  ;;  %v2902_v28 = vand.u32 2147483648, %v2890_v60  ;;  %v2900_v16 = vand.u32 2147483647, %v2890_v60  ;;  %vm2896_vm7 = vweird.f32 %v2890_v60 }
 0x5a6   :  { %v2884_v43 = vor.u32 1.1754944e-38, %v2883_v13  ;;  %vm2882_vm10 = vcmp.eq.f32.partialorder %v2881_v21, 8.507059e+37 }
 0x5a7   :  { %v2903_v24 = vor.u32 1.1754944e-38, %v2902_v28  ;;  %vm2901_vm11 = vcmp.eq.f32.partialorder %v2900_v16, 8.507059e+37 }
 0x5a8   :  { %v4528_v62 = vpop.eup %4527 }
 0x5a9   :  { %v2910_v63 = vadd.f32 1.0, %v4528_v62 }
 0x5aa   :  { %v4530_v0 = vpop.eup %4529 }
 0x5ab   :  { %v4532_v2 = vpop.eup %4531  ;;  %v2873_v9 = vmul.f32 %v4530_v0, %v2871_v59  ;;  %4533 = vrcp.f32 %v2910_v63  ;;  %vm2878_vm4 = vweird.f32 %v4530_v0  ;;  %v2922_v36 = vand.u32 2147483648, %v2910_v63 }
 0x5ac   :  { %v2892_v37 = vmul.f32 %v4532_v2, %v2890_v60  ;;  %4535 = vtanh.f32 %v2866_v1  ;;  %vm2897_vm5 = vweird.f32 %v4532_v2  ;;  %vm2879_vm8 = vmor %vm2877_vm6, %vm2878_vm4  ;;  %vm2916_vm13 = vweird.f32 %v2910_v63 }
 0x5ad   :  { %v2874_v22 = vsub.f32 1.0, %v2873_v9  ;;  %vm2898_vm9 = vmor %vm2896_vm7, %vm2897_vm5  ;;  %v2920_v35 = vand.u32 2147483647, %v2910_v63  ;;  %v2923_v39 = vor.u32 1.1754944e-38, %v2922_v36 }
 0x5ae   :  { %v2893_v10 = vsub.f32 1.0, %v2892_v37 }
 0x5af   :  { %v2875_v32 = vmul.f32 %v4530_v0, %v2874_v22  ;;  %vm2921_vm15 = vcmp.eq.f32.partialorder %v2920_v35, 8.507059e+37 }
 0x5b0   :  { %v2894_v15 = vmul.f32 %v4532_v2, %v2893_v10 }
 0x5b1   :  { %v4534_v17 = vpop.eup %4533  ;;  %v2876_v29 = vadd.f32 %v4530_v0, %v2875_v32 }
 0x5b2   :  { %v2895_v18 = vadd.f32 %v4532_v2, %v2894_v15  ;;  %v2912_v19 = vmul.f32 %v4534_v17, %v2910_v63  ;;  %v4536_v26 = vpop.eup %4535  ;;  %vm2917_vm12 = vweird.f32 %v4534_v17 }
 0x5b3   :  { %v2880_v25 = vsel %vm2879_vm8, %v4530_v0, %v2876_v29  ;;  %vm2918_vm14 = vmor %vm2916_vm13, %vm2917_vm12 }
 0x5b4   :  { %v2885_v30 = vsel %vm2882_vm10, %v2884_v43, %v2880_v25  ;;  %v2899_v23 = vsel %vm2898_vm9, %v4532_v2, %v2895_v18  ;;  %v2913_v31 = vsub.f32 1.0, %v2912_v19 }
 0x5b5   :  { %v2904_v33 = vsel %vm2901_vm11, %v2903_v24, %v2899_v23  ;;  %v2930_v4 = vmul.f32 %v4536_v26, %v2885_v30 }
 0x5b6   :  { %v2929_v7 = vmul.f32 %v2927_v20, %v2904_v33  ;;  %v2914_v34 = vmul.f32 %v4534_v17, %v2913_v31 }
 0x5b8   :  { %v2931_v42 = vadd.f32 %v2930_v4, %v2929_v7  ;;  %v2915_v48 = vadd.f32 %v4534_v17, %v2914_v34 }
 0x5ba   :  { %4537 = vtanh.f32 %v2931_v42  ;;  %v2919_v38 = vsel %vm2918_vm14, %v4534_v17, %v2915_v48 }
 0x5bb   :  { %v2924_v8 = vsel %vm2921_vm15, %v2923_v39, %v2919_v38 }
 0x5c0   :  { %v4538_v5 = vpop.eup %4537 }
 0x5c1   :  { %v2933_v6 = vmul.f32 %v4538_v5, %v2924_v8 }
 0x5c3   :  { %2934 = vst [vmem:[%s4814_s4 + $0x8] sm:$0xc0] %v2933_v6 }
 0x5c4   :  { %2939 = vsyncpa [#allocation3], 1 }
 0x5c5   :  { %2940 = vsyncpa [#allocation5], 1 }

</bundles_post_ra>
